<compile_context>
chip_gen: v6e
topology: v6e:2x2x1
jax: 0.10.0
libtpu: 0.0.40
codegen_flags: <defaults>
</compile_context>

<pallas_src>
import functools

import numpy as np
import jax
import jax.numpy as jnp
from jax.experimental import pallas as pl
from jax.experimental.pallas import tpu as pltpu

EPS = 1e-5      # nn.InstanceNorm2d default eps
LANE = 128


def _round_up(x, m):
    return ((x + m - 1) // m) * m


# ----------------------------- Pallas kernel -----------------------------

def _conv_fused_kernel(cols_ref, w_ref, b_ref, *rest, norm, relu, residual):
    """Fused per-sample conv (as matmul) + bias + InstanceNorm [+ReLU] [+res].

    cols_ref: (1, HW, K)  bf16  im2col patches of one sample
    w_ref   : (K,  N)     bf16  weight matrix (same block for every grid step)
    b_ref   : (1,  N)     f32   bias
    r_ref   : (1, HW, N)  f32   optional residual (added after IN)
    o_ref   : (1, HW, N)  f32
    """
    if residual:
        r_ref, o_ref = rest
    else:
        (o_ref,) = rest

    # MXU matmul with f32 accumulation.
    acc = jnp.dot(cols_ref[0], w_ref[...], preferred_element_type=jnp.float32)
    acc = acc + b_ref[...]                              # (1, N) broadcast

    if norm:
        # InstanceNorm2d (affine=False): per-sample, per-channel stats over HW.
        # HW sits on sublanes (XLU reduction), C on lanes; rsqrt goes to EUP.
        mean = jnp.mean(acc, axis=0, keepdims=True)
        xc = acc - mean
        var = jnp.mean(xc * xc, axis=0, keepdims=True)  # biased variance
        acc = xc * jax.lax.rsqrt(var + EPS)
    if relu:
        acc = jnp.maximum(acc, 0.0)
    if residual:
        acc = acc + r_ref[0]

    o_ref[0] = acc


def _fused_conv_call(cols, wmat, bias, residual=None, *, norm, relu):
    """cols: (N, HW, K) bf16; wmat: (K, Cp) bf16; bias: (1, Cp) f32;
       residual: optional (N, HW, Cp) f32.  Returns (N, HW, Cp) f32."""
    N, HW, K = cols.shape
    Cp = wmat.shape[1]

    in_specs = [
        pl.BlockSpec((1, HW, K), lambda n: (n, 0, 0)),
        pl.BlockSpec((K, Cp), lambda n: (0, 0)),
        pl.BlockSpec((1, Cp), lambda n: (0, 0)),
    ]
    args = [cols, wmat, bias]
    if residual is not None:
        in_specs.append(pl.BlockSpec((1, HW, Cp), lambda n: (n, 0, 0)))
        args.append(residual)

    kernel = functools.partial(_conv_fused_kernel, norm=norm, relu=relu,
                               residual=residual is not None)
    return pl.pallas_call(
        kernel,
        out_shape=jax.ShapeDtypeStruct((N, HW, Cp), jnp.float32),
        grid_spec=pltpu.PrefetchScalarGridSpec(
            num_scalar_prefetch=0,
            grid=(N,),
            in_specs=in_specs,
            out_specs=pl.BlockSpec((1, HW, Cp), lambda n: (n, 0, 0))),
        compiler_params=pltpu.CompilerParams(
            dimension_semantics=("parallel",)),
    )(*args)


# ----------------------------- JAX glue (conv) -----------------------------

def _im2col(x, kh, kw, stride):
    # x: NHWC -> (N, Ho*Wo, kh*kw*C), K ordering = (kh, kw, C).
    N, H, W, C = x.shape
    Ho = (H - kh) // stride + 1
    Wo = (W - kw) // stride + 1
    cols = []
    for i in range(kh):
        for j in range(kw):
            cols.append(x[:, i:i + stride * Ho:stride,
                          j:j + stride * Wo:stride, :])
    cols = jnp.stack(cols, axis=3)                    # (N, Ho, Wo, kh*kw, C)
    return cols.reshape(N, Ho * Wo, kh * kw * C), Ho, Wo


def conv2d_fused(x, w, b, *, stride=1, pad=0, pad_mode="zero",
                 norm=True, relu=True, residual=None):
    """x: NHWC f32 (channel dim may carry zero-padding past the weight's Cin).
       w: (Cout, Cin, kh, kw) (PyTorch layout); b: (Cout,).
       Returns NHWC f32 with Cout zero-padded up to a multiple of 128."""
    if pad > 0:
        mode = "reflect" if pad_mode == "reflect" else "constant"
        x = jnp.pad(x, ((0, 0), (pad, pad), (pad, pad), (0, 0)), mode=mode)

    N, _, _, Cx = x.shape
    Cout, Cin, kh, kw = w.shape
    cols, Ho, Wo = _im2col(x, kh, kw, stride)

    K0 = kh * kw * Cx
    Kp = _round_up(K0, LANE)
    Cp = _round_up(Cout, LANE)

    # Weight -> (kh, kw, Cin, Cout); pad Cin to the activation's (padded)
    # channel count with zero rows, flatten to (K0, Cout), pad K and Cout.
    wmat = jnp.transpose(w, (2, 3, 1, 0))
    if Cx > Cin:
        wmat = jnp.pad(wmat, ((0, 0), (0, 0), (0, Cx - Cin), (0, 0)))
    wmat = wmat.reshape(K0, Cout)
    wmat = jnp.pad(wmat, ((0, Kp - K0), (0, Cp - Cout)))
    if Kp > K0:
        cols = jnp.pad(cols, ((0, 0), (0, 0), (0, Kp - K0)))
    bias = jnp.pad(b, (0, Cp - Cout)).reshape(1, Cp).astype(jnp.float32)

    # bf16 for the MXU / HBM traffic; accumulation & IN stay f32 in-kernel.
    cols = cols.astype(jnp.bfloat16)
    wmat = wmat.astype(jnp.bfloat16)

    res = None
    if residual is not None:
        res = residual.reshape(N, Ho * Wo, Cp).astype(jnp.float32)

    out = _fused_conv_call(cols, wmat, bias, res, norm=norm, relu=relu)
    return out.reshape(N, Ho, Wo, Cp)


def upsample2x_nearest(x):
    # nn.Upsample(scale_factor=2), default mode='nearest'
    return jnp.repeat(jnp.repeat(x, 2, axis=1), 2, axis=2)


# ----------------------------- Model -----------------------------

def init_params(key, in_channels=2, out_channels=3, num_residual_blocks=9):
    n_convs = 6 + 2 * num_residual_blocks
    keys = iter(jax.random.split(key, n_convs))

    def conv_init(cin, cout, k):
        k1, k2 = jax.random.split(next(keys))
        bound = 1.0 / np.sqrt(cin * k * k)   # PyTorch default conv init bound
        w = jax.random.uniform(k1, (cout, cin, k, k), jnp.float32, -bound, bound)
        b = jax.random.uniform(k2, (cout,), jnp.float32, -bound, bound)
        return w, b

    p = {}
    p["init"] = conv_init(in_channels, 64, 7)
    p["down"] = [conv_init(64, 128, 3), conv_init(128, 256, 3)]
    p["res"] = [(conv_init(256, 256, 3), conv_init(256, 256, 3))
                for _ in range(num_residual_blocks)]
    p["up"] = [conv_init(256, 128, 3), conv_init(128, 64, 3)]
    p["out"] = conv_init(64, out_channels, 3)
    return p


def resnet_forward(x_nchw, p, in_channels=2, out_channels=3):
    x = jnp.transpose(x_nchw, (0, 2, 3, 1)).astype(jnp.float32)   # -> NHWC

    # ReflectionPad2d(in_channels), Conv(in, 64, 7), IN, ReLU  (fused)
    w, b = p["init"]
    x = conv2d_fused(x, w, b, stride=1, pad=in_channels, pad_mode="reflect",
                     norm=True, relu=True)

    # Two downsampling convs: Conv(3, stride=2, pad=1), IN, ReLU  (fused)
    for (w, b) in p["down"]:
        x = conv2d_fused(x, w, b, stride=2, pad=1, pad_mode="zero",
                         norm=True, relu=True)

    # Residual blocks: conv+IN+ReLU fused, then conv+IN+residual-add fused.
    for (w1, b1), (w2, b2) in p["res"]:
        y = conv2d_fused(x, w1, b1, stride=1, pad=1, pad_mode="reflect",
                         norm=True, relu=True)
        x = conv2d_fused(y, w2, b2, stride=1, pad=1, pad_mode="reflect",
                         norm=True, relu=False, residual=x)

    # Two upsampling stages: Upsample(2), Conv(3, pad=1), IN, ReLU  (fused)
    for (w, b) in p["up"]:
        x = upsample2x_nearest(x)
        x = conv2d_fused(x, w, b, stride=1, pad=1, pad_mode="zero",
                         norm=True, relu=True)

    # Output conv: Conv(64, out_channels, 3, pad=1), no norm / activation.
    w, b = p["out"]
    x = conv2d_fused(x, w, b, stride=1, pad=1, pad_mode="zero",
                     norm=False, relu=False)
    x = x[..., :out_channels]                 # drop lane-padding channels

    return jnp.transpose(x, (0, 3, 1, 2))     # back to NCHW


# ----------------------------- Main -----------------------------

if __name__ == "__main__":
    key = jax.random.PRNGKey(0)
    kp, kx = jax.random.split(key)

    in_channels, out_channels, num_res = 2, 3, 9
    params = init_params(kp, in_channels, out_channels, num_res)

    # NCHW input, matching PyTorch convention: batch=2, channels=2, 16x16
    x = jax.random.normal(kx, (2, in_channels, 16, 16), jnp.float32)

    fwd = jax.jit(functools.partial(resnet_forward,
                                    in_channels=in_channels,
                                    out_channels=out_channels))
    out = fwd(x, params)
    jax.block_until_ready(out)

    assert out.shape == (2, out_channels, 16, 16), out.shape
    assert out.dtype == jnp.float32
    assert bool(jnp.all(jnp.isfinite(out)))
    print("KERNEL_OK")
</pallas_src>

<mosaic_0001>
module attributes {stable_mosaic.version = 11 : i64} {
  func.func @_conv_fused_kernel(%arg0: i32, %arg1: memref<1x196x128xbf16, #tpu.memory_space<vmem>>, %arg2: memref<128x128xbf16, #tpu.memory_space<vmem>>, %arg3: memref<1x128xf32, #tpu.memory_space<vmem>>, %arg4: memref<1x196x128xf32, #tpu.memory_space<vmem>>) attributes {dimension_semantics = [#tpu.dimension_semantics<parallel>], iteration_bounds = array<i64: 2>, scalar_prefetch = 0 : i64, scratch_operands = 0 : i64, tpu.core_type = #tpu.core_type<tc>, window_params = [{transform_indices = @transform_0, window_bounds = array<i64: 1, 196, 128>}, {pipeline_mode = #tpu.pipeline_mode<synchronous>, transform_indices = @transform_1, window_bounds = array<i64: 128, 128>}, {pipeline_mode = #tpu.pipeline_mode<synchronous>, transform_indices = @transform_2, window_bounds = array<i64: 1, 128>}, {transform_indices = @transform_3, window_bounds = array<i64: 1, 196, 128>}]} {
    %c0 = arith.constant 0 : index
    %c0_0 = arith.constant 0 : index
    %c0_1 = arith.constant 0 : index
    %0 = vector.load %arg1[%c0, %c0_0, %c0_1] : memref<1x196x128xbf16, #tpu.memory_space<vmem>>, vector<1x196x128xbf16>
    %1 = vector.shape_cast %0 : vector<1x196x128xbf16> to vector<196x128xbf16>
    %c0_2 = arith.constant 0 : index
    %c0_3 = arith.constant 0 : index
    %2 = vector.load %arg2[%c0_2, %c0_3] : memref<128x128xbf16, #tpu.memory_space<vmem>>, vector<128x128xbf16>
    %cst = arith.constant dense<0.000000e+00> : vector<196x128xf32>
    %3 = tpu.matmul %1, %2, %cst {dimension_numbers = #tpu.dot_dimension_numbers<[1], [0], [0], [1], [0, 0, 1, 1], [], []>} : vector<196x128xbf16>, vector<128x128xbf16>, vector<196x128xf32> -> vector<196x128xf32>
    %c0_4 = arith.constant 0 : index
    %c0_5 = arith.constant 0 : index
    %4 = vector.load %arg3[%c0_4, %c0_5] : memref<1x128xf32, #tpu.memory_space<vmem>>, vector<1x128xf32>
    %5 = vector.broadcast %4 : vector<1x128xf32> to vector<196x128xf32>
    %6 = arith.addf %3, %5 : vector<196x128xf32>
    %cst_6 = arith.constant dense<0.000000e+00> : vector<128xf32>
    %7 = vector.multi_reduction <add>, %6, %cst_6 [0] : vector<196x128xf32> to vector<128xf32>
    %8 = vector.shape_cast %7 : vector<128xf32> to vector<1x128xf32>
    %cst_7 = arith.constant 1.960000e+02 : f32
    %9 = vector.broadcast %cst_7 : f32 to vector<1x128xf32>
    %10 = arith.divf %8, %9 : vector<1x128xf32>
    %11 = vector.broadcast %10 : vector<1x128xf32> to vector<196x128xf32>
    %12 = arith.subf %6, %11 : vector<196x128xf32>
    %13 = arith.mulf %12, %12 : vector<196x128xf32>
    %cst_8 = arith.constant dense<0.000000e+00> : vector<128xf32>
    %14 = vector.multi_reduction <add>, %13, %cst_8 [0] : vector<196x128xf32> to vector<128xf32>
    %15 = vector.shape_cast %14 : vector<128xf32> to vector<1x128xf32>
    %cst_9 = arith.constant 1.960000e+02 : f32
    %16 = vector.broadcast %cst_9 : f32 to vector<1x128xf32>
    %17 = arith.divf %15, %16 : vector<1x128xf32>
    %cst_10 = arith.constant 9.99999974E-6 : f32
    %18 = vector.broadcast %cst_10 : f32 to vector<1x128xf32>
    %19 = arith.addf %17, %18 : vector<1x128xf32>
    %20 = math.rsqrt %19 : vector<1x128xf32>
    %21 = vector.broadcast %20 : vector<1x128xf32> to vector<196x128xf32>
    %22 = arith.mulf %12, %21 : vector<196x128xf32>
    %cst_11 = arith.constant 0.000000e+00 : f32
    %23 = vector.broadcast %cst_11 : f32 to vector<196x128xf32>
    %24 = arith.maximumf %22, %23 : vector<196x128xf32>
    %c0_12 = arith.constant 0 : index
    %c0_13 = arith.constant 0 : index
    %c0_14 = arith.constant 0 : index
    %25 = vector.load %arg4[%c0_12, %c0_13, %c0_14] : memref<1x196x128xf32, #tpu.memory_space<vmem>>, vector<1x196x128xf32>
    %26 = vector.shape_cast %25 : vector<1x196x128xf32> to vector<196x128xf32>
    %27 = vector.shape_cast %24 : vector<196x128xf32> to vector<1x196x128xf32>
    tpu.vector_store %arg4[%c0_12, %c0_13, %c0_14], %27 {strides = array<i32>} : memref<1x196x128xf32, #tpu.memory_space<vmem>>, vector<1x196x128xf32>,
    return
  }
  func.func @transform_0(%arg0: i32) -> (i32, i32, i32) {
    %c0_i32 = arith.constant 0 : i32
    %c0_i32_0 = arith.constant 0 : i32
    %c0_i32_1 = arith.constant 0 : i32
    return %arg0, %c0_i32, %c0_i32_0 : i32, i32, i32
  }
  func.func @transform_1(%arg0: i32) -> (i32, i32) {
    %c0_i32 = arith.constant 0 : i32
    %c0_i32_0 = arith.constant 0 : i32
    %c0_i32_1 = arith.constant 0 : i32
    return %c0_i32, %c0_i32_0 : i32, i32
  }
  func.func @transform_2(%arg0: i32) -> (i32, i32) {
    %c0_i32 = arith.constant 0 : i32
    %c0_i32_0 = arith.constant 0 : i32
    %c0_i32_1 = arith.constant 0 : i32
    return %c0_i32, %c0_i32_0 : i32, i32
  }
  func.func @transform_3(%arg0: i32) -> (i32, i32, i32) {
    %c0_i32 = arith.constant 0 : i32
    %c0_i32_0 = arith.constant 0 : i32
    %c0_i32_1 = arith.constant 0 : i32
    return %arg0, %c0_i32, %c0_i32_0 : i32, i32, i32
  }
}

module attributes {stable_mosaic.version = 11 : i64} {
  func.func @_conv_fused_kernel(%arg0: i32, %arg1: memref<1x49x1152xbf16, #tpu.memory_space<vmem>>, %arg2: memref<1152x128xbf16, #tpu.memory_space<vmem>>, %arg3: memref<1x128xf32, #tpu.memory_space<vmem>>, %arg4: memref<1x49x128xf32, #tpu.memory_space<vmem>>) attributes {dimension_semantics = [#tpu.dimension_semantics<parallel>], iteration_bounds = array<i64: 2>, scalar_prefetch = 0 : i64, scratch_operands = 0 : i64, tpu.core_type = #tpu.core_type<tc>, window_params = [{transform_indices = @transform_0, window_bounds = array<i64: 1, 49, 1152>}, {pipeline_mode = #tpu.pipeline_mode<synchronous>, transform_indices = @transform_1, window_bounds = array<i64: 1152, 128>}, {pipeline_mode = #tpu.pipeline_mode<synchronous>, transform_indices = @transform_2, window_bounds = array<i64: 1, 128>}, {transform_indices = @transform_3, window_bounds = array<i64: 1, 49, 128>}]} {
    %c0 = arith.constant 0 : index
    %c0_0 = arith.constant 0 : index
    %c0_1 = arith.constant 0 : index
    %0 = vector.load %arg1[%c0, %c0_0, %c0_1] : memref<1x49x1152xbf16, #tpu.memory_space<vmem>>, vector<1x49x1152xbf16>
    %1 = vector.shape_cast %0 : vector<1x49x1152xbf16> to vector<49x1152xbf16>
    %c0_2 = arith.constant 0 : index
    %c0_3 = arith.constant 0 : index
    %2 = vector.load %arg2[%c0_2, %c0_3] : memref<1152x128xbf16, #tpu.memory_space<vmem>>, vector<1152x128xbf16>
    %cst = arith.constant dense<0.000000e+00> : vector<49x128xf32>
    %3 = tpu.matmul %1, %2, %cst {dimension_numbers = #tpu.dot_dimension_numbers<[1], [0], [0], [1], [0, 0, 1, 1], [], []>} : vector<49x1152xbf16>, vector<1152x128xbf16>, vector<49x128xf32> -> vector<49x128xf32>
    %c0_4 = arith.constant 0 : index
    %c0_5 = arith.constant 0 : index
    %4 = vector.load %arg3[%c0_4, %c0_5] : memref<1x128xf32, #tpu.memory_space<vmem>>, vector<1x128xf32>
    %5 = vector.broadcast %4 : vector<1x128xf32> to vector<49x128xf32>
    %6 = arith.addf %3, %5 : vector<49x128xf32>
    %cst_6 = arith.constant dense<0.000000e+00> : vector<128xf32>
    %7 = vector.multi_reduction <add>, %6, %cst_6 [0] : vector<49x128xf32> to vector<128xf32>
    %8 = vector.shape_cast %7 : vector<128xf32> to vector<1x128xf32>
    %cst_7 = arith.constant 4.900000e+01 : f32
    %9 = vector.broadcast %cst_7 : f32 to vector<1x128xf32>
    %10 = arith.divf %8, %9 : vector<1x128xf32>
    %11 = vector.broadcast %10 : vector<1x128xf32> to vector<49x128xf32>
    %12 = arith.subf %6, %11 : vector<49x128xf32>
    %13 = arith.mulf %12, %12 : vector<49x128xf32>
    %cst_8 = arith.constant dense<0.000000e+00> : vector<128xf32>
    %14 = vector.multi_reduction <add>, %13, %cst_8 [0] : vector<49x128xf32> to vector<128xf32>
    %15 = vector.shape_cast %14 : vector<128xf32> to vector<1x128xf32>
    %cst_9 = arith.constant 4.900000e+01 : f32
    %16 = vector.broadcast %cst_9 : f32 to vector<1x128xf32>
    %17 = arith.divf %15, %16 : vector<1x128xf32>
    %cst_10 = arith.constant 9.99999974E-6 : f32
    %18 = vector.broadcast %cst_10 : f32 to vector<1x128xf32>
    %19 = arith.addf %17, %18 : vector<1x128xf32>
    %20 = math.rsqrt %19 : vector<1x128xf32>
    %21 = vector.broadcast %20 : vector<1x128xf32> to vector<49x128xf32>
    %22 = arith.mulf %12, %21 : vector<49x128xf32>
    %cst_11 = arith.constant 0.000000e+00 : f32
    %23 = vector.broadcast %cst_11 : f32 to vector<49x128xf32>
    %24 = arith.maximumf %22, %23 : vector<49x128xf32>
    %c0_12 = arith.constant 0 : index
    %c0_13 = arith.constant 0 : index
    %c0_14 = arith.constant 0 : index
    %25 = vector.load %arg4[%c0_12, %c0_13, %c0_14] : memref<1x49x128xf32, #tpu.memory_space<vmem>>, vector<1x49x128xf32>
    %26 = vector.shape_cast %25 : vector<1x49x128xf32> to vector<49x128xf32>
    %27 = vector.shape_cast %24 : vector<49x128xf32> to vector<1x49x128xf32>
    tpu.vector_store %arg4[%c0_12, %c0_13, %c0_14], %27 {strides = array<i32>} : memref<1x49x128xf32, #tpu.memory_space<vmem>>, vector<1x49x128xf32>,
    return
  }
  func.func @transform_0(%arg0: i32) -> (i32, i32, i32) {
    %c0_i32 = arith.constant 0 : i32
    %c0_i32_0 = arith.constant 0 : i32
    %c0_i32_1 = arith.constant 0 : i32
    return %arg0, %c0_i32, %c0_i32_0 : i32, i32, i32
  }
  func.func @transform_1(%arg0: i32) -> (i32, i32) {
    %c0_i32 = arith.constant 0 : i32
    %c0_i32_0 = arith.constant 0 : i32
    %c0_i32_1 = arith.constant 0 : i32
    return %c0_i32, %c0_i32_0 : i32, i32
  }
  func.func @transform_2(%arg0: i32) -> (i32, i32) {
    %c0_i32 = arith.constant 0 : i32
    %c0_i32_0 = arith.constant 0 : i32
    %c0_i32_1 = arith.constant 0 : i32
    return %c0_i32, %c0_i32_0 : i32, i32
  }
  func.func @transform_3(%arg0: i32) -> (i32, i32, i32) {
    %c0_i32 = arith.constant 0 : i32
    %c0_i32_0 = arith.constant 0 : i32
    %c0_i32_1 = arith.constant 0 : i32
    return %arg0, %c0_i32, %c0_i32_0 : i32, i32, i32
  }
}

module attributes {stable_mosaic.version = 11 : i64} {
  func.func @_conv_fused_kernel(%arg0: i32, %arg1: memref<1x16x1152xbf16, #tpu.memory_space<vmem>>, %arg2: memref<1152x256xbf16, #tpu.memory_space<vmem>>, %arg3: memref<1x256xf32, #tpu.memory_space<vmem>>, %arg4: memref<1x16x256xf32, #tpu.memory_space<vmem>>) attributes {dimension_semantics = [#tpu.dimension_semantics<parallel>], iteration_bounds = array<i64: 2>, scalar_prefetch = 0 : i64, scratch_operands = 0 : i64, tpu.core_type = #tpu.core_type<tc>, window_params = [{transform_indices = @transform_0, window_bounds = array<i64: 1, 16, 1152>}, {pipeline_mode = #tpu.pipeline_mode<synchronous>, transform_indices = @transform_1, window_bounds = array<i64: 1152, 256>}, {pipeline_mode = #tpu.pipeline_mode<synchronous>, transform_indices = @transform_2, window_bounds = array<i64: 1, 256>}, {transform_indices = @transform_3, window_bounds = array<i64: 1, 16, 256>}]} {
    %c0 = arith.constant 0 : index
    %c0_0 = arith.constant 0 : index
    %c0_1 = arith.constant 0 : index
    %0 = vector.load %arg1[%c0, %c0_0, %c0_1] : memref<1x16x1152xbf16, #tpu.memory_space<vmem>>, vector<1x16x1152xbf16>
    %1 = vector.shape_cast %0 : vector<1x16x1152xbf16> to vector<16x1152xbf16>
    %c0_2 = arith.constant 0 : index
    %c0_3 = arith.constant 0 : index
    %2 = vector.load %arg2[%c0_2, %c0_3] : memref<1152x256xbf16, #tpu.memory_space<vmem>>, vector<1152x256xbf16>
    %cst = arith.constant dense<0.000000e+00> : vector<16x256xf32>
    %3 = tpu.matmul %1, %2, %cst {dimension_numbers = #tpu.dot_dimension_numbers<[1], [0], [0], [1], [0, 0, 1, 1], [], []>} : vector<16x1152xbf16>, vector<1152x256xbf16>, vector<16x256xf32> -> vector<16x256xf32>
    %c0_4 = arith.constant 0 : index
    %c0_5 = arith.constant 0 : index
    %4 = vector.load %arg3[%c0_4, %c0_5] : memref<1x256xf32, #tpu.memory_space<vmem>>, vector<1x256xf32>
    %5 = vector.broadcast %4 : vector<1x256xf32> to vector<16x256xf32>
    %6 = arith.addf %3, %5 : vector<16x256xf32>
    %cst_6 = arith.constant dense<0.000000e+00> : vector<256xf32>
    %7 = vector.multi_reduction <add>, %6, %cst_6 [0] : vector<16x256xf32> to vector<256xf32>
    %8 = vector.shape_cast %7 : vector<256xf32> to vector<1x256xf32>
    %cst_7 = arith.constant 1.600000e+01 : f32
    %9 = vector.broadcast %cst_7 : f32 to vector<1x256xf32>
    %10 = arith.divf %8, %9 : vector<1x256xf32>
    %11 = vector.broadcast %10 : vector<1x256xf32> to vector<16x256xf32>
    %12 = arith.subf %6, %11 : vector<16x256xf32>
    %13 = arith.mulf %12, %12 : vector<16x256xf32>
    %cst_8 = arith.constant dense<0.000000e+00> : vector<256xf32>
    %14 = vector.multi_reduction <add>, %13, %cst_8 [0] : vector<16x256xf32> to vector<256xf32>
    %15 = vector.shape_cast %14 : vector<256xf32> to vector<1x256xf32>
    %cst_9 = arith.constant 1.600000e+01 : f32
    %16 = vector.broadcast %cst_9 : f32 to vector<1x256xf32>
    %17 = arith.divf %15, %16 : vector<1x256xf32>
    %cst_10 = arith.constant 9.99999974E-6 : f32
    %18 = vector.broadcast %cst_10 : f32 to vector<1x256xf32>
    %19 = arith.addf %17, %18 : vector<1x256xf32>
    %20 = math.rsqrt %19 : vector<1x256xf32>
    %21 = vector.broadcast %20 : vector<1x256xf32> to vector<16x256xf32>
    %22 = arith.mulf %12, %21 : vector<16x256xf32>
    %cst_11 = arith.constant 0.000000e+00 : f32
    %23 = vector.broadcast %cst_11 : f32 to vector<16x256xf32>
    %24 = arith.maximumf %22, %23 : vector<16x256xf32>
    %c0_12 = arith.constant 0 : index
    %c0_13 = arith.constant 0 : index
    %c0_14 = arith.constant 0 : index
    %25 = vector.load %arg4[%c0_12, %c0_13, %c0_14] : memref<1x16x256xf32, #tpu.memory_space<vmem>>, vector<1x16x256xf32>
    %26 = vector.shape_cast %25 : vector<1x16x256xf32> to vector<16x256xf32>
    %27 = vector.shape_cast %24 : vector<16x256xf32> to vector<1x16x256xf32>
    tpu.vector_store %arg4[%c0_12, %c0_13, %c0_14], %27 {strides = array<i32>} : memref<1x16x256xf32, #tpu.memory_space<vmem>>, vector<1x16x256xf32>,
    return
  }
  func.func @transform_0(%arg0: i32) -> (i32, i32, i32) {
    %c0_i32 = arith.constant 0 : i32
    %c0_i32_0 = arith.constant 0 : i32
    %c0_i32_1 = arith.constant 0 : i32
    return %arg0, %c0_i32, %c0_i32_0 : i32, i32, i32
  }
  func.func @transform_1(%arg0: i32) -> (i32, i32) {
    %c0_i32 = arith.constant 0 : i32
    %c0_i32_0 = arith.constant 0 : i32
    %c0_i32_1 = arith.constant 0 : i32
    return %c0_i32, %c0_i32_0 : i32, i32
  }
  func.func @transform_2(%arg0: i32) -> (i32, i32) {
    %c0_i32 = arith.constant 0 : i32
    %c0_i32_0 = arith.constant 0 : i32
    %c0_i32_1 = arith.constant 0 : i32
    return %c0_i32, %c0_i32_0 : i32, i32
  }
  func.func @transform_3(%arg0: i32) -> (i32, i32, i32) {
    %c0_i32 = arith.constant 0 : i32
    %c0_i32_0 = arith.constant 0 : i32
    %c0_i32_1 = arith.constant 0 : i32
    return %arg0, %c0_i32, %c0_i32_0 : i32, i32, i32
  }
}

module attributes {stable_mosaic.version = 11 : i64} {
  func.func @_conv_fused_kernel(%arg0: i32, %arg1: memref<1x16x2304xbf16, #tpu.memory_space<vmem>>, %arg2: memref<2304x256xbf16, #tpu.memory_space<vmem>>, %arg3: memref<1x256xf32, #tpu.memory_space<vmem>>, %arg4: memref<1x16x256xf32, #tpu.memory_space<vmem>>) attributes {dimension_semantics = [#tpu.dimension_semantics<parallel>], iteration_bounds = array<i64: 2>, scalar_prefetch = 0 : i64, scratch_operands = 0 : i64, tpu.core_type = #tpu.core_type<tc>, window_params = [{transform_indices = @transform_0, window_bounds = array<i64: 1, 16, 2304>}, {pipeline_mode = #tpu.pipeline_mode<synchronous>, transform_indices = @transform_1, window_bounds = array<i64: 2304, 256>}, {pipeline_mode = #tpu.pipeline_mode<synchronous>, transform_indices = @transform_2, window_bounds = array<i64: 1, 256>}, {transform_indices = @transform_3, window_bounds = array<i64: 1, 16, 256>}]} {
    %c0 = arith.constant 0 : index
    %c0_0 = arith.constant 0 : index
    %c0_1 = arith.constant 0 : index
    %0 = vector.load %arg1[%c0, %c0_0, %c0_1] : memref<1x16x2304xbf16, #tpu.memory_space<vmem>>, vector<1x16x2304xbf16>
    %1 = vector.shape_cast %0 : vector<1x16x2304xbf16> to vector<16x2304xbf16>
    %c0_2 = arith.constant 0 : index
    %c0_3 = arith.constant 0 : index
    %2 = vector.load %arg2[%c0_2, %c0_3] : memref<2304x256xbf16, #tpu.memory_space<vmem>>, vector<2304x256xbf16>
    %cst = arith.constant dense<0.000000e+00> : vector<16x256xf32>
    %3 = tpu.matmul %1, %2, %cst {dimension_numbers = #tpu.dot_dimension_numbers<[1], [0], [0], [1], [0, 0, 1, 1], [], []>} : vector<16x2304xbf16>, vector<2304x256xbf16>, vector<16x256xf32> -> vector<16x256xf32>
    %c0_4 = arith.constant 0 : index
    %c0_5 = arith.constant 0 : index
    %4 = vector.load %arg3[%c0_4, %c0_5] : memref<1x256xf32, #tpu.memory_space<vmem>>, vector<1x256xf32>
    %5 = vector.broadcast %4 : vector<1x256xf32> to vector<16x256xf32>
    %6 = arith.addf %3, %5 : vector<16x256xf32>
    %cst_6 = arith.constant dense<0.000000e+00> : vector<256xf32>
    %7 = vector.multi_reduction <add>, %6, %cst_6 [0] : vector<16x256xf32> to vector<256xf32>
    %8 = vector.shape_cast %7 : vector<256xf32> to vector<1x256xf32>
    %cst_7 = arith.constant 1.600000e+01 : f32
    %9 = vector.broadcast %cst_7 : f32 to vector<1x256xf32>
    %10 = arith.divf %8, %9 : vector<1x256xf32>
    %11 = vector.broadcast %10 : vector<1x256xf32> to vector<16x256xf32>
    %12 = arith.subf %6, %11 : vector<16x256xf32>
    %13 = arith.mulf %12, %12 : vector<16x256xf32>
    %cst_8 = arith.constant dense<0.000000e+00> : vector<256xf32>
    %14 = vector.multi_reduction <add>, %13, %cst_8 [0] : vector<16x256xf32> to vector<256xf32>
    %15 = vector.shape_cast %14 : vector<256xf32> to vector<1x256xf32>
    %cst_9 = arith.constant 1.600000e+01 : f32
    %16 = vector.broadcast %cst_9 : f32 to vector<1x256xf32>
    %17 = arith.divf %15, %16 : vector<1x256xf32>
    %cst_10 = arith.constant 9.99999974E-6 : f32
    %18 = vector.broadcast %cst_10 : f32 to vector<1x256xf32>
    %19 = arith.addf %17, %18 : vector<1x256xf32>
    %20 = math.rsqrt %19 : vector<1x256xf32>
    %21 = vector.broadcast %20 : vector<1x256xf32> to vector<16x256xf32>
    %22 = arith.mulf %12, %21 : vector<16x256xf32>
    %cst_11 = arith.constant 0.000000e+00 : f32
    %23 = vector.broadcast %cst_11 : f32 to vector<16x256xf32>
    %24 = arith.maximumf %22, %23 : vector<16x256xf32>
    %c0_12 = arith.constant 0 : index
    %c0_13 = arith.constant 0 : index
    %c0_14 = arith.constant 0 : index
    %25 = vector.load %arg4[%c0_12, %c0_13, %c0_14] : memref<1x16x256xf32, #tpu.memory_space<vmem>>, vector<1x16x256xf32>
    %26 = vector.shape_cast %25 : vector<1x16x256xf32> to vector<16x256xf32>
    %27 = vector.shape_cast %24 : vector<16x256xf32> to vector<1x16x256xf32>
    tpu.vector_store %arg4[%c0_12, %c0_13, %c0_14], %27 {strides = array<i32>} : memref<1x16x256xf32, #tpu.memory_space<vmem>>, vector<1x16x256xf32>,
    return
  }
  func.func @transform_0(%arg0: i32) -> (i32, i32, i32) {
    %c0_i32 = arith.constant 0 : i32
    %c0_i32_0 = arith.constant 0 : i32
    %c0_i32_1 = arith.constant 0 : i32
    return %arg0, %c0_i32, %c0_i32_0 : i32, i32, i32
  }
  func.func @transform_1(%arg0: i32) -> (i32, i32) {
    %c0_i32 = arith.constant 0 : i32
    %c0_i32_0 = arith.constant 0 : i32
    %c0_i32_1 = arith.constant 0 : i32
    return %c0_i32, %c0_i32_0 : i32, i32
  }
  func.func @transform_2(%arg0: i32) -> (i32, i32) {
    %c0_i32 = arith.constant 0 : i32
    %c0_i32_0 = arith.constant 0 : i32
    %c0_i32_1 = arith.constant 0 : i32
    return %c0_i32, %c0_i32_0 : i32, i32
  }
  func.func @transform_3(%arg0: i32) -> (i32, i32, i32) {
    %c0_i32 = arith.constant 0 : i32
    %c0_i32_0 = arith.constant 0 : i32
    %c0_i32_1 = arith.constant 0 : i32
    return %arg0, %c0_i32, %c0_i32_0 : i32, i32, i32
  }
}

module attributes {stable_mosaic.version = 11 : i64} {
  func.func @_conv_fused_kernel(%arg0: i32, %arg1: memref<1x16x2304xbf16, #tpu.memory_space<vmem>>, %arg2: memref<2304x256xbf16, #tpu.memory_space<vmem>>, %arg3: memref<1x256xf32, #tpu.memory_space<vmem>>, %arg4: memref<1x16x256xf32, #tpu.memory_space<vmem>>, %arg5: memref<1x16x256xf32, #tpu.memory_space<vmem>>) attributes {dimension_semantics = [#tpu.dimension_semantics<parallel>], iteration_bounds = array<i64: 2>, scalar_prefetch = 0 : i64, scratch_operands = 0 : i64, tpu.core_type = #tpu.core_type<tc>, window_params = [{transform_indices = @transform_0, window_bounds = array<i64: 1, 16, 2304>}, {pipeline_mode = #tpu.pipeline_mode<synchronous>, transform_indices = @transform_1, window_bounds = array<i64: 2304, 256>}, {pipeline_mode = #tpu.pipeline_mode<synchronous>, transform_indices = @transform_2, window_bounds = array<i64: 1, 256>}, {transform_indices = @transform_3, window_bounds = array<i64: 1, 16, 256>}, {transform_indices = @transform_4, window_bounds = array<i64: 1, 16, 256>}]} {
    %c0 = arith.constant 0 : index
    %c0_0 = arith.constant 0 : index
    %c0_1 = arith.constant 0 : index
    %0 = vector.load %arg1[%c0, %c0_0, %c0_1] : memref<1x16x2304xbf16, #tpu.memory_space<vmem>>, vector<1x16x2304xbf16>
    %1 = vector.shape_cast %0 : vector<1x16x2304xbf16> to vector<16x2304xbf16>
    %c0_2 = arith.constant 0 : index
    %c0_3 = arith.constant 0 : index
    %2 = vector.load %arg2[%c0_2, %c0_3] : memref<2304x256xbf16, #tpu.memory_space<vmem>>, vector<2304x256xbf16>
    %cst = arith.constant dense<0.000000e+00> : vector<16x256xf32>
    %3 = tpu.matmul %1, %2, %cst {dimension_numbers = #tpu.dot_dimension_numbers<[1], [0], [0], [1], [0, 0, 1, 1], [], []>} : vector<16x2304xbf16>, vector<2304x256xbf16>, vector<16x256xf32> -> vector<16x256xf32>
    %c0_4 = arith.constant 0 : index
    %c0_5 = arith.constant 0 : index
    %4 = vector.load %arg3[%c0_4, %c0_5] : memref<1x256xf32, #tpu.memory_space<vmem>>, vector<1x256xf32>
    %5 = vector.broadcast %4 : vector<1x256xf32> to vector<16x256xf32>
    %6 = arith.addf %3, %5 : vector<16x256xf32>
    %cst_6 = arith.constant dense<0.000000e+00> : vector<256xf32>
    %7 = vector.multi_reduction <add>, %6, %cst_6 [0] : vector<16x256xf32> to vector<256xf32>
    %8 = vector.shape_cast %7 : vector<256xf32> to vector<1x256xf32>
    %cst_7 = arith.constant 1.600000e+01 : f32
    %9 = vector.broadcast %cst_7 : f32 to vector<1x256xf32>
    %10 = arith.divf %8, %9 : vector<1x256xf32>
    %11 = vector.broadcast %10 : vector<1x256xf32> to vector<16x256xf32>
    %12 = arith.subf %6, %11 : vector<16x256xf32>
    %13 = arith.mulf %12, %12 : vector<16x256xf32>
    %cst_8 = arith.constant dense<0.000000e+00> : vector<256xf32>
    %14 = vector.multi_reduction <add>, %13, %cst_8 [0] : vector<16x256xf32> to vector<256xf32>
    %15 = vector.shape_cast %14 : vector<256xf32> to vector<1x256xf32>
    %cst_9 = arith.constant 1.600000e+01 : f32
    %16 = vector.broadcast %cst_9 : f32 to vector<1x256xf32>
    %17 = arith.divf %15, %16 : vector<1x256xf32>
    %cst_10 = arith.constant 9.99999974E-6 : f32
    %18 = vector.broadcast %cst_10 : f32 to vector<1x256xf32>
    %19 = arith.addf %17, %18 : vector<1x256xf32>
    %20 = math.rsqrt %19 : vector<1x256xf32>
    %21 = vector.broadcast %20 : vector<1x256xf32> to vector<16x256xf32>
    %22 = arith.mulf %12, %21 : vector<16x256xf32>
    %c0_11 = arith.constant 0 : index
    %c0_12 = arith.constant 0 : index
    %c0_13 = arith.constant 0 : index
    %23 = vector.load %arg4[%c0_11, %c0_12, %c0_13] : memref<1x16x256xf32, #tpu.memory_space<vmem>>, vector<1x16x256xf32>
    %24 = vector.shape_cast %23 : vector<1x16x256xf32> to vector<16x256xf32>
    %25 = arith.addf %22, %24 : vector<16x256xf32>
    %c0_14 = arith.constant 0 : index
    %c0_15 = arith.constant 0 : index
    %c0_16 = arith.constant 0 : index
    %26 = vector.load %arg5[%c0_14, %c0_15, %c0_16] : memref<1x16x256xf32, #tpu.memory_space<vmem>>, vector<1x16x256xf32>
    %27 = vector.shape_cast %26 : vector<1x16x256xf32> to vector<16x256xf32>
    %28 = vector.shape_cast %25 : vector<16x256xf32> to vector<1x16x256xf32>
    tpu.vector_store %arg5[%c0_14, %c0_15, %c0_16], %28 {strides = array<i32>} : memref<1x16x256xf32, #tpu.memory_space<vmem>>, vector<1x16x256xf32>,
    return
  }
  func.func @transform_0(%arg0: i32) -> (i32, i32, i32) {
    %c0_i32 = arith.constant 0 : i32
    %c0_i32_0 = arith.constant 0 : i32
    %c0_i32_1 = arith.constant 0 : i32
    return %arg0, %c0_i32, %c0_i32_0 : i32, i32, i32
  }
  func.func @transform_1(%arg0: i32) -> (i32, i32) {
    %c0_i32 = arith.constant 0 : i32
    %c0_i32_0 = arith.constant 0 : i32
    %c0_i32_1 = arith.constant 0 : i32
    return %c0_i32, %c0_i32_0 : i32, i32
  }
  func.func @transform_2(%arg0: i32) -> (i32, i32) {
    %c0_i32 = arith.constant 0 : i32
    %c0_i32_0 = arith.constant 0 : i32
    %c0_i32_1 = arith.constant 0 : i32
    return %c0_i32, %c0_i32_0 : i32, i32
  }
  func.func @transform_3(%arg0: i32) -> (i32, i32, i32) {
    %c0_i32 = arith.constant 0 : i32
    %c0_i32_0 = arith.constant 0 : i32
    %c0_i32_1 = arith.constant 0 : i32
    return %arg0, %c0_i32, %c0_i32_0 : i32, i32, i32
  }
  func.func @transform_4(%arg0: i32) -> (i32, i32, i32) {
    %c0_i32 = arith.constant 0 : i32
    %c0_i32_0 = arith.constant 0 : i32
    %c0_i32_1 = arith.constant 0 : i32
    return %arg0, %c0_i32, %c0_i32_0 : i32, i32, i32
  }
}

module attributes {stable_mosaic.version = 11 : i64} {
  func.func @_conv_fused_kernel(%arg0: i32, %arg1: memref<1x64x2304xbf16, #tpu.memory_space<vmem>>, %arg2: memref<2304x128xbf16, #tpu.memory_space<vmem>>, %arg3: memref<1x128xf32, #tpu.memory_space<vmem>>, %arg4: memref<1x64x128xf32, #tpu.memory_space<vmem>>) attributes {dimension_semantics = [#tpu.dimension_semantics<parallel>], iteration_bounds = array<i64: 2>, scalar_prefetch = 0 : i64, scratch_operands = 0 : i64, tpu.core_type = #tpu.core_type<tc>, window_params = [{transform_indices = @transform_0, window_bounds = array<i64: 1, 64, 2304>}, {pipeline_mode = #tpu.pipeline_mode<synchronous>, transform_indices = @transform_1, window_bounds = array<i64: 2304, 128>}, {pipeline_mode = #tpu.pipeline_mode<synchronous>, transform_indices = @transform_2, window_bounds = array<i64: 1, 128>}, {transform_indices = @transform_3, window_bounds = array<i64: 1, 64, 128>}]} {
    %c0 = arith.constant 0 : index
    %c0_0 = arith.constant 0 : index
    %c0_1 = arith.constant 0 : index
    %0 = vector.load %arg1[%c0, %c0_0, %c0_1] : memref<1x64x2304xbf16, #tpu.memory_space<vmem>>, vector<1x64x2304xbf16>
    %1 = vector.shape_cast %0 : vector<1x64x2304xbf16> to vector<64x2304xbf16>
    %c0_2 = arith.constant 0 : index
    %c0_3 = arith.constant 0 : index
    %2 = vector.load %arg2[%c0_2, %c0_3] : memref<2304x128xbf16, #tpu.memory_space<vmem>>, vector<2304x128xbf16>
    %cst = arith.constant dense<0.000000e+00> : vector<64x128xf32>
    %3 = tpu.matmul %1, %2, %cst {dimension_numbers = #tpu.dot_dimension_numbers<[1], [0], [0], [1], [0, 0, 1, 1], [], []>} : vector<64x2304xbf16>, vector<2304x128xbf16>, vector<64x128xf32> -> vector<64x128xf32>
    %c0_4 = arith.constant 0 : index
    %c0_5 = arith.constant 0 : index
    %4 = vector.load %arg3[%c0_4, %c0_5] : memref<1x128xf32, #tpu.memory_space<vmem>>, vector<1x128xf32>
    %5 = vector.broadcast %4 : vector<1x128xf32> to vector<64x128xf32>
    %6 = arith.addf %3, %5 : vector<64x128xf32>
    %cst_6 = arith.constant dense<0.000000e+00> : vector<128xf32>
    %7 = vector.multi_reduction <add>, %6, %cst_6 [0] : vector<64x128xf32> to vector<128xf32>
    %8 = vector.shape_cast %7 : vector<128xf32> to vector<1x128xf32>
    %cst_7 = arith.constant 6.400000e+01 : f32
    %9 = vector.broadcast %cst_7 : f32 to vector<1x128xf32>
    %10 = arith.divf %8, %9 : vector<1x128xf32>
    %11 = vector.broadcast %10 : vector<1x128xf32> to vector<64x128xf32>
    %12 = arith.subf %6, %11 : vector<64x128xf32>
    %13 = arith.mulf %12, %12 : vector<64x128xf32>
    %cst_8 = arith.constant dense<0.000000e+00> : vector<128xf32>
    %14 = vector.multi_reduction <add>, %13, %cst_8 [0] : vector<64x128xf32> to vector<128xf32>
    %15 = vector.shape_cast %14 : vector<128xf32> to vector<1x128xf32>
    %cst_9 = arith.constant 6.400000e+01 : f32
    %16 = vector.broadcast %cst_9 : f32 to vector<1x128xf32>
    %17 = arith.divf %15, %16 : vector<1x128xf32>
    %cst_10 = arith.constant 9.99999974E-6 : f32
    %18 = vector.broadcast %cst_10 : f32 to vector<1x128xf32>
    %19 = arith.addf %17, %18 : vector<1x128xf32>
    %20 = math.rsqrt %19 : vector<1x128xf32>
    %21 = vector.broadcast %20 : vector<1x128xf32> to vector<64x128xf32>
    %22 = arith.mulf %12, %21 : vector<64x128xf32>
    %cst_11 = arith.constant 0.000000e+00 : f32
    %23 = vector.broadcast %cst_11 : f32 to vector<64x128xf32>
    %24 = arith.maximumf %22, %23 : vector<64x128xf32>
    %c0_12 = arith.constant 0 : index
    %c0_13 = arith.constant 0 : index
    %c0_14 = arith.constant 0 : index
    %25 = vector.load %arg4[%c0_12, %c0_13, %c0_14] : memref<1x64x128xf32, #tpu.memory_space<vmem>>, vector<1x64x128xf32>
    %26 = vector.shape_cast %25 : vector<1x64x128xf32> to vector<64x128xf32>
    %27 = vector.shape_cast %24 : vector<64x128xf32> to vector<1x64x128xf32>
    tpu.vector_store %arg4[%c0_12, %c0_13, %c0_14], %27 {strides = array<i32>} : memref<1x64x128xf32, #tpu.memory_space<vmem>>, vector<1x64x128xf32>,
    return
  }
  func.func @transform_0(%arg0: i32) -> (i32, i32, i32) {
    %c0_i32 = arith.constant 0 : i32
    %c0_i32_0 = arith.constant 0 : i32
    %c0_i32_1 = arith.constant 0 : i32
    return %arg0, %c0_i32, %c0_i32_0 : i32, i32, i32
  }
  func.func @transform_1(%arg0: i32) -> (i32, i32) {
    %c0_i32 = arith.constant 0 : i32
    %c0_i32_0 = arith.constant 0 : i32
    %c0_i32_1 = arith.constant 0 : i32
    return %c0_i32, %c0_i32_0 : i32, i32
  }
  func.func @transform_2(%arg0: i32) -> (i32, i32) {
    %c0_i32 = arith.constant 0 : i32
    %c0_i32_0 = arith.constant 0 : i32
    %c0_i32_1 = arith.constant 0 : i32
    return %c0_i32, %c0_i32_0 : i32, i32
  }
  func.func @transform_3(%arg0: i32) -> (i32, i32, i32) {
    %c0_i32 = arith.constant 0 : i32
    %c0_i32_0 = arith.constant 0 : i32
    %c0_i32_1 = arith.constant 0 : i32
    return %arg0, %c0_i32, %c0_i32_0 : i32, i32, i32
  }
}

module attributes {stable_mosaic.version = 11 : i64} {
  func.func @_conv_fused_kernel(%arg0: i32, %arg1: memref<1x256x1152xbf16, #tpu.memory_space<vmem>>, %arg2: memref<1152x128xbf16, #tpu.memory_space<vmem>>, %arg3: memref<1x128xf32, #tpu.memory_space<vmem>>, %arg4: memref<1x256x128xf32, #tpu.memory_space<vmem>>) attributes {dimension_semantics = [#tpu.dimension_semantics<parallel>], iteration_bounds = array<i64: 2>, scalar_prefetch = 0 : i64, scratch_operands = 0 : i64, tpu.core_type = #tpu.core_type<tc>, window_params = [{transform_indices = @transform_0, window_bounds = array<i64: 1, 256, 1152>}, {pipeline_mode = #tpu.pipeline_mode<synchronous>, transform_indices = @transform_1, window_bounds = array<i64: 1152, 128>}, {pipeline_mode = #tpu.pipeline_mode<synchronous>, transform_indices = @transform_2, window_bounds = array<i64: 1, 128>}, {transform_indices = @transform_3, window_bounds = array<i64: 1, 256, 128>}]} {
    %c0 = arith.constant 0 : index
    %c0_0 = arith.constant 0 : index
    %c0_1 = arith.constant 0 : index
    %0 = vector.load %arg1[%c0, %c0_0, %c0_1] : memref<1x256x1152xbf16, #tpu.memory_space<vmem>>, vector<1x256x1152xbf16>
    %1 = vector.shape_cast %0 : vector<1x256x1152xbf16> to vector<256x1152xbf16>
    %c0_2 = arith.constant 0 : index
    %c0_3 = arith.constant 0 : index
    %2 = vector.load %arg2[%c0_2, %c0_3] : memref<1152x128xbf16, #tpu.memory_space<vmem>>, vector<1152x128xbf16>
    %cst = arith.constant dense<0.000000e+00> : vector<256x128xf32>
    %3 = tpu.matmul %1, %2, %cst {dimension_numbers = #tpu.dot_dimension_numbers<[1], [0], [0], [1], [0, 0, 1, 1], [], []>} : vector<256x1152xbf16>, vector<1152x128xbf16>, vector<256x128xf32> -> vector<256x128xf32>
    %c0_4 = arith.constant 0 : index
    %c0_5 = arith.constant 0 : index
    %4 = vector.load %arg3[%c0_4, %c0_5] : memref<1x128xf32, #tpu.memory_space<vmem>>, vector<1x128xf32>
    %5 = vector.broadcast %4 : vector<1x128xf32> to vector<256x128xf32>
    %6 = arith.addf %3, %5 : vector<256x128xf32>
    %cst_6 = arith.constant dense<0.000000e+00> : vector<128xf32>
    %7 = vector.multi_reduction <add>, %6, %cst_6 [0] : vector<256x128xf32> to vector<128xf32>
    %8 = vector.shape_cast %7 : vector<128xf32> to vector<1x128xf32>
    %cst_7 = arith.constant 2.560000e+02 : f32
    %9 = vector.broadcast %cst_7 : f32 to vector<1x128xf32>
    %10 = arith.divf %8, %9 : vector<1x128xf32>
    %11 = vector.broadcast %10 : vector<1x128xf32> to vector<256x128xf32>
    %12 = arith.subf %6, %11 : vector<256x128xf32>
    %13 = arith.mulf %12, %12 : vector<256x128xf32>
    %cst_8 = arith.constant dense<0.000000e+00> : vector<128xf32>
    %14 = vector.multi_reduction <add>, %13, %cst_8 [0] : vector<256x128xf32> to vector<128xf32>
    %15 = vector.shape_cast %14 : vector<128xf32> to vector<1x128xf32>
    %cst_9 = arith.constant 2.560000e+02 : f32
    %16 = vector.broadcast %cst_9 : f32 to vector<1x128xf32>
    %17 = arith.divf %15, %16 : vector<1x128xf32>
    %cst_10 = arith.constant 9.99999974E-6 : f32
    %18 = vector.broadcast %cst_10 : f32 to vector<1x128xf32>
    %19 = arith.addf %17, %18 : vector<1x128xf32>
    %20 = math.rsqrt %19 : vector<1x128xf32>
    %21 = vector.broadcast %20 : vector<1x128xf32> to vector<256x128xf32>
    %22 = arith.mulf %12, %21 : vector<256x128xf32>
    %cst_11 = arith.constant 0.000000e+00 : f32
    %23 = vector.broadcast %cst_11 : f32 to vector<256x128xf32>
    %24 = arith.maximumf %22, %23 : vector<256x128xf32>
    %c0_12 = arith.constant 0 : index
    %c0_13 = arith.constant 0 : index
    %c0_14 = arith.constant 0 : index
    %25 = vector.load %arg4[%c0_12, %c0_13, %c0_14] : memref<1x256x128xf32, #tpu.memory_space<vmem>>, vector<1x256x128xf32>
    %26 = vector.shape_cast %25 : vector<1x256x128xf32> to vector<256x128xf32>
    %27 = vector.shape_cast %24 : vector<256x128xf32> to vector<1x256x128xf32>
    tpu.vector_store %arg4[%c0_12, %c0_13, %c0_14], %27 {strides = array<i32>} : memref<1x256x128xf32, #tpu.memory_space<vmem>>, vector<1x256x128xf32>,
    return
  }
  func.func @transform_0(%arg0: i32) -> (i32, i32, i32) {
    %c0_i32 = arith.constant 0 : i32
    %c0_i32_0 = arith.constant 0 : i32
    %c0_i32_1 = arith.constant 0 : i32
    return %arg0, %c0_i32, %c0_i32_0 : i32, i32, i32
  }
  func.func @transform_1(%arg0: i32) -> (i32, i32) {
    %c0_i32 = arith.constant 0 : i32
    %c0_i32_0 = arith.constant 0 : i32
    %c0_i32_1 = arith.constant 0 : i32
    return %c0_i32, %c0_i32_0 : i32, i32
  }
  func.func @transform_2(%arg0: i32) -> (i32, i32) {
    %c0_i32 = arith.constant 0 : i32
    %c0_i32_0 = arith.constant 0 : i32
    %c0_i32_1 = arith.constant 0 : i32
    return %c0_i32, %c0_i32_0 : i32, i32
  }
  func.func @transform_3(%arg0: i32) -> (i32, i32, i32) {
    %c0_i32 = arith.constant 0 : i32
    %c0_i32_0 = arith.constant 0 : i32
    %c0_i32_1 = arith.constant 0 : i32
    return %arg0, %c0_i32, %c0_i32_0 : i32, i32, i32
  }
}

module attributes {stable_mosaic.version = 11 : i64} {
  func.func @_conv_fused_kernel(%arg0: i32, %arg1: memref<1x256x1152xbf16, #tpu.memory_space<vmem>>, %arg2: memref<1152x128xbf16, #tpu.memory_space<vmem>>, %arg3: memref<1x128xf32, #tpu.memory_space<vmem>>, %arg4: memref<1x256x128xf32, #tpu.memory_space<vmem>>) attributes {dimension_semantics = [#tpu.dimension_semantics<parallel>], iteration_bounds = array<i64: 2>, scalar_prefetch = 0 : i64, scratch_operands = 0 : i64, tpu.core_type = #tpu.core_type<tc>, window_params = [{transform_indices = @transform_0, window_bounds = array<i64: 1, 256, 1152>}, {pipeline_mode = #tpu.pipeline_mode<synchronous>, transform_indices = @transform_1, window_bounds = array<i64: 1152, 128>}, {pipeline_mode = #tpu.pipeline_mode<synchronous>, transform_indices = @transform_2, window_bounds = array<i64: 1, 128>}, {transform_indices = @transform_3, window_bounds = array<i64: 1, 256, 128>}]} {
    %c0 = arith.constant 0 : index
    %c0_0 = arith.constant 0 : index
    %c0_1 = arith.constant 0 : index
    %0 = vector.load %arg1[%c0, %c0_0, %c0_1] : memref<1x256x1152xbf16, #tpu.memory_space<vmem>>, vector<1x256x1152xbf16>
    %1 = vector.shape_cast %0 : vector<1x256x1152xbf16> to vector<256x1152xbf16>
    %c0_2 = arith.constant 0 : index
    %c0_3 = arith.constant 0 : index
    %2 = vector.load %arg2[%c0_2, %c0_3] : memref<1152x128xbf16, #tpu.memory_space<vmem>>, vector<1152x128xbf16>
    %cst = arith.constant dense<0.000000e+00> : vector<256x128xf32>
    %3 = tpu.matmul %1, %2, %cst {dimension_numbers = #tpu.dot_dimension_numbers<[1], [0], [0], [1], [0, 0, 1, 1], [], []>} : vector<256x1152xbf16>, vector<1152x128xbf16>, vector<256x128xf32> -> vector<256x128xf32>
    %c0_4 = arith.constant 0 : index
    %c0_5 = arith.constant 0 : index
    %4 = vector.load %arg3[%c0_4, %c0_5] : memref<1x128xf32, #tpu.memory_space<vmem>>, vector<1x128xf32>
    %5 = vector.broadcast %4 : vector<1x128xf32> to vector<256x128xf32>
    %6 = arith.addf %3, %5 : vector<256x128xf32>
    %c0_6 = arith.constant 0 : index
    %c0_7 = arith.constant 0 : index
    %c0_8 = arith.constant 0 : index
    %7 = vector.load %arg4[%c0_6, %c0_7, %c0_8] : memref<1x256x128xf32, #tpu.memory_space<vmem>>, vector<1x256x128xf32>
    %8 = vector.shape_cast %7 : vector<1x256x128xf32> to vector<256x128xf32>
    %9 = vector.shape_cast %6 : vector<256x128xf32> to vector<1x256x128xf32>
    tpu.vector_store %arg4[%c0_6, %c0_7, %c0_8], %9 {strides = array<i32>} : memref<1x256x128xf32, #tpu.memory_space<vmem>>, vector<1x256x128xf32>,
    return
  }
  func.func @transform_0(%arg0: i32) -> (i32, i32, i32) {
    %c0_i32 = arith.constant 0 : i32
    %c0_i32_0 = arith.constant 0 : i32
    %c0_i32_1 = arith.constant 0 : i32
    return %arg0, %c0_i32, %c0_i32_0 : i32, i32, i32
  }
  func.func @transform_1(%arg0: i32) -> (i32, i32) {
    %c0_i32 = arith.constant 0 : i32
    %c0_i32_0 = arith.constant 0 : i32
    %c0_i32_1 = arith.constant 0 : i32
    return %c0_i32, %c0_i32_0 : i32, i32
  }
  func.func @transform_2(%arg0: i32) -> (i32, i32) {
    %c0_i32 = arith.constant 0 : i32
    %c0_i32_0 = arith.constant 0 : i32
    %c0_i32_1 = arith.constant 0 : i32
    return %c0_i32, %c0_i32_0 : i32, i32
  }
  func.func @transform_3(%arg0: i32) -> (i32, i32, i32) {
    %c0_i32 = arith.constant 0 : i32
    %c0_i32_0 = arith.constant 0 : i32
    %c0_i32_1 = arith.constant 0 : i32
    return %arg0, %c0_i32, %c0_i32_0 : i32, i32, i32
  }
}

</mosaic_0001>

<bundles_post_ra>
// kernel: resnet_forward.24
= control target key start
LH: loop header
LB: loop body
LE: loop exit
PB: predicated region body
PF: predicated region fallthrough
CT: control target
= control target key end

     0   :  { %s929_s12 = smov 0   ;;  %s1306_s0 = inlined_call_operand.vmem [shape: bf16[2,196,128], index: 0, kind: input, shape index: {}]   ;;  %s1307_s1 = inlined_call_operand.vmem [shape: bf16[128,128], index: 1, kind: input, shape index: {}]   ;;  %s1308_s2 = inlined_call_operand.vmem [shape: f32[1,128], index: 2, kind: input, shape index: {}]   ;;  %s1309_s3 = inlined_call_operand.vmem [shape: f32[2,196,128], index: 3, kind: output, shape index: {}]  }
   0x1 LB: > { %s728_s13 = sadd.s32 4294967295, %s905_s12   ;;  %p732_p0 = scmp.ge.s32.totalorder %s905_s12, 1  ;;  %s905_s12 = sphi %s929_s12, %s13_s12  }
   0x2   : > { %p137_p1 = scmp.lt.s32.totalorder %s905_s12, 3 }
   0x4   : > { %p138_p2 = pnand %p732_p0, %p137_p1 }
   0x5   : > { %p161_p3 = scmp.lt.s32.totalorder (!%p138_p2), %s728_s13, 1 }
   0x6   : > { %141 = sbr.rel (%p138_p2) target bundleno = 432 (0x1b0), region = 32 }
   0xb   : > { %v876_v0 = vld [vmem:[%s1307_s1 + $0x38] sm:$0xff]   ;;  %v907_v1 = vmov 0.0   ;;  %v877_v2 = vld [vmem:[%s1307_s1 + $0x30] sm:$0xff]   ;;  %vm908_vm0 = vmmov 0   ;;  %s1311_s13 = smov (!%p161_p3, %s728_s13), 1  ;;  %v878_v3 = vld [vmem:[%s1307_s1 + $0x28] sm:$0xff]  }
   0xc   : > { %780 = vmatprep.subr.bf16.mxu0 %v907_v1  ;;  %848 = vmatprep.subr.bf16.mxu1 %v907_v1  ;;  %s864_s20 = smul.u32 100, %s1311_s13  ;;  %v879_v4 = vld [vmem:[%s1307_s1 + $0x20] sm:$0xff]   ;;  %v880_v5 = vld [vmem:[%s1307_s1 + $0x18] sm:$0xff]   ;;  %v881_v6 = vld [vmem:[%s1307_s1 + $0x10] sm:$0xff]   ;;  %vm503_vm1 = vcmask 1043456  }
   0xd   : > { %781 = vmatpush3.bf16.msra.mxu0 %v876_v0  ;;  %856 = vmatpush3.bf16.msra.mxu1 %v876_v0  ;;  %v882_v7 = vld [vmem:[%s1307_s1 + $0x8] sm:$0xff]   ;;  %v883_v8 = vld [vmem:[%s1307_s1] sm:$0xff]   ;;  %s865_s9 = smul.u32 200, %s1311_s13 }
   0xe   : > { %782 = vmatprep.subr.bf16.mxu0 %v907_v1  ;;  %849 = vmatprep.subr.bf16.mxu1 %v907_v1  ;;  %s962_s23 = scalar_lea.vmem %s1306_s0, %s864_s20  ;;  %v1041_v48 = vld [vmem:[%s1308_s2] ss:$0 sm:$0xff] }
   0xf   : > { %796 = vmatprep.mubr.msk.bf16.mxu0 %vm908_vm0, %v907_v1  ;;  %824 = vmatprep.mubr.msk.bf16.mxu1 %vm908_vm0, %v907_v1  ;;  %v884_v9 = vld [vmem:[%s962_s23] sm:$0xff]   ;;  %v888_v10 = vld [vmem:[%s962_s23 + $0x38] sm:$0xff]   ;;  %v885_v11 = vld [vmem:[%s962_s23 + $0x8] sm:$0xff]   ;;  %s1275_s13 = scalar_lea.vmem %s1309_s3, %s865_s9 }
  0x10   : > { %v890_v12 = vld [vmem:[%s962_s23 + $0x40] sm:$0xff]   ;;  %v886_v13 = vld [vmem:[%s962_s23 + $0x10] sm:$0xff]   ;;  %v892_v14 = vld [vmem:[%s962_s23 + $0x48] sm:$0xff]  }
  0x11   : > { %783 = vmatpush3.bf16.msra.mxu0 %v877_v2  ;;  %857 = vmatpush3.bf16.msra.mxu1 %v877_v2  ;;  %v887_v15 = vld [vmem:[%s962_s23 + $0x18] sm:$0xff]   ;;  %v894_v16 = vld [vmem:[%s962_s23 + $0x50] sm:$0xff]   ;;  %v889_v17 = vld [vmem:[%s962_s23 + $0x20] sm:$0xff]  }
  0x12   : > { %784 = vmatprep.subr.bf16.mxu0 %v907_v1  ;;  %850 = vmatprep.subr.bf16.mxu1 %v907_v1  ;;  %v895_v18 = vld [vmem:[%s962_s23 + $0x58] sm:$0xff]   ;;  %v891_v19 = vld [vmem:[%s962_s23 + $0x28] sm:$0xff]   ;;  %v896_v20 = vld [vmem:[%s962_s23 + $0x60] ss:$0 sps:$4 sm:$0x33]  }
  0x13   : > { %v893_v21 = vld [vmem:[%s962_s23 + $0x30] sm:$0xff]  }
  0x15   : > { %785 = vmatpush3.bf16.msra.mxu0 %v878_v3  ;;  %858 = vmatpush3.bf16.msra.mxu1 %v878_v3 }
  0x16   : > { %786 = vmatprep.subr.bf16.mxu0 %v907_v1  ;;  %851 = vmatprep.subr.bf16.mxu1 %v907_v1 }
  0x19   : > { %787 = vmatpush3.bf16.msra.mxu0 %v879_v4  ;;  %859 = vmatpush3.bf16.msra.mxu1 %v879_v4 }
  0x1a   : > { %788 = vmatprep.subr.bf16.mxu0 %v907_v1  ;;  %852 = vmatprep.subr.bf16.mxu1 %v907_v1 }
  0x1d   : > { %789 = vmatpush3.bf16.msra.mxu0 %v880_v5  ;;  %860 = vmatpush3.bf16.msra.mxu1 %v880_v5 }
  0x1e   : > { %790 = vmatprep.subr.bf16.mxu0 %v907_v1  ;;  %853 = vmatprep.subr.bf16.mxu1 %v907_v1 }
  0x21   : > { %791 = vmatpush3.bf16.msra.mxu0 %v881_v6  ;;  %861 = vmatpush3.bf16.msra.mxu1 %v881_v6 }
  0x22   : > { %792 = vmatprep.subr.bf16.mxu0 %v907_v1  ;;  %854 = vmatprep.subr.bf16.mxu1 %v907_v1 }
  0x25   : > { %793 = vmatpush3.bf16.msra.mxu0 %v882_v7  ;;  %862 = vmatpush3.bf16.msra.mxu1 %v882_v7 }
  0x26   : > { %794 = vmatprep.subr.bf16.mxu0 %v907_v1  ;;  %855 = vmatprep.subr.bf16.mxu1 %v907_v1 }
  0x29   : > { %795 = vmatpush3.bf16.msra.mxu0 %v883_v8  ;;  %863 = vmatpush3.bf16.msra.mxu1 %v883_v8 }
  0x2c   : > { %797 = vmatmul.mubr.bf16.vlgmr.msra.gmra.mxu0 %v884_v9  ;;  %825 = vmatmul.mubr.bf16.vlgmr.msra.gmra.mxu1 %v888_v10 }
  0x2d   : > { %800 = vmatprep.mubr.msk.bf16.mxu0 %vm908_vm0, %v907_v1  ;;  %828 = vmatprep.mubr.msk.bf16.mxu1 %vm908_vm0, %v907_v1 }
  0x34   : > { %801 = vmatmul.mubr.bf16.gmra.mxu0 %v885_v11  ;;  %829 = vmatmul.mubr.bf16.gmra.mxu1 %v890_v12 }
  0x35   : > { %804 = vmatprep.mubr.msk.bf16.mxu0 %vm908_vm0, %v907_v1  ;;  %832 = vmatprep.mubr.msk.bf16.mxu1 %vm908_vm0, %v907_v1 }
  0x3c   : > { %805 = vmatmul.mubr.bf16.gmra.mxu0 %v886_v13  ;;  %833 = vmatmul.mubr.bf16.gmra.mxu1 %v892_v14 }
  0x3d   : > { %808 = vmatprep.mubr.msk.bf16.mxu0 %vm908_vm0, %v907_v1  ;;  %836 = vmatprep.mubr.msk.bf16.mxu1 %vm908_vm0, %v907_v1 }
  0x44   : > { %809 = vmatmul.mubr.bf16.gmra.mxu0 %v887_v15  ;;  %837 = vmatmul.mubr.bf16.gmra.mxu1 %v894_v16 }
  0x45   : > { %812 = vmatprep.mubr.msk.bf16.mxu0 %vm908_vm0, %v907_v1  ;;  %840 = vmatprep.mubr.msk.bf16.mxu1 %vm908_vm0, %v907_v1 }
  0x4c   : > { %813 = vmatmul.mubr.bf16.gmra.mxu0 %v889_v17  ;;  %841 = vmatmul.mubr.bf16.gmra.mxu1 %v895_v18 }
  0x4d   : > { %816 = vmatprep.mubr.msk.bf16.mxu0 %vm908_vm0, %v907_v1  ;;  %844 = vmatprep.mubr.msk.bf16.mxu1 %vm908_vm0, %v907_v1 }
  0x54   : > { %817 = vmatmul.mubr.bf16.gmra.mxu0 %v891_v19  ;;  %845 = vmatmul.mubr.bf16.gmra.mxu1 %v896_v20 }
  0x55   : > { %820 = vmatprep.mubr.msk.bf16.mxu0 %vm908_vm0, %v907_v1 }
  0x5c   : > { %821 = vmatmul.mubr.bf16.gmra.mxu0 %v893_v21 }
  0xec   : > { %v378_v22 = vpop.f32.mrf.mxu0  ;;  %v1024_v23 = vpop.f32.mrf.mxu1 }
  0xed   : > { %v1047_v54 = vadd.f32 %v1041_v48, %v378_v22 }
  0xee   : > { %v798_v24 = vpop.f32.mrf.mxu0  ;;  %v826_v25 = vpop.f32.mrf.mxu1 }
  0xf0   : > { %v381_v26 = vpop.f32.mrf.mxu0  ;;  %v1026_v27 = vpop.f32.mrf.mxu1 }
  0xf1   : > { %v1044_v51 = vadd.f32 %v1041_v48, %v381_v26 }
  0xf2   : > { %v799_v28 = vpop.f32.mrf.mxu0  ;;  %v827_v29 = vpop.f32.mrf.mxu1 }
  0xf3   : > { %v480_v58 = vadd.f32 %v1044_v51, %v1047_v54 }
  0xf4   : > { %v386_v30 = vpop.f32.mrf.mxu0  ;;  %v1028_v31 = vpop.f32.mrf.mxu1 }
  0xf5   : > { %v1050_v55 = vadd.f32 %v1041_v48, %v386_v30 }
  0xf6   : > { %v802_v32 = vpop.f32.mrf.mxu0  ;;  %v830_v33 = vpop.f32.mrf.mxu1 }
  0xf7   : > { %v481_v62 = vadd.f32 %v480_v58, %v1050_v55 }
  0xf8   : > { %v389_v34 = vpop.f32.mrf.mxu0  ;;  %v1030_v35 = vpop.f32.mrf.mxu1 }
  0xf9   : > { %v1055_v59 = vadd.f32 %v1041_v48, %v389_v34 }
  0xfa   : > { %v803_v36 = vpop.f32.mrf.mxu0  ;;  %v831_v37 = vpop.f32.mrf.mxu1 }
  0xfb   : > { %v482_v2 = vadd.f32 %v481_v62, %v1055_v59 }
  0xfc   : > { %v394_v38 = vpop.f32.mrf.mxu0  ;;  %v1032_v39 = vpop.f32.mrf.mxu1 }
  0xfd   : > { %v1059_v63 = vadd.f32 %v1041_v48, %v394_v38 }
  0xfe   : > { %v806_v40 = vpop.f32.mrf.mxu0  ;;  %v834_v41 = vpop.f32.mrf.mxu1 }
  0xff   : > { %v483_v6 = vadd.f32 %v482_v2, %v1059_v63 }
 0x100   : > { %v397_v42 = vpop.f32.mrf.mxu0  ;;  %v1034_v43 = vpop.f32.mrf.mxu1 }
 0x101   : > { %v1063_v3 = vadd.f32 %v1041_v48, %v397_v42  ;;  %v435_v42 = vadd.f32 %v1041_v48, %v1024_v23  ;;  %v1114_v23 = vadd.f32 %v1041_v48, %v1032_v39 }
 0x102   : > { %v807_v44 = vpop.f32.mrf.mxu0  ;;  %v835_v45 = vpop.f32.mrf.mxu1 }
 0x103   : > { %v484_v10 = vadd.f32 %v483_v6, %v1063_v3  ;;  %v438_v45 = vadd.f32 %v1041_v48, %v1026_v27  ;;  %v1119_v27 = vadd.f32 %v1041_v48, %v1034_v43 }
 0x104   : > { %v402_v46 = vpop.f32.mrf.mxu0  ;;  %v1036_v47 = vpop.f32.mrf.mxu1 }
 0x105   : > { %v1067_v7 = vadd.f32 %v1041_v48, %v402_v46  ;;  %v1124_v58 = vadd.f32 %v1041_v48, %v1036_v47 }
 0x106   : > { %v810_v49 = vpop.f32.mrf.mxu0  ;;  %v838_v50 = vpop.f32.mrf.mxu1 }
 0x107   : > { %v485_v14 = vadd.f32 %v484_v10, %v1067_v7  ;;  %v1105_v49 = vadd.f32 %v1041_v48, %v1028_v31 }
 0x108   : > { %v405_v52 = vpop.f32.mrf.mxu0  ;;  %v461_v53 = vpop.f32.mrf.mxu1 }
 0x109   : > { %v1071_v11 = vadd.f32 %v1041_v48, %v405_v52  ;;  %v1109_v52 = vadd.f32 %v1041_v48, %v1030_v35 }
 0x10a   : > { %v811_v56 = vpop.f32.mrf.mxu0  ;;  %v839_v57 = vpop.f32.mrf.mxu1 }
 0x10b   : > { %v486_v18 = vadd.f32 %v485_v14, %v1071_v11 }
 0x10c   : > { %v410_v60 = vpop.f32.mrf.mxu0  ;;  %v466_v61 = vpop.f32.mrf.mxu1 }
 0x10d   : > { %v1075_v15 = vadd.f32 %v1041_v48, %v410_v60  ;;  %v1128_v60 = vadd.f32 %v1041_v48, %v461_v53  ;;  %v1134_v43 = vadd.f32 %v1041_v48, %v466_v61 }
 0x10e   : > { %v814_v0 = vpop.f32.mrf.mxu0  ;;  %v842_v1 = vpop.f32.mrf.mxu1 }
 0x10f   : > { %v487_v22 = vadd.f32 %v486_v18, %v1075_v15 }
 0x110   : > { %v413_v4 = vpop.f32.mrf.mxu0  ;;  %v469_v5 = vpop.f32.mrf.mxu1 }
 0x111   : > { %v1079_v19 = vadd.f32 %v1041_v48, %v413_v4  ;;  %v1138_v47 = vadd.f32 %v1041_v48, %v469_v5 }
 0x112   : > { %v815_v8 = vpop.f32.mrf.mxu0  ;;  %v843_v9 = vpop.f32.mrf.mxu1 }
 0x113   : > { %v488_v28 = vadd.f32 %v487_v22, %v1079_v19 }
 0x114   : > { %v418_v12 = vpop.f32.mrf.mxu0  ;;  %v474_v13 = vpop.f32.mrf.mxu1 }
 0x115   : > { %v1083_v24 = vadd.f32 %v1041_v48, %v418_v12  ;;  %v475_v62 = vadd.f32 %v1041_v48, %v474_v13 }
 0x116   : > { %v818_v16 = vpop.f32.mrf.mxu0  ;;  %v846_v17 = vpop.f32.mrf.mxu1 }
 0x117   : > { %v489_v32 = vadd.f32 %v488_v28, %v1083_v24  ;;  %v504_v2 = vsel %vm503_vm1, %v475_v62, 0.0 }
 0x118   : > { %v421_v20 = vpop.f32.mrf.mxu0  ;;  %v477_v21 = vpop.f32.mrf.mxu1 }
 0x119   : > { %v1087_v29 = vadd.f32 %v1041_v48, %v421_v20 }
 0x11a   : > { %v819_v25 = vpop.f32.mrf.mxu0  ;;  %v847_v26 = vpop.f32.mrf.mxu1 }
 0x11b   : > { %v490_v36 = vadd.f32 %v489_v32, %v1087_v29 }
 0x11c   : > { %v426_v30 = vpop.f32.mrf.mxu0 }
 0x11d   : > { %v1091_v33 = vadd.f32 %v1041_v48, %v426_v30 }
 0x11e   : > { %v822_v34 = vpop.f32.mrf.mxu0 }
 0x11f   : > { %v491_v38 = vadd.f32 %v490_v36, %v1091_v33 }
 0x120   : > { %v429_v37 = vpop.f32.mrf.mxu0 }
 0x121   : > { %v1096_v40 = vadd.f32 %v1041_v48, %v429_v37 }
 0x122   : > { %v823_v41 = vpop.f32.mrf.mxu0 }
 0x123   : > { %v492_v44 = vadd.f32 %v491_v38, %v1096_v40 }
 0x125   : > { %v493_v46 = vadd.f32 %v492_v44, %v435_v42 }
 0x127   : > { %v494_v50 = vadd.f32 %v493_v46, %v438_v45 }
 0x129   : > { %v495_v56 = vadd.f32 %v494_v50, %v1105_v49 }
 0x12b   : > { %v496_v57 = vadd.f32 %v495_v56, %v1109_v52 }
 0x12d   : > { %v497_v31 = vadd.f32 %v496_v57, %v1114_v23 }
 0x12f   : > { %v498_v35 = vadd.f32 %v497_v31, %v1119_v27 }
 0x131   : > { %v499_v39 = vadd.f32 %v498_v35, %v1124_v58 }
 0x133   : > { %v500_v0 = vadd.f32 %v499_v39, %v1128_v60 }
 0x135   : > { %v501_v1 = vadd.f32 %v500_v0, %v1134_v43 }
 0x137   : > { %v502_v53 = vadd.f32 %v501_v1, %v1138_v47 }
 0x139   : > { %v505_v4 = vadd.f32 %v504_v2, %v502_v53 }
 0x13b   : > { %v506_v6 = vrot.slane %v505_v4, 4 }
 0x13d   : > { %v507_v8 = vadd.f32 %v506_v6, %v505_v4 }
 0x13f   : > { %v508_v9 = vrot.slane %v507_v8, 2 }
 0x141   : > { %v509_v10 = vadd.f32 %v508_v9, %v507_v8 }
 0x143   : > { %v510_v12 = vrot.slane %v509_v10, 1 }
 0x145   : > { %v511_v13 = vadd.f32 %v510_v12, %v509_v10 }
 0x147   : > { %v1142_v14 = vmul.f32 0.0051020407, %v511_v13 }
 0x149   : > { %v1145_v61 = vsub.f32 %v435_v42, %v1142_v14  ;;  %v1148_v16 = vsub.f32 %v438_v45, %v1142_v14  ;;  %v1152_v48 = vsub.f32 %v1047_v54, %v1142_v14  ;;  %v1156_v5 = vsub.f32 %v1044_v51, %v1142_v14 }
 0x14a   : > { %v1160_v17 = vsub.f32 %v1050_v55, %v1142_v14  ;;  %v1163_v18 = vsub.f32 %v475_v62, %v1142_v14  ;;  %v1171_v54 = vsub.f32 %v1055_v59, %v1142_v14  ;;  %v1175_v51 = vsub.f32 %v1059_v63, %v1142_v14 }
 0x14b   : > { %v539_v20 = vmul.f32 %v1152_v48, %v1152_v48  ;;  %v540_v21 = vmul.f32 %v1156_v5, %v1156_v5  ;;  %v1183_v26 = vsub.f32 %v1063_v3, %v1142_v14  ;;  %v1190_v63 = vsub.f32 %v1067_v7, %v1142_v14 }
 0x14c   : > { %v541_v55 = vmul.f32 %v1160_v17, %v1160_v17  ;;  %v563_v22 = vmul.f32 %v1163_v18, %v1163_v18  ;;  %v542_v28 = vmul.f32 %v1171_v54, %v1171_v54  ;;  %v543_v32 = vmul.f32 %v1175_v51, %v1175_v51 }
 0x14d   : > { %v564_v25 = vadd.f32 %v540_v21, %v539_v20  ;;  %v1196_v36 = vsub.f32 %v1071_v11, %v1142_v14  ;;  %v544_v3 = vmul.f32 %v1183_v26, %v1183_v26  ;;  %v1202_v38 = vsub.f32 %v1075_v15, %v1142_v14 }
 0x14e   : > { %v587_v30 = vsel %vm503_vm1, %v563_v22, 0.0  ;;  %v545_v7 = vmul.f32 %v1190_v63, %v1190_v63  ;;  %v1208_v42 = vsub.f32 %v1079_v19, %v1142_v14  ;;  %v1214_v45 = vsub.f32 %v1083_v24, %v1142_v14 }
 0x14f   : > { %v565_v59 = vadd.f32 %v564_v25, %v541_v55  ;;  %v546_v11 = vmul.f32 %v1196_v36, %v1196_v36  ;;  %v547_v15 = vmul.f32 %v1202_v38, %v1202_v38  ;;  %v1220_v50 = vsub.f32 %v1087_v29, %v1142_v14 }
 0x150   : > { %v548_v19 = vmul.f32 %v1208_v42, %v1208_v42  ;;  %v1226_v57 = vsub.f32 %v1091_v33, %v1142_v14  ;;  %v549_v24 = vmul.f32 %v1214_v45, %v1214_v45  ;;  %v527_v35 = vsub.f32 %v1096_v40, %v1142_v14 }
 0x151   : > { %v566_v34 = vadd.f32 %v565_v59, %v542_v28  ;;  %v550_v39 = vmul.f32 %v1220_v50, %v1220_v50  ;;  %v530_v33 = vsub.f32 %v1105_v49, %v1142_v14  ;;  %v553_v53 = vmul.f32 %v1145_v61, %v1145_v61 }
 0x152   : > { %v551_v62 = vmul.f32 %v1226_v57, %v1226_v57  ;;  %v552_v1 = vmul.f32 %v527_v35, %v527_v35  ;;  %v531_v40 = vsub.f32 %v1109_v52, %v1142_v14  ;;  %v554_v6 = vmul.f32 %v1148_v16, %v1148_v16 }
 0x153   : > { %v567_v37 = vadd.f32 %v566_v34, %v543_v32  ;;  %v532_v9 = vsub.f32 %v1114_v23, %v1142_v14  ;;  %v555_v10 = vmul.f32 %v530_v33, %v530_v33  ;;  %v533_v13 = vsub.f32 %v1119_v27, %v1142_v14 }
 0x154   : > { %v556_v49 = vmul.f32 %v531_v40, %v531_v40  ;;  %v534_v21 = vsub.f32 %v1124_v58, %v1142_v14  ;;  %v535_v52 = vsub.f32 %v1128_v60, %v1142_v14  ;;  %v536_v23 = vsub.f32 %v1134_v43, %v1142_v14 }
 0x155   : > { %v568_v41 = vadd.f32 %v567_v37, %v544_v3  ;;  %v557_v55 = vmul.f32 %v532_v9, %v532_v9  ;;  %v558_v25 = vmul.f32 %v533_v13, %v533_v13  ;;  %v537_v27 = vsub.f32 %v1138_v47, %v1142_v14 }
 0x156   : > { %v559_v59 = vmul.f32 %v534_v21, %v534_v21  ;;  %v560_v34 = vmul.f32 %v535_v52, %v535_v52  ;;  %v561_v37 = vmul.f32 %v536_v23, %v536_v23 }
 0x157   : > { %v569_v44 = vadd.f32 %v568_v41, %v545_v7  ;;  %v562_v58 = vmul.f32 %v537_v27, %v537_v27 }
 0x159   : > { %v570_v46 = vadd.f32 %v569_v44, %v546_v11 }
 0x15b   : > { %v571_v56 = vadd.f32 %v570_v46, %v547_v15 }
 0x15d   : > { %v572_v31 = vadd.f32 %v571_v56, %v548_v19 }
 0x15f   : > { %v573_v29 = vadd.f32 %v572_v31, %v549_v24 }
 0x161   : > { %v574_v0 = vadd.f32 %v573_v29, %v550_v39 }
 0x163   : > { %v575_v2 = vadd.f32 %v574_v0, %v551_v62 }
 0x165   : > { %v576_v4 = vadd.f32 %v575_v2, %v552_v1 }
 0x167   : > { %v577_v8 = vadd.f32 %v576_v4, %v553_v53 }
 0x169   : > { %v578_v12 = vadd.f32 %v577_v8, %v554_v6 }
 0x16b   : > { %v579_v20 = vadd.f32 %v578_v12, %v555_v10 }
 0x16d   : > { %v580_v22 = vadd.f32 %v579_v20, %v556_v49 }
 0x16f   : > { %v581_v28 = vadd.f32 %v580_v22, %v557_v55 }
 0x171   : > { %v582_v32 = vadd.f32 %v581_v28, %v558_v25 }
 0x173   : > { %v583_v3 = vadd.f32 %v582_v32, %v559_v59 }
 0x175   : > { %v584_v7 = vadd.f32 %v583_v3, %v560_v34 }
 0x177   : > { %v585_v41 = vadd.f32 %v584_v7, %v561_v37 }
 0x179   : > { %v586_v11 = vadd.f32 %v585_v41, %v562_v58 }
 0x17b   : > { %v588_v44 = vadd.f32 %v587_v30, %v586_v11 }
 0x17d   : > { %v589_v60 = vrot.slane %v588_v44, 4 }
 0x17f   : > { %v590_v15 = vadd.f32 %v589_v60, %v588_v44 }
 0x181   : > { %v591_v46 = vrot.slane %v590_v15, 2 }
 0x183   : > { %v592_v19 = vadd.f32 %v591_v46, %v590_v15 }
 0x185   : > { %v593_v56 = vrot.slane %v592_v19, 1 }
 0x187   : > { %v594_v43 = vadd.f32 %v593_v56, %v592_v19 }
 0x189   : > { %v595_v24 = vmul.f32 0.0051020407, %v594_v43 }
 0x18b   : > { %v596_v31 = vadd.f32 1e-05, %v595_v24 }
 0x18d   : > { %897 = vrsqrt.f32 %v596_v31 }
 0x19a   : > { %v898_v39 = vpop.eup %897 }
 0x19b   : > { %v598_v47 = vmul.f32 %v898_v39, %v1152_v48  ;;  %v599_v14 = vmul.f32 %v898_v39, %v1156_v5  ;;  %v600_v29 = vmul.f32 %v898_v39, %v1160_v17  ;;  %v601_v62 = vmul.f32 %v898_v39, %v1171_v54 }
 0x19c   : > { %v602_v30 = vmul.f32 %v898_v39, %v1175_v51  ;;  %v603_v0 = vmul.f32 %v898_v39, %v1183_v26  ;;  %v604_v1 = vmul.f32 %v898_v39, %v1190_v63  ;;  %v605_v2 = vmul.f32 %v898_v39, %v1196_v36 }
 0x19d   : > { %v606_v53 = vmul.f32 %v898_v39, %v1202_v38  ;;  %v607_v4 = vmul.f32 %v898_v39, %v1208_v42  ;;  %v608_v48 = vmul.f32 %v898_v39, %v1214_v45  ;;  %v609_v5 = vmul.f32 %v898_v39, %v1220_v50 }
 0x19e   : > { %v610_v17 = vmul.f32 %v898_v39, %v1226_v57  ;;  %v611_v54 = vmul.f32 %v898_v39, %v527_v35  ;;  %v612_v6 = vmul.f32 %v898_v39, %v1145_v61  ;;  %v613_v51 = vmul.f32 %v898_v39, %v1148_v16 }
 0x19f   : > { %v614_v26 = vmul.f32 %v898_v39, %v530_v33  ;;  %v615_v8 = vmul.f32 %v898_v39, %v531_v40  ;;  %v616_v63 = vmul.f32 %v898_v39, %v532_v9  ;;  %v617_v10 = vmul.f32 %v898_v39, %v533_v13 }
 0x1a0   : > { %v618_v36 = vmul.f32 %v898_v39, %v534_v21  ;;  %v619_v38 = vmul.f32 %v898_v39, %v535_v52  ;;  %v620_v42 = vmul.f32 %v898_v39, %v536_v23  ;;  %v621_v45 = vmul.f32 %v898_v39, %v537_v27 }
 0x1a1   : > { %v622_v61 = vmul.f32 %v898_v39, %v1163_v18  ;;  %v623_v50 = vmax.f32 %v598_v47, 0.0  ;;  %v624_v16 = vmax.f32 %v599_v14, 0.0  ;;  %v625_v57 = vmax.f32 %v600_v29, 0.0 }
 0x1a2   : > { %v626_v35 = vmax.f32 %v601_v62, 0.0  ;;  %v627_v33 = vmax.f32 %v602_v30, 0.0  ;;  %v628_v40 = vmax.f32 %v603_v0, 0.0  ;;  %v629_v9 = vmax.f32 %v604_v1, 0.0 }
 0x1a3   : > { %v630_v12 = vmax.f32 %v605_v2, 0.0  ;;  %v631_v13 = vmax.f32 %v606_v53, 0.0  ;;  %v632_v49 = vmax.f32 %v607_v4, 0.0  ;;  %v633_v20 = vmax.f32 %v608_v48, 0.0  ;;  %648 = vst [vmem:[%s1275_s13] sm:$0xff] %v623_v50  ;;  %649 = vst [vmem:[%s1275_s13 + $0x8] sm:$0xff] %v624_v16 }
 0x1a4   : > { %650 = vst [vmem:[%s1275_s13 + $0x10] sm:$0xff] %v625_v57  ;;  %v634_v18 = vmax.f32 %v609_v5, 0.0  ;;  %v635_v21 = vmax.f32 %v610_v17, 0.0  ;;  %v636_v55 = vmax.f32 %v611_v54, 0.0  ;;  %v637_v22 = vmax.f32 %v612_v6, 0.0  ;;  %651 = vst [vmem:[%s1275_s13 + $0x18] sm:$0xff] %v626_v35 }
 0x1a5   : > { %652 = vst [vmem:[%s1275_s13 + $0x20] sm:$0xff] %v627_v33  ;;  %653 = vst [vmem:[%s1275_s13 + $0x28] sm:$0xff] %v628_v40  ;;  %v638_v52 = vmax.f32 %v613_v51, 0.0  ;;  %v639_v25 = vmax.f32 %v614_v26, 0.0  ;;  %v640_v28 = vmax.f32 %v615_v8, 0.0  ;;  %v641_v23 = vmax.f32 %v616_v63, 0.0 }
 0x1a6   : > { %654 = vst [vmem:[%s1275_s13 + $0x30] sm:$0xff] %v629_v9  ;;  %655 = vst [vmem:[%s1275_s13 + $0x38] sm:$0xff] %v630_v12  ;;  %v642_v59 = vmax.f32 %v617_v10, 0.0  ;;  %v643_v32 = vmax.f32 %v618_v36, 0.0  ;;  %v644_v27 = vmax.f32 %v619_v38, 0.0  ;;  %v645_v34 = vmax.f32 %v620_v42, 0.0 }
 0x1a7   : > { %656 = vst [vmem:[%s1275_s13 + $0x40] sm:$0xff] %v631_v13  ;;  %657 = vst [vmem:[%s1275_s13 + $0x48] sm:$0xff] %v632_v49  ;;  %v646_v3 = vmax.f32 %v621_v45, 0.0  ;;  %v647_v37 = vmax.f32 %v622_v61, 0.0 }
 0x1a8   : > { %658 = vst [vmem:[%s1275_s13 + $0x50] sm:$0xff] %v633_v20  ;;  %659 = vst [vmem:[%s1275_s13 + $0x58] sm:$0xff] %v634_v18 }
 0x1a9   : > { %660 = vst [vmem:[%s1275_s13 + $0x60] sm:$0xff] %v635_v21  ;;  %661 = vst [vmem:[%s1275_s13 + $0x68] sm:$0xff] %v636_v55 }
 0x1aa   : > { %662 = vst [vmem:[%s1275_s13 + $0x70] sm:$0xff] %v637_v22  ;;  %663 = vst [vmem:[%s1275_s13 + $0x78] sm:$0xff] %v638_v52 }
 0x1ab   : > { %664 = vst [vmem:[%s1275_s13 + $0x80] sm:$0xff] %v639_v25  ;;  %665 = vst [vmem:[%s1275_s13 + $0x88] sm:$0xff] %v640_v28 }
 0x1ac   : > { %666 = vst [vmem:[%s1275_s13 + $0x90] sm:$0xff] %v641_v23  ;;  %667 = vst [vmem:[%s1275_s13 + $0x98] sm:$0xff] %v642_v59 }
 0x1ad   : > { %668 = vst [vmem:[%s1275_s13 + $0xa0] sm:$0xff] %v643_v32  ;;  %669 = vst [vmem:[%s1275_s13 + $0xa8] sm:$0xff] %v644_v27 }
 0x1ae   : > { %670 = vst [vmem:[%s1275_s13 + $0xb0] sm:$0xff] %v645_v34  ;;  %671 = vst [vmem:[%s1275_s13 + $0xb8] sm:$0xff] %v646_v3 }
 0x1af   : > { %672 = vst [vmem:[%s1275_s13 + $0xc0] sm:$0xf] %v647_v37 }
 0x1b0 PF: > { %s13_s12 = sadd.s32 1, %s905_s12  }
 0x1b1   : > { %p10_p4 = scmp.ge.s32.totalorder %s13_s12, 4  }
 0x1b3   :  { %12 = sbr.rel (!%p10_p4) target bundleno = 1 (0x1), region = 62 }

// kernel: resnet_forward.25
= control target key start
LH: loop header
LB: loop body
LE: loop exit
PB: predicated region body
PF: predicated region fallthrough
CT: control target
= control target key end

     0   :  { %s1892_s12 = smov 0   ;;  %s2205_s0 = inlined_call_operand.vmem [shape: bf16[2,49,1152], index: 0, kind: input, shape index: {}]   ;;  %s2206_s1 = inlined_call_operand.vmem [shape: bf16[1152,128], index: 1, kind: input, shape index: {}]   ;;  %s2207_s2 = inlined_call_operand.vmem [shape: f32[1,128], index: 2, kind: input, shape index: {}]   ;;  %s2208_s3 = inlined_call_operand.vmem [shape: f32[2,49,128], index: 3, kind: output, shape index: {}]  }
   0x1 LB: > { %s1402_s13 = sadd.s32 4294967295, %s1870_s12   ;;  %p1406_p0 = scmp.ge.s32.totalorder %s1870_s12, 1  ;;  %s1870_s12 = sphi %s1892_s12, %s13_s12  }
   0x2   : > { %p137_p1 = scmp.lt.s32.totalorder %s1870_s12, 3 }
   0x4   : > { %p138_p2 = pnand %p1406_p0, %p137_p1 }
   0x6   : > { %141 = sbr.rel (%p138_p2) target bundleno = 391 (0x187), region = 32 }
   0xb   : > { %v1742_v0 = vld [vmem:[%s2206_s1 + $0x78] sm:$0xff]   ;;  %v1746_v4 = vld [vmem:[%s2206_s1 + $0x70] sm:$0xff]   ;;  %v1750_v8 = vld [vmem:[%s2206_s1 + $0x68] sm:$0xff]   ;;  %p161_p3 = scmp.lt.s32.totalorder %s1402_s13, 1  ;;  %vm1285_vm0 = vcmask 1040384  }
   0xc   : > { %v1743_v1 = vld [vmem:[%s2206_s1 + $0xf8] sm:$0xff]   ;;  %1520 = vmatprep.subr.bf16.mxu0 %v1742_v0  ;;  %v1747_v5 = vld [vmem:[%s2206_s1 + $0xf0] sm:$0xff]   ;;  %v1751_v9 = vld [vmem:[%s2206_s1 + $0xe8] sm:$0xff]  }
   0xd   : > { %v1744_v2 = vld [vmem:[%s2206_s1 + $0x38] sm:$0xff]   ;;  %1560 = vmatprep.subr.bf16.mxu1 %v1743_v1  ;;  %v1748_v6 = vld [vmem:[%s2206_s1 + $0x30] sm:$0xff]   ;;  %v1752_v10 = vld [vmem:[%s2206_s1 + $0x28] sm:$0xff]   ;;  %s2224_s13 = smov (!%p161_p3, %s1402_s13), 1 }
   0xe   : > { %v1745_v3 = vld [vmem:[%s2206_s1 + $0xb8] sm:$0xff]   ;;  %1521 = vmatpush3.bf16.msra.mxu0 %v1744_v2  ;;  %v1749_v7 = vld [vmem:[%s2206_s1 + $0xb0] sm:$0xff]   ;;  %v1753_v11 = vld [vmem:[%s2206_s1 + $0xa8] sm:$0xff]   ;;  %s1732_s16 = smul.u32 252, %s2224_s13 }
   0xf   : > { %1561 = vmatpush3.bf16.msra.mxu1 %v1745_v3  ;;  %1522 = vmatprep.subr.bf16.mxu0 %v1746_v4  ;;  %v1754_v12 = vld [vmem:[%s2206_s1 + $0x60] sm:$0xff]   ;;  %v1758_v16 = vld [vmem:[%s2206_s1 + $0x58] sm:$0xff]   ;;  %v1762_v20 = vld [vmem:[%s2206_s1 + $0x50] sm:$0xff]  }
  0x10   : > { %1562 = vmatprep.subr.bf16.mxu1 %v1747_v5  ;;  %v1755_v13 = vld [vmem:[%s2206_s1 + $0xe0] sm:$0xff]   ;;  %v1759_v17 = vld [vmem:[%s2206_s1 + $0xd8] sm:$0xff]   ;;  %v1763_v21 = vld [vmem:[%s2206_s1 + $0xd0] sm:$0xff]   ;;  %s2000_s27 = scalar_lea.vmem %s2205_s0, %s1732_s16  ;;  %s1733_s16 = smul.u32 56, %s2224_s13 }
  0x11   : > { %v1756_v14 = vld [vmem:[%s2206_s1 + $0x20] sm:$0xff]   ;;  %v1760_v18 = vld [vmem:[%s2206_s1 + $0x18] sm:$0xff]   ;;  %v1764_v22 = vld [vmem:[%s2206_s1 + $0x10] sm:$0xff]  }
  0x12   : > { %1523 = vmatpush3.bf16.msra.mxu0 %v1748_v6  ;;  %v1757_v15 = vld [vmem:[%s2206_s1 + $0xa0] sm:$0xff]   ;;  %v1761_v19 = vld [vmem:[%s2206_s1 + $0x98] sm:$0xff]   ;;  %v1765_v23 = vld [vmem:[%s2206_s1 + $0x90] sm:$0xff]   ;;  %s170_s19 = scalar_lea.vmem %s2208_s3, %s1733_s16 }
  0x13   : > { %1563 = vmatpush3.bf16.msra.mxu1 %v1749_v7  ;;  %1524 = vmatprep.subr.bf16.mxu0 %v1750_v8  ;;  %v1766_v24 = vld [vmem:[%s2206_s1 + $0x48] sm:$0xff]   ;;  %v1770_v28 = vld [vmem:[%s2206_s1 + $0x40] sm:$0xff]   ;;  %v1780_v36 = vld [vmem:[%s2206_s1 + $0x178] sm:$0xff]  }
  0x14   : > { %1564 = vmatprep.subr.bf16.mxu1 %v1751_v9  ;;  %v1767_v25 = vld [vmem:[%s2206_s1 + $0xc8] sm:$0xff]   ;;  %v1771_v29 = vld [vmem:[%s2206_s1 + $0xc0] sm:$0xff]   ;;  %v1781_v37 = vld [vmem:[%s2206_s1 + $0x1f8] sm:$0xff]  }
  0x15   : > { %v1768_v26 = vld [vmem:[%s2206_s1 + $0x8] sm:$0xff]   ;;  %v1772_v30 = vld [vmem:[%s2206_s1] sm:$0xff]   ;;  %v1782_v38 = vld [vmem:[%s2206_s1 + $0x138] sm:$0xff]  }
  0x16   : > { %1525 = vmatpush3.bf16.msra.mxu0 %v1752_v10  ;;  %v1769_v27 = vld [vmem:[%s2206_s1 + $0x88] sm:$0xff]   ;;  %v1773_v31 = vld [vmem:[%s2206_s1 + $0x80] sm:$0xff]   ;;  %v1783_v39 = vld [vmem:[%s2206_s1 + $0x1b8] sm:$0xff]  }
  0x17   : > { %1565 = vmatpush3.bf16.msra.mxu1 %v1753_v11  ;;  %1526 = vmatprep.subr.bf16.mxu0 %v1754_v12  ;;  %v1774_v32 = vld [vmem:[%s2000_s27] ss:$36 sps:$4 sm:$0xff]   ;;  %v1777_v34 = vld [vmem:[%s2000_s27 + $0x8] ss:$36 sps:$4 sm:$0xff]   ;;  %v1784_v40 = vld [vmem:[%s2206_s1 + $0x170] sm:$0xff]  }
  0x18   : > { %1566 = vmatprep.subr.bf16.mxu1 %v1755_v13  ;;  %v1776_v33 = vld [vmem:[%s2000_s27 + $0x4] ss:$36 sps:$4 sm:$0xff]   ;;  %v1779_v35 = vld [vmem:[%s2000_s27 + $0xc] ss:$36 sps:$4 sm:$0xff]   ;;  %v1790_v45 = vld [vmem:[%s2000_s27 + $0x54] ss:$36 sps:$4 sm:$0xff]  }
  0x19   : > { %992 = vmatprep.mubr.bf16.mxu0 %v1776_v33  ;;  %1056 = vmatprep.mubr.bf16.mxu1 %v1779_v35  ;;  %v1785_v41 = vld [vmem:[%s2206_s1 + $0x1f0] sm:$0xff]   ;;  %v1792_v46 = vld [vmem:[%s2000_s27 + $0x48] ss:$36 sps:$4 sm:$0xff]   ;;  %v1798_v52 = vld [vmem:[%s2206_s1 + $0x160] sm:$0xff]  }
  0x1a   : > { %1527 = vmatpush3.bf16.msra.mxu0 %v1756_v14  ;;  %v1786_v42 = vld [vmem:[%s2206_s1 + $0x130] sm:$0xff]   ;;  %v1794_v48 = vld [vmem:[%s2206_s1 + $0x168] sm:$0xff]   ;;  %v1799_v53 = vld [vmem:[%s2206_s1 + $0x1e0] sm:$0xff]  }
  0x1b   : > { %1567 = vmatpush3.bf16.msra.mxu1 %v1757_v15  ;;  %1528 = vmatprep.subr.bf16.mxu0 %v1758_v16  ;;  %v1787_v43 = vld [vmem:[%s2206_s1 + $0x1b0] sm:$0xff]   ;;  %v1795_v49 = vld [vmem:[%s2206_s1 + $0x1e8] sm:$0xff]   ;;  %v1800_v54 = vld [vmem:[%s2206_s1 + $0x120] sm:$0xff]  }
  0x1c   : > { %1568 = vmatprep.subr.bf16.mxu1 %v1759_v17  ;;  %v1788_v44 = vld [vmem:[%s2000_s27 + $0x4c] ss:$36 sps:$4 sm:$0xff]   ;;  %v1801_v55 = vld [vmem:[%s2206_s1 + $0x1a0] sm:$0xff]   ;;  %v1802_v56 = vld [vmem:[%s2000_s27 + $0x94] ss:$36 sps:$4 sm:$0xff]  }
  0x1d   : > { %v1793_v47 = vld [vmem:[%s2000_s27 + $0x50] ss:$36 sps:$4 sm:$0xff]   ;;  %v1796_v50 = vld [vmem:[%s2206_s1 + $0x128] sm:$0xff]   ;;  %v1804_v57 = vld [vmem:[%s2000_s27 + $0x9c] ss:$36 sps:$4 sm:$0xff]  }
  0x1e   : > { %1529 = vmatpush3.bf16.msra.mxu0 %v1760_v18  ;;  %v1797_v51 = vld [vmem:[%s2206_s1 + $0x1a8] sm:$0xff]   ;;  %v1806_v58 = vld [vmem:[%s2000_s27 + $0x90] ss:$36 sps:$4 sm:$0xff]   ;;  %v1807_v59 = vld [vmem:[%s2000_s27 + $0x98] ss:$36 sps:$4 sm:$0xff]  }
  0x1f   : > { %1569 = vmatpush3.bf16.msra.mxu1 %v1761_v19  ;;  %1530 = vmatprep.subr.bf16.mxu0 %v1762_v20  ;;  %v1808_v60 = vld [vmem:[%s2206_s1 + $0x158] sm:$0xff]   ;;  %v1812_v0 = vld [vmem:[%s2206_s1 + $0x150] sm:$0xff]   ;;  %v203_v5 = vld [vmem:[%s2000_s27 + $0xe0] sm:$0x11] }
  0x20   : > { %1570 = vmatprep.subr.bf16.mxu1 %v1763_v21  ;;  %v1809_v61 = vld [vmem:[%s2206_s1 + $0x1d8] sm:$0xff]   ;;  %v1813_v1 = vld [vmem:[%s2206_s1 + $0x1d0] sm:$0xff]   ;;  %v1440_v7 = vcombine.high %v203_v5, %v203_v5  ;;  %v1439_v9 = vcombine.low %v203_v5, %v203_v5  ;;  %v1820_v10 = vld [vmem:[%s2206_s1 + $0x148] sm:$0xff]  }
  0x21   : > { %v1810_v62 = vld [vmem:[%s2206_s1 + $0x118] sm:$0xff]   ;;  %v1814_v2 = vld [vmem:[%s2206_s1 + $0x110] sm:$0xff]   ;;  %v1821_v11 = vld [vmem:[%s2206_s1 + $0x1c8] sm:$0xff]  }
  0x22   : > { %1531 = vmatpush3.bf16.msra.mxu0 %v1764_v22  ;;  %v1811_v63 = vld [vmem:[%s2206_s1 + $0x198] sm:$0xff]   ;;  %v1815_v3 = vld [vmem:[%s2206_s1 + $0x190] sm:$0xff]   ;;  %v1822_v12 = vld [vmem:[%s2206_s1 + $0x108] sm:$0xff]  }
  0x23   : > { %1571 = vmatpush3.bf16.msra.mxu1 %v1765_v23  ;;  %1532 = vmatprep.subr.bf16.mxu0 %v1766_v24  ;;  %v202_v4 = vld [vmem:[%s2000_s27 + $0xd8] sm:$0x11]  ;;  %v1823_v13 = vld [vmem:[%s2206_s1 + $0x188] sm:$0xff]   ;;  %v1824_v14 = vld [vmem:[%s2206_s1 + $0x140] sm:$0xff]  }
  0x24   : > { %1572 = vmatprep.subr.bf16.mxu1 %v1767_v25  ;;  %v1438_v6 = vcombine.high %v202_v4, %v202_v4  ;;  %v1437_v8 = vcombine.low %v202_v4, %v202_v4  ;;  %v1825_v15 = vld [vmem:[%s2206_s1 + $0x1c0] sm:$0xff]   ;;  %v1828_v18 = vld [vmem:[%s2000_s27 + $0x10] ss:$36 sps:$4 sm:$0xff]   ;;  %v1831_v20 = vld [vmem:[%s2000_s27 + $0x18] ss:$36 sps:$4 sm:$0xff]  }
  0x25   : > { %v1826_v16 = vld [vmem:[%s2206_s1 + $0x100] sm:$0xff]   ;;  %v1830_v19 = vld [vmem:[%s2000_s27 + $0x14] ss:$36 sps:$4 sm:$0xff]   ;;  %v204_v33 = vld [vmem:[%s2000_s27 + $0xe8] sm:$0x11] }
  0x26   : > { %1533 = vmatpush3.bf16.msra.mxu0 %v1768_v26  ;;  %v1827_v17 = vld [vmem:[%s2206_s1 + $0x180] sm:$0xff]   ;;  %v1834_v22 = vld [vmem:[%s2206_s1 + $0x238] sm:$0xff]   ;;  %v1835_v23 = vld [vmem:[%s2206_s1 + $0x230] sm:$0xff]  }
  0x27   : > { %1573 = vmatpush3.bf16.msra.mxu1 %v1769_v27  ;;  %1534 = vmatprep.subr.bf16.mxu0 %v1770_v28  ;;  %v1833_v21 = vld [vmem:[%s2000_s27 + $0x1c] ss:$36 sps:$4 sm:$0xff]   ;;  %v1838_v25 = vld [vmem:[%s2000_s27 + $0x64] ss:$36 sps:$4 sm:$0xff]  }
  0x28   : > { %1574 = vmatprep.subr.bf16.mxu1 %v1771_v29  ;;  %v1836_v24 = vld [vmem:[%s2000_s27 + $0x5c] ss:$36 sps:$4 sm:$0xff]   ;;  %v1842_v27 = vld [vmem:[%s2206_s1 + $0x228] sm:$0xff]  }
  0x29   : > { %v1840_v26 = vld [vmem:[%s2000_s27 + $0x58] ss:$36 sps:$4 sm:$0xff]   ;;  %v1841_v28 = vld [vmem:[%s2000_s27 + $0x60] ss:$36 sps:$4 sm:$0xff]  }
  0x2a   : > { %1535 = vmatpush3.bf16.msra.mxu0 %v1772_v30  ;;  %v1844_v29 = vld [vmem:[%s2000_s27 + $0xa4] ss:$36 sps:$4 sm:$0xff]   ;;  %v1846_v30 = vld [vmem:[%s2000_s27 + $0xac] ss:$36 sps:$4 sm:$0xff]  }
  0x2b   : > { %1575 = vmatpush3.bf16.msra.mxu1 %v1773_v31  ;;  %1600 = vmatprep.subr.bf16.mxu0 %v1780_v36  ;;  %v1843_v31 = vld [vmem:[%s2206_s1 + $0x220] sm:$0xff]   ;;  %v1849_v36 = vld [vmem:[%s2000_s27 + $0xa8] ss:$36 sps:$4 sm:$0xff]  }
  0x2c   : > { %1640 = vmatprep.subr.bf16.mxu1 %v1781_v37  ;;  %v1848_v35 = vld [vmem:[%s2000_s27 + $0xa0] ss:$36 sps:$4 sm:$0xff]   ;;  %v1442_v37 = vcombine.high %v204_v33, %v204_v33 }
  0x2d   : > { %993 = vmatmul.mubr.bf16.vlgmr.msra.gmra.mxu0 %v1774_v32  ;;  %v1850_v32 = vld [vmem:[%s2206_s1 + $0x218] sm:$0xff]  }
  0x2e   : > { %1057 = vmatmul.mubr.bf16.vlgmr.msra.gmra.mxu1 %v1777_v34  ;;  %1601 = vmatpush3.bf16.msra.mxu0 %v1782_v38  ;;  %v205_v34 = vld [vmem:[%s2000_s27 + $0xf0] sm:$0x11] }
  0x2f   : > { %1641 = vmatpush3.bf16.msra.mxu1 %v1783_v39  ;;  %1602 = vmatprep.subr.bf16.mxu0 %v1784_v40  ;;  %v1444_v38 = vcombine.high %v205_v34, %v205_v34  ;;  %v1851_v39 = vld [vmem:[%s2206_s1 + $0x210] sm:$0xff]   ;;  %v1856_v40 = vld [vmem:[%s2206_s1 + $0x208] sm:$0xff]  }
  0x30   : > { %1642 = vmatprep.subr.bf16.mxu1 %v1785_v41  ;;  %1000 = vmatprep.mubr.bf16.mxu0 %v1788_v44  ;;  %v1441_v41 = vcombine.low %v204_v33, %v204_v33  ;;  %v1859_v44 = vld [vmem:[%s2000_s27 + $0xb0] ss:$36 sps:$4 sm:$0xff]  }
  0x31   : > { %1064 = vmatprep.mubr.bf16.mxu1 %v1790_v45  ;;  %v1857_v45 = vld [vmem:[%s2206_s1 + $0x200] sm:$0xff]  }
  0x32   : > { %1603 = vmatpush3.bf16.msra.mxu0 %v1786_v42  ;;  %v1443_v42 = vcombine.low %v205_v34, %v205_v34 }
  0x33   : > { %1643 = vmatpush3.bf16.msra.mxu1 %v1787_v43  ;;  %1604 = vmatprep.subr.bf16.mxu0 %v1794_v48  ;;  %v1858_v43 = vld [vmem:[%s2000_s27 + $0x20] ss:$36 sps:$4 sm:$0xff]  }
  0x34   : > { %1644 = vmatprep.subr.bf16.mxu1 %v1795_v49 }
  0x35   : > { %1001 = vmatmul.mubr.bf16.gmra.mxu0 %v1792_v46  ;;  %v1860_v46 = vld [vmem:[%s2000_s27 + $0x68] ss:$36 sps:$4 sm:$0xff]  }
  0x36   : > { %1065 = vmatmul.mubr.bf16.gmra.mxu1 %v1793_v47  ;;  %1605 = vmatpush3.bf16.msra.mxu0 %v1796_v50  ;;  %v1861_v47 = vld [vmem:[%s2000_s27 + $0xf8] ss:$0 sps:$4 sm:$0x11]  }
  0x37   : > { %1645 = vmatpush3.bf16.msra.mxu1 %v1797_v51  ;;  %1606 = vmatprep.subr.bf16.mxu0 %v1798_v52 }
  0x38   : > { %1646 = vmatprep.subr.bf16.mxu1 %v1799_v53  ;;  %1008 = vmatprep.mubr.bf16.mxu0 %v1802_v56 }
  0x39   : > { %1072 = vmatprep.mubr.bf16.mxu1 %v1804_v57 }
  0x3a   : > { %1607 = vmatpush3.bf16.msra.mxu0 %v1800_v54 }
  0x3b   : > { %1647 = vmatpush3.bf16.msra.mxu1 %v1801_v55  ;;  %1608 = vmatprep.subr.bf16.mxu0 %v1808_v60 }
  0x3c   : > { %1648 = vmatprep.subr.bf16.mxu1 %v1809_v61 }
  0x3d   : > { %1009 = vmatmul.mubr.bf16.gmra.mxu0 %v1806_v58 }
  0x3e   : > { %1073 = vmatmul.mubr.bf16.gmra.mxu1 %v1807_v59  ;;  %1609 = vmatpush3.bf16.msra.mxu0 %v1810_v62 }
  0x3f   : > { %1649 = vmatpush3.bf16.msra.mxu1 %v1811_v63  ;;  %1610 = vmatprep.subr.bf16.mxu0 %v1812_v0 }
  0x40   : > { %1650 = vmatprep.subr.bf16.mxu1 %v1813_v1  ;;  %1016 = vmatprep.mubr.bf16.mxu0 %v1438_v6 }
  0x41   : > { %1080 = vmatprep.mubr.bf16.mxu1 %v1440_v7 }
  0x42   : > { %1611 = vmatpush3.bf16.msra.mxu0 %v1814_v2 }
  0x43   : > { %1651 = vmatpush3.bf16.msra.mxu1 %v1815_v3  ;;  %1612 = vmatprep.subr.bf16.mxu0 %v1820_v10 }
  0x44   : > { %1652 = vmatprep.subr.bf16.mxu1 %v1821_v11 }
  0x45   : > { %1017 = vmatmul.mubr.bf16.gmra.mxu0 %v1437_v8 }
  0x46   : > { %1081 = vmatmul.mubr.bf16.gmra.mxu1 %v1439_v9  ;;  %1613 = vmatpush3.bf16.msra.mxu0 %v1822_v12 }
  0x47   : > { %1653 = vmatpush3.bf16.msra.mxu1 %v1823_v13  ;;  %1614 = vmatprep.subr.bf16.mxu0 %v1824_v14 }
  0x48   : > { %1654 = vmatprep.subr.bf16.mxu1 %v1825_v15  ;;  %1120 = vmatprep.mubr.bf16.mxu0 %v1830_v19 }
  0x49   : > { %1184 = vmatprep.mubr.bf16.mxu1 %v1833_v21 }
  0x4a   : > { %1615 = vmatpush3.bf16.msra.mxu0 %v1826_v16 }
  0x4b   : > { %1655 = vmatpush3.bf16.msra.mxu1 %v1827_v17  ;;  %1692 = vmatprep.subr.bf16.mxu0 %v1834_v22 }
  0x4c   : > { %1716 = vmatprep.subr.bf16.mxu1 %v1834_v22 }
  0x4d   : > { %1121 = vmatmul.mubr.bf16.vlgmr.msra.gmra.mxu0 %v1828_v18 }
  0x4e   : > { %1185 = vmatmul.mubr.bf16.vlgmr.msra.gmra.mxu1 %v1831_v20  ;;  %1693 = vmatpush3.bf16.msra.mxu0 %v1834_v22 }
  0x4f   : > { %1724 = vmatpush3.bf16.msra.mxu1 %v1834_v22  ;;  %1694 = vmatprep.subr.bf16.mxu0 %v1835_v23 }
  0x50   : > { %1717 = vmatprep.subr.bf16.mxu1 %v1835_v23  ;;  %1128 = vmatprep.mubr.bf16.mxu0 %v1836_v24 }
  0x51   : > { %1192 = vmatprep.mubr.bf16.mxu1 %v1838_v25 }
  0x52   : > { %1695 = vmatpush3.bf16.msra.mxu0 %v1835_v23 }
  0x53   : > { %1725 = vmatpush3.bf16.msra.mxu1 %v1835_v23  ;;  %1696 = vmatprep.subr.bf16.mxu0 %v1842_v27 }
  0x54   : > { %1718 = vmatprep.subr.bf16.mxu1 %v1842_v27 }
  0x55   : > { %1129 = vmatmul.mubr.bf16.gmra.mxu0 %v1840_v26 }
  0x56   : > { %1193 = vmatmul.mubr.bf16.gmra.mxu1 %v1841_v28  ;;  %1136 = vmatprep.mubr.bf16.mxu0 %v1844_v29 }
  0x57   : > { %1697 = vmatpush3.bf16.msra.mxu0 %v1842_v27  ;;  %1200 = vmatprep.mubr.bf16.mxu1 %v1846_v30 }
  0x58   : > { %1726 = vmatpush3.bf16.msra.mxu1 %v1842_v27  ;;  %1698 = vmatprep.subr.bf16.mxu0 %v1843_v31 }
  0x59   : > { %1719 = vmatprep.subr.bf16.mxu1 %v1843_v31 }
  0x5b   : > { %1699 = vmatpush3.bf16.msra.mxu0 %v1843_v31 }
  0x5c   : > { %1727 = vmatpush3.bf16.msra.mxu1 %v1843_v31  ;;  %1700 = vmatprep.subr.bf16.mxu0 %v1850_v32 }
  0x5d   : > { %1137 = vmatmul.mubr.bf16.gmra.mxu0 %v1848_v35  ;;  %1720 = vmatprep.subr.bf16.mxu1 %v1850_v32 }
  0x5e   : > { %1201 = vmatmul.mubr.bf16.gmra.mxu1 %v1849_v36  ;;  %1144 = vmatprep.mubr.bf16.mxu0 %v1442_v37 }
  0x5f   : > { %1701 = vmatpush3.bf16.msra.mxu0 %v1850_v32  ;;  %1208 = vmatprep.mubr.bf16.mxu1 %v1444_v38 }
  0x60   : > { %1728 = vmatpush3.bf16.msra.mxu1 %v1850_v32  ;;  %1702 = vmatprep.subr.bf16.mxu0 %v1851_v39 }
  0x61   : > { %1721 = vmatprep.subr.bf16.mxu1 %v1851_v39 }
  0x63   : > { %1703 = vmatpush3.bf16.msra.mxu0 %v1851_v39 }
  0x64   : > { %1729 = vmatpush3.bf16.msra.mxu1 %v1851_v39  ;;  %1704 = vmatprep.subr.bf16.mxu0 %v1856_v40 }
  0x65   : > { %1145 = vmatmul.mubr.bf16.gmra.mxu0 %v1441_v41  ;;  %1722 = vmatprep.subr.bf16.mxu1 %v1856_v40 }
  0x66   : > { %1209 = vmatmul.mubr.bf16.gmra.mxu1 %v1443_v42  ;;  %1708 = vmatprep.mubr.bf16.mxu0 %v1858_v43  ;;  %v1409_v42 = vld [vmem:[%s2207_s2] ss:$0 sm:$0xff] }
  0x67   : > { %1705 = vmatpush3.bf16.msra.mxu0 %v1856_v40  ;;  %1712 = vmatprep.mubr.bf16.mxu1 %v1859_v44 }
  0x68   : > { %1730 = vmatpush3.bf16.msra.mxu1 %v1856_v40  ;;  %1706 = vmatprep.subr.bf16.mxu0 %v1857_v45 }
  0x69   : > { %1723 = vmatprep.subr.bf16.mxu1 %v1857_v45 }
  0x6b   : > { %1707 = vmatpush3.bf16.msra.mxu0 %v1857_v45 }
  0x6c   : > { %1731 = vmatpush3.bf16.msra.mxu1 %v1857_v45 }
  0x6e   : > { %1709 = vmatmul.mubr.bf16.vlgmr.msra.gmra.mxu0 %v1860_v46 }
  0x6f   : > { %1713 = vmatmul.mubr.bf16.vlgmr.msra.gmra.mxu1 %v1861_v47 }
  0xed   : > { %v1536_v48 = vpop.f32.mrf.mxu0 }
  0xee   : > { %v1576_v49 = vpop.f32.mrf.mxu1 }
  0xef   : > { %v1537_v50 = vpop.f32.mrf.mxu0 }
  0xf0   : > { %v1577_v51 = vpop.f32.mrf.mxu1  ;;  %v1538_v39 = vadd.f32 %v1537_v50, %v1536_v48 }
  0xf1   : > { %v1539_v52 = vpop.f32.mrf.mxu0  ;;  %v1578_v47 = vadd.f32 %v1577_v51, %v1576_v49 }
  0xf2   : > { %v1579_v53 = vpop.f32.mrf.mxu1 }
  0xf3   : > { %v1540_v54 = vpop.f32.mrf.mxu0 }
  0xf4   : > { %v1580_v55 = vpop.f32.mrf.mxu1  ;;  %v1541_v40 = vadd.f32 %v1540_v54, %v1539_v52 }
  0xf5   : > { %v1542_v56 = vpop.f32.mrf.mxu0 }
  0xf6   : > { %v1582_v57 = vpop.f32.mrf.mxu1 }
  0xf7   : > { %v1543_v58 = vpop.f32.mrf.mxu0 }
  0xf8   : > { %v1583_v59 = vpop.f32.mrf.mxu1  ;;  %v1544_v43 = vadd.f32 %v1543_v58, %v1542_v56 }
  0xf9   : > { %v1545_v60 = vpop.f32.mrf.mxu0 }
  0xfa   : > { %v1585_v61 = vpop.f32.mrf.mxu1 }
  0xfb   : > { %v1546_v62 = vpop.f32.mrf.mxu0 }
  0xfc   : > { %v1586_v63 = vpop.f32.mrf.mxu1  ;;  %v1547_v44 = vadd.f32 %v1546_v62, %v1545_v60 }
  0xfd   : > { %v1548_v0 = vpop.f32.mrf.mxu0  ;;  %v1587_v50 = vadd.f32 %v1586_v63, %v1585_v61 }
  0xfe   : > { %v2160_v1 = vpop.f32.mrf.mxu1  ;;  %v1006_v48 = vadd.f32 %v1547_v44, %v1409_v42 }
  0xff   : > { %v1549_v2 = vpop.f32.mrf.mxu0 }
 0x100   : > { %v2162_v3 = vpop.f32.mrf.mxu1  ;;  %v1550_v52 = vadd.f32 %v1549_v2, %v1548_v0 }
 0x101   : > { %v1551_v4 = vpop.f32.mrf.mxu0 }
 0x102   : > { %v2164_v5 = vpop.f32.mrf.mxu1 }
 0x103   : > { %v1552_v6 = vpop.f32.mrf.mxu0 }
 0x104   : > { %v2166_v7 = vpop.f32.mrf.mxu1  ;;  %v1553_v62 = vadd.f32 %v1552_v6, %v1551_v4 }
 0x105   : > { %v1554_v8 = vpop.f32.mrf.mxu0 }
 0x106   : > { %v2168_v9 = vpop.f32.mrf.mxu1 }
 0x107   : > { %2209 = vst [vmem:[#allocation2_spill] sm:$0xff] %v2168_v9  ;;  %v1555_v10 = vpop.f32.mrf.mxu0 }
 0x108   : > { %v2170_v11 = vpop.f32.mrf.mxu1 }
 0x109   : > { %2210 = vst [vmem:[#allocation3_spill] sm:$0xff] %v2170_v11  ;;  %v1557_v12 = vpop.f32.mrf.mxu0 }
 0x10a   : > { %v1597_v13 = vpop.f32.mrf.mxu1 }
 0x10b   : > { %v1558_v14 = vpop.f32.mrf.mxu0  ;;  %v995_v13 = vadd.f32 %v1538_v39, %v1409_v42 }
 0x10c   : > { %v1598_v15 = vpop.f32.mrf.mxu1  ;;  %v998_v14 = vadd.f32 %v1541_v40, %v1409_v42  ;;  %v1070_v40 = vadd.f32 %v1587_v50, %v1006_v48 }
 0x10d   : > { %v1616_v16 = vpop.f32.mrf.mxu0  ;;  %v1581_v15 = vadd.f32 %v1580_v55, %v1579_v53  ;;  %v1059_v58 = vadd.f32 %v1578_v47, %v995_v13  ;;  %v1011_v53 = vadd.f32 %v1550_v52, %v1409_v42  ;;  %v1590_v55 = vadd.f32 %v2162_v3, %v2160_v1 }
 0x10e   : > { %v1656_v17 = vpop.f32.mrf.mxu1  ;;  %v2216_v61 = vld [vmem:[#allocation2_spill] sm:$0xff] }
 0x10f   : > { %v1617_v18 = vpop.f32.mrf.mxu0  ;;  %v1062_v60 = vadd.f32 %v1581_v15, %v998_v14 }
 0x110   : > { %v1657_v19 = vpop.f32.mrf.mxu1  ;;  %v1618_v11 = vadd.f32 %v1617_v18, %v1616_v16  ;;  %v2217_v63 = vld [vmem:[#allocation3_spill] sm:$0xff] }
 0x111   : > { %v1619_v20 = vpop.f32.mrf.mxu0  ;;  %v1596_v0 = vadd.f32 %v2217_v63, %v2216_v61  ;;  %v1658_v16 = vadd.f32 %v1657_v19, %v1656_v17 }
 0x112   : > { %v1659_v21 = vpop.f32.mrf.mxu1 }
 0x113   : > { %v1620_v22 = vpop.f32.mrf.mxu0 }
 0x114   : > { %v1660_v23 = vpop.f32.mrf.mxu1  ;;  %v1621_v9 = vadd.f32 %v1620_v22, %v1619_v20  ;;  %v1014_v20 = vadd.f32 %v1553_v62, %v1409_v42 }
 0x115   : > { %v1622_v24 = vpop.f32.mrf.mxu0  ;;  %v1661_v6 = vadd.f32 %v1660_v23, %v1659_v21 }
 0x116   : > { %v1662_v25 = vpop.f32.mrf.mxu1  ;;  %v1126_v4 = vadd.f32 %v1621_v9, %v1062_v60 }
 0x117   : > { %v1623_v26 = vpop.f32.mrf.mxu0 }
 0x118   : > { %v1663_v27 = vpop.f32.mrf.mxu1  ;;  %v1624_v49 = vadd.f32 %v1623_v26, %v1622_v24  ;;  %v1190_v17 = vadd.f32 %v1661_v6, %v1126_v4 }
 0x119   : > { %v1625_v28 = vpop.f32.mrf.mxu0  ;;  %v1664_v24 = vadd.f32 %v1663_v27, %v1662_v25 }
 0x11a   : > { %v2172_v29 = vpop.f32.mrf.mxu1 }
 0x11b   : > { %2211 = vst [vmem:[#allocation4_spill] sm:$0xff] %v2172_v29  ;;  %v1626_v30 = vpop.f32.mrf.mxu0 }
 0x11c   : > { %v1666_v31 = vpop.f32.mrf.mxu1  ;;  %v1627_v2 = vadd.f32 %v1626_v30, %v1625_v28 }
 0x11d   : > { %v1628_v32 = vpop.f32.mrf.mxu0 }
 0x11e   : > { %v2174_v33 = vpop.f32.mrf.mxu1 }
 0x11f   : > { %2212 = vst [vmem:[#allocation5_spill] sm:$0xff] %v2174_v33  ;;  %v1629_v34 = vpop.f32.mrf.mxu0  ;;  %v1003_v33 = vadd.f32 %v1544_v43, %v1409_v42  ;;  %v1075_v43 = vadd.f32 %v1590_v55, %v1011_v53 }
 0x120   : > { %v2176_v35 = vpop.f32.mrf.mxu1  ;;  %v1630_v1 = vadd.f32 %v1629_v34, %v1628_v32 }
 0x121   : > { %2213 = vst [vmem:[#allocation6_spill] sm:$0xff] %v2176_v35  ;;  %v1631_v36 = vpop.f32.mrf.mxu0  ;;  %v1584_v35 = vadd.f32 %v1583_v59, %v1582_v57  ;;  %v1593_v57 = vadd.f32 %v2166_v7, %v2164_v5  ;;  %v1134_v5 = vadd.f32 %v1627_v2, %v1070_v40 }
 0x122   : > { %v2178_v37 = vpop.f32.mrf.mxu1  ;;  %v2218_v7 = vld [vmem:[#allocation4_spill] sm:$0xff]  ;;  %v1139_v25 = vadd.f32 %v1630_v1, %v1075_v43 }
 0x123   : > { %2214 = vst [vmem:[#allocation7_spill] sm:$0xff] %v2178_v37  ;;  %v1632_v38 = vpop.f32.mrf.mxu0  ;;  %v1067_v39 = vadd.f32 %v1584_v35, %v1003_v33  ;;  %v1667_v35 = vadd.f32 %v1666_v31, %v2218_v7  ;;  %v1078_v9 = vadd.f32 %v1593_v57, %v1014_v20 }
 0x124   : > { %v2180_v41 = vpop.f32.mrf.mxu1  ;;  %v1633_v28 = vadd.f32 %v1632_v38, %v1631_v36 }
 0x125   : > { %2215 = vst [vmem:[#allocation8_spill] sm:$0xff] %v2180_v41  ;;  %v1634_v45 = vpop.f32.mrf.mxu0  ;;  %v1556_v41 = vadd.f32 %v1555_v10, %v1554_v8  ;;  %v1123_v10 = vadd.f32 %v1618_v11, %v1059_v58  ;;  %v1131_v22 = vadd.f32 %v1624_v49, %v1067_v39  ;;  %v1198_v47 = vadd.f32 %v1667_v35, %v1134_v5 }
 0x126   : > { %v1674_v46 = vpop.f32.mrf.mxu1  ;;  %v2219_v27 = vld [vmem:[#allocation5_spill] sm:$0xff] }
 0x127   : > { %v1635_v12 = vpop.f32.mrf.mxu0  ;;  %v1019_v59 = vadd.f32 %v1556_v41, %v1409_v42  ;;  %v1187_v30 = vadd.f32 %v1658_v16, %v1123_v10  ;;  %v1195_v23 = vadd.f32 %v1664_v24, %v1131_v22 }
 0x128   : > { %v1675_v37 = vpop.f32.mrf.mxu1  ;;  %v1636_v26 = vadd.f32 %v1635_v12, %v1634_v45  ;;  %v2220_v44 = vld [vmem:[#allocation6_spill] sm:$0xff]  ;;  %v1142_v12 = vadd.f32 %v1633_v28, %v1078_v9 }
 0x129   : > { %v1637_v54 = vpop.f32.mrf.mxu0  ;;  %v1083_v33 = vadd.f32 %v1596_v0, %v1019_v59  ;;  %v1676_v21 = vadd.f32 %v1675_v37, %v1674_v46  ;;  %v1670_v32 = vadd.f32 %v2220_v44, %v2219_v27 }
 0x12a   : > { %v1677_v29 = vpop.f32.mrf.mxu1  ;;  %v2221_v31 = vld [vmem:[#allocation7_spill] sm:$0xff] }
 0x12b   : > { %v1638_v56 = vpop.f32.mrf.mxu0  ;;  %v1147_v19 = vadd.f32 %v1636_v26, %v1083_v33  ;;  %v1203_v48 = vadd.f32 %v1670_v32, %v1139_v25 }
 0x12c   : > { %v1678_v51 = vpop.f32.mrf.mxu1  ;;  %v2222_v13 = vld [vmem:[#allocation8_spill] sm:$0xff] }
 0x12d   : > { %v1673_v14 = vadd.f32 %v2222_v13, %v2221_v31  ;;  %v1211_v15 = vadd.f32 %v1676_v21, %v1147_v19 }
 0x12e   : > { %v1710_v8 = vpop.f32.mrf.mxu0 }
 0x12f   : > { %v1714_v18 = vpop.f32.mrf.mxu1  ;;  %v1259_v36 = vadd.f32 %v1710_v8, %v1195_v23  ;;  %v1206_v54 = vadd.f32 %v1673_v14, %v1142_v12 }
 0x130   : > { %v1250_v29 = vpop.f32.mrf.mxu0  ;;  %v1275_v58 = vadd.f32 %v1714_v18, %v1211_v15 }
 0x131   : > { %v1266_v3 = vpop.f32.mrf.mxu1  ;;  %v1251_v34 = vadd.f32 %v1250_v29, %v1187_v30 }
 0x132   : > { %v1711_v41 = vpop.f32.mrf.mxu0  ;;  %v1267_v46 = vadd.f32 %v1266_v3, %v1203_v48  ;;  %v1286_v51 = vsel %vm1285_vm0, %v1275_v58, 0.0 }
 0x133   : > { %v1715_v11 = vpop.f32.mrf.mxu1  ;;  %v1262_v50 = vadd.f32 %v1711_v41, %v1198_v47 }
 0x134   : > { %v1253_v42 = vpop.f32.mrf.mxu0 }
 0x135   : > { %v1254_v45 = vadd.f32 %v1253_v42, %v1190_v17  ;;  %v1269_v37 = vpop.f32.mrf.mxu1 }
 0x136   : > { %v1270_v60 = vadd.f32 %v1269_v37, %v1206_v54 }
 0x137   : > { %v1280_v38 = vadd.f32 %v1254_v45, %v1251_v34 }
 0x139   : > { %v1281_v52 = vadd.f32 %v1280_v38, %v1259_v36 }
 0x13b   : > { %v1282_v56 = vadd.f32 %v1281_v52, %v1262_v50 }
 0x13d   : > { %v1283_v62 = vadd.f32 %v1282_v56, %v1267_v46 }
 0x13f   : > { %v1284_v49 = vadd.f32 %v1283_v62, %v1270_v60 }
 0x141   : > { %v1287_v39 = vadd.f32 %v1286_v51, %v1284_v49 }
 0x143   : > { %v1288_v40 = vrot.slane %v1287_v39, 4 }
 0x145   : > { %v1289_v53 = vadd.f32 %v1288_v40, %v1287_v39 }
 0x147   : > { %v1290_v55 = vrot.slane %v1289_v53, 2 }
 0x149   : > { %v1291_v57 = vadd.f32 %v1290_v55, %v1289_v53 }
 0x14b   : > { %v1292_v59 = vrot.slane %v1291_v57, 1 }
 0x14d   : > { %v1293_v61 = vadd.f32 %v1292_v59, %v1291_v57 }
 0x14f   : > { %v1295_v63 = vmul.f32 0.020408163, %v1293_v61 }
 0x151   : > { %v1296_v0 = vsub.f32 %v1251_v34, %v1295_v63  ;;  %v1297_v2 = vsub.f32 %v1254_v45, %v1295_v63  ;;  %v1298_v8 = vsub.f32 %v1259_v36, %v1295_v63  ;;  %v1299_v10 = vsub.f32 %v1262_v50, %v1295_v63 }
 0x152   : > { %v1300_v6 = vsub.f32 %v1267_v46, %v1295_v63  ;;  %v1302_v22 = vsub.f32 %v1275_v58, %v1295_v63  ;;  %v1301_v24 = vsub.f32 %v1270_v60, %v1295_v63 }
 0x153   : > { %v1303_v16 = vmul.f32 %v1296_v0, %v1296_v0  ;;  %v1304_v4 = vmul.f32 %v1297_v2, %v1297_v2  ;;  %v1305_v18 = vmul.f32 %v1298_v8, %v1298_v8  ;;  %v1306_v26 = vmul.f32 %v1299_v10, %v1299_v10 }
 0x154   : > { %v1307_v1 = vmul.f32 %v1300_v6, %v1300_v6  ;;  %v1309_v33 = vmul.f32 %v1302_v22, %v1302_v22  ;;  %v1308_v5 = vmul.f32 %v1301_v24, %v1301_v24 }
 0x155   : > { %v1310_v20 = vadd.f32 %v1304_v4, %v1303_v16 }
 0x156   : > { %v1315_v41 = vsel %vm1285_vm0, %v1309_v33, 0.0 }
 0x157   : > { %v1311_v29 = vadd.f32 %v1310_v20, %v1305_v18 }
 0x159   : > { %v1312_v3 = vadd.f32 %v1311_v29, %v1306_v26 }
 0x15b   : > { %v1313_v7 = vadd.f32 %v1312_v3, %v1307_v1 }
 0x15d   : > { %v1314_v35 = vadd.f32 %v1313_v7, %v1308_v5 }
 0x15f   : > { %v1316_v43 = vadd.f32 %v1315_v41, %v1314_v35 }
 0x161   : > { %v1317_v28 = vrot.slane %v1316_v43, 4 }
 0x163   : > { %v1318_v30 = vadd.f32 %v1317_v28, %v1316_v43 }
 0x165   : > { %v1319_v11 = vrot.slane %v1318_v30, 2 }
 0x167   : > { %v1320_v17 = vadd.f32 %v1319_v11, %v1318_v30 }
 0x169   : > { %v1321_v9 = vrot.slane %v1320_v17, 1 }
 0x16b   : > { %v1322_v19 = vadd.f32 %v1321_v9, %v1320_v17 }
 0x16d   : > { %v1323_v21 = vmul.f32 0.020408163, %v1322_v19 }
 0x16f   : > { %v1324_v23 = vadd.f32 1e-05, %v1323_v21 }
 0x171   : > { %1862 = vrsqrt.f32 %v1324_v23 }
 0x17e   : > { %v1863_v42 = vpop.eup %1862 }
 0x17f   : > { %v1326_v25 = vmul.f32 %v1863_v42, %v1296_v0  ;;  %v1327_v27 = vmul.f32 %v1863_v42, %v1297_v2  ;;  %v1328_v44 = vmul.f32 %v1863_v42, %v1298_v8  ;;  %v1329_v32 = vmul.f32 %v1863_v42, %v1299_v10 }
 0x180   : > { %v1330_v34 = vmul.f32 %v1863_v42, %v1300_v6  ;;  %v1331_v45 = vmul.f32 %v1863_v42, %v1301_v24  ;;  %v1332_v47 = vmul.f32 %v1863_v42, %v1302_v22 }
 0x181   : > { %v1333_v12 = vmax.f32 %v1326_v25, 0.0  ;;  %v1334_v31 = vmax.f32 %v1327_v27, 0.0  ;;  %v1335_v13 = vmax.f32 %v1328_v44, 0.0  ;;  %v1336_v14 = vmax.f32 %v1329_v32, 0.0 }
 0x182   : > { %v1337_v36 = vmax.f32 %v1330_v34, 0.0  ;;  %v1338_v38 = vmax.f32 %v1331_v45, 0.0  ;;  %v1339_v15 = vmax.f32 %v1332_v47, 0.0 }
 0x183   : > { %1340 = vst [vmem:[%s170_s19] sm:$0xff] %v1333_v12  ;;  %1341 = vst [vmem:[%s170_s19 + $0x8] sm:$0xff] %v1334_v31 }
 0x184   : > { %1342 = vst [vmem:[%s170_s19 + $0x10] sm:$0xff] %v1335_v13  ;;  %1343 = vst [vmem:[%s170_s19 + $0x18] sm:$0xff] %v1336_v14 }
 0x185   : > { %1344 = vst [vmem:[%s170_s19 + $0x20] sm:$0xff] %v1337_v36  ;;  %1345 = vst [vmem:[%s170_s19 + $0x28] sm:$0xff] %v1338_v38 }
 0x186   : > { %1346 = vst [vmem:[%s170_s19 + $0x30] sm:$0x1] %v1339_v15 }
 0x187 PF: > { %s13_s12 = sadd.s32 1, %s1870_s12  }
 0x188   : > { %p10_p4 = scmp.ge.s32.totalorder %s13_s12, 4  }
 0x18a   :  { %12 = sbr.rel (!%p10_p4) target bundleno = 1 (0x1), region = 62 }

// kernel: resnet_forward.26
= control target key start
LH: loop header
LB: loop body
LE: loop exit
PB: predicated region body
PF: predicated region fallthrough
CT: control target
= control target key end

     0   :  { %s1867_s12 = smov 0   ;;  %s2338_s0 = inlined_call_operand.vmem [shape: bf16[2,16,1152], index: 0, kind: input, shape index: {}]   ;;  %s2339_s1 = inlined_call_operand.vmem [shape: bf16[1152,256], index: 1, kind: input, shape index: {}]   ;;  %s2340_s2 = inlined_call_operand.vmem [shape: f32[1,256], index: 2, kind: input, shape index: {}]   ;;  %s2341_s3 = inlined_call_operand.vmem [shape: f32[2,16,256], index: 3, kind: output, shape index: {}]  }
   0x1 LB: > { %s1431_s13 = sadd.s32 4294967295, %s1844_s12   ;;  %p1435_p0 = scmp.ge.s32.totalorder %s1844_s12, 1  ;;  %s1844_s12 = sphi %s1867_s12, %s13_s12  }
   0x2   : > { %p137_p1 = scmp.lt.s32.totalorder %s1844_s12, 3 }
   0x4   : > { %p138_p2 = pnand %p1435_p0, %p137_p1 }
   0x5   : > { %p161_p3 = scmp.lt.s32.totalorder (!%p138_p2), %s1431_s13, 1 }
   0x6   : > { %141 = sbr.rel (%p138_p2) target bundleno = 430 (0x1ae), region = 32 }
   0xb   : > { %v1605_v0 = vld [vmem:[%s2339_s1 + $0x74] ss:$8 sps:$4 sm:$0xff]   ;;  %v1607_v1 = vld [vmem:[%s2339_s1 + $0x70] ss:$8 sps:$4 sm:$0xff]   ;;  %v1611_v4 = vld [vmem:[%s2339_s1 + $0x64] ss:$8 sps:$4 sm:$0xff]  }
   0xc   : > { %1104 = vmatprep.subr.bf16.mxu0 %v1605_v0  ;;  %v1608_v2 = vld [vmem:[%s2339_s1 + $0x174] ss:$8 sps:$4 sm:$0xff]   ;;  %v1610_v3 = vld [vmem:[%s2339_s1 + $0x170] ss:$8 sps:$4 sm:$0xff]   ;;  %v1613_v5 = vld [vmem:[%s2339_s1 + $0x60] ss:$8 sps:$4 sm:$0xff]  }
   0xd   : > { %1105 = vmatpush1.bf16.msra.mxu0 %v1607_v1  ;;  %1147 = vmatprep.subr.bf16.mxu1 %v1608_v2  ;;  %v1614_v6 = vld [vmem:[%s2339_s1 + $0x164] ss:$8 sps:$4 sm:$0xff]   ;;  %v1616_v7 = vld [vmem:[%s2339_s1 + $0x160] ss:$8 sps:$4 sm:$0xff]   ;;  %v1617_v8 = vld [vmem:[%s2339_s1 + $0x54] ss:$8 sps:$4 sm:$0xff]  }
   0xe   : > { %1148 = vmatpush1.bf16.msra.mxu1 %v1610_v3  ;;  %1106 = vmatprep.subr.bf16.mxu0 %v1611_v4  ;;  %v1619_v9 = vld [vmem:[%s2339_s1 + $0x50] ss:$8 sps:$4 sm:$0xff]   ;;  %v1620_v10 = vld [vmem:[%s2339_s1 + $0x154] ss:$8 sps:$4 sm:$0xff]   ;;  %v1623_v11 = vld [vmem:[%s2339_s1 + $0x44] ss:$8 sps:$4 sm:$0xff]  }
   0xf   : > { %1149 = vmatprep.subr.bf16.mxu1 %v1614_v6  ;;  %v1622_v12 = vld [vmem:[%s2339_s1 + $0x150] ss:$8 sps:$4 sm:$0xff]   ;;  %v1626_v13 = vld [vmem:[%s2339_s1 + $0x144] ss:$8 sps:$4 sm:$0xff]   ;;  %v1625_v14 = vld [vmem:[%s2339_s1 + $0x40] ss:$8 sps:$4 sm:$0xff]  }
  0x10   : > { %v1629_v15 = vld [vmem:[%s2339_s1 + $0x34] ss:$8 sps:$4 sm:$0xff]   ;;  %v1628_v16 = vld [vmem:[%s2339_s1 + $0x140] ss:$8 sps:$4 sm:$0xff]   ;;  %v1631_v18 = vld [vmem:[%s2339_s1 + $0x30] ss:$8 sps:$4 sm:$0xff]  }
  0x11   : > { %1107 = vmatpush1.bf16.msra.mxu0 %v1613_v5  ;;  %v1632_v17 = vld [vmem:[%s2339_s1 + $0x134] ss:$8 sps:$4 sm:$0xff]   ;;  %v1635_v19 = vld [vmem:[%s2339_s1 + $0x24] ss:$8 sps:$4 sm:$0xff]   ;;  %v1634_v20 = vld [vmem:[%s2339_s1 + $0x130] ss:$8 sps:$4 sm:$0xff]  }
  0x12   : > { %1108 = vmatprep.subr.bf16.mxu0 %v1617_v8  ;;  %1150 = vmatpush1.bf16.msra.mxu1 %v1616_v7  ;;  %v1638_v21 = vld [vmem:[%s2339_s1 + $0x124] ss:$8 sps:$4 sm:$0xff]   ;;  %v1637_v22 = vld [vmem:[%s2339_s1 + $0x20] ss:$8 sps:$4 sm:$0xff]   ;;  %v1641_v23 = vld [vmem:[%s2339_s1 + $0x14] ss:$8 sps:$4 sm:$0xff]  }
  0x13   : > { %1151 = vmatprep.subr.bf16.mxu1 %v1620_v10  ;;  %v1640_v24 = vld [vmem:[%s2339_s1 + $0x120] ss:$8 sps:$4 sm:$0xff]   ;;  %v1644_v25 = vld [vmem:[%s2339_s1 + $0x114] ss:$8 sps:$4 sm:$0xff]   ;;  %v1643_v26 = vld [vmem:[%s2339_s1 + $0x10] ss:$8 sps:$4 sm:$0xff]  }
  0x14   : > { %v1647_v27 = vld [vmem:[%s2339_s1 + $0x4] ss:$8 sps:$4 sm:$0xff]   ;;  %v1646_v28 = vld [vmem:[%s2339_s1 + $0x110] ss:$8 sps:$4 sm:$0xff]   ;;  %v1649_v30 = vld [vmem:[%s2339_s1] ss:$8 sps:$4 sm:$0xff]  }
  0x15   : > { %1109 = vmatpush1.bf16.msra.mxu0 %v1619_v9  ;;  %v1650_v29 = vld [vmem:[%s2339_s1 + $0x104] ss:$8 sps:$4 sm:$0xff]   ;;  %v1653_v31 = vld [vmem:[%s2339_s1 + $0xf4] ss:$8 sps:$4 sm:$0xff]   ;;  %v1652_v32 = vld [vmem:[%s2339_s1 + $0x100] ss:$8 sps:$4 sm:$0xff]  }
  0x16   : > { %1110 = vmatprep.subr.bf16.mxu0 %v1623_v11  ;;  %1152 = vmatpush1.bf16.msra.mxu1 %v1622_v12  ;;  %v1656_v33 = vld [vmem:[%s2339_s1 + $0x1f4] ss:$8 sps:$4 sm:$0xff]   ;;  %v1655_v34 = vld [vmem:[%s2339_s1 + $0xf0] ss:$8 sps:$4 sm:$0xff]   ;;  %v1659_v35 = vld [vmem:[%s2339_s1 + $0xe4] ss:$8 sps:$4 sm:$0xff]  }
  0x17   : > { %1153 = vmatprep.subr.bf16.mxu1 %v1626_v13  ;;  %s2343_s13 = smov (!%p161_p3, %s1431_s13), 1  ;;  %v1658_v36 = vld [vmem:[%s2339_s1 + $0x1f0] ss:$8 sps:$4 sm:$0xff]   ;;  %v1662_v37 = vld [vmem:[%s2339_s1 + $0x1e4] ss:$8 sps:$4 sm:$0xff]  }
  0x18   : > { %v1661_v38 = vld [vmem:[%s2339_s1 + $0xe0] ss:$8 sps:$4 sm:$0xff]   ;;  %v1665_v39 = vld [vmem:[%s2339_s1 + $0xd4] ss:$8 sps:$4 sm:$0xff]   ;;  %s1595_s19 = smul.u32 72, %s2343_s13 }
  0x19   : > { %1111 = vmatpush1.bf16.msra.mxu0 %v1625_v14  ;;  %v1664_v40 = vld [vmem:[%s2339_s1 + $0x1e0] ss:$8 sps:$4 sm:$0xff]   ;;  %v1668_v41 = vld [vmem:[%s2339_s1 + $0x1d4] ss:$8 sps:$4 sm:$0xff]   ;;  %v1667_v42 = vld [vmem:[%s2339_s1 + $0xd0] ss:$8 sps:$4 sm:$0xff]  }
  0x1a   : > { %1112 = vmatprep.subr.bf16.mxu0 %v1629_v15  ;;  %1154 = vmatpush1.bf16.msra.mxu1 %v1628_v16  ;;  %v1671_v43 = vld [vmem:[%s2339_s1 + $0xc4] ss:$8 sps:$4 sm:$0xff]   ;;  %s2017_s30 = scalar_lea.vmem %s2338_s0, %s1595_s19  ;;  %v1670_v44 = vld [vmem:[%s2339_s1 + $0x1d0] ss:$8 sps:$4 sm:$0xff]   ;;  %v1673_v46 = vld [vmem:[%s2339_s1 + $0xc0] ss:$8 sps:$4 sm:$0xff]  }
  0x1b   : > { %1155 = vmatprep.subr.bf16.mxu1 %v1632_v17  ;;  %v1674_v45 = vld [vmem:[%s2339_s1 + $0x1c4] ss:$8 sps:$4 sm:$0xff]   ;;  %v1677_v48 = vld [vmem:[%s2339_s1 + $0xb4] ss:$8 sps:$4 sm:$0xff]   ;;  %v1676_v49 = vld [vmem:[%s2339_s1 + $0x1c0] ss:$8 sps:$4 sm:$0xff]  }
  0x1c   : > { %v1702_v47 = vld [vmem:[%s2017_s30 + $0x4] ss:$36 sps:$4 sm:$0xff]   ;;  %v1680_v50 = vld [vmem:[%s2339_s1 + $0x1b4] ss:$8 sps:$4 sm:$0xff]   ;;  %v1709_v51 = vld [vmem:[%s2017_s30 + $0xc] ss:$36 sps:$4 sm:$0xff]  }
  0x1d   : > { %1113 = vmatpush1.bf16.msra.mxu0 %v1631_v18  ;;  %1136 = vmatprep.mubr.bf16.mxu0 %v1702_v47  ;;  %v1679_v52 = vld [vmem:[%s2339_s1 + $0xb0] ss:$8 sps:$4 sm:$0xff]   ;;  %v1683_v53 = vld [vmem:[%s2339_s1 + $0xa4] ss:$8 sps:$4 sm:$0xff]   ;;  %v1685_v56 = vld [vmem:[%s2339_s1 + $0xa0] ss:$8 sps:$4 sm:$0xff]  }
  0x1e   : > { %1114 = vmatprep.subr.bf16.mxu0 %v1635_v19  ;;  %1156 = vmatpush1.bf16.msra.mxu1 %v1634_v20  ;;  %v1682_v54 = vld [vmem:[%s2339_s1 + $0x1b0] ss:$8 sps:$4 sm:$0xff]   ;;  %v1686_v55 = vld [vmem:[%s2339_s1 + $0x1a4] ss:$8 sps:$4 sm:$0xff]   ;;  %v1689_v57 = vld [vmem:[%s2339_s1 + $0x94] ss:$8 sps:$4 sm:$0xff]  }
  0x1f   : > { %1157 = vmatprep.subr.bf16.mxu1 %v1638_v21  ;;  %1179 = vmatprep.mubr.bf16.mxu1 %v1709_v51  ;;  %v1688_v58 = vld [vmem:[%s2339_s1 + $0x1a0] ss:$8 sps:$4 sm:$0xff]   ;;  %v1692_v59 = vld [vmem:[%s2339_s1 + $0x194] ss:$8 sps:$4 sm:$0xff]   ;;  %v1691_v60 = vld [vmem:[%s2339_s1 + $0x90] ss:$8 sps:$4 sm:$0xff]  }
  0x20   : > { %v1695_v61 = vld [vmem:[%s2339_s1 + $0x84] ss:$8 sps:$4 sm:$0xff]   ;;  %v1694_v62 = vld [vmem:[%s2339_s1 + $0x190] ss:$8 sps:$4 sm:$0xff]   ;;  %v1697_v0 = vld [vmem:[%s2339_s1 + $0x80] ss:$8 sps:$4 sm:$0xff]  }
  0x21   : > { %1115 = vmatpush1.bf16.msra.mxu0 %v1637_v22  ;;  %v1698_v63 = vld [vmem:[%s2339_s1 + $0x184] ss:$8 sps:$4 sm:$0xff]   ;;  %v1706_v1 = vld [vmem:[%s2339_s1 + $0x274] ss:$8 sps:$4 sm:$0xff]   ;;  %v1703_v2 = vld [vmem:[%s2339_s1 + $0x180] ss:$8 sps:$4 sm:$0xff]  }
  0x22   : > { %1116 = vmatprep.subr.bf16.mxu0 %v1641_v23  ;;  %1158 = vmatpush1.bf16.msra.mxu1 %v1640_v24  ;;  %v1700_v3 = vld [vmem:[%s2017_s30] ss:$36 sps:$4 sm:$0xff]   ;;  %v1712_v4 = vld [vmem:[%s2339_s1 + $0x374] ss:$8 sps:$4 sm:$0xff]   ;;  %v1704_v5 = vld [vmem:[%s2339_s1 + $0x270] ss:$8 sps:$4 sm:$0xff]  }
  0x23   : > { %1159 = vmatprep.subr.bf16.mxu1 %v1644_v25  ;;  %v1707_v6 = vld [vmem:[%s2017_s30 + $0x8] ss:$36 sps:$4 sm:$0xff]   ;;  %v1710_v8 = vld [vmem:[%s2339_s1 + $0x370] ss:$8 sps:$4 sm:$0xff]   ;;  %v1721_v11 = vld [vmem:[%s2339_s1 + $0x254] ss:$8 sps:$4 sm:$0xff]  }
  0x24   : > { %v1715_v7 = vld [vmem:[%s2339_s1 + $0x264] ss:$8 sps:$4 sm:$0xff]   ;;  %v1713_v10 = vld [vmem:[%s2339_s1 + $0x260] ss:$8 sps:$4 sm:$0xff]   ;;  %v1724_v13 = vld [vmem:[%s2339_s1 + $0x354] ss:$8 sps:$4 sm:$0xff]  }
  0x25   : > { %1117 = vmatpush1.bf16.msra.mxu0 %v1643_v26  ;;  %v1718_v9 = vld [vmem:[%s2339_s1 + $0x364] ss:$8 sps:$4 sm:$0xff]   ;;  %v1716_v12 = vld [vmem:[%s2339_s1 + $0x360] ss:$8 sps:$4 sm:$0xff]   ;;  %v1719_v14 = vld [vmem:[%s2339_s1 + $0x250] ss:$8 sps:$4 sm:$0xff]  }
  0x26   : > { %1118 = vmatprep.subr.bf16.mxu0 %v1647_v27  ;;  %1160 = vmatpush1.bf16.msra.mxu1 %v1646_v28  ;;  %v1727_v15 = vld [vmem:[%s2339_s1 + $0x244] ss:$8 sps:$4 sm:$0xff]   ;;  %v1722_v16 = vld [vmem:[%s2339_s1 + $0x350] ss:$8 sps:$4 sm:$0xff]   ;;  %v1725_v18 = vld [vmem:[%s2339_s1 + $0x240] ss:$8 sps:$4 sm:$0xff]  }
  0x27   : > { %1161 = vmatprep.subr.bf16.mxu1 %v1650_v29  ;;  %v1730_v17 = vld [vmem:[%s2339_s1 + $0x344] ss:$8 sps:$4 sm:$0xff]   ;;  %v1733_v19 = vld [vmem:[%s2339_s1 + $0x234] ss:$8 sps:$4 sm:$0xff]   ;;  %v1728_v20 = vld [vmem:[%s2339_s1 + $0x340] ss:$8 sps:$4 sm:$0xff]  }
  0x28   : > { %v1736_v21 = vld [vmem:[%s2339_s1 + $0x334] ss:$8 sps:$4 sm:$0xff]   ;;  %v1731_v22 = vld [vmem:[%s2339_s1 + $0x230] ss:$8 sps:$4 sm:$0xff]   ;;  %v1739_v23 = vld [vmem:[%s2339_s1 + $0x224] ss:$8 sps:$4 sm:$0xff]  }
  0x29   : > { %1119 = vmatpush1.bf16.msra.mxu0 %v1649_v30  ;;  %v1734_v24 = vld [vmem:[%s2339_s1 + $0x330] ss:$8 sps:$4 sm:$0xff]   ;;  %v1742_v25 = vld [vmem:[%s2339_s1 + $0x324] ss:$8 sps:$4 sm:$0xff]   ;;  %v1737_v26 = vld [vmem:[%s2339_s1 + $0x220] ss:$8 sps:$4 sm:$0xff]  }
  0x2a   : > { %1120 = vmatprep.subr.bf16.mxu0 %v1653_v31  ;;  %1162 = vmatpush1.bf16.msra.mxu1 %v1652_v32  ;;  %v1745_v27 = vld [vmem:[%s2339_s1 + $0x214] ss:$8 sps:$4 sm:$0xff]   ;;  %v1740_v28 = vld [vmem:[%s2339_s1 + $0x320] ss:$8 sps:$4 sm:$0xff]   ;;  %v1743_v30 = vld [vmem:[%s2339_s1 + $0x210] ss:$8 sps:$4 sm:$0xff]  }
  0x2b   : > { %1163 = vmatprep.subr.bf16.mxu1 %v1656_v33  ;;  %v1748_v29 = vld [vmem:[%s2339_s1 + $0x314] ss:$8 sps:$4 sm:$0xff]   ;;  %v1746_v31 = vld [vmem:[%s2339_s1 + $0x310] ss:$8 sps:$4 sm:$0xff]   ;;  %v1751_v32 = vld [vmem:[%s2339_s1 + $0x204] ss:$8 sps:$4 sm:$0xff]  }
  0x2c   : > { %v1805_v33 = vld [vmem:[%s2017_s30 + $0x14] ss:$36 sps:$4 sm:$0xff]   ;;  %v1778_v51 = vld [vmem:[%s2339_s1 + $0x3c4] ss:$8 sps:$4 sm:$0xff]  }
  0x2d   : > { %1121 = vmatpush2.bf16.msra.mxu0 %v1655_v34  ;;  %v1754_v34 = vld [vmem:[%s2339_s1 + $0x304] ss:$8 sps:$4 sm:$0xff]   ;;  %v1772_v47 = vld [vmem:[%s2339_s1 + $0x3d4] ss:$8 sps:$4 sm:$0xff]  }
  0x2e   : > { %1122 = vmatprep.subr.bf16.mxu0 %v1659_v35  ;;  %1164 = vmatpush2.bf16.msra.mxu1 %v1658_v36  ;;  %v1749_v35 = vld [vmem:[%s2339_s1 + $0x200] ss:$8 sps:$4 sm:$0xff]  }
  0x2f   : > { %1165 = vmatprep.subr.bf16.mxu1 %v1662_v37  ;;  %v1811_v36 = vld [vmem:[%s2017_s30 + $0x1c] ss:$36 sps:$4 sm:$0xff]  }
  0x30   : > { %v1757_v37 = vld [vmem:[%s2339_s1 + $0x2f4] ss:$8 sps:$4 sm:$0xff]  }
  0x31   : > { %1123 = vmatpush2.bf16.msra.mxu0 %v1661_v38  ;;  %v1752_v38 = vld [vmem:[%s2339_s1 + $0x300] ss:$8 sps:$4 sm:$0xff]  }
  0x32   : > { %1124 = vmatprep.subr.bf16.mxu0 %v1665_v39  ;;  %1166 = vmatpush2.bf16.msra.mxu1 %v1664_v40  ;;  %v1760_v39 = vld [vmem:[%s2339_s1 + $0x3f4] ss:$8 sps:$4 sm:$0xff]   ;;  %v1755_v40 = vld [vmem:[%s2339_s1 + $0x2f0] ss:$8 sps:$4 sm:$0xff]  }
  0x33   : > { %1167 = vmatprep.subr.bf16.mxu1 %v1668_v41  ;;  %v1763_v41 = vld [vmem:[%s2339_s1 + $0x2e4] ss:$8 sps:$4 sm:$0xff]  }
  0x35   : > { %1125 = vmatpush2.bf16.msra.mxu0 %v1667_v42  ;;  %v1758_v42 = vld [vmem:[%s2339_s1 + $0x3f0] ss:$8 sps:$4 sm:$0xff]  }
  0x36   : > { %1126 = vmatprep.subr.bf16.mxu0 %v1671_v43  ;;  %1168 = vmatpush2.bf16.msra.mxu1 %v1670_v44  ;;  %v1766_v43 = vld [vmem:[%s2339_s1 + $0x3e4] ss:$8 sps:$4 sm:$0xff]   ;;  %v1761_v44 = vld [vmem:[%s2339_s1 + $0x2e0] ss:$8 sps:$4 sm:$0xff]  }
  0x37   : > { %1169 = vmatprep.subr.bf16.mxu1 %v1674_v45  ;;  %v1769_v45 = vld [vmem:[%s2339_s1 + $0x2d4] ss:$8 sps:$4 sm:$0xff]  }
  0x39   : > { %1127 = vmatpush2.bf16.msra.mxu0 %v1673_v46  ;;  %v1764_v46 = vld [vmem:[%s2339_s1 + $0x3e0] ss:$8 sps:$4 sm:$0xff]  }
  0x3a   : > { %1128 = vmatprep.subr.bf16.mxu0 %v1677_v48  ;;  %1170 = vmatpush2.bf16.msra.mxu1 %v1676_v49  ;;  %v1767_v48 = vld [vmem:[%s2339_s1 + $0x2d0] ss:$8 sps:$4 sm:$0xff]   ;;  %v1775_v49 = vld [vmem:[%s2339_s1 + $0x2c4] ss:$8 sps:$4 sm:$0xff]  }
  0x3b   : > { %1171 = vmatprep.subr.bf16.mxu1 %v1680_v50  ;;  %v1770_v50 = vld [vmem:[%s2339_s1 + $0x3d0] ss:$8 sps:$4 sm:$0xff]  }
  0x3d   : > { %1129 = vmatpush2.bf16.msra.mxu0 %v1679_v52  ;;  %v1773_v52 = vld [vmem:[%s2339_s1 + $0x2c0] ss:$8 sps:$4 sm:$0xff]  }
  0x3e   : > { %1130 = vmatprep.subr.bf16.mxu0 %v1683_v53  ;;  %1172 = vmatpush2.bf16.msra.mxu1 %v1682_v54  ;;  %v1781_v53 = vld [vmem:[%s2339_s1 + $0x2b4] ss:$8 sps:$4 sm:$0xff]   ;;  %v1776_v54 = vld [vmem:[%s2339_s1 + $0x3c0] ss:$8 sps:$4 sm:$0xff]  }
  0x3f   : > { %1173 = vmatprep.subr.bf16.mxu1 %v1686_v55  ;;  %v1784_v55 = vld [vmem:[%s2339_s1 + $0x3b4] ss:$8 sps:$4 sm:$0xff]  }
  0x41   : > { %1131 = vmatpush2.bf16.msra.mxu0 %v1685_v56  ;;  %v1779_v56 = vld [vmem:[%s2339_s1 + $0x2b0] ss:$8 sps:$4 sm:$0xff]  }
  0x42   : > { %1132 = vmatprep.subr.bf16.mxu0 %v1689_v57  ;;  %1174 = vmatpush2.bf16.msra.mxu1 %v1688_v58  ;;  %v1787_v57 = vld [vmem:[%s2339_s1 + $0x2a4] ss:$8 sps:$4 sm:$0xff]   ;;  %v1782_v58 = vld [vmem:[%s2339_s1 + $0x3b0] ss:$8 sps:$4 sm:$0xff]  }
  0x43   : > { %1175 = vmatprep.subr.bf16.mxu1 %v1692_v59  ;;  %v1790_v59 = vld [vmem:[%s2339_s1 + $0x3a4] ss:$8 sps:$4 sm:$0xff]  }
  0x45   : > { %1133 = vmatpush2.bf16.msra.mxu0 %v1691_v60  ;;  %v1785_v60 = vld [vmem:[%s2339_s1 + $0x2a0] ss:$8 sps:$4 sm:$0xff]  }
  0x46   : > { %1134 = vmatprep.subr.bf16.mxu0 %v1695_v61  ;;  %1176 = vmatpush2.bf16.msra.mxu1 %v1694_v62  ;;  %v1793_v61 = vld [vmem:[%s2339_s1 + $0x294] ss:$8 sps:$4 sm:$0xff]   ;;  %v1788_v62 = vld [vmem:[%s2339_s1 + $0x3a0] ss:$8 sps:$4 sm:$0xff]  }
  0x47   : > { %1177 = vmatprep.subr.bf16.mxu1 %v1698_v63  ;;  %v1796_v63 = vld [vmem:[%s2339_s1 + $0x394] ss:$8 sps:$4 sm:$0xff]  }
  0x49   : > { %1135 = vmatpush2.bf16.msra.mxu0 %v1697_v0  ;;  %v1791_v0 = vld [vmem:[%s2339_s1 + $0x290] ss:$8 sps:$4 sm:$0xff]  }
  0x4a   : > { %1190 = vmatprep.subr.bf16.mxu0 %v1706_v1  ;;  %1178 = vmatpush2.bf16.msra.mxu1 %v1703_v2  ;;  %v1799_v1 = vld [vmem:[%s2339_s1 + $0x284] ss:$8 sps:$4 sm:$0xff]   ;;  %v1794_v2 = vld [vmem:[%s2339_s1 + $0x390] ss:$8 sps:$4 sm:$0xff]  }
  0x4b   : > { %1233 = vmatprep.subr.bf16.mxu1 %v1712_v4  ;;  %v1797_v4 = vld [vmem:[%s2339_s1 + $0x280] ss:$8 sps:$4 sm:$0xff]  }
  0x4c   : > { %1137 = vmatmul.mubr.bf16.vlgmr.msra.gmra.mxu0 %v1700_v3  ;;  %v1802_v3 = vld [vmem:[%s2339_s1 + $0x384] ss:$8 sps:$4 sm:$0xff]  }
  0x4d   : > { %1191 = vmatpush1.bf16.msra.mxu0 %v1704_v5  ;;  %1180 = vmatmul.mubr.bf16.vlgmr.msra.gmra.mxu1 %v1707_v6  ;;  %v1808_v5 = vld [vmem:[%s2339_s1 + $0x474] ss:$8 sps:$4 sm:$0xff]   ;;  %v1800_v6 = vld [vmem:[%s2339_s1 + $0x380] ss:$8 sps:$4 sm:$0xff]  }
  0x4e   : > { %1192 = vmatprep.subr.bf16.mxu0 %v1715_v7  ;;  %1234 = vmatpush1.bf16.msra.mxu1 %v1710_v8  ;;  %v1803_v7 = vld [vmem:[%s2017_s30 + $0x10] ss:$36 sps:$4 sm:$0xff]  }
  0x4f   : > { %1235 = vmatprep.subr.bf16.mxu1 %v1718_v9  ;;  %1222 = vmatprep.mubr.bf16.mxu0 %v1805_v33  ;;  %v1806_v8 = vld [vmem:[%s2339_s1 + $0x470] ss:$8 sps:$4 sm:$0xff]  }
  0x50   : > { %1265 = vmatprep.mubr.bf16.mxu1 %v1811_v36  ;;  %v1809_v9 = vld [vmem:[%s2017_s30 + $0x18] ss:$36 sps:$4 sm:$0xff]   ;;  %v326_v36 = vld [vmem:[%s2340_s2] sm:$0x3] }
  0x51   : > { %1193 = vmatpush1.bf16.msra.mxu0 %v1713_v10  ;;  %v1814_v10 = vld [vmem:[%s2339_s1 + $0x464] ss:$8 sps:$4 sm:$0xff]  }
  0x52   : > { %1194 = vmatprep.subr.bf16.mxu0 %v1721_v11  ;;  %1236 = vmatpush1.bf16.msra.mxu1 %v1716_v12  ;;  %v1812_v11 = vld [vmem:[%s2339_s1 + $0x460] ss:$8 sps:$4 sm:$0xff]   ;;  %v1846_v12 = vmov 0  }
  0x53   : > { %1237 = vmatprep.subr.bf16.mxu1 %v1724_v13  ;;  %v1817_v13 = vld [vmem:[%s2339_s1 + $0x454] ss:$8 sps:$4 sm:$0xff]  }
  0x55   : > { %1195 = vmatpush1.bf16.msra.mxu0 %v1719_v14  ;;  %v1815_v14 = vld [vmem:[%s2339_s1 + $0x450] ss:$8 sps:$4 sm:$0xff]  }
  0x56   : > { %1196 = vmatprep.subr.bf16.mxu0 %v1727_v15  ;;  %1238 = vmatpush1.bf16.msra.mxu1 %v1722_v16  ;;  %v1820_v15 = vld [vmem:[%s2339_s1 + $0x444] ss:$8 sps:$4 sm:$0xff]   ;;  %v1818_v16 = vld [vmem:[%s2339_s1 + $0x440] ss:$8 sps:$4 sm:$0xff]  }
  0x57   : > { %1239 = vmatprep.subr.bf16.mxu1 %v1730_v17  ;;  %v1823_v17 = vld [vmem:[%s2339_s1 + $0x434] ss:$8 sps:$4 sm:$0xff]  }
  0x59   : > { %1197 = vmatpush1.bf16.msra.mxu0 %v1725_v18  ;;  %v1821_v18 = vld [vmem:[%s2339_s1 + $0x430] ss:$8 sps:$4 sm:$0xff]  }
  0x5a   : > { %1198 = vmatprep.subr.bf16.mxu0 %v1733_v19  ;;  %1240 = vmatpush1.bf16.msra.mxu1 %v1728_v20  ;;  %v1826_v19 = vld [vmem:[%s2339_s1 + $0x424] ss:$8 sps:$4 sm:$0xff]   ;;  %v1824_v20 = vld [vmem:[%s2339_s1 + $0x420] ss:$8 sps:$4 sm:$0xff]  }
  0x5b   : > { %1241 = vmatprep.subr.bf16.mxu1 %v1736_v21  ;;  %v1829_v21 = vld [vmem:[%s2339_s1 + $0x414] ss:$8 sps:$4 sm:$0xff]  }
  0x5d   : > { %1199 = vmatpush1.bf16.msra.mxu0 %v1731_v22  ;;  %v1827_v22 = vld [vmem:[%s2339_s1 + $0x410] ss:$8 sps:$4 sm:$0xff]  }
  0x5e   : > { %1200 = vmatprep.subr.bf16.mxu0 %v1739_v23  ;;  %1242 = vmatpush1.bf16.msra.mxu1 %v1734_v24  ;;  %v1832_v23 = vld [vmem:[%s2339_s1 + $0x404] ss:$8 sps:$4 sm:$0xff]   ;;  %v1830_v24 = vld [vmem:[%s2339_s1 + $0x400] ss:$8 sps:$4 sm:$0xff]  }
  0x5f   : > { %1243 = vmatprep.subr.bf16.mxu1 %v1742_v25  ;;  %v1833_v25 = vld [vmem:[%s2017_s30 + $0x20] ss:$36 sps:$4 sm:$0xff]   ;;  %s1594_s30 = sshll.u32 %s2343_s13, 5 }
  0x60   : > { %s170_s18 = scalar_lea.vmem %s2341_s3, %s1594_s30 }
  0x61   : > { %1201 = vmatpush1.bf16.msra.mxu0 %v1737_v26 }
  0x62   : > { %1202 = vmatprep.subr.bf16.mxu0 %v1745_v27  ;;  %1244 = vmatpush1.bf16.msra.mxu1 %v1740_v28 }
  0x63   : > { %1245 = vmatprep.subr.bf16.mxu1 %v1748_v29  ;;  %v328_v29 = vlaneseq }
  0x65   : > { %1203 = vmatpush1.bf16.msra.mxu0 %v1743_v30 }
  0x66   : > { %1204 = vmatprep.subr.bf16.mxu0 %v1751_v32  ;;  %1246 = vmatpush1.bf16.msra.mxu1 %v1746_v31  ;;  %v329_v32 = vshrl.u32 %v328_v29, 7 }
  0x67   : > { %1247 = vmatprep.subr.bf16.mxu1 %v1754_v34 }
  0x69   : > { %1205 = vmatpush1.bf16.msra.mxu0 %v1749_v35  ;;  %v330_v35 = vsub.s32 0, %v329_v32 }
  0x6a   : > { %1206 = vmatprep.subr.bf16.mxu0 %v1757_v37  ;;  %1248 = vmatpush1.bf16.msra.mxu1 %v1752_v38  ;;  %v334_v38 = vsub.s32 1, %v329_v32 }
  0x6b   : > { %1249 = vmatprep.subr.bf16.mxu1 %v1760_v39 }
  0x6d   : > { %1207 = vmatpush2.bf16.msra.mxu0 %v1755_v40  ;;  %v331_v40 = vrot.slane %v326_v36, %v330_v35 }
  0x6e   : > { %1208 = vmatprep.subr.bf16.mxu0 %v1763_v41  ;;  %1250 = vmatpush2.bf16.msra.mxu1 %v1758_v42 }
  0x6f   : > { %1251 = vmatprep.subr.bf16.mxu1 %v1766_v43  ;;  %v335_v43 = vrot.slane %v326_v36, %v334_v38 }
  0x71   : > { %1209 = vmatpush2.bf16.msra.mxu0 %v1761_v44 }
  0x72   : > { %1210 = vmatprep.subr.bf16.mxu0 %v1769_v45  ;;  %1252 = vmatpush2.bf16.msra.mxu1 %v1764_v46 }
  0x73   : > { %1253 = vmatprep.subr.bf16.mxu1 %v1772_v47 }
  0x75   : > { %1211 = vmatpush2.bf16.msra.mxu0 %v1767_v48 }
  0x76   : > { %1212 = vmatprep.subr.bf16.mxu0 %v1775_v49  ;;  %1254 = vmatpush2.bf16.msra.mxu1 %v1770_v50 }
  0x77   : > { %1255 = vmatprep.subr.bf16.mxu1 %v1778_v51 }
  0x79   : > { %1213 = vmatpush2.bf16.msra.mxu0 %v1773_v52 }
  0x7a   : > { %1214 = vmatprep.subr.bf16.mxu0 %v1781_v53  ;;  %1256 = vmatpush2.bf16.msra.mxu1 %v1776_v54 }
  0x7b   : > { %1257 = vmatprep.subr.bf16.mxu1 %v1784_v55 }
  0x7d   : > { %1215 = vmatpush2.bf16.msra.mxu0 %v1779_v56 }
  0x7e   : > { %1216 = vmatprep.subr.bf16.mxu0 %v1787_v57  ;;  %1258 = vmatpush2.bf16.msra.mxu1 %v1782_v58 }
  0x7f   : > { %1259 = vmatprep.subr.bf16.mxu1 %v1790_v59 }
  0x81   : > { %1217 = vmatpush2.bf16.msra.mxu0 %v1785_v60 }
  0x82   : > { %1218 = vmatprep.subr.bf16.mxu0 %v1793_v61  ;;  %1260 = vmatpush2.bf16.msra.mxu1 %v1788_v62 }
  0x83   : > { %1261 = vmatprep.subr.bf16.mxu1 %v1796_v63 }
  0x85   : > { %1219 = vmatpush2.bf16.msra.mxu0 %v1791_v0 }
  0x86   : > { %1220 = vmatprep.subr.bf16.mxu0 %v1799_v1  ;;  %1262 = vmatpush2.bf16.msra.mxu1 %v1794_v2 }
  0x87   : > { %1263 = vmatprep.subr.bf16.mxu1 %v1802_v3 }
  0x89   : > { %1221 = vmatpush2.bf16.msra.mxu0 %v1797_v4 }
  0x8a   : > { %1276 = vmatprep.subr.bf16.mxu0 %v1808_v5  ;;  %1264 = vmatpush2.bf16.msra.mxu1 %v1800_v6 }
  0x8c   : > { %1223 = vmatmul.mubr.bf16.vlgmr.msra.gmra.mxu0 %v1803_v7 }
  0x8d   : > { %1277 = vmatpush1.bf16.msra.mxu0 %v1806_v8  ;;  %1308 = vmatprep.mubr.bf16.mxu0 %v1846_v12 }
  0x8e   : > { %1266 = vmatmul.mubr.bf16.vlgmr.msra.gmra.mxu1 %v1809_v9  ;;  %1278 = vmatprep.subr.bf16.mxu0 %v1814_v10 }
  0x91   : > { %1279 = vmatpush1.bf16.msra.mxu0 %v1812_v11 }
  0x92   : > { %1280 = vmatprep.subr.bf16.mxu0 %v1817_v13 }
  0x95   : > { %1281 = vmatpush1.bf16.msra.mxu0 %v1815_v14 }
  0x96   : > { %1282 = vmatprep.subr.bf16.mxu0 %v1820_v15 }
  0x99   : > { %1283 = vmatpush1.bf16.msra.mxu0 %v1818_v16 }
  0x9a   : > { %1284 = vmatprep.subr.bf16.mxu0 %v1823_v17 }
  0x9d   : > { %1285 = vmatpush1.bf16.msra.mxu0 %v1821_v18 }
  0x9e   : > { %1286 = vmatprep.subr.bf16.mxu0 %v1826_v19 }
  0xa1   : > { %1287 = vmatpush1.bf16.msra.mxu0 %v1824_v20 }
  0xa2   : > { %1288 = vmatprep.subr.bf16.mxu0 %v1829_v21 }
  0xa5   : > { %1289 = vmatpush1.bf16.msra.mxu0 %v1827_v22 }
  0xa6   : > { %1290 = vmatprep.subr.bf16.mxu0 %v1832_v23 }
  0xa9   : > { %1291 = vmatpush1.bf16.msra.mxu0 %v1830_v24 }
  0xac   : > { %1309 = vmatmul.mubr.bf16.vlgmr.msra.gmra.mxu0 %v1833_v25 }
 0x10c   : > { %v1138_v26 = vpop.f32.mrf.mxu0 }
 0x10d   : > { %v1181_v28 = vpop.f32.mrf.mxu1  ;;  %v1139_v44 = vadd.f32 %v1138_v26, %v331_v40 }
 0x10e   : > { %v1140_v27 = vpop.f32.mrf.mxu0 }
 0x10f   : > { %v1183_v31 = vpop.f32.mrf.mxu1  ;;  %v1141_v48 = vadd.f32 %v1140_v27, %v335_v43  ;;  %v1182_v50 = vadd.f32 %v1181_v28, %v1139_v44 }
 0x110   : > { %v1142_v30 = vpop.f32.mrf.mxu0 }
 0x111   : > { %v1185_v34 = vpop.f32.mrf.mxu1  ;;  %v1143_v45 = vadd.f32 %v1142_v30, %v331_v40  ;;  %v1184_v54 = vadd.f32 %v1183_v31, %v1141_v48 }
 0x112   : > { %v1144_v33 = vpop.f32.mrf.mxu0 }
 0x113   : > { %v1187_v39 = vpop.f32.mrf.mxu1  ;;  %v1145_v49 = vadd.f32 %v1144_v33, %v335_v43  ;;  %v1186_v51 = vadd.f32 %v1185_v34, %v1143_v45 }
 0x115   : > { %v1188_v55 = vadd.f32 %v1187_v39, %v1145_v49 }
 0x14c   : > { %v1224_v37 = vpop.f32.mrf.mxu0 }
 0x14d   : > { %v1225_v56 = vadd.f32 %v1224_v37, %v1182_v50 }
 0x14e   : > { %v1226_v41 = vpop.f32.mrf.mxu0  ;;  %v1267_v42 = vpop.f32.mrf.mxu1 }
 0x14f   : > { %v1227_v59 = vadd.f32 %v1226_v41, %v1184_v54  ;;  %v1268_v63 = vadd.f32 %v1267_v42, %v1225_v56 }
 0x150   : > { %v1228_v46 = vpop.f32.mrf.mxu0  ;;  %v1269_v47 = vpop.f32.mrf.mxu1 }
 0x151   : > { %v1229_v57 = vadd.f32 %v1228_v46, %v1186_v51  ;;  %v1270_v2 = vadd.f32 %v1269_v47, %v1227_v59 }
 0x152   : > { %v1230_v52 = vpop.f32.mrf.mxu0  ;;  %v1271_v53 = vpop.f32.mrf.mxu1 }
 0x153   : > { %v1231_v60 = vadd.f32 %v1230_v52, %v1188_v55  ;;  %v1272_v0 = vadd.f32 %v1271_v53, %v1229_v57 }
 0x154   : > { %v1273_v61 = vpop.f32.mrf.mxu1 }
 0x155   : > { %v1274_v3 = vadd.f32 %v1273_v61, %v1231_v60 }
 0x16c   : > { %v1310_v58 = vpop.f32.mrf.mxu0 }
 0x16d   : > { %v1311_v4 = vadd.f32 %v1310_v58, %v1268_v63 }
 0x16e   : > { %v1312_v62 = vpop.f32.mrf.mxu0 }
 0x16f   : > { %v1313_v7 = vadd.f32 %v1312_v62, %v1270_v2 }
 0x170   : > { %v1314_v1 = vpop.f32.mrf.mxu0 }
 0x171   : > { %v1315_v5 = vadd.f32 %v1314_v1, %v1272_v0 }
 0x172   : > { %v1316_v6 = vpop.f32.mrf.mxu0 }
 0x173   : > { %v1319_v8 = vadd.f32 %v1315_v5, %v1311_v4  ;;  %v1317_v9 = vadd.f32 %v1316_v6, %v1274_v3 }
 0x175   : > { %v1320_v10 = vrot.slane %v1319_v8, 4  ;;  %v1326_v11 = vadd.f32 %v1317_v9, %v1313_v7 }
 0x177   : > { %v1321_v12 = vadd.f32 %v1320_v10, %v1319_v8  ;;  %v1327_v13 = vrot.slane %v1326_v11, 4 }
 0x179   : > { %v1322_v14 = vrot.slane %v1321_v12, 2  ;;  %v1328_v15 = vadd.f32 %v1327_v13, %v1326_v11 }
 0x17b   : > { %v1323_v16 = vadd.f32 %v1322_v14, %v1321_v12  ;;  %v1329_v17 = vrot.slane %v1328_v15, 2 }
 0x17d   : > { %v1324_v18 = vrot.slane %v1323_v16, 1  ;;  %v1330_v19 = vadd.f32 %v1329_v17, %v1328_v15 }
 0x17f   : > { %v1325_v20 = vadd.f32 %v1324_v18, %v1323_v16  ;;  %v1331_v21 = vrot.slane %v1330_v19, 1 }
 0x181   : > { %v1334_v22 = vmul.f32 0.0625, %v1325_v20  ;;  %v1332_v23 = vadd.f32 %v1331_v21, %v1330_v19 }
 0x183   : > { %v1336_v24 = vsub.f32 %v1311_v4, %v1334_v22  ;;  %v1338_v25 = vsub.f32 %v1315_v5, %v1334_v22  ;;  %v1335_v26 = vmul.f32 0.0625, %v1332_v23 }
 0x185   : > { %v1340_v27 = vmul.f32 %v1336_v24, %v1336_v24  ;;  %v1342_v28 = vmul.f32 %v1338_v25, %v1338_v25  ;;  %v1337_v29 = vsub.f32 %v1313_v7, %v1335_v26  ;;  %v1339_v30 = vsub.f32 %v1317_v9, %v1335_v26 }
 0x187   : > { %v1344_v31 = vadd.f32 %v1342_v28, %v1340_v27  ;;  %v1341_v32 = vmul.f32 %v1337_v29, %v1337_v29  ;;  %v1343_v33 = vmul.f32 %v1339_v30, %v1339_v30 }
 0x189   : > { %v1345_v34 = vrot.slane %v1344_v31, 4  ;;  %v1351_v35 = vadd.f32 %v1343_v33, %v1341_v32 }
 0x18b   : > { %v1346_v36 = vadd.f32 %v1345_v34, %v1344_v31  ;;  %v1352_v37 = vrot.slane %v1351_v35, 4 }
 0x18d   : > { %v1347_v38 = vrot.slane %v1346_v36, 2  ;;  %v1353_v39 = vadd.f32 %v1352_v37, %v1351_v35 }
 0x18f   : > { %v1348_v40 = vadd.f32 %v1347_v38, %v1346_v36  ;;  %v1354_v41 = vrot.slane %v1353_v39, 2 }
 0x191   : > { %v1349_v42 = vrot.slane %v1348_v40, 1  ;;  %v1355_v43 = vadd.f32 %v1354_v41, %v1353_v39 }
 0x193   : > { %v1350_v44 = vadd.f32 %v1349_v42, %v1348_v40  ;;  %v1356_v45 = vrot.slane %v1355_v43, 1 }
 0x195   : > { %v1358_v46 = vmul.f32 0.0625, %v1350_v44  ;;  %v1357_v47 = vadd.f32 %v1356_v45, %v1355_v43 }
 0x197   : > { %v1360_v48 = vadd.f32 1e-05, %v1358_v46  ;;  %v1359_v49 = vmul.f32 0.0625, %v1357_v47 }
 0x199   : > { %1834 = vrsqrt.f32 %v1360_v48  ;;  %v1361_v50 = vadd.f32 1e-05, %v1359_v49 }
 0x19b   : > { %1836 = vrsqrt.f32 %v1361_v50 }
 0x1a6   : > { %v1835_v51 = vpop.eup %1834 }
 0x1a7   : > { %v1364_v52 = vmul.f32 %v1835_v51, %v1336_v24  ;;  %v1366_v53 = vmul.f32 %v1835_v51, %v1338_v25 }
 0x1a8   : > { %v1837_v54 = vpop.eup %1836 }
 0x1a9   : > { %v1368_v55 = vmax.f32 %v1364_v52, 0.0  ;;  %v1370_v56 = vmax.f32 %v1366_v53, 0.0  ;;  %v1365_v57 = vmul.f32 %v1837_v54, %v1337_v29  ;;  %v1367_v58 = vmul.f32 %v1837_v54, %v1339_v30 }
 0x1ab   : > { %1372 = vst [vmem:[%s170_s18] sm:$0xff] %v1368_v55  ;;  %1374 = vst [vmem:[%s170_s18 + $0x10] sm:$0xff] %v1370_v56  ;;  %v1369_v59 = vmax.f32 %v1365_v57, 0.0  ;;  %v1371_v60 = vmax.f32 %v1367_v58, 0.0 }
 0x1ad   : > { %1373 = vst [vmem:[%s170_s18 + $0x8] sm:$0xff] %v1369_v59  ;;  %1375 = vst [vmem:[%s170_s18 + $0x18] sm:$0xff] %v1371_v60 }
 0x1ae PF: > { %s13_s12 = sadd.s32 1, %s1844_s12  }
 0x1af   : > { %p10_p4 = scmp.ge.s32.totalorder %s13_s12, 4  }
 0x1b1   :  { %12 = sbr.rel (!%p10_p4) target bundleno = 1 (0x1), region = 62 }

// kernel: resnet_forward.27
= control target key start
LH: loop header
LB: loop body
LE: loop exit
PB: predicated region body
PF: predicated region fallthrough
CT: control target
= control target key end

     0   :  { %s3335_s12 = smov 0   ;;  %s4247_s0 = inlined_call_operand.vmem [shape: bf16[2,16,2304], index: 0, kind: input, shape index: {}]   ;;  %s4248_s1 = inlined_call_operand.vmem [shape: bf16[2304,256], index: 1, kind: input, shape index: {}]   ;;  %s4249_s2 = inlined_call_operand.vmem [shape: f32[1,256], index: 2, kind: input, shape index: {}]   ;;  %s4250_s3 = inlined_call_operand.vmem [shape: f32[2,16,256], index: 3, kind: output, shape index: {}]  }
   0x1 LB: > { %s2518_s13 = sadd.s32 4294967295, %s3313_s12   ;;  %p2522_p0 = scmp.ge.s32.totalorder %s3313_s12, 1  ;;  %s3313_s12 = sphi %s3335_s12, %s13_s12  }
   0x2   : > { %p137_p1 = scmp.lt.s32.totalorder %s3313_s12, 3 }
   0x4   : > { %p138_p2 = pnand %p2522_p0, %p137_p1 }
   0x5   : > { %p161_p3 = scmp.lt.s32.totalorder (!%p138_p2), %s2518_s13, 1 }
   0x6   : > { %141 = sbr.rel (%p138_p2) target bundleno = 590 (0x24e), region = 32 }
   0xb   : > { %v2844_v0 = vld [vmem:[%s4248_s1 + $0x74] ss:$8 sps:$4 sm:$0xff]   ;;  %v2846_v1 = vld [vmem:[%s4248_s1 + $0x70] ss:$8 sps:$4 sm:$0xff]   ;;  %v2850_v4 = vld [vmem:[%s4248_s1 + $0x64] ss:$8 sps:$4 sm:$0xff]  }
   0xc   : > { %2019 = vmatprep.subr.bf16.mxu0 %v2844_v0  ;;  %v2847_v2 = vld [vmem:[%s4248_s1 + $0x174] ss:$8 sps:$4 sm:$0xff]   ;;  %v2849_v3 = vld [vmem:[%s4248_s1 + $0x170] ss:$8 sps:$4 sm:$0xff]   ;;  %v2852_v5 = vld [vmem:[%s4248_s1 + $0x60] ss:$8 sps:$4 sm:$0xff]  }
   0xd   : > { %2020 = vmatpush1.bf16.msra.mxu0 %v2846_v1  ;;  %2062 = vmatprep.subr.bf16.mxu1 %v2847_v2  ;;  %v2853_v6 = vld [vmem:[%s4248_s1 + $0x164] ss:$8 sps:$4 sm:$0xff]   ;;  %v2855_v7 = vld [vmem:[%s4248_s1 + $0x160] ss:$8 sps:$4 sm:$0xff]   ;;  %v2856_v8 = vld [vmem:[%s4248_s1 + $0x54] ss:$8 sps:$4 sm:$0xff]  }
   0xe   : > { %2063 = vmatpush1.bf16.msra.mxu1 %v2849_v3  ;;  %2021 = vmatprep.subr.bf16.mxu0 %v2850_v4  ;;  %v2858_v9 = vld [vmem:[%s4248_s1 + $0x50] ss:$8 sps:$4 sm:$0xff]   ;;  %v2859_v10 = vld [vmem:[%s4248_s1 + $0x154] ss:$8 sps:$4 sm:$0xff]   ;;  %v2862_v11 = vld [vmem:[%s4248_s1 + $0x44] ss:$8 sps:$4 sm:$0xff]  }
   0xf   : > { %2064 = vmatprep.subr.bf16.mxu1 %v2853_v6  ;;  %v2861_v12 = vld [vmem:[%s4248_s1 + $0x150] ss:$8 sps:$4 sm:$0xff]   ;;  %v2865_v13 = vld [vmem:[%s4248_s1 + $0x144] ss:$8 sps:$4 sm:$0xff]   ;;  %v2864_v14 = vld [vmem:[%s4248_s1 + $0x40] ss:$8 sps:$4 sm:$0xff]  }
  0x10   : > { %v2868_v15 = vld [vmem:[%s4248_s1 + $0x34] ss:$8 sps:$4 sm:$0xff]   ;;  %v2867_v16 = vld [vmem:[%s4248_s1 + $0x140] ss:$8 sps:$4 sm:$0xff]   ;;  %v2870_v18 = vld [vmem:[%s4248_s1 + $0x30] ss:$8 sps:$4 sm:$0xff]  }
  0x11   : > { %2022 = vmatpush1.bf16.msra.mxu0 %v2852_v5  ;;  %v2871_v17 = vld [vmem:[%s4248_s1 + $0x134] ss:$8 sps:$4 sm:$0xff]   ;;  %v2874_v19 = vld [vmem:[%s4248_s1 + $0x24] ss:$8 sps:$4 sm:$0xff]   ;;  %v2873_v20 = vld [vmem:[%s4248_s1 + $0x130] ss:$8 sps:$4 sm:$0xff]  }
  0x12   : > { %2023 = vmatprep.subr.bf16.mxu0 %v2856_v8  ;;  %2065 = vmatpush1.bf16.msra.mxu1 %v2855_v7  ;;  %v2877_v21 = vld [vmem:[%s4248_s1 + $0x124] ss:$8 sps:$4 sm:$0xff]   ;;  %v2876_v22 = vld [vmem:[%s4248_s1 + $0x20] ss:$8 sps:$4 sm:$0xff]   ;;  %v2880_v23 = vld [vmem:[%s4248_s1 + $0x14] ss:$8 sps:$4 sm:$0xff]  }
  0x13   : > { %2066 = vmatprep.subr.bf16.mxu1 %v2859_v10  ;;  %v2879_v24 = vld [vmem:[%s4248_s1 + $0x120] ss:$8 sps:$4 sm:$0xff]   ;;  %v2883_v25 = vld [vmem:[%s4248_s1 + $0x114] ss:$8 sps:$4 sm:$0xff]   ;;  %v2882_v26 = vld [vmem:[%s4248_s1 + $0x10] ss:$8 sps:$4 sm:$0xff]  }
  0x14   : > { %v2886_v27 = vld [vmem:[%s4248_s1 + $0x4] ss:$8 sps:$4 sm:$0xff]   ;;  %v2885_v28 = vld [vmem:[%s4248_s1 + $0x110] ss:$8 sps:$4 sm:$0xff]   ;;  %v2888_v30 = vld [vmem:[%s4248_s1] ss:$8 sps:$4 sm:$0xff]  }
  0x15   : > { %2024 = vmatpush1.bf16.msra.mxu0 %v2858_v9  ;;  %v2889_v29 = vld [vmem:[%s4248_s1 + $0x104] ss:$8 sps:$4 sm:$0xff]   ;;  %v2892_v31 = vld [vmem:[%s4248_s1 + $0xf4] ss:$8 sps:$4 sm:$0xff]   ;;  %v2891_v32 = vld [vmem:[%s4248_s1 + $0x100] ss:$8 sps:$4 sm:$0xff]  }
  0x16   : > { %2025 = vmatprep.subr.bf16.mxu0 %v2862_v11  ;;  %2067 = vmatpush1.bf16.msra.mxu1 %v2861_v12  ;;  %v2895_v33 = vld [vmem:[%s4248_s1 + $0x1f4] ss:$8 sps:$4 sm:$0xff]   ;;  %v2894_v34 = vld [vmem:[%s4248_s1 + $0xf0] ss:$8 sps:$4 sm:$0xff]   ;;  %v2898_v35 = vld [vmem:[%s4248_s1 + $0xe4] ss:$8 sps:$4 sm:$0xff]  }
  0x17   : > { %2068 = vmatprep.subr.bf16.mxu1 %v2865_v13  ;;  %s4252_s13 = smov (!%p161_p3, %s2518_s13), 1  ;;  %v2897_v36 = vld [vmem:[%s4248_s1 + $0x1f0] ss:$8 sps:$4 sm:$0xff]   ;;  %v2901_v37 = vld [vmem:[%s4248_s1 + $0x1e4] ss:$8 sps:$4 sm:$0xff]  }
  0x18   : > { %v2900_v38 = vld [vmem:[%s4248_s1 + $0xe0] ss:$8 sps:$4 sm:$0xff]   ;;  %v2904_v39 = vld [vmem:[%s4248_s1 + $0xd4] ss:$8 sps:$4 sm:$0xff]   ;;  %s2835_s19 = smul.u32 144, %s4252_s13  ;;  %s2834_s15 = sshll.u32 %s4252_s13, 5 }
  0x19   : > { %2026 = vmatpush1.bf16.msra.mxu0 %v2864_v14  ;;  %v2903_v40 = vld [vmem:[%s4248_s1 + $0x1e0] ss:$8 sps:$4 sm:$0xff]   ;;  %v2907_v41 = vld [vmem:[%s4248_s1 + $0x1d4] ss:$8 sps:$4 sm:$0xff]   ;;  %v2906_v42 = vld [vmem:[%s4248_s1 + $0xd0] ss:$8 sps:$4 sm:$0xff]   ;;  %s170_s18 = scalar_lea.vmem %s4250_s3, %s2834_s15 }
  0x1a   : > { %2027 = vmatprep.subr.bf16.mxu0 %v2868_v15  ;;  %2069 = vmatpush1.bf16.msra.mxu1 %v2867_v16  ;;  %v2910_v43 = vld [vmem:[%s4248_s1 + $0xc4] ss:$8 sps:$4 sm:$0xff]   ;;  %s3485_s30 = scalar_lea.vmem %s4247_s0, %s2835_s19  ;;  %v2909_v44 = vld [vmem:[%s4248_s1 + $0x1d0] ss:$8 sps:$4 sm:$0xff]   ;;  %v2912_v46 = vld [vmem:[%s4248_s1 + $0xc0] ss:$8 sps:$4 sm:$0xff]  }
  0x1b   : > { %2070 = vmatprep.subr.bf16.mxu1 %v2871_v17  ;;  %v2913_v45 = vld [vmem:[%s4248_s1 + $0x1c4] ss:$8 sps:$4 sm:$0xff]   ;;  %v2916_v48 = vld [vmem:[%s4248_s1 + $0xb4] ss:$8 sps:$4 sm:$0xff]   ;;  %v2915_v49 = vld [vmem:[%s4248_s1 + $0x1c0] ss:$8 sps:$4 sm:$0xff]  }
  0x1c   : > { %v2941_v47 = vld [vmem:[%s3485_s30 + $0x4] ss:$72 sps:$4 sm:$0xff]   ;;  %v2919_v50 = vld [vmem:[%s4248_s1 + $0x1b4] ss:$8 sps:$4 sm:$0xff]   ;;  %v2918_v52 = vld [vmem:[%s4248_s1 + $0xb0] ss:$8 sps:$4 sm:$0xff]  }
  0x1d   : > { %2028 = vmatpush1.bf16.msra.mxu0 %v2870_v18  ;;  %2051 = vmatprep.mubr.bf16.mxu0 %v2941_v47  ;;  %v2948_v51 = vld [vmem:[%s3485_s30 + $0xc] ss:$72 sps:$4 sm:$0xff]   ;;  %v2921_v54 = vld [vmem:[%s4248_s1 + $0x1b0] ss:$8 sps:$4 sm:$0xff]   ;;  %v2924_v56 = vld [vmem:[%s4248_s1 + $0xa0] ss:$8 sps:$4 sm:$0xff]  }
  0x1e   : > { %2029 = vmatprep.subr.bf16.mxu0 %v2874_v19  ;;  %2071 = vmatpush1.bf16.msra.mxu1 %v2873_v20  ;;  %v2922_v53 = vld [vmem:[%s4248_s1 + $0xa4] ss:$8 sps:$4 sm:$0xff]   ;;  %v2928_v57 = vld [vmem:[%s4248_s1 + $0x94] ss:$8 sps:$4 sm:$0xff]   ;;  %v2927_v58 = vld [vmem:[%s4248_s1 + $0x1a0] ss:$8 sps:$4 sm:$0xff]  }
  0x1f   : > { %2072 = vmatprep.subr.bf16.mxu1 %v2877_v21  ;;  %2094 = vmatprep.mubr.bf16.mxu1 %v2948_v51  ;;  %v2925_v55 = vld [vmem:[%s4248_s1 + $0x1a4] ss:$8 sps:$4 sm:$0xff]   ;;  %v2931_v59 = vld [vmem:[%s4248_s1 + $0x194] ss:$8 sps:$4 sm:$0xff]   ;;  %v2930_v60 = vld [vmem:[%s4248_s1 + $0x90] ss:$8 sps:$4 sm:$0xff]  }
  0x20   : > { %v2934_v61 = vld [vmem:[%s4248_s1 + $0x84] ss:$8 sps:$4 sm:$0xff]   ;;  %v2933_v62 = vld [vmem:[%s4248_s1 + $0x190] ss:$8 sps:$4 sm:$0xff]   ;;  %v2936_v0 = vld [vmem:[%s4248_s1 + $0x80] ss:$8 sps:$4 sm:$0xff]  }
  0x21   : > { %2030 = vmatpush1.bf16.msra.mxu0 %v2876_v22  ;;  %v2937_v63 = vld [vmem:[%s4248_s1 + $0x184] ss:$8 sps:$4 sm:$0xff]   ;;  %v2945_v1 = vld [vmem:[%s4248_s1 + $0x274] ss:$8 sps:$4 sm:$0xff]   ;;  %v2942_v2 = vld [vmem:[%s4248_s1 + $0x180] ss:$8 sps:$4 sm:$0xff]  }
  0x22   : > { %2031 = vmatprep.subr.bf16.mxu0 %v2880_v23  ;;  %2073 = vmatpush1.bf16.msra.mxu1 %v2879_v24  ;;  %v2939_v3 = vld [vmem:[%s3485_s30] ss:$72 sps:$4 sm:$0xff]   ;;  %v2951_v4 = vld [vmem:[%s4248_s1 + $0x374] ss:$8 sps:$4 sm:$0xff]   ;;  %v2943_v5 = vld [vmem:[%s4248_s1 + $0x270] ss:$8 sps:$4 sm:$0xff]  }
  0x23   : > { %2074 = vmatprep.subr.bf16.mxu1 %v2883_v25  ;;  %v2946_v6 = vld [vmem:[%s3485_s30 + $0x8] ss:$72 sps:$4 sm:$0xff]   ;;  %v2954_v7 = vld [vmem:[%s4248_s1 + $0x264] ss:$8 sps:$4 sm:$0xff]   ;;  %v2960_v11 = vld [vmem:[%s4248_s1 + $0x254] ss:$8 sps:$4 sm:$0xff]  }
  0x24   : > { %v2949_v8 = vld [vmem:[%s4248_s1 + $0x370] ss:$8 sps:$4 sm:$0xff]   ;;  %v2957_v9 = vld [vmem:[%s4248_s1 + $0x364] ss:$8 sps:$4 sm:$0xff]   ;;  %v2952_v10 = vld [vmem:[%s4248_s1 + $0x260] ss:$8 sps:$4 sm:$0xff]  }
  0x25   : > { %2032 = vmatpush1.bf16.msra.mxu0 %v2882_v26  ;;  %v2955_v12 = vld [vmem:[%s4248_s1 + $0x360] ss:$8 sps:$4 sm:$0xff]   ;;  %v2963_v13 = vld [vmem:[%s4248_s1 + $0x354] ss:$8 sps:$4 sm:$0xff]   ;;  %v2958_v14 = vld [vmem:[%s4248_s1 + $0x250] ss:$8 sps:$4 sm:$0xff]  }
  0x26   : > { %2033 = vmatprep.subr.bf16.mxu0 %v2886_v27  ;;  %2075 = vmatpush1.bf16.msra.mxu1 %v2885_v28  ;;  %v2966_v15 = vld [vmem:[%s4248_s1 + $0x244] ss:$8 sps:$4 sm:$0xff]   ;;  %v2961_v16 = vld [vmem:[%s4248_s1 + $0x350] ss:$8 sps:$4 sm:$0xff]   ;;  %v2964_v18 = vld [vmem:[%s4248_s1 + $0x240] ss:$8 sps:$4 sm:$0xff]  }
  0x27   : > { %2076 = vmatprep.subr.bf16.mxu1 %v2889_v29  ;;  %v2969_v17 = vld [vmem:[%s4248_s1 + $0x344] ss:$8 sps:$4 sm:$0xff]   ;;  %v2972_v19 = vld [vmem:[%s4248_s1 + $0x234] ss:$8 sps:$4 sm:$0xff]   ;;  %v2967_v20 = vld [vmem:[%s4248_s1 + $0x340] ss:$8 sps:$4 sm:$0xff]  }
  0x28   : > { %v2975_v21 = vld [vmem:[%s4248_s1 + $0x334] ss:$8 sps:$4 sm:$0xff]   ;;  %v2970_v22 = vld [vmem:[%s4248_s1 + $0x230] ss:$8 sps:$4 sm:$0xff]   ;;  %v2978_v23 = vld [vmem:[%s4248_s1 + $0x224] ss:$8 sps:$4 sm:$0xff]  }
  0x29   : > { %2034 = vmatpush1.bf16.msra.mxu0 %v2888_v30  ;;  %v2973_v24 = vld [vmem:[%s4248_s1 + $0x330] ss:$8 sps:$4 sm:$0xff]   ;;  %v2981_v25 = vld [vmem:[%s4248_s1 + $0x324] ss:$8 sps:$4 sm:$0xff]   ;;  %v2976_v26 = vld [vmem:[%s4248_s1 + $0x220] ss:$8 sps:$4 sm:$0xff]  }
  0x2a   : > { %2035 = vmatprep.subr.bf16.mxu0 %v2892_v31  ;;  %2077 = vmatpush1.bf16.msra.mxu1 %v2891_v32  ;;  %v2984_v27 = vld [vmem:[%s4248_s1 + $0x214] ss:$8 sps:$4 sm:$0xff]   ;;  %v2979_v28 = vld [vmem:[%s4248_s1 + $0x320] ss:$8 sps:$4 sm:$0xff]   ;;  %v2982_v30 = vld [vmem:[%s4248_s1 + $0x210] ss:$8 sps:$4 sm:$0xff]  }
  0x2b   : > { %2078 = vmatprep.subr.bf16.mxu1 %v2895_v33  ;;  %v2987_v29 = vld [vmem:[%s4248_s1 + $0x314] ss:$8 sps:$4 sm:$0xff]   ;;  %v2985_v31 = vld [vmem:[%s4248_s1 + $0x310] ss:$8 sps:$4 sm:$0xff]   ;;  %v2990_v32 = vld [vmem:[%s4248_s1 + $0x204] ss:$8 sps:$4 sm:$0xff]  }
  0x2c   : > { %v3044_v33 = vld [vmem:[%s3485_s30 + $0x14] ss:$72 sps:$4 sm:$0xff]   ;;  %v3017_v51 = vld [vmem:[%s4248_s1 + $0x3c4] ss:$8 sps:$4 sm:$0xff]  }
  0x2d   : > { %2036 = vmatpush2.bf16.msra.mxu0 %v2894_v34  ;;  %v2993_v34 = vld [vmem:[%s4248_s1 + $0x304] ss:$8 sps:$4 sm:$0xff]   ;;  %v3011_v47 = vld [vmem:[%s4248_s1 + $0x3d4] ss:$8 sps:$4 sm:$0xff]  }
  0x2e   : > { %2037 = vmatprep.subr.bf16.mxu0 %v2898_v35  ;;  %2079 = vmatpush2.bf16.msra.mxu1 %v2897_v36  ;;  %v2988_v35 = vld [vmem:[%s4248_s1 + $0x200] ss:$8 sps:$4 sm:$0xff]   ;;  %v3050_v36 = vld [vmem:[%s3485_s30 + $0x1c] ss:$72 sps:$4 sm:$0xff]  }
  0x2f   : > { %2080 = vmatprep.subr.bf16.mxu1 %v2901_v37  ;;  %v2996_v37 = vld [vmem:[%s4248_s1 + $0x2f4] ss:$8 sps:$4 sm:$0xff]  }
  0x31   : > { %2038 = vmatpush2.bf16.msra.mxu0 %v2900_v38  ;;  %v2991_v38 = vld [vmem:[%s4248_s1 + $0x300] ss:$8 sps:$4 sm:$0xff]  }
  0x32   : > { %2039 = vmatprep.subr.bf16.mxu0 %v2904_v39  ;;  %2081 = vmatpush2.bf16.msra.mxu1 %v2903_v40  ;;  %v2999_v39 = vld [vmem:[%s4248_s1 + $0x3f4] ss:$8 sps:$4 sm:$0xff]   ;;  %v2994_v40 = vld [vmem:[%s4248_s1 + $0x2f0] ss:$8 sps:$4 sm:$0xff]  }
  0x33   : > { %2082 = vmatprep.subr.bf16.mxu1 %v2907_v41  ;;  %v3002_v41 = vld [vmem:[%s4248_s1 + $0x2e4] ss:$8 sps:$4 sm:$0xff]  }
  0x35   : > { %2040 = vmatpush2.bf16.msra.mxu0 %v2906_v42  ;;  %v2997_v42 = vld [vmem:[%s4248_s1 + $0x3f0] ss:$8 sps:$4 sm:$0xff]  }
  0x36   : > { %2041 = vmatprep.subr.bf16.mxu0 %v2910_v43  ;;  %2083 = vmatpush2.bf16.msra.mxu1 %v2909_v44  ;;  %v3005_v43 = vld [vmem:[%s4248_s1 + $0x3e4] ss:$8 sps:$4 sm:$0xff]   ;;  %v3000_v44 = vld [vmem:[%s4248_s1 + $0x2e0] ss:$8 sps:$4 sm:$0xff]  }
  0x37   : > { %2084 = vmatprep.subr.bf16.mxu1 %v2913_v45  ;;  %v3008_v45 = vld [vmem:[%s4248_s1 + $0x2d4] ss:$8 sps:$4 sm:$0xff]  }
  0x39   : > { %2042 = vmatpush2.bf16.msra.mxu0 %v2912_v46  ;;  %v3003_v46 = vld [vmem:[%s4248_s1 + $0x3e0] ss:$8 sps:$4 sm:$0xff]  }
  0x3a   : > { %2043 = vmatprep.subr.bf16.mxu0 %v2916_v48  ;;  %2085 = vmatpush2.bf16.msra.mxu1 %v2915_v49  ;;  %v3006_v48 = vld [vmem:[%s4248_s1 + $0x2d0] ss:$8 sps:$4 sm:$0xff]   ;;  %v3014_v49 = vld [vmem:[%s4248_s1 + $0x2c4] ss:$8 sps:$4 sm:$0xff]  }
  0x3b   : > { %2086 = vmatprep.subr.bf16.mxu1 %v2919_v50  ;;  %v3009_v50 = vld [vmem:[%s4248_s1 + $0x3d0] ss:$8 sps:$4 sm:$0xff]  }
  0x3d   : > { %2044 = vmatpush2.bf16.msra.mxu0 %v2918_v52  ;;  %v3012_v52 = vld [vmem:[%s4248_s1 + $0x2c0] ss:$8 sps:$4 sm:$0xff]  }
  0x3e   : > { %2045 = vmatprep.subr.bf16.mxu0 %v2922_v53  ;;  %2087 = vmatpush2.bf16.msra.mxu1 %v2921_v54  ;;  %v3020_v53 = vld [vmem:[%s4248_s1 + $0x2b4] ss:$8 sps:$4 sm:$0xff]   ;;  %v3015_v54 = vld [vmem:[%s4248_s1 + $0x3c0] ss:$8 sps:$4 sm:$0xff]  }
  0x3f   : > { %2088 = vmatprep.subr.bf16.mxu1 %v2925_v55  ;;  %v3023_v55 = vld [vmem:[%s4248_s1 + $0x3b4] ss:$8 sps:$4 sm:$0xff]  }
  0x41   : > { %2046 = vmatpush2.bf16.msra.mxu0 %v2924_v56  ;;  %v3018_v56 = vld [vmem:[%s4248_s1 + $0x2b0] ss:$8 sps:$4 sm:$0xff]  }
  0x42   : > { %2047 = vmatprep.subr.bf16.mxu0 %v2928_v57  ;;  %2089 = vmatpush2.bf16.msra.mxu1 %v2927_v58  ;;  %v3026_v57 = vld [vmem:[%s4248_s1 + $0x2a4] ss:$8 sps:$4 sm:$0xff]   ;;  %v3021_v58 = vld [vmem:[%s4248_s1 + $0x3b0] ss:$8 sps:$4 sm:$0xff]  }
  0x43   : > { %2090 = vmatprep.subr.bf16.mxu1 %v2931_v59  ;;  %v3029_v59 = vld [vmem:[%s4248_s1 + $0x3a4] ss:$8 sps:$4 sm:$0xff]  }
  0x45   : > { %2048 = vmatpush2.bf16.msra.mxu0 %v2930_v60  ;;  %v3024_v60 = vld [vmem:[%s4248_s1 + $0x2a0] ss:$8 sps:$4 sm:$0xff]  }
  0x46   : > { %2049 = vmatprep.subr.bf16.mxu0 %v2934_v61  ;;  %2091 = vmatpush2.bf16.msra.mxu1 %v2933_v62  ;;  %v3032_v61 = vld [vmem:[%s4248_s1 + $0x294] ss:$8 sps:$4 sm:$0xff]   ;;  %v3027_v62 = vld [vmem:[%s4248_s1 + $0x3a0] ss:$8 sps:$4 sm:$0xff]  }
  0x47   : > { %2092 = vmatprep.subr.bf16.mxu1 %v2937_v63  ;;  %v3035_v63 = vld [vmem:[%s4248_s1 + $0x394] ss:$8 sps:$4 sm:$0xff]  }
  0x49   : > { %2050 = vmatpush2.bf16.msra.mxu0 %v2936_v0  ;;  %v3030_v0 = vld [vmem:[%s4248_s1 + $0x290] ss:$8 sps:$4 sm:$0xff]  }
  0x4a   : > { %2105 = vmatprep.subr.bf16.mxu0 %v2945_v1  ;;  %2093 = vmatpush2.bf16.msra.mxu1 %v2942_v2  ;;  %v3038_v1 = vld [vmem:[%s4248_s1 + $0x284] ss:$8 sps:$4 sm:$0xff]   ;;  %v3033_v2 = vld [vmem:[%s4248_s1 + $0x390] ss:$8 sps:$4 sm:$0xff]  }
  0x4b   : > { %2148 = vmatprep.subr.bf16.mxu1 %v2951_v4  ;;  %v3036_v4 = vld [vmem:[%s4248_s1 + $0x280] ss:$8 sps:$4 sm:$0xff]  }
  0x4c   : > { %2052 = vmatmul.mubr.bf16.vlgmr.msra.gmra.mxu0 %v2939_v3  ;;  %v3041_v3 = vld [vmem:[%s4248_s1 + $0x384] ss:$8 sps:$4 sm:$0xff]  }
  0x4d   : > { %2106 = vmatpush1.bf16.msra.mxu0 %v2943_v5  ;;  %2095 = vmatmul.mubr.bf16.vlgmr.msra.gmra.mxu1 %v2946_v6  ;;  %v3047_v5 = vld [vmem:[%s4248_s1 + $0x474] ss:$8 sps:$4 sm:$0xff]   ;;  %v3039_v6 = vld [vmem:[%s4248_s1 + $0x380] ss:$8 sps:$4 sm:$0xff]  }
  0x4e   : > { %2107 = vmatprep.subr.bf16.mxu0 %v2954_v7  ;;  %2149 = vmatpush1.bf16.msra.mxu1 %v2949_v8  ;;  %v3042_v7 = vld [vmem:[%s3485_s30 + $0x10] ss:$72 sps:$4 sm:$0xff]   ;;  %v3053_v8 = vld [vmem:[%s4248_s1 + $0x574] ss:$8 sps:$4 sm:$0xff]  }
  0x4f   : > { %2150 = vmatprep.subr.bf16.mxu1 %v2957_v9  ;;  %2137 = vmatprep.mubr.bf16.mxu0 %v3044_v33  ;;  %v3045_v9 = vld [vmem:[%s4248_s1 + $0x470] ss:$8 sps:$4 sm:$0xff]   ;;  %v3086_v33 = vld [vmem:[%s4248_s1 + $0x414] ss:$8 sps:$4 sm:$0xff]  }
  0x50   : > { %2180 = vmatprep.mubr.bf16.mxu1 %v3050_v36  ;;  %v3084_v36 = vld [vmem:[%s4248_s1 + $0x410] ss:$8 sps:$4 sm:$0xff]  }
  0x51   : > { %2108 = vmatpush1.bf16.msra.mxu0 %v2952_v10  ;;  %v3048_v10 = vld [vmem:[%s3485_s30 + $0x18] ss:$72 sps:$4 sm:$0xff]  }
  0x52   : > { %2109 = vmatprep.subr.bf16.mxu0 %v2960_v11  ;;  %2151 = vmatpush1.bf16.msra.mxu1 %v2955_v12  ;;  %v3056_v11 = vld [vmem:[%s4248_s1 + $0x464] ss:$8 sps:$4 sm:$0xff]   ;;  %v3051_v12 = vld [vmem:[%s4248_s1 + $0x570] ss:$8 sps:$4 sm:$0xff]  }
  0x53   : > { %2152 = vmatprep.subr.bf16.mxu1 %v2963_v13  ;;  %v3059_v13 = vld [vmem:[%s4248_s1 + $0x564] ss:$8 sps:$4 sm:$0xff]  }
  0x55   : > { %2110 = vmatpush1.bf16.msra.mxu0 %v2958_v14  ;;  %v3054_v14 = vld [vmem:[%s4248_s1 + $0x460] ss:$8 sps:$4 sm:$0xff]  }
  0x56   : > { %2111 = vmatprep.subr.bf16.mxu0 %v2966_v15  ;;  %2153 = vmatpush1.bf16.msra.mxu1 %v2961_v16  ;;  %v3062_v15 = vld [vmem:[%s4248_s1 + $0x454] ss:$8 sps:$4 sm:$0xff]   ;;  %v3057_v16 = vld [vmem:[%s4248_s1 + $0x560] ss:$8 sps:$4 sm:$0xff]  }
  0x57   : > { %2154 = vmatprep.subr.bf16.mxu1 %v2969_v17  ;;  %v3065_v17 = vld [vmem:[%s4248_s1 + $0x554] ss:$8 sps:$4 sm:$0xff]  }
  0x59   : > { %2112 = vmatpush1.bf16.msra.mxu0 %v2964_v18  ;;  %v3146_v18 = vld [vmem:[%s3485_s30 + $0x24] ss:$72 sps:$4 sm:$0xff]  }
  0x5a   : > { %2113 = vmatprep.subr.bf16.mxu0 %v2972_v19  ;;  %2155 = vmatpush1.bf16.msra.mxu1 %v2967_v20  ;;  %v3060_v19 = vld [vmem:[%s4248_s1 + $0x450] ss:$8 sps:$4 sm:$0xff]  }
  0x5b   : > { %2156 = vmatprep.subr.bf16.mxu1 %v2975_v21  ;;  %v3063_v20 = vld [vmem:[%s4248_s1 + $0x550] ss:$8 sps:$4 sm:$0xff]   ;;  %v3068_v21 = vld [vmem:[%s4248_s1 + $0x444] ss:$8 sps:$4 sm:$0xff]  }
  0x5d   : > { %2114 = vmatpush1.bf16.msra.mxu0 %v2970_v22  ;;  %v3152_v22 = vld [vmem:[%s3485_s30 + $0x2c] ss:$72 sps:$4 sm:$0xff]  }
  0x5e   : > { %2115 = vmatprep.subr.bf16.mxu0 %v2978_v23  ;;  %2157 = vmatpush1.bf16.msra.mxu1 %v2973_v24  ;;  %v3071_v23 = vld [vmem:[%s4248_s1 + $0x544] ss:$8 sps:$4 sm:$0xff]   ;;  %v3066_v24 = vld [vmem:[%s4248_s1 + $0x440] ss:$8 sps:$4 sm:$0xff]  }
  0x5f   : > { %2158 = vmatprep.subr.bf16.mxu1 %v2981_v25  ;;  %v3074_v25 = vld [vmem:[%s4248_s1 + $0x434] ss:$8 sps:$4 sm:$0xff]  }
  0x61   : > { %2116 = vmatpush1.bf16.msra.mxu0 %v2976_v26  ;;  %v3069_v26 = vld [vmem:[%s4248_s1 + $0x540] ss:$8 sps:$4 sm:$0xff]  }
  0x62   : > { %2117 = vmatprep.subr.bf16.mxu0 %v2984_v27  ;;  %2159 = vmatpush1.bf16.msra.mxu1 %v2979_v28  ;;  %v3077_v27 = vld [vmem:[%s4248_s1 + $0x534] ss:$8 sps:$4 sm:$0xff]   ;;  %v3072_v28 = vld [vmem:[%s4248_s1 + $0x430] ss:$8 sps:$4 sm:$0xff]  }
  0x63   : > { %2160 = vmatprep.subr.bf16.mxu1 %v2987_v29  ;;  %v3080_v29 = vld [vmem:[%s4248_s1 + $0x424] ss:$8 sps:$4 sm:$0xff]  }
  0x65   : > { %2118 = vmatpush1.bf16.msra.mxu0 %v2982_v30  ;;  %v3075_v30 = vld [vmem:[%s4248_s1 + $0x530] ss:$8 sps:$4 sm:$0xff]  }
  0x66   : > { %2119 = vmatprep.subr.bf16.mxu0 %v2990_v32  ;;  %2161 = vmatpush1.bf16.msra.mxu1 %v2985_v31  ;;  %v3083_v31 = vld [vmem:[%s4248_s1 + $0x524] ss:$8 sps:$4 sm:$0xff]   ;;  %v3078_v32 = vld [vmem:[%s4248_s1 + $0x420] ss:$8 sps:$4 sm:$0xff]  }
  0x67   : > { %2162 = vmatprep.subr.bf16.mxu1 %v2993_v34  ;;  %v3081_v34 = vld [vmem:[%s4248_s1 + $0x520] ss:$8 sps:$4 sm:$0xff]  }
  0x69   : > { %2120 = vmatpush1.bf16.msra.mxu0 %v2988_v35  ;;  %v3089_v35 = vld [vmem:[%s4248_s1 + $0x514] ss:$8 sps:$4 sm:$0xff]  }
  0x6a   : > { %2121 = vmatprep.subr.bf16.mxu0 %v2996_v37  ;;  %2163 = vmatpush1.bf16.msra.mxu1 %v2991_v38  ;;  %v3092_v37 = vld [vmem:[%s4248_s1 + $0x404] ss:$8 sps:$4 sm:$0xff]   ;;  %v3087_v38 = vld [vmem:[%s4248_s1 + $0x510] ss:$8 sps:$4 sm:$0xff]  }
  0x6b   : > { %2164 = vmatprep.subr.bf16.mxu1 %v2999_v39  ;;  %v3095_v39 = vld [vmem:[%s4248_s1 + $0x504] ss:$8 sps:$4 sm:$0xff]  }
  0x6d   : > { %2122 = vmatpush2.bf16.msra.mxu0 %v2994_v40  ;;  %v3090_v40 = vld [vmem:[%s4248_s1 + $0x400] ss:$8 sps:$4 sm:$0xff]  }
  0x6e   : > { %2123 = vmatprep.subr.bf16.mxu0 %v3002_v41  ;;  %2165 = vmatpush2.bf16.msra.mxu1 %v2997_v42  ;;  %v3098_v41 = vld [vmem:[%s4248_s1 + $0x4f4] ss:$8 sps:$4 sm:$0xff]   ;;  %v3093_v42 = vld [vmem:[%s4248_s1 + $0x500] ss:$8 sps:$4 sm:$0xff]  }
  0x6f   : > { %2166 = vmatprep.subr.bf16.mxu1 %v3005_v43  ;;  %v3101_v43 = vld [vmem:[%s4248_s1 + $0x5f4] ss:$8 sps:$4 sm:$0xff]  }
  0x71   : > { %2124 = vmatpush2.bf16.msra.mxu0 %v3000_v44  ;;  %v3096_v44 = vld [vmem:[%s4248_s1 + $0x4f0] ss:$8 sps:$4 sm:$0xff]  }
  0x72   : > { %2125 = vmatprep.subr.bf16.mxu0 %v3008_v45  ;;  %2167 = vmatpush2.bf16.msra.mxu1 %v3003_v46  ;;  %v3104_v45 = vld [vmem:[%s4248_s1 + $0x4e4] ss:$8 sps:$4 sm:$0xff]   ;;  %v3099_v46 = vld [vmem:[%s4248_s1 + $0x5f0] ss:$8 sps:$4 sm:$0xff]  }
  0x73   : > { %2168 = vmatprep.subr.bf16.mxu1 %v3011_v47  ;;  %v3107_v47 = vld [vmem:[%s4248_s1 + $0x5e4] ss:$8 sps:$4 sm:$0xff]  }
  0x75   : > { %2126 = vmatpush2.bf16.msra.mxu0 %v3006_v48  ;;  %v3102_v48 = vld [vmem:[%s4248_s1 + $0x4e0] ss:$8 sps:$4 sm:$0xff]  }
  0x76   : > { %2127 = vmatprep.subr.bf16.mxu0 %v3014_v49  ;;  %2169 = vmatpush2.bf16.msra.mxu1 %v3009_v50  ;;  %v3110_v49 = vld [vmem:[%s4248_s1 + $0x4d4] ss:$8 sps:$4 sm:$0xff]   ;;  %v3105_v50 = vld [vmem:[%s4248_s1 + $0x5e0] ss:$8 sps:$4 sm:$0xff]  }
  0x77   : > { %2170 = vmatprep.subr.bf16.mxu1 %v3017_v51  ;;  %v3113_v51 = vld [vmem:[%s4248_s1 + $0x5d4] ss:$8 sps:$4 sm:$0xff]  }
  0x79   : > { %2128 = vmatpush2.bf16.msra.mxu0 %v3012_v52  ;;  %v3108_v52 = vld [vmem:[%s4248_s1 + $0x4d0] ss:$8 sps:$4 sm:$0xff]  }
  0x7a   : > { %2129 = vmatprep.subr.bf16.mxu0 %v3020_v53  ;;  %2171 = vmatpush2.bf16.msra.mxu1 %v3015_v54  ;;  %v3116_v53 = vld [vmem:[%s4248_s1 + $0x4c4] ss:$8 sps:$4 sm:$0xff]   ;;  %v3111_v54 = vld [vmem:[%s4248_s1 + $0x5d0] ss:$8 sps:$4 sm:$0xff]  }
  0x7b   : > { %2172 = vmatprep.subr.bf16.mxu1 %v3023_v55  ;;  %v3119_v55 = vld [vmem:[%s4248_s1 + $0x5c4] ss:$8 sps:$4 sm:$0xff]  }
  0x7d   : > { %2130 = vmatpush2.bf16.msra.mxu0 %v3018_v56  ;;  %v3114_v56 = vld [vmem:[%s4248_s1 + $0x4c0] ss:$8 sps:$4 sm:$0xff]  }
  0x7e   : > { %2131 = vmatprep.subr.bf16.mxu0 %v3026_v57  ;;  %2173 = vmatpush2.bf16.msra.mxu1 %v3021_v58  ;;  %v3122_v57 = vld [vmem:[%s4248_s1 + $0x4b4] ss:$8 sps:$4 sm:$0xff]   ;;  %v3117_v58 = vld [vmem:[%s4248_s1 + $0x5c0] ss:$8 sps:$4 sm:$0xff]  }
  0x7f   : > { %2174 = vmatprep.subr.bf16.mxu1 %v3029_v59  ;;  %v3125_v59 = vld [vmem:[%s4248_s1 + $0x5b4] ss:$8 sps:$4 sm:$0xff]  }
  0x81   : > { %2132 = vmatpush2.bf16.msra.mxu0 %v3024_v60  ;;  %v3120_v60 = vld [vmem:[%s4248_s1 + $0x4b0] ss:$8 sps:$4 sm:$0xff]  }
  0x82   : > { %2133 = vmatprep.subr.bf16.mxu0 %v3032_v61  ;;  %2175 = vmatpush2.bf16.msra.mxu1 %v3027_v62  ;;  %v3128_v61 = vld [vmem:[%s4248_s1 + $0x4a4] ss:$8 sps:$4 sm:$0xff]   ;;  %v3123_v62 = vld [vmem:[%s4248_s1 + $0x5b0] ss:$8 sps:$4 sm:$0xff]  }
  0x83   : > { %2176 = vmatprep.subr.bf16.mxu1 %v3035_v63  ;;  %v3131_v63 = vld [vmem:[%s4248_s1 + $0x5a4] ss:$8 sps:$4 sm:$0xff]  }
  0x85   : > { %2134 = vmatpush2.bf16.msra.mxu0 %v3030_v0  ;;  %v3126_v0 = vld [vmem:[%s4248_s1 + $0x4a0] ss:$8 sps:$4 sm:$0xff]  }
  0x86   : > { %2135 = vmatprep.subr.bf16.mxu0 %v3038_v1  ;;  %2177 = vmatpush2.bf16.msra.mxu1 %v3033_v2  ;;  %v3134_v1 = vld [vmem:[%s4248_s1 + $0x494] ss:$8 sps:$4 sm:$0xff]   ;;  %v3129_v2 = vld [vmem:[%s4248_s1 + $0x5a0] ss:$8 sps:$4 sm:$0xff]  }
  0x87   : > { %2178 = vmatprep.subr.bf16.mxu1 %v3041_v3  ;;  %v3137_v3 = vld [vmem:[%s4248_s1 + $0x594] ss:$8 sps:$4 sm:$0xff]  }
  0x89   : > { %2136 = vmatpush2.bf16.msra.mxu0 %v3036_v4  ;;  %v3132_v4 = vld [vmem:[%s4248_s1 + $0x490] ss:$8 sps:$4 sm:$0xff]  }
  0x8a   : > { %2191 = vmatprep.subr.bf16.mxu0 %v3047_v5  ;;  %2179 = vmatpush2.bf16.msra.mxu1 %v3039_v6  ;;  %v3140_v5 = vld [vmem:[%s4248_s1 + $0x484] ss:$8 sps:$4 sm:$0xff]   ;;  %v3135_v6 = vld [vmem:[%s4248_s1 + $0x590] ss:$8 sps:$4 sm:$0xff]  }
  0x8b   : > { %2234 = vmatprep.subr.bf16.mxu1 %v3053_v8  ;;  %v3143_v8 = vld [vmem:[%s4248_s1 + $0x584] ss:$8 sps:$4 sm:$0xff]  }
  0x8c   : > { %2138 = vmatmul.mubr.bf16.vlgmr.msra.gmra.mxu0 %v3042_v7  ;;  %v3138_v7 = vld [vmem:[%s4248_s1 + $0x480] ss:$8 sps:$4 sm:$0xff]  }
  0x8d   : > { %2192 = vmatpush1.bf16.msra.mxu0 %v3045_v9  ;;  %2181 = vmatmul.mubr.bf16.vlgmr.msra.gmra.mxu1 %v3048_v10  ;;  %v3141_v9 = vld [vmem:[%s4248_s1 + $0x580] ss:$8 sps:$4 sm:$0xff]   ;;  %v3149_v10 = vld [vmem:[%s4248_s1 + $0x674] ss:$8 sps:$4 sm:$0xff]  }
  0x8e   : > { %2193 = vmatprep.subr.bf16.mxu0 %v3056_v11  ;;  %2235 = vmatpush1.bf16.msra.mxu1 %v3051_v12  ;;  %v3144_v11 = vld [vmem:[%s3485_s30 + $0x20] ss:$72 sps:$4 sm:$0xff]   ;;  %v3147_v12 = vld [vmem:[%s4248_s1 + $0x670] ss:$8 sps:$4 sm:$0xff]  }
  0x8f   : > { %2236 = vmatprep.subr.bf16.mxu1 %v3059_v13  ;;  %2223 = vmatprep.mubr.bf16.mxu0 %v3146_v18  ;;  %v3150_v13 = vld [vmem:[%s3485_s30 + $0x28] ss:$72 sps:$4 sm:$0xff]   ;;  %v3254_v18 = vld [vmem:[%s3485_s30 + $0x3c] ss:$72 sps:$4 sm:$0xff]  }
  0x90   : > { %2266 = vmatprep.mubr.bf16.mxu1 %v3152_v22  ;;  %v3159_v22 = vld [vmem:[%s4248_s1 + $0x760] ss:$8 sps:$4 sm:$0xff]  }
  0x91   : > { %2194 = vmatpush1.bf16.msra.mxu0 %v3054_v14  ;;  %v3155_v14 = vld [vmem:[%s4248_s1 + $0x774] ss:$8 sps:$4 sm:$0xff]  }
  0x92   : > { %2195 = vmatprep.subr.bf16.mxu0 %v3062_v15  ;;  %2237 = vmatpush1.bf16.msra.mxu1 %v3057_v16  ;;  %v3248_v15 = vld [vmem:[%s3485_s30 + $0x34] ss:$72 sps:$4 sm:$0xff]   ;;  %v3158_v16 = vld [vmem:[%s4248_s1 + $0x664] ss:$8 sps:$4 sm:$0xff]  }
  0x93   : > { %2238 = vmatprep.subr.bf16.mxu1 %v3065_v17  ;;  %v3153_v17 = vld [vmem:[%s4248_s1 + $0x770] ss:$8 sps:$4 sm:$0xff]  }
  0x95   : > { %2196 = vmatpush1.bf16.msra.mxu0 %v3060_v19  ;;  %v3161_v19 = vld [vmem:[%s4248_s1 + $0x764] ss:$8 sps:$4 sm:$0xff]  }
  0x96   : > { %2197 = vmatprep.subr.bf16.mxu0 %v3068_v21  ;;  %2239 = vmatpush1.bf16.msra.mxu1 %v3063_v20  ;;  %v3156_v20 = vld [vmem:[%s4248_s1 + $0x660] ss:$8 sps:$4 sm:$0xff]   ;;  %v3164_v21 = vld [vmem:[%s4248_s1 + $0x654] ss:$8 sps:$4 sm:$0xff]  }
  0x97   : > { %2240 = vmatprep.subr.bf16.mxu1 %v3071_v23  ;;  %v3167_v23 = vld [vmem:[%s4248_s1 + $0x754] ss:$8 sps:$4 sm:$0xff]  }
  0x99   : > { %2198 = vmatpush1.bf16.msra.mxu0 %v3066_v24  ;;  %v3162_v24 = vld [vmem:[%s4248_s1 + $0x650] ss:$8 sps:$4 sm:$0xff]  }
  0x9a   : > { %2199 = vmatprep.subr.bf16.mxu0 %v3074_v25  ;;  %2241 = vmatpush1.bf16.msra.mxu1 %v3069_v26  ;;  %v3170_v25 = vld [vmem:[%s4248_s1 + $0x644] ss:$8 sps:$4 sm:$0xff]   ;;  %v3165_v26 = vld [vmem:[%s4248_s1 + $0x750] ss:$8 sps:$4 sm:$0xff]  }
  0x9b   : > { %2242 = vmatprep.subr.bf16.mxu1 %v3077_v27  ;;  %v3173_v27 = vld [vmem:[%s4248_s1 + $0x744] ss:$8 sps:$4 sm:$0xff]  }
  0x9d   : > { %2200 = vmatpush1.bf16.msra.mxu0 %v3072_v28  ;;  %v3168_v28 = vld [vmem:[%s4248_s1 + $0x640] ss:$8 sps:$4 sm:$0xff]  }
  0x9e   : > { %2201 = vmatprep.subr.bf16.mxu0 %v3080_v29  ;;  %2243 = vmatpush1.bf16.msra.mxu1 %v3075_v30  ;;  %v3176_v29 = vld [vmem:[%s4248_s1 + $0x634] ss:$8 sps:$4 sm:$0xff]   ;;  %v3171_v30 = vld [vmem:[%s4248_s1 + $0x740] ss:$8 sps:$4 sm:$0xff]  }
  0x9f   : > { %2244 = vmatprep.subr.bf16.mxu1 %v3083_v31  ;;  %v3179_v31 = vld [vmem:[%s4248_s1 + $0x734] ss:$8 sps:$4 sm:$0xff]  }
  0xa1   : > { %2202 = vmatpush1.bf16.msra.mxu0 %v3078_v32  ;;  %v3174_v32 = vld [vmem:[%s4248_s1 + $0x630] ss:$8 sps:$4 sm:$0xff]  }
  0xa2   : > { %2203 = vmatprep.subr.bf16.mxu0 %v3086_v33  ;;  %2245 = vmatpush1.bf16.msra.mxu1 %v3081_v34  ;;  %v3182_v33 = vld [vmem:[%s4248_s1 + $0x624] ss:$8 sps:$4 sm:$0xff]   ;;  %v3177_v34 = vld [vmem:[%s4248_s1 + $0x730] ss:$8 sps:$4 sm:$0xff]  }
  0xa3   : > { %2246 = vmatprep.subr.bf16.mxu1 %v3089_v35  ;;  %v3185_v35 = vld [vmem:[%s4248_s1 + $0x724] ss:$8 sps:$4 sm:$0xff]  }
  0xa5   : > { %2204 = vmatpush1.bf16.msra.mxu0 %v3084_v36  ;;  %v3180_v36 = vld [vmem:[%s4248_s1 + $0x620] ss:$8 sps:$4 sm:$0xff]  }
  0xa6   : > { %2205 = vmatprep.subr.bf16.mxu0 %v3092_v37  ;;  %2247 = vmatpush1.bf16.msra.mxu1 %v3087_v38  ;;  %v3188_v37 = vld [vmem:[%s4248_s1 + $0x614] ss:$8 sps:$4 sm:$0xff]   ;;  %v3183_v38 = vld [vmem:[%s4248_s1 + $0x720] ss:$8 sps:$4 sm:$0xff]  }
  0xa7   : > { %2248 = vmatprep.subr.bf16.mxu1 %v3095_v39  ;;  %v3191_v39 = vld [vmem:[%s4248_s1 + $0x714] ss:$8 sps:$4 sm:$0xff]  }
  0xa9   : > { %2206 = vmatpush1.bf16.msra.mxu0 %v3090_v40  ;;  %v3186_v40 = vld [vmem:[%s4248_s1 + $0x610] ss:$8 sps:$4 sm:$0xff]  }
  0xaa   : > { %2207 = vmatprep.subr.bf16.mxu0 %v3098_v41  ;;  %2249 = vmatpush1.bf16.msra.mxu1 %v3093_v42  ;;  %v3194_v41 = vld [vmem:[%s4248_s1 + $0x604] ss:$8 sps:$4 sm:$0xff]   ;;  %v3189_v42 = vld [vmem:[%s4248_s1 + $0x710] ss:$8 sps:$4 sm:$0xff]  }
  0xab   : > { %2250 = vmatprep.subr.bf16.mxu1 %v3101_v43  ;;  %v3197_v43 = vld [vmem:[%s4248_s1 + $0x704] ss:$8 sps:$4 sm:$0xff]  }
  0xad   : > { %2208 = vmatpush2.bf16.msra.mxu0 %v3096_v44  ;;  %v3192_v44 = vld [vmem:[%s4248_s1 + $0x600] ss:$8 sps:$4 sm:$0xff]  }
  0xae   : > { %2209 = vmatprep.subr.bf16.mxu0 %v3104_v45  ;;  %2251 = vmatpush2.bf16.msra.mxu1 %v3099_v46  ;;  %v3200_v45 = vld [vmem:[%s4248_s1 + $0x6f4] ss:$8 sps:$4 sm:$0xff]   ;;  %v3195_v46 = vld [vmem:[%s4248_s1 + $0x700] ss:$8 sps:$4 sm:$0xff]  }
  0xaf   : > { %2252 = vmatprep.subr.bf16.mxu1 %v3107_v47  ;;  %v3203_v47 = vld [vmem:[%s4248_s1 + $0x7f4] ss:$8 sps:$4 sm:$0xff]  }
  0xb1   : > { %2210 = vmatpush2.bf16.msra.mxu0 %v3102_v48  ;;  %v3198_v48 = vld [vmem:[%s4248_s1 + $0x6f0] ss:$8 sps:$4 sm:$0xff]  }
  0xb2   : > { %2211 = vmatprep.subr.bf16.mxu0 %v3110_v49  ;;  %2253 = vmatpush2.bf16.msra.mxu1 %v3105_v50  ;;  %v3206_v49 = vld [vmem:[%s4248_s1 + $0x6e4] ss:$8 sps:$4 sm:$0xff]   ;;  %v3201_v50 = vld [vmem:[%s4248_s1 + $0x7f0] ss:$8 sps:$4 sm:$0xff]  }
  0xb3   : > { %2254 = vmatprep.subr.bf16.mxu1 %v3113_v51  ;;  %v3209_v51 = vld [vmem:[%s4248_s1 + $0x7e4] ss:$8 sps:$4 sm:$0xff]  }
  0xb5   : > { %2212 = vmatpush2.bf16.msra.mxu0 %v3108_v52  ;;  %v3204_v52 = vld [vmem:[%s4248_s1 + $0x6e0] ss:$8 sps:$4 sm:$0xff]  }
  0xb6   : > { %2213 = vmatprep.subr.bf16.mxu0 %v3116_v53  ;;  %2255 = vmatpush2.bf16.msra.mxu1 %v3111_v54  ;;  %v3212_v53 = vld [vmem:[%s4248_s1 + $0x6d4] ss:$8 sps:$4 sm:$0xff]   ;;  %v3207_v54 = vld [vmem:[%s4248_s1 + $0x7e0] ss:$8 sps:$4 sm:$0xff]  }
  0xb7   : > { %2256 = vmatprep.subr.bf16.mxu1 %v3119_v55  ;;  %v3215_v55 = vld [vmem:[%s4248_s1 + $0x7d4] ss:$8 sps:$4 sm:$0xff]  }
  0xb9   : > { %2214 = vmatpush2.bf16.msra.mxu0 %v3114_v56  ;;  %v3210_v56 = vld [vmem:[%s4248_s1 + $0x6d0] ss:$8 sps:$4 sm:$0xff]  }
  0xba   : > { %2215 = vmatprep.subr.bf16.mxu0 %v3122_v57  ;;  %2257 = vmatpush2.bf16.msra.mxu1 %v3117_v58  ;;  %v3218_v57 = vld [vmem:[%s4248_s1 + $0x6c4] ss:$8 sps:$4 sm:$0xff]   ;;  %v3213_v58 = vld [vmem:[%s4248_s1 + $0x7d0] ss:$8 sps:$4 sm:$0xff]  }
  0xbb   : > { %2258 = vmatprep.subr.bf16.mxu1 %v3125_v59  ;;  %v3221_v59 = vld [vmem:[%s4248_s1 + $0x7c4] ss:$8 sps:$4 sm:$0xff]  }
  0xbd   : > { %2216 = vmatpush2.bf16.msra.mxu0 %v3120_v60  ;;  %v3216_v60 = vld [vmem:[%s4248_s1 + $0x6c0] ss:$8 sps:$4 sm:$0xff]  }
  0xbe   : > { %2217 = vmatprep.subr.bf16.mxu0 %v3128_v61  ;;  %2259 = vmatpush2.bf16.msra.mxu1 %v3123_v62  ;;  %v3224_v61 = vld [vmem:[%s4248_s1 + $0x6b4] ss:$8 sps:$4 sm:$0xff]   ;;  %v3219_v62 = vld [vmem:[%s4248_s1 + $0x7c0] ss:$8 sps:$4 sm:$0xff]  }
  0xbf   : > { %2260 = vmatprep.subr.bf16.mxu1 %v3131_v63  ;;  %v3227_v63 = vld [vmem:[%s4248_s1 + $0x7b4] ss:$8 sps:$4 sm:$0xff]  }
  0xc1   : > { %2218 = vmatpush2.bf16.msra.mxu0 %v3126_v0  ;;  %v3222_v0 = vld [vmem:[%s4248_s1 + $0x6b0] ss:$8 sps:$4 sm:$0xff]  }
  0xc2   : > { %2219 = vmatprep.subr.bf16.mxu0 %v3134_v1  ;;  %2261 = vmatpush2.bf16.msra.mxu1 %v3129_v2  ;;  %v3230_v1 = vld [vmem:[%s4248_s1 + $0x6a4] ss:$8 sps:$4 sm:$0xff]   ;;  %v3225_v2 = vld [vmem:[%s4248_s1 + $0x7b0] ss:$8 sps:$4 sm:$0xff]  }
  0xc3   : > { %2262 = vmatprep.subr.bf16.mxu1 %v3137_v3  ;;  %v3233_v3 = vld [vmem:[%s4248_s1 + $0x7a4] ss:$8 sps:$4 sm:$0xff]  }
  0xc5   : > { %2220 = vmatpush2.bf16.msra.mxu0 %v3132_v4  ;;  %v3228_v4 = vld [vmem:[%s4248_s1 + $0x6a0] ss:$8 sps:$4 sm:$0xff]  }
  0xc6   : > { %2221 = vmatprep.subr.bf16.mxu0 %v3140_v5  ;;  %2263 = vmatpush2.bf16.msra.mxu1 %v3135_v6  ;;  %v3236_v5 = vld [vmem:[%s4248_s1 + $0x694] ss:$8 sps:$4 sm:$0xff]   ;;  %v3231_v6 = vld [vmem:[%s4248_s1 + $0x7a0] ss:$8 sps:$4 sm:$0xff]  }
  0xc7   : > { %2264 = vmatprep.subr.bf16.mxu1 %v3143_v8  ;;  %v3234_v8 = vld [vmem:[%s4248_s1 + $0x690] ss:$8 sps:$4 sm:$0xff]  }
  0xc9   : > { %2222 = vmatpush2.bf16.msra.mxu0 %v3138_v7  ;;  %v3239_v7 = vld [vmem:[%s4248_s1 + $0x794] ss:$8 sps:$4 sm:$0xff]  }
  0xca   : > { %2277 = vmatprep.subr.bf16.mxu0 %v3149_v10  ;;  %2265 = vmatpush2.bf16.msra.mxu1 %v3141_v9  ;;  %v3242_v9 = vld [vmem:[%s4248_s1 + $0x684] ss:$8 sps:$4 sm:$0xff]   ;;  %v3237_v10 = vld [vmem:[%s4248_s1 + $0x790] ss:$8 sps:$4 sm:$0xff]  }
  0xcb   : > { %2320 = vmatprep.subr.bf16.mxu1 %v3155_v14  ;;  %v3243_v14 = vld [vmem:[%s4248_s1 + $0x780] ss:$8 sps:$4 sm:$0xff]  }
  0xcc   : > { %2224 = vmatmul.mubr.bf16.vlgmr.msra.gmra.mxu0 %v3144_v11  ;;  %v3245_v11 = vld [vmem:[%s4248_s1 + $0x784] ss:$8 sps:$4 sm:$0xff]  }
  0xcd   : > { %2278 = vmatpush1.bf16.msra.mxu0 %v3147_v12  ;;  %2309 = vmatprep.mubr.bf16.mxu0 %v3248_v15  ;;  %v3240_v12 = vld [vmem:[%s4248_s1 + $0x680] ss:$8 sps:$4 sm:$0xff]   ;;  %v3246_v15 = vld [vmem:[%s3485_s30 + $0x30] ss:$72 sps:$4 sm:$0xff]  }
  0xce   : > { %2267 = vmatmul.mubr.bf16.vlgmr.msra.gmra.mxu1 %v3150_v13  ;;  %2279 = vmatprep.subr.bf16.mxu0 %v3158_v16  ;;  %v3251_v13 = vld [vmem:[%s4248_s1 + $0x874] ss:$8 sps:$4 sm:$0xff]   ;;  %v3249_v16 = vld [vmem:[%s4248_s1 + $0x870] ss:$8 sps:$4 sm:$0xff]  }
  0xcf   : > { %2321 = vmatpush1.bf16.msra.mxu1 %v3153_v17  ;;  %2352 = vmatprep.mubr.bf16.mxu1 %v3254_v18  ;;  %v3302_v17 = vld [vmem:[%s3485_s30 + $0x44] ss:$72 sps:$4 sm:$0xff]   ;;  %v3252_v18 = vld [vmem:[%s3485_s30 + $0x38] ss:$72 sps:$4 sm:$0xff]  }
  0xd0   : > { %2322 = vmatprep.subr.bf16.mxu1 %v3161_v19  ;;  %v3257_v19 = vld [vmem:[%s4248_s1 + $0x864] ss:$8 sps:$4 sm:$0xff]  }
  0xd1   : > { %2280 = vmatpush1.bf16.msra.mxu0 %v3156_v20  ;;  %v3255_v20 = vld [vmem:[%s4248_s1 + $0x860] ss:$8 sps:$4 sm:$0xff]  }
  0xd2   : > { %2281 = vmatprep.subr.bf16.mxu0 %v3164_v21  ;;  %v3260_v21 = vld [vmem:[%s4248_s1 + $0x854] ss:$8 sps:$4 sm:$0xff]  }
  0xd3   : > { %2323 = vmatpush1.bf16.msra.mxu1 %v3159_v22  ;;  %v3258_v22 = vld [vmem:[%s4248_s1 + $0x850] ss:$8 sps:$4 sm:$0xff]  }
  0xd4   : > { %2324 = vmatprep.subr.bf16.mxu1 %v3167_v23  ;;  %v3263_v23 = vld [vmem:[%s4248_s1 + $0x844] ss:$8 sps:$4 sm:$0xff]  }
  0xd5   : > { %2282 = vmatpush1.bf16.msra.mxu0 %v3162_v24  ;;  %v3261_v24 = vld [vmem:[%s4248_s1 + $0x840] ss:$8 sps:$4 sm:$0xff]  }
  0xd6   : > { %2283 = vmatprep.subr.bf16.mxu0 %v3170_v25  ;;  %v3266_v25 = vld [vmem:[%s4248_s1 + $0x834] ss:$8 sps:$4 sm:$0xff]  }
  0xd7   : > { %2325 = vmatpush1.bf16.msra.mxu1 %v3165_v26  ;;  %v3264_v26 = vld [vmem:[%s4248_s1 + $0x830] ss:$8 sps:$4 sm:$0xff]  }
  0xd8   : > { %2326 = vmatprep.subr.bf16.mxu1 %v3173_v27  ;;  %v3269_v27 = vld [vmem:[%s4248_s1 + $0x824] ss:$8 sps:$4 sm:$0xff]  }
  0xd9   : > { %2284 = vmatpush1.bf16.msra.mxu0 %v3168_v28  ;;  %v3267_v28 = vld [vmem:[%s4248_s1 + $0x820] ss:$8 sps:$4 sm:$0xff]  }
  0xda   : > { %2285 = vmatprep.subr.bf16.mxu0 %v3176_v29  ;;  %v3272_v29 = vld [vmem:[%s4248_s1 + $0x814] ss:$8 sps:$4 sm:$0xff]  }
  0xdb   : > { %2327 = vmatpush1.bf16.msra.mxu1 %v3171_v30  ;;  %v3270_v30 = vld [vmem:[%s4248_s1 + $0x810] ss:$8 sps:$4 sm:$0xff]  }
  0xdc   : > { %2328 = vmatprep.subr.bf16.mxu1 %v3179_v31  ;;  %v3275_v31 = vld [vmem:[%s4248_s1 + $0x804] ss:$8 sps:$4 sm:$0xff]  }
  0xdd   : > { %2286 = vmatpush1.bf16.msra.mxu0 %v3174_v32  ;;  %v3273_v32 = vld [vmem:[%s4248_s1 + $0x800] ss:$8 sps:$4 sm:$0xff]  }
  0xde   : > { %2287 = vmatprep.subr.bf16.mxu0 %v3182_v33  ;;  %v3278_v33 = vld [vmem:[%s4248_s1 + $0x8f4] ss:$8 sps:$4 sm:$0xff]  }
  0xdf   : > { %2329 = vmatpush1.bf16.msra.mxu1 %v3177_v34  ;;  %v3276_v34 = vld [vmem:[%s4248_s1 + $0x8f0] ss:$8 sps:$4 sm:$0xff]  }
  0xe0   : > { %2330 = vmatprep.subr.bf16.mxu1 %v3185_v35  ;;  %v3281_v35 = vld [vmem:[%s4248_s1 + $0x8e4] ss:$8 sps:$4 sm:$0xff]  }
  0xe1   : > { %2288 = vmatpush1.bf16.msra.mxu0 %v3180_v36  ;;  %v3279_v36 = vld [vmem:[%s4248_s1 + $0x8e0] ss:$8 sps:$4 sm:$0xff]  }
  0xe2   : > { %2289 = vmatprep.subr.bf16.mxu0 %v3188_v37  ;;  %v3284_v37 = vld [vmem:[%s4248_s1 + $0x8d4] ss:$8 sps:$4 sm:$0xff]  }
  0xe3   : > { %2331 = vmatpush1.bf16.msra.mxu1 %v3183_v38  ;;  %v3282_v38 = vld [vmem:[%s4248_s1 + $0x8d0] ss:$8 sps:$4 sm:$0xff]  }
  0xe4   : > { %2332 = vmatprep.subr.bf16.mxu1 %v3191_v39  ;;  %v3287_v39 = vld [vmem:[%s4248_s1 + $0x8c4] ss:$8 sps:$4 sm:$0xff]  }
  0xe5   : > { %2290 = vmatpush1.bf16.msra.mxu0 %v3186_v40  ;;  %v3285_v40 = vld [vmem:[%s4248_s1 + $0x8c0] ss:$8 sps:$4 sm:$0xff]  }
  0xe6   : > { %2291 = vmatprep.subr.bf16.mxu0 %v3194_v41  ;;  %v3290_v41 = vld [vmem:[%s4248_s1 + $0x8b4] ss:$8 sps:$4 sm:$0xff]  }
  0xe7   : > { %2333 = vmatpush1.bf16.msra.mxu1 %v3189_v42  ;;  %v3288_v42 = vld [vmem:[%s4248_s1 + $0x8b0] ss:$8 sps:$4 sm:$0xff]  }
  0xe8   : > { %2334 = vmatprep.subr.bf16.mxu1 %v3197_v43  ;;  %v3293_v43 = vld [vmem:[%s4248_s1 + $0x8a4] ss:$8 sps:$4 sm:$0xff]  }
  0xe9   : > { %2292 = vmatpush1.bf16.msra.mxu0 %v3192_v44  ;;  %v3291_v44 = vld [vmem:[%s4248_s1 + $0x8a0] ss:$8 sps:$4 sm:$0xff]  }
  0xea   : > { %2293 = vmatprep.subr.bf16.mxu0 %v3200_v45  ;;  %v3296_v45 = vld [vmem:[%s4248_s1 + $0x894] ss:$8 sps:$4 sm:$0xff]  }
  0xeb   : > { %2335 = vmatpush1.bf16.msra.mxu1 %v3195_v46  ;;  %v3294_v46 = vld [vmem:[%s4248_s1 + $0x890] ss:$8 sps:$4 sm:$0xff]  }
  0xec   : > { %2336 = vmatprep.subr.bf16.mxu1 %v3203_v47  ;;  %v3299_v47 = vld [vmem:[%s4248_s1 + $0x884] ss:$8 sps:$4 sm:$0xff]  }
  0xed   : > { %2294 = vmatpush2.bf16.msra.mxu0 %v3198_v48  ;;  %v3297_v48 = vld [vmem:[%s4248_s1 + $0x880] ss:$8 sps:$4 sm:$0xff]  }
  0xee   : > { %2295 = vmatprep.subr.bf16.mxu0 %v3206_v49  ;;  %v3300_v49 = vld [vmem:[%s3485_s30 + $0x40] ss:$72 sps:$4 sm:$0xff]  }
  0xef   : > { %2337 = vmatpush2.bf16.msra.mxu1 %v3201_v50 }
  0xf0   : > { %2338 = vmatprep.subr.bf16.mxu1 %v3209_v51 }
  0xf1   : > { %2296 = vmatpush2.bf16.msra.mxu0 %v3204_v52 }
  0xf2   : > { %2297 = vmatprep.subr.bf16.mxu0 %v3212_v53 }
  0xf3   : > { %2339 = vmatpush2.bf16.msra.mxu1 %v3207_v54 }
  0xf4   : > { %2340 = vmatprep.subr.bf16.mxu1 %v3215_v55 }
  0xf5   : > { %2298 = vmatpush2.bf16.msra.mxu0 %v3210_v56 }
  0xf6   : > { %2299 = vmatprep.subr.bf16.mxu0 %v3218_v57 }
  0xf7   : > { %2341 = vmatpush2.bf16.msra.mxu1 %v3213_v58 }
  0xf8   : > { %2342 = vmatprep.subr.bf16.mxu1 %v3221_v59 }
  0xf9   : > { %2300 = vmatpush2.bf16.msra.mxu0 %v3216_v60 }
  0xfa   : > { %2301 = vmatprep.subr.bf16.mxu0 %v3224_v61  ;;  %v479_v61 = vlaneseq }
  0xfb   : > { %2343 = vmatpush2.bf16.msra.mxu1 %v3219_v62 }
  0xfc   : > { %2344 = vmatprep.subr.bf16.mxu1 %v3227_v63 }
  0xfd   : > { %2302 = vmatpush2.bf16.msra.mxu0 %v3222_v0  ;;  %v480_v0 = vshrl.u32 %v479_v61, 7 }
  0xfe   : > { %2303 = vmatprep.subr.bf16.mxu0 %v3230_v1 }
  0xff   : > { %2345 = vmatpush2.bf16.msra.mxu1 %v3225_v2 }
 0x100   : > { %2346 = vmatprep.subr.bf16.mxu1 %v3233_v3 }
 0x101   : > { %2304 = vmatpush2.bf16.msra.mxu0 %v3228_v4  ;;  %v481_v4 = vsub.s32 0, %v480_v0 }
 0x102   : > { %2305 = vmatprep.subr.bf16.mxu0 %v3236_v5  ;;  %v477_v5 = vld [vmem:[%s4249_s2] sm:$0x3] }
 0x103   : > { %2347 = vmatpush2.bf16.msra.mxu1 %v3231_v6 }
 0x104   : > { %2348 = vmatprep.subr.bf16.mxu1 %v3239_v7  ;;  %v485_v7 = vsub.s32 1, %v480_v0 }
 0x105   : > { %2306 = vmatpush2.bf16.msra.mxu0 %v3234_v8 }
 0x106   : > { %2307 = vmatprep.subr.bf16.mxu0 %v3242_v9 }
 0x107   : > { %2349 = vmatpush2.bf16.msra.mxu1 %v3237_v10  ;;  %v482_v10 = vrot.slane %v477_v5, %v481_v4 }
 0x108   : > { %2350 = vmatprep.subr.bf16.mxu1 %v3245_v11  ;;  %v486_v11 = vrot.slane %v477_v5, %v485_v7 }
 0x109   : > { %2308 = vmatpush2.bf16.msra.mxu0 %v3240_v12 }
 0x10a   : > { %2363 = vmatprep.subr.bf16.mxu0 %v3251_v13 }
 0x10b   : > { %2351 = vmatpush2.bf16.msra.mxu1 %v3243_v14 }
 0x10c   : > { %2310 = vmatmul.mubr.bf16.vlgmr.msra.gmra.mxu0 %v3246_v15  ;;  %v2053_v50 = vpop.f32.mrf.mxu0 }
 0x10d   : > { %2364 = vmatpush1.bf16.msra.mxu0 %v3249_v16  ;;  %2395 = vmatprep.mubr.bf16.mxu0 %v3302_v17  ;;  %v2096_v52 = vpop.f32.mrf.mxu1  ;;  %v2054_v14 = vadd.f32 %v2053_v50, %v482_v10 }
 0x10e   : > { %2353 = vmatmul.mubr.bf16.vlgmr.msra.gmra.mxu1 %v3252_v18  ;;  %2365 = vmatprep.subr.bf16.mxu0 %v3257_v19  ;;  %v2055_v51 = vpop.f32.mrf.mxu0 }
 0x10f   : > { %v2098_v54 = vpop.f32.mrf.mxu1  ;;  %v2056_v16 = vadd.f32 %v2055_v51, %v486_v11 }
 0x110   : > { %v2057_v53 = vpop.f32.mrf.mxu0 }
 0x111   : > { %2366 = vmatpush1.bf16.msra.mxu0 %v3255_v20  ;;  %v2100_v56 = vpop.f32.mrf.mxu1  ;;  %v2058_v15 = vadd.f32 %v2057_v53, %v482_v10  ;;  %v2097_v20 = vadd.f32 %v2096_v52, %v2054_v14 }
 0x112   : > { %2367 = vmatprep.subr.bf16.mxu0 %v3260_v21  ;;  %v2059_v55 = vpop.f32.mrf.mxu0 }
 0x113   : > { %v2102_v58 = vpop.f32.mrf.mxu1  ;;  %v2060_v17 = vadd.f32 %v2059_v55, %v486_v11  ;;  %v2101_v21 = vadd.f32 %v2100_v56, %v2058_v15 }
 0x115   : > { %2368 = vmatpush1.bf16.msra.mxu0 %v3258_v22 }
 0x116   : > { %2369 = vmatprep.subr.bf16.mxu0 %v3263_v23  ;;  %v2099_v23 = vadd.f32 %v2098_v54, %v2056_v16 }
 0x119   : > { %2370 = vmatpush1.bf16.msra.mxu0 %v3261_v24  ;;  %v2103_v24 = vadd.f32 %v2102_v58, %v2060_v17 }
 0x11a   : > { %2371 = vmatprep.subr.bf16.mxu0 %v3266_v25 }
 0x11d   : > { %2372 = vmatpush1.bf16.msra.mxu0 %v3264_v26 }
 0x11e   : > { %2373 = vmatprep.subr.bf16.mxu0 %v3269_v27 }
 0x121   : > { %2374 = vmatpush1.bf16.msra.mxu0 %v3267_v28 }
 0x122   : > { %2375 = vmatprep.subr.bf16.mxu0 %v3272_v29 }
 0x125   : > { %2376 = vmatpush1.bf16.msra.mxu0 %v3270_v30 }
 0x126   : > { %2377 = vmatprep.subr.bf16.mxu0 %v3275_v31 }
 0x129   : > { %2378 = vmatpush1.bf16.msra.mxu0 %v3273_v32 }
 0x12a   : > { %2379 = vmatprep.subr.bf16.mxu0 %v3278_v33 }
 0x12d   : > { %2380 = vmatpush2.bf16.msra.mxu0 %v3276_v34 }
 0x12e   : > { %2381 = vmatprep.subr.bf16.mxu0 %v3281_v35 }
 0x131   : > { %2382 = vmatpush2.bf16.msra.mxu0 %v3279_v36 }
 0x132   : > { %2383 = vmatprep.subr.bf16.mxu0 %v3284_v37 }
 0x135   : > { %2384 = vmatpush2.bf16.msra.mxu0 %v3282_v38 }
 0x136   : > { %2385 = vmatprep.subr.bf16.mxu0 %v3287_v39 }
 0x139   : > { %2386 = vmatpush2.bf16.msra.mxu0 %v3285_v40 }
 0x13a   : > { %2387 = vmatprep.subr.bf16.mxu0 %v3290_v41 }
 0x13d   : > { %2388 = vmatpush2.bf16.msra.mxu0 %v3288_v42 }
 0x13e   : > { %2389 = vmatprep.subr.bf16.mxu0 %v3293_v43 }
 0x141   : > { %2390 = vmatpush2.bf16.msra.mxu0 %v3291_v44 }
 0x142   : > { %2391 = vmatprep.subr.bf16.mxu0 %v3296_v45 }
 0x145   : > { %2392 = vmatpush2.bf16.msra.mxu0 %v3294_v46 }
 0x146   : > { %2393 = vmatprep.subr.bf16.mxu0 %v3299_v47 }
 0x149   : > { %2394 = vmatpush2.bf16.msra.mxu0 %v3297_v48 }
 0x14c   : > { %2396 = vmatmul.mubr.bf16.vlgmr.msra.gmra.mxu0 %v3300_v49  ;;  %v2139_v57 = vpop.f32.mrf.mxu0 }
 0x14d   : > { %v2182_v60 = vpop.f32.mrf.mxu1  ;;  %v2140_v25 = vadd.f32 %v2139_v57, %v2097_v20 }
 0x14e   : > { %v2141_v59 = vpop.f32.mrf.mxu0 }
 0x14f   : > { %v2184_v63 = vpop.f32.mrf.mxu1  ;;  %v2142_v28 = vadd.f32 %v2141_v59, %v2099_v23  ;;  %v2183_v32 = vadd.f32 %v2182_v60, %v2140_v25 }
 0x150   : > { %v2143_v62 = vpop.f32.mrf.mxu0 }
 0x151   : > { %v2186_v2 = vpop.f32.mrf.mxu1  ;;  %v2144_v26 = vadd.f32 %v2143_v62, %v2101_v21  ;;  %v2185_v34 = vadd.f32 %v2184_v63, %v2142_v28 }
 0x152   : > { %v2145_v1 = vpop.f32.mrf.mxu0 }
 0x153   : > { %v2188_v6 = vpop.f32.mrf.mxu1  ;;  %v2146_v29 = vadd.f32 %v2145_v1, %v2103_v24  ;;  %v2187_v33 = vadd.f32 %v2186_v2, %v2144_v26 }
 0x155   : > { %v2189_v35 = vadd.f32 %v2188_v6, %v2146_v29 }
 0x18c   : > { %v2225_v3 = vpop.f32.mrf.mxu0 }
 0x18d   : > { %v2226_v36 = vadd.f32 %v2225_v3, %v2183_v32 }
 0x18e   : > { %v2227_v8 = vpop.f32.mrf.mxu0  ;;  %v2268_v9 = vpop.f32.mrf.mxu1 }
 0x18f   : > { %v2228_v40 = vadd.f32 %v2227_v8, %v2185_v34  ;;  %v2269_v42 = vadd.f32 %v2268_v9, %v2226_v36 }
 0x190   : > { %v2229_v12 = vpop.f32.mrf.mxu0  ;;  %v2270_v13 = vpop.f32.mrf.mxu1 }
 0x191   : > { %v2230_v37 = vadd.f32 %v2229_v12, %v2187_v33  ;;  %v2271_v46 = vadd.f32 %v2270_v13, %v2228_v40 }
 0x192   : > { %v2231_v18 = vpop.f32.mrf.mxu0  ;;  %v2272_v19 = vpop.f32.mrf.mxu1 }
 0x193   : > { %v2232_v41 = vadd.f32 %v2231_v18, %v2189_v35  ;;  %v2273_v43 = vadd.f32 %v2272_v19, %v2230_v37 }
 0x194   : > { %v2274_v27 = vpop.f32.mrf.mxu1 }
 0x195   : > { %v2275_v47 = vadd.f32 %v2274_v27, %v2232_v41 }
 0x1cc   : > { %v2311_v22 = vpop.f32.mrf.mxu0 }
 0x1cd   : > { %v2312_v48 = vadd.f32 %v2311_v22, %v2269_v42 }
 0x1ce   : > { %v2313_v30 = vpop.f32.mrf.mxu0  ;;  %v2354_v31 = vpop.f32.mrf.mxu1 }
 0x1cf   : > { %v2314_v51 = vadd.f32 %v2313_v30, %v2271_v46  ;;  %v2355_v55 = vadd.f32 %v2354_v31, %v2312_v48 }
 0x1d0   : > { %v2315_v38 = vpop.f32.mrf.mxu0  ;;  %v2356_v39 = vpop.f32.mrf.mxu1 }
 0x1d1   : > { %v2316_v49 = vadd.f32 %v2315_v38, %v2273_v43  ;;  %v2357_v58 = vadd.f32 %v2356_v39, %v2314_v51 }
 0x1d2   : > { %v2317_v44 = vpop.f32.mrf.mxu0  ;;  %v2358_v45 = vpop.f32.mrf.mxu1 }
 0x1d3   : > { %v2318_v52 = vadd.f32 %v2317_v44, %v2275_v47  ;;  %v2359_v56 = vadd.f32 %v2358_v45, %v2316_v49 }
 0x1d4   : > { %v2360_v53 = vpop.f32.mrf.mxu1 }
 0x1d5   : > { %v2361_v59 = vadd.f32 %v2360_v53, %v2318_v52 }
 0x20c   : > { %v2397_v50 = vpop.f32.mrf.mxu0 }
 0x20d   : > { %v2398_v60 = vadd.f32 %v2397_v50, %v2355_v55 }
 0x20e   : > { %v2399_v54 = vpop.f32.mrf.mxu0 }
 0x20f   : > { %v2400_v63 = vadd.f32 %v2399_v54, %v2357_v58 }
 0x210   : > { %v2401_v57 = vpop.f32.mrf.mxu0 }
 0x211   : > { %v2402_v61 = vadd.f32 %v2401_v57, %v2359_v56 }
 0x212   : > { %v2403_v62 = vpop.f32.mrf.mxu0 }
 0x213   : > { %v2406_v0 = vadd.f32 %v2402_v61, %v2398_v60  ;;  %v2404_v1 = vadd.f32 %v2403_v62, %v2361_v59 }
 0x215   : > { %v2407_v2 = vrot.slane %v2406_v0, 4  ;;  %v2413_v3 = vadd.f32 %v2404_v1, %v2400_v63 }
 0x217   : > { %v2408_v4 = vadd.f32 %v2407_v2, %v2406_v0  ;;  %v2414_v5 = vrot.slane %v2413_v3, 4 }
 0x219   : > { %v2409_v6 = vrot.slane %v2408_v4, 2  ;;  %v2415_v7 = vadd.f32 %v2414_v5, %v2413_v3 }
 0x21b   : > { %v2410_v8 = vadd.f32 %v2409_v6, %v2408_v4  ;;  %v2416_v9 = vrot.slane %v2415_v7, 2 }
 0x21d   : > { %v2411_v10 = vrot.slane %v2410_v8, 1  ;;  %v2417_v11 = vadd.f32 %v2416_v9, %v2415_v7 }
 0x21f   : > { %v2412_v12 = vadd.f32 %v2411_v10, %v2410_v8  ;;  %v2418_v13 = vrot.slane %v2417_v11, 1 }
 0x221   : > { %v2421_v14 = vmul.f32 0.0625, %v2412_v12  ;;  %v2419_v15 = vadd.f32 %v2418_v13, %v2417_v11 }
 0x223   : > { %v2423_v16 = vsub.f32 %v2398_v60, %v2421_v14  ;;  %v2425_v17 = vsub.f32 %v2402_v61, %v2421_v14  ;;  %v2422_v18 = vmul.f32 0.0625, %v2419_v15 }
 0x225   : > { %v2427_v19 = vmul.f32 %v2423_v16, %v2423_v16  ;;  %v2429_v20 = vmul.f32 %v2425_v17, %v2425_v17  ;;  %v2424_v21 = vsub.f32 %v2400_v63, %v2422_v18  ;;  %v2426_v22 = vsub.f32 %v2404_v1, %v2422_v18 }
 0x227   : > { %v2431_v23 = vadd.f32 %v2429_v20, %v2427_v19  ;;  %v2428_v24 = vmul.f32 %v2424_v21, %v2424_v21  ;;  %v2430_v25 = vmul.f32 %v2426_v22, %v2426_v22 }
 0x229   : > { %v2432_v26 = vrot.slane %v2431_v23, 4  ;;  %v2438_v27 = vadd.f32 %v2430_v25, %v2428_v24 }
 0x22b   : > { %v2433_v28 = vadd.f32 %v2432_v26, %v2431_v23  ;;  %v2439_v29 = vrot.slane %v2438_v27, 4 }
 0x22d   : > { %v2434_v30 = vrot.slane %v2433_v28, 2  ;;  %v2440_v31 = vadd.f32 %v2439_v29, %v2438_v27 }
 0x22f   : > { %v2435_v32 = vadd.f32 %v2434_v30, %v2433_v28  ;;  %v2441_v33 = vrot.slane %v2440_v31, 2 }
 0x231   : > { %v2436_v34 = vrot.slane %v2435_v32, 1  ;;  %v2442_v35 = vadd.f32 %v2441_v33, %v2440_v31 }
 0x233   : > { %v2437_v36 = vadd.f32 %v2436_v34, %v2435_v32  ;;  %v2443_v37 = vrot.slane %v2442_v35, 1 }
 0x235   : > { %v2445_v38 = vmul.f32 0.0625, %v2437_v36  ;;  %v2444_v39 = vadd.f32 %v2443_v37, %v2442_v35 }
 0x237   : > { %v2447_v40 = vadd.f32 1e-05, %v2445_v38  ;;  %v2446_v41 = vmul.f32 0.0625, %v2444_v39 }
 0x239   : > { %3303 = vrsqrt.f32 %v2447_v40  ;;  %v2448_v42 = vadd.f32 1e-05, %v2446_v41 }
 0x23b   : > { %3305 = vrsqrt.f32 %v2448_v42 }
 0x246   : > { %v3304_v43 = vpop.eup %3303 }
 0x247   : > { %v2451_v44 = vmul.f32 %v3304_v43, %v2423_v16  ;;  %v2453_v45 = vmul.f32 %v3304_v43, %v2425_v17 }
 0x248   : > { %v3306_v46 = vpop.eup %3305 }
 0x249   : > { %v2455_v47 = vmax.f32 %v2451_v44, 0.0  ;;  %v2457_v48 = vmax.f32 %v2453_v45, 0.0  ;;  %v2452_v49 = vmul.f32 %v3306_v46, %v2424_v21  ;;  %v2454_v50 = vmul.f32 %v3306_v46, %v2426_v22 }
 0x24b   : > { %2459 = vst [vmem:[%s170_s18] sm:$0xff] %v2455_v47  ;;  %2461 = vst [vmem:[%s170_s18 + $0x10] sm:$0xff] %v2457_v48  ;;  %v2456_v51 = vmax.f32 %v2452_v49, 0.0  ;;  %v2458_v52 = vmax.f32 %v2454_v50, 0.0 }
 0x24d   : > { %2460 = vst [vmem:[%s170_s18 + $0x8] sm:$0xff] %v2456_v51  ;;  %2462 = vst [vmem:[%s170_s18 + $0x18] sm:$0xff] %v2458_v52 }
 0x24e PF: > { %s13_s12 = sadd.s32 1, %s3313_s12  }
 0x24f   : > { %p10_p4 = scmp.ge.s32.totalorder %s13_s12, 4  }
 0x251   :  { %12 = sbr.rel (!%p10_p4) target bundleno = 1 (0x1), region = 62 }

// kernel: resnet_forward.28
= control target key start
LH: loop header
LB: loop body
LE: loop exit
PB: predicated region body
PF: predicated region fallthrough
CT: control target
= control target key end

     0   :  { %s3406_s15 = smov 0   ;;  %s4321_s0 = inlined_call_operand.vmem [shape: bf16[2,16,2304], index: 0, kind: input, shape index: {}]   ;;  %s4322_s1 = inlined_call_operand.vmem [shape: bf16[2304,256], index: 1, kind: input, shape index: {}]   ;;  %s4323_s2 = inlined_call_operand.vmem [shape: f32[1,256], index: 2, kind: input, shape index: {}]   ;;  %s4324_s3 = inlined_call_operand.vmem [shape: f32[2,16,256], index: 3, kind: input, shape index: {}]   ;;  %s4325_s4 = inlined_call_operand.vmem [shape: f32[2,16,256], index: 4, kind: output, shape index: {}]  }
   0x1 LB: > { %s2581_s16 = sadd.s32 4294967295, %s3379_s15   ;;  %p2585_p0 = scmp.ge.s32.totalorder %s3379_s15, 1  ;;  %s3379_s15 = sphi %s3406_s15, %s14_s15  }
   0x2   : > { %p172_p1 = scmp.lt.s32.totalorder %s3379_s15, 3 }
   0x4   : > { %p173_p2 = pnand %p2585_p0, %p172_p1 }
   0x5   : > { %p203_p3 = scmp.lt.s32.totalorder (!%p173_p2), %s2581_s16, 1 }
   0x6   : > { %176 = sbr.rel (%p173_p2) target bundleno = 590 (0x24e), region = 36 }
   0xb   : > { %v2910_v0 = vld [vmem:[%s4322_s1 + $0x74] ss:$8 sps:$4 sm:$0xff]   ;;  %v2912_v1 = vld [vmem:[%s4322_s1 + $0x70] ss:$8 sps:$4 sm:$0xff]   ;;  %v2916_v4 = vld [vmem:[%s4322_s1 + $0x64] ss:$8 sps:$4 sm:$0xff]  }
   0xc   : > { %2066 = vmatprep.subr.bf16.mxu0 %v2910_v0  ;;  %v2913_v2 = vld [vmem:[%s4322_s1 + $0x174] ss:$8 sps:$4 sm:$0xff]   ;;  %v2915_v3 = vld [vmem:[%s4322_s1 + $0x170] ss:$8 sps:$4 sm:$0xff]   ;;  %v2918_v5 = vld [vmem:[%s4322_s1 + $0x60] ss:$8 sps:$4 sm:$0xff]  }
   0xd   : > { %2067 = vmatpush1.bf16.msra.mxu0 %v2912_v1  ;;  %2109 = vmatprep.subr.bf16.mxu1 %v2913_v2  ;;  %v2919_v6 = vld [vmem:[%s4322_s1 + $0x164] ss:$8 sps:$4 sm:$0xff]   ;;  %v2921_v7 = vld [vmem:[%s4322_s1 + $0x160] ss:$8 sps:$4 sm:$0xff]   ;;  %v2922_v8 = vld [vmem:[%s4322_s1 + $0x54] ss:$8 sps:$4 sm:$0xff]  }
   0xe   : > { %2110 = vmatpush1.bf16.msra.mxu1 %v2915_v3  ;;  %2068 = vmatprep.subr.bf16.mxu0 %v2916_v4  ;;  %v2924_v9 = vld [vmem:[%s4322_s1 + $0x50] ss:$8 sps:$4 sm:$0xff]   ;;  %v2925_v10 = vld [vmem:[%s4322_s1 + $0x154] ss:$8 sps:$4 sm:$0xff]   ;;  %v2928_v11 = vld [vmem:[%s4322_s1 + $0x44] ss:$8 sps:$4 sm:$0xff]  }
   0xf   : > { %2111 = vmatprep.subr.bf16.mxu1 %v2919_v6  ;;  %v2927_v12 = vld [vmem:[%s4322_s1 + $0x150] ss:$8 sps:$4 sm:$0xff]   ;;  %v2931_v13 = vld [vmem:[%s4322_s1 + $0x144] ss:$8 sps:$4 sm:$0xff]   ;;  %v2930_v14 = vld [vmem:[%s4322_s1 + $0x40] ss:$8 sps:$4 sm:$0xff]  }
  0x10   : > { %v2934_v15 = vld [vmem:[%s4322_s1 + $0x34] ss:$8 sps:$4 sm:$0xff]   ;;  %v2933_v16 = vld [vmem:[%s4322_s1 + $0x140] ss:$8 sps:$4 sm:$0xff]   ;;  %v2936_v18 = vld [vmem:[%s4322_s1 + $0x30] ss:$8 sps:$4 sm:$0xff]  }
  0x11   : > { %2069 = vmatpush1.bf16.msra.mxu0 %v2918_v5  ;;  %v2937_v17 = vld [vmem:[%s4322_s1 + $0x134] ss:$8 sps:$4 sm:$0xff]   ;;  %v2940_v19 = vld [vmem:[%s4322_s1 + $0x24] ss:$8 sps:$4 sm:$0xff]   ;;  %v2939_v20 = vld [vmem:[%s4322_s1 + $0x130] ss:$8 sps:$4 sm:$0xff]  }
  0x12   : > { %2070 = vmatprep.subr.bf16.mxu0 %v2922_v8  ;;  %2112 = vmatpush1.bf16.msra.mxu1 %v2921_v7  ;;  %v2943_v21 = vld [vmem:[%s4322_s1 + $0x124] ss:$8 sps:$4 sm:$0xff]   ;;  %v2942_v22 = vld [vmem:[%s4322_s1 + $0x20] ss:$8 sps:$4 sm:$0xff]   ;;  %v2946_v23 = vld [vmem:[%s4322_s1 + $0x14] ss:$8 sps:$4 sm:$0xff]  }
  0x13   : > { %2113 = vmatprep.subr.bf16.mxu1 %v2925_v10  ;;  %v2945_v24 = vld [vmem:[%s4322_s1 + $0x120] ss:$8 sps:$4 sm:$0xff]   ;;  %v2949_v25 = vld [vmem:[%s4322_s1 + $0x114] ss:$8 sps:$4 sm:$0xff]   ;;  %v2948_v26 = vld [vmem:[%s4322_s1 + $0x10] ss:$8 sps:$4 sm:$0xff]  }
  0x14   : > { %v2952_v27 = vld [vmem:[%s4322_s1 + $0x4] ss:$8 sps:$4 sm:$0xff]   ;;  %v2951_v28 = vld [vmem:[%s4322_s1 + $0x110] ss:$8 sps:$4 sm:$0xff]   ;;  %v2954_v30 = vld [vmem:[%s4322_s1] ss:$8 sps:$4 sm:$0xff]  }
  0x15   : > { %2071 = vmatpush1.bf16.msra.mxu0 %v2924_v9  ;;  %v2955_v29 = vld [vmem:[%s4322_s1 + $0x104] ss:$8 sps:$4 sm:$0xff]   ;;  %v2958_v31 = vld [vmem:[%s4322_s1 + $0xf4] ss:$8 sps:$4 sm:$0xff]   ;;  %v2957_v32 = vld [vmem:[%s4322_s1 + $0x100] ss:$8 sps:$4 sm:$0xff]  }
  0x16   : > { %2072 = vmatprep.subr.bf16.mxu0 %v2928_v11  ;;  %2114 = vmatpush1.bf16.msra.mxu1 %v2927_v12  ;;  %v2961_v33 = vld [vmem:[%s4322_s1 + $0x1f4] ss:$8 sps:$4 sm:$0xff]   ;;  %v2960_v34 = vld [vmem:[%s4322_s1 + $0xf0] ss:$8 sps:$4 sm:$0xff]   ;;  %v2964_v35 = vld [vmem:[%s4322_s1 + $0xe4] ss:$8 sps:$4 sm:$0xff]  }
  0x17   : > { %2115 = vmatprep.subr.bf16.mxu1 %v2931_v13  ;;  %s4327_s16 = smov (!%p203_p3, %s2581_s16), 1  ;;  %v2963_v36 = vld [vmem:[%s4322_s1 + $0x1f0] ss:$8 sps:$4 sm:$0xff]   ;;  %v2967_v37 = vld [vmem:[%s4322_s1 + $0x1e4] ss:$8 sps:$4 sm:$0xff]  }
  0x18   : > { %v2966_v38 = vld [vmem:[%s4322_s1 + $0xe0] ss:$8 sps:$4 sm:$0xff]   ;;  %v2970_v39 = vld [vmem:[%s4322_s1 + $0xd4] ss:$8 sps:$4 sm:$0xff]   ;;  %s2901_s25 = smul.u32 144, %s4327_s16  ;;  %s2899_s19 = sshll.u32 %s4327_s16, 5 }
  0x19   : > { %2073 = vmatpush1.bf16.msra.mxu0 %v2930_v14  ;;  %v2969_v40 = vld [vmem:[%s4322_s1 + $0x1e0] ss:$8 sps:$4 sm:$0xff]   ;;  %v2973_v41 = vld [vmem:[%s4322_s1 + $0x1d4] ss:$8 sps:$4 sm:$0xff]   ;;  %v2972_v42 = vld [vmem:[%s4322_s1 + $0xd0] ss:$8 sps:$4 sm:$0xff]   ;;  %s212_s22 = scalar_lea.vmem %s4324_s3, %s2899_s19 }
  0x1a   : > { %2074 = vmatprep.subr.bf16.mxu0 %v2934_v15  ;;  %2116 = vmatpush1.bf16.msra.mxu1 %v2933_v16  ;;  %v2976_v43 = vld [vmem:[%s4322_s1 + $0xc4] ss:$8 sps:$4 sm:$0xff]   ;;  %s3556_s10 = scalar_lea.vmem %s4321_s0, %s2901_s25  ;;  %v2975_v44 = vld [vmem:[%s4322_s1 + $0x1d0] ss:$8 sps:$4 sm:$0xff]   ;;  %v2978_v46 = vld [vmem:[%s4322_s1 + $0xc0] ss:$8 sps:$4 sm:$0xff]   ;;  %s217_s25 = scalar_lea.vmem %s4325_s4, %s2899_s19 }
  0x1b   : > { %2117 = vmatprep.subr.bf16.mxu1 %v2937_v17  ;;  %v2979_v45 = vld [vmem:[%s4322_s1 + $0x1c4] ss:$8 sps:$4 sm:$0xff]   ;;  %v2982_v48 = vld [vmem:[%s4322_s1 + $0xb4] ss:$8 sps:$4 sm:$0xff]   ;;  %v2981_v49 = vld [vmem:[%s4322_s1 + $0x1c0] ss:$8 sps:$4 sm:$0xff]  }
  0x1c   : > { %v3007_v47 = vld [vmem:[%s3556_s10 + $0x4] ss:$72 sps:$4 sm:$0xff]   ;;  %v2985_v50 = vld [vmem:[%s4322_s1 + $0x1b4] ss:$8 sps:$4 sm:$0xff]   ;;  %v2984_v52 = vld [vmem:[%s4322_s1 + $0xb0] ss:$8 sps:$4 sm:$0xff]  }
  0x1d   : > { %2075 = vmatpush1.bf16.msra.mxu0 %v2936_v18  ;;  %2098 = vmatprep.mubr.bf16.mxu0 %v3007_v47  ;;  %v3014_v51 = vld [vmem:[%s3556_s10 + $0xc] ss:$72 sps:$4 sm:$0xff]   ;;  %v2987_v54 = vld [vmem:[%s4322_s1 + $0x1b0] ss:$8 sps:$4 sm:$0xff]   ;;  %v2990_v56 = vld [vmem:[%s4322_s1 + $0xa0] ss:$8 sps:$4 sm:$0xff]  }
  0x1e   : > { %2076 = vmatprep.subr.bf16.mxu0 %v2940_v19  ;;  %2118 = vmatpush1.bf16.msra.mxu1 %v2939_v20  ;;  %v2988_v53 = vld [vmem:[%s4322_s1 + $0xa4] ss:$8 sps:$4 sm:$0xff]   ;;  %v2994_v57 = vld [vmem:[%s4322_s1 + $0x94] ss:$8 sps:$4 sm:$0xff]   ;;  %v2993_v58 = vld [vmem:[%s4322_s1 + $0x1a0] ss:$8 sps:$4 sm:$0xff]  }
  0x1f   : > { %2119 = vmatprep.subr.bf16.mxu1 %v2943_v21  ;;  %2141 = vmatprep.mubr.bf16.mxu1 %v3014_v51  ;;  %v2991_v55 = vld [vmem:[%s4322_s1 + $0x1a4] ss:$8 sps:$4 sm:$0xff]   ;;  %v2997_v59 = vld [vmem:[%s4322_s1 + $0x194] ss:$8 sps:$4 sm:$0xff]   ;;  %v2996_v60 = vld [vmem:[%s4322_s1 + $0x90] ss:$8 sps:$4 sm:$0xff]  }
  0x20   : > { %v3000_v61 = vld [vmem:[%s4322_s1 + $0x84] ss:$8 sps:$4 sm:$0xff]   ;;  %v2999_v62 = vld [vmem:[%s4322_s1 + $0x190] ss:$8 sps:$4 sm:$0xff]   ;;  %v3002_v0 = vld [vmem:[%s4322_s1 + $0x80] ss:$8 sps:$4 sm:$0xff]  }
  0x21   : > { %2077 = vmatpush1.bf16.msra.mxu0 %v2942_v22  ;;  %v3003_v63 = vld [vmem:[%s4322_s1 + $0x184] ss:$8 sps:$4 sm:$0xff]   ;;  %v3011_v1 = vld [vmem:[%s4322_s1 + $0x274] ss:$8 sps:$4 sm:$0xff]   ;;  %v3008_v2 = vld [vmem:[%s4322_s1 + $0x180] ss:$8 sps:$4 sm:$0xff]  }
  0x22   : > { %2078 = vmatprep.subr.bf16.mxu0 %v2946_v23  ;;  %2120 = vmatpush1.bf16.msra.mxu1 %v2945_v24  ;;  %v3005_v3 = vld [vmem:[%s3556_s10] ss:$72 sps:$4 sm:$0xff]   ;;  %v3017_v4 = vld [vmem:[%s4322_s1 + $0x374] ss:$8 sps:$4 sm:$0xff]   ;;  %v3009_v5 = vld [vmem:[%s4322_s1 + $0x270] ss:$8 sps:$4 sm:$0xff]  }
  0x23   : > { %2121 = vmatprep.subr.bf16.mxu1 %v2949_v25  ;;  %v3012_v6 = vld [vmem:[%s3556_s10 + $0x8] ss:$72 sps:$4 sm:$0xff]   ;;  %v3020_v7 = vld [vmem:[%s4322_s1 + $0x264] ss:$8 sps:$4 sm:$0xff]   ;;  %v3026_v11 = vld [vmem:[%s4322_s1 + $0x254] ss:$8 sps:$4 sm:$0xff]  }
  0x24   : > { %v3015_v8 = vld [vmem:[%s4322_s1 + $0x370] ss:$8 sps:$4 sm:$0xff]   ;;  %v3023_v9 = vld [vmem:[%s4322_s1 + $0x364] ss:$8 sps:$4 sm:$0xff]   ;;  %v3018_v10 = vld [vmem:[%s4322_s1 + $0x260] ss:$8 sps:$4 sm:$0xff]  }
  0x25   : > { %2079 = vmatpush1.bf16.msra.mxu0 %v2948_v26  ;;  %v3021_v12 = vld [vmem:[%s4322_s1 + $0x360] ss:$8 sps:$4 sm:$0xff]   ;;  %v3029_v13 = vld [vmem:[%s4322_s1 + $0x354] ss:$8 sps:$4 sm:$0xff]   ;;  %v3024_v14 = vld [vmem:[%s4322_s1 + $0x250] ss:$8 sps:$4 sm:$0xff]  }
  0x26   : > { %2080 = vmatprep.subr.bf16.mxu0 %v2952_v27  ;;  %2122 = vmatpush1.bf16.msra.mxu1 %v2951_v28  ;;  %v3032_v15 = vld [vmem:[%s4322_s1 + $0x244] ss:$8 sps:$4 sm:$0xff]   ;;  %v3027_v16 = vld [vmem:[%s4322_s1 + $0x350] ss:$8 sps:$4 sm:$0xff]   ;;  %v3030_v18 = vld [vmem:[%s4322_s1 + $0x240] ss:$8 sps:$4 sm:$0xff]  }
  0x27   : > { %2123 = vmatprep.subr.bf16.mxu1 %v2955_v29  ;;  %v3035_v17 = vld [vmem:[%s4322_s1 + $0x344] ss:$8 sps:$4 sm:$0xff]   ;;  %v3038_v19 = vld [vmem:[%s4322_s1 + $0x234] ss:$8 sps:$4 sm:$0xff]   ;;  %v3033_v20 = vld [vmem:[%s4322_s1 + $0x340] ss:$8 sps:$4 sm:$0xff]  }
  0x28   : > { %v3041_v21 = vld [vmem:[%s4322_s1 + $0x334] ss:$8 sps:$4 sm:$0xff]   ;;  %v3036_v22 = vld [vmem:[%s4322_s1 + $0x230] ss:$8 sps:$4 sm:$0xff]   ;;  %v3044_v23 = vld [vmem:[%s4322_s1 + $0x224] ss:$8 sps:$4 sm:$0xff]  }
  0x29   : > { %2081 = vmatpush1.bf16.msra.mxu0 %v2954_v30  ;;  %v3039_v24 = vld [vmem:[%s4322_s1 + $0x330] ss:$8 sps:$4 sm:$0xff]   ;;  %v3047_v25 = vld [vmem:[%s4322_s1 + $0x324] ss:$8 sps:$4 sm:$0xff]   ;;  %v3042_v26 = vld [vmem:[%s4322_s1 + $0x220] ss:$8 sps:$4 sm:$0xff]  }
  0x2a   : > { %2082 = vmatprep.subr.bf16.mxu0 %v2958_v31  ;;  %2124 = vmatpush1.bf16.msra.mxu1 %v2957_v32  ;;  %v3050_v27 = vld [vmem:[%s4322_s1 + $0x214] ss:$8 sps:$4 sm:$0xff]   ;;  %v3045_v28 = vld [vmem:[%s4322_s1 + $0x320] ss:$8 sps:$4 sm:$0xff]   ;;  %v3048_v30 = vld [vmem:[%s4322_s1 + $0x210] ss:$8 sps:$4 sm:$0xff]  }
  0x2b   : > { %2125 = vmatprep.subr.bf16.mxu1 %v2961_v33  ;;  %v3053_v29 = vld [vmem:[%s4322_s1 + $0x314] ss:$8 sps:$4 sm:$0xff]   ;;  %v3051_v31 = vld [vmem:[%s4322_s1 + $0x310] ss:$8 sps:$4 sm:$0xff]   ;;  %v3056_v32 = vld [vmem:[%s4322_s1 + $0x204] ss:$8 sps:$4 sm:$0xff]  }
  0x2c   : > { %v3110_v33 = vld [vmem:[%s3556_s10 + $0x14] ss:$72 sps:$4 sm:$0xff]   ;;  %v3083_v51 = vld [vmem:[%s4322_s1 + $0x3c4] ss:$8 sps:$4 sm:$0xff]  }
  0x2d   : > { %2083 = vmatpush2.bf16.msra.mxu0 %v2960_v34  ;;  %v3059_v34 = vld [vmem:[%s4322_s1 + $0x304] ss:$8 sps:$4 sm:$0xff]   ;;  %v3077_v47 = vld [vmem:[%s4322_s1 + $0x3d4] ss:$8 sps:$4 sm:$0xff]  }
  0x2e   : > { %2084 = vmatprep.subr.bf16.mxu0 %v2964_v35  ;;  %2126 = vmatpush2.bf16.msra.mxu1 %v2963_v36  ;;  %v3054_v35 = vld [vmem:[%s4322_s1 + $0x200] ss:$8 sps:$4 sm:$0xff]   ;;  %v3116_v36 = vld [vmem:[%s3556_s10 + $0x1c] ss:$72 sps:$4 sm:$0xff]  }
  0x2f   : > { %2127 = vmatprep.subr.bf16.mxu1 %v2967_v37  ;;  %v3062_v37 = vld [vmem:[%s4322_s1 + $0x2f4] ss:$8 sps:$4 sm:$0xff]  }
  0x31   : > { %2085 = vmatpush2.bf16.msra.mxu0 %v2966_v38  ;;  %v3057_v38 = vld [vmem:[%s4322_s1 + $0x300] ss:$8 sps:$4 sm:$0xff]  }
  0x32   : > { %2086 = vmatprep.subr.bf16.mxu0 %v2970_v39  ;;  %2128 = vmatpush2.bf16.msra.mxu1 %v2969_v40  ;;  %v3065_v39 = vld [vmem:[%s4322_s1 + $0x3f4] ss:$8 sps:$4 sm:$0xff]   ;;  %v3060_v40 = vld [vmem:[%s4322_s1 + $0x2f0] ss:$8 sps:$4 sm:$0xff]  }
  0x33   : > { %2129 = vmatprep.subr.bf16.mxu1 %v2973_v41  ;;  %v3068_v41 = vld [vmem:[%s4322_s1 + $0x2e4] ss:$8 sps:$4 sm:$0xff]  }
  0x35   : > { %2087 = vmatpush2.bf16.msra.mxu0 %v2972_v42  ;;  %v3063_v42 = vld [vmem:[%s4322_s1 + $0x3f0] ss:$8 sps:$4 sm:$0xff]  }
  0x36   : > { %2088 = vmatprep.subr.bf16.mxu0 %v2976_v43  ;;  %2130 = vmatpush2.bf16.msra.mxu1 %v2975_v44  ;;  %v3071_v43 = vld [vmem:[%s4322_s1 + $0x3e4] ss:$8 sps:$4 sm:$0xff]   ;;  %v3066_v44 = vld [vmem:[%s4322_s1 + $0x2e0] ss:$8 sps:$4 sm:$0xff]  }
  0x37   : > { %2131 = vmatprep.subr.bf16.mxu1 %v2979_v45  ;;  %v3074_v45 = vld [vmem:[%s4322_s1 + $0x2d4] ss:$8 sps:$4 sm:$0xff]  }
  0x39   : > { %2089 = vmatpush2.bf16.msra.mxu0 %v2978_v46  ;;  %v3069_v46 = vld [vmem:[%s4322_s1 + $0x3e0] ss:$8 sps:$4 sm:$0xff]  }
  0x3a   : > { %2090 = vmatprep.subr.bf16.mxu0 %v2982_v48  ;;  %2132 = vmatpush2.bf16.msra.mxu1 %v2981_v49  ;;  %v3072_v48 = vld [vmem:[%s4322_s1 + $0x2d0] ss:$8 sps:$4 sm:$0xff]   ;;  %v3080_v49 = vld [vmem:[%s4322_s1 + $0x2c4] ss:$8 sps:$4 sm:$0xff]  }
  0x3b   : > { %2133 = vmatprep.subr.bf16.mxu1 %v2985_v50  ;;  %v3075_v50 = vld [vmem:[%s4322_s1 + $0x3d0] ss:$8 sps:$4 sm:$0xff]  }
  0x3d   : > { %2091 = vmatpush2.bf16.msra.mxu0 %v2984_v52  ;;  %v3078_v52 = vld [vmem:[%s4322_s1 + $0x2c0] ss:$8 sps:$4 sm:$0xff]  }
  0x3e   : > { %2092 = vmatprep.subr.bf16.mxu0 %v2988_v53  ;;  %2134 = vmatpush2.bf16.msra.mxu1 %v2987_v54  ;;  %v3086_v53 = vld [vmem:[%s4322_s1 + $0x2b4] ss:$8 sps:$4 sm:$0xff]   ;;  %v3081_v54 = vld [vmem:[%s4322_s1 + $0x3c0] ss:$8 sps:$4 sm:$0xff]  }
  0x3f   : > { %2135 = vmatprep.subr.bf16.mxu1 %v2991_v55  ;;  %v3089_v55 = vld [vmem:[%s4322_s1 + $0x3b4] ss:$8 sps:$4 sm:$0xff]  }
  0x41   : > { %2093 = vmatpush2.bf16.msra.mxu0 %v2990_v56  ;;  %v3084_v56 = vld [vmem:[%s4322_s1 + $0x2b0] ss:$8 sps:$4 sm:$0xff]  }
  0x42   : > { %2094 = vmatprep.subr.bf16.mxu0 %v2994_v57  ;;  %2136 = vmatpush2.bf16.msra.mxu1 %v2993_v58  ;;  %v3092_v57 = vld [vmem:[%s4322_s1 + $0x2a4] ss:$8 sps:$4 sm:$0xff]   ;;  %v3087_v58 = vld [vmem:[%s4322_s1 + $0x3b0] ss:$8 sps:$4 sm:$0xff]  }
  0x43   : > { %2137 = vmatprep.subr.bf16.mxu1 %v2997_v59  ;;  %v3095_v59 = vld [vmem:[%s4322_s1 + $0x3a4] ss:$8 sps:$4 sm:$0xff]  }
  0x45   : > { %2095 = vmatpush2.bf16.msra.mxu0 %v2996_v60  ;;  %v3090_v60 = vld [vmem:[%s4322_s1 + $0x2a0] ss:$8 sps:$4 sm:$0xff]  }
  0x46   : > { %2096 = vmatprep.subr.bf16.mxu0 %v3000_v61  ;;  %2138 = vmatpush2.bf16.msra.mxu1 %v2999_v62  ;;  %v3098_v61 = vld [vmem:[%s4322_s1 + $0x294] ss:$8 sps:$4 sm:$0xff]   ;;  %v3093_v62 = vld [vmem:[%s4322_s1 + $0x3a0] ss:$8 sps:$4 sm:$0xff]  }
  0x47   : > { %2139 = vmatprep.subr.bf16.mxu1 %v3003_v63  ;;  %v3101_v63 = vld [vmem:[%s4322_s1 + $0x394] ss:$8 sps:$4 sm:$0xff]  }
  0x49   : > { %2097 = vmatpush2.bf16.msra.mxu0 %v3002_v0  ;;  %v3096_v0 = vld [vmem:[%s4322_s1 + $0x290] ss:$8 sps:$4 sm:$0xff]  }
  0x4a   : > { %2152 = vmatprep.subr.bf16.mxu0 %v3011_v1  ;;  %2140 = vmatpush2.bf16.msra.mxu1 %v3008_v2  ;;  %v3104_v1 = vld [vmem:[%s4322_s1 + $0x284] ss:$8 sps:$4 sm:$0xff]   ;;  %v3099_v2 = vld [vmem:[%s4322_s1 + $0x390] ss:$8 sps:$4 sm:$0xff]  }
  0x4b   : > { %2195 = vmatprep.subr.bf16.mxu1 %v3017_v4  ;;  %v3102_v4 = vld [vmem:[%s4322_s1 + $0x280] ss:$8 sps:$4 sm:$0xff]  }
  0x4c   : > { %2099 = vmatmul.mubr.bf16.vlgmr.msra.gmra.mxu0 %v3005_v3  ;;  %v3107_v3 = vld [vmem:[%s4322_s1 + $0x384] ss:$8 sps:$4 sm:$0xff]  }
  0x4d   : > { %2153 = vmatpush1.bf16.msra.mxu0 %v3009_v5  ;;  %2142 = vmatmul.mubr.bf16.vlgmr.msra.gmra.mxu1 %v3012_v6  ;;  %v3113_v5 = vld [vmem:[%s4322_s1 + $0x474] ss:$8 sps:$4 sm:$0xff]   ;;  %v3105_v6 = vld [vmem:[%s4322_s1 + $0x380] ss:$8 sps:$4 sm:$0xff]  }
  0x4e   : > { %2154 = vmatprep.subr.bf16.mxu0 %v3020_v7  ;;  %2196 = vmatpush1.bf16.msra.mxu1 %v3015_v8  ;;  %v3108_v7 = vld [vmem:[%s3556_s10 + $0x10] ss:$72 sps:$4 sm:$0xff]   ;;  %v3119_v8 = vld [vmem:[%s4322_s1 + $0x574] ss:$8 sps:$4 sm:$0xff]  }
  0x4f   : > { %2197 = vmatprep.subr.bf16.mxu1 %v3023_v9  ;;  %2184 = vmatprep.mubr.bf16.mxu0 %v3110_v33  ;;  %v3111_v9 = vld [vmem:[%s4322_s1 + $0x470] ss:$8 sps:$4 sm:$0xff]   ;;  %v3152_v33 = vld [vmem:[%s4322_s1 + $0x414] ss:$8 sps:$4 sm:$0xff]  }
  0x50   : > { %2227 = vmatprep.mubr.bf16.mxu1 %v3116_v36  ;;  %v3150_v36 = vld [vmem:[%s4322_s1 + $0x410] ss:$8 sps:$4 sm:$0xff]  }
  0x51   : > { %2155 = vmatpush1.bf16.msra.mxu0 %v3018_v10  ;;  %v3114_v10 = vld [vmem:[%s3556_s10 + $0x18] ss:$72 sps:$4 sm:$0xff]  }
  0x52   : > { %2156 = vmatprep.subr.bf16.mxu0 %v3026_v11  ;;  %2198 = vmatpush1.bf16.msra.mxu1 %v3021_v12  ;;  %v3122_v11 = vld [vmem:[%s4322_s1 + $0x464] ss:$8 sps:$4 sm:$0xff]   ;;  %v3117_v12 = vld [vmem:[%s4322_s1 + $0x570] ss:$8 sps:$4 sm:$0xff]  }
  0x53   : > { %2199 = vmatprep.subr.bf16.mxu1 %v3029_v13  ;;  %v3125_v13 = vld [vmem:[%s4322_s1 + $0x564] ss:$8 sps:$4 sm:$0xff]  }
  0x55   : > { %2157 = vmatpush1.bf16.msra.mxu0 %v3024_v14  ;;  %v3120_v14 = vld [vmem:[%s4322_s1 + $0x460] ss:$8 sps:$4 sm:$0xff]  }
  0x56   : > { %2158 = vmatprep.subr.bf16.mxu0 %v3032_v15  ;;  %2200 = vmatpush1.bf16.msra.mxu1 %v3027_v16  ;;  %v3128_v15 = vld [vmem:[%s4322_s1 + $0x454] ss:$8 sps:$4 sm:$0xff]   ;;  %v3123_v16 = vld [vmem:[%s4322_s1 + $0x560] ss:$8 sps:$4 sm:$0xff]  }
  0x57   : > { %2201 = vmatprep.subr.bf16.mxu1 %v3035_v17  ;;  %v3131_v17 = vld [vmem:[%s4322_s1 + $0x554] ss:$8 sps:$4 sm:$0xff]  }
  0x59   : > { %2159 = vmatpush1.bf16.msra.mxu0 %v3030_v18  ;;  %v3212_v18 = vld [vmem:[%s3556_s10 + $0x24] ss:$72 sps:$4 sm:$0xff]  }
  0x5a   : > { %2160 = vmatprep.subr.bf16.mxu0 %v3038_v19  ;;  %2202 = vmatpush1.bf16.msra.mxu1 %v3033_v20  ;;  %v3126_v19 = vld [vmem:[%s4322_s1 + $0x450] ss:$8 sps:$4 sm:$0xff]  }
  0x5b   : > { %2203 = vmatprep.subr.bf16.mxu1 %v3041_v21  ;;  %v3129_v20 = vld [vmem:[%s4322_s1 + $0x550] ss:$8 sps:$4 sm:$0xff]   ;;  %v3134_v21 = vld [vmem:[%s4322_s1 + $0x444] ss:$8 sps:$4 sm:$0xff]  }
  0x5d   : > { %2161 = vmatpush1.bf16.msra.mxu0 %v3036_v22  ;;  %v3218_v22 = vld [vmem:[%s3556_s10 + $0x2c] ss:$72 sps:$4 sm:$0xff]  }
  0x5e   : > { %2162 = vmatprep.subr.bf16.mxu0 %v3044_v23  ;;  %2204 = vmatpush1.bf16.msra.mxu1 %v3039_v24  ;;  %v3137_v23 = vld [vmem:[%s4322_s1 + $0x544] ss:$8 sps:$4 sm:$0xff]   ;;  %v3132_v24 = vld [vmem:[%s4322_s1 + $0x440] ss:$8 sps:$4 sm:$0xff]  }
  0x5f   : > { %2205 = vmatprep.subr.bf16.mxu1 %v3047_v25  ;;  %v3140_v25 = vld [vmem:[%s4322_s1 + $0x434] ss:$8 sps:$4 sm:$0xff]  }
  0x61   : > { %2163 = vmatpush1.bf16.msra.mxu0 %v3042_v26  ;;  %v3135_v26 = vld [vmem:[%s4322_s1 + $0x540] ss:$8 sps:$4 sm:$0xff]  }
  0x62   : > { %2164 = vmatprep.subr.bf16.mxu0 %v3050_v27  ;;  %2206 = vmatpush1.bf16.msra.mxu1 %v3045_v28  ;;  %v3143_v27 = vld [vmem:[%s4322_s1 + $0x534] ss:$8 sps:$4 sm:$0xff]   ;;  %v3138_v28 = vld [vmem:[%s4322_s1 + $0x430] ss:$8 sps:$4 sm:$0xff]  }
  0x63   : > { %2207 = vmatprep.subr.bf16.mxu1 %v3053_v29  ;;  %v3146_v29 = vld [vmem:[%s4322_s1 + $0x424] ss:$8 sps:$4 sm:$0xff]  }
  0x65   : > { %2165 = vmatpush1.bf16.msra.mxu0 %v3048_v30  ;;  %v3141_v30 = vld [vmem:[%s4322_s1 + $0x530] ss:$8 sps:$4 sm:$0xff]  }
  0x66   : > { %2166 = vmatprep.subr.bf16.mxu0 %v3056_v32  ;;  %2208 = vmatpush1.bf16.msra.mxu1 %v3051_v31  ;;  %v3149_v31 = vld [vmem:[%s4322_s1 + $0x524] ss:$8 sps:$4 sm:$0xff]   ;;  %v3144_v32 = vld [vmem:[%s4322_s1 + $0x420] ss:$8 sps:$4 sm:$0xff]  }
  0x67   : > { %2209 = vmatprep.subr.bf16.mxu1 %v3059_v34  ;;  %v3147_v34 = vld [vmem:[%s4322_s1 + $0x520] ss:$8 sps:$4 sm:$0xff]  }
  0x69   : > { %2167 = vmatpush1.bf16.msra.mxu0 %v3054_v35  ;;  %v3155_v35 = vld [vmem:[%s4322_s1 + $0x514] ss:$8 sps:$4 sm:$0xff]  }
  0x6a   : > { %2168 = vmatprep.subr.bf16.mxu0 %v3062_v37  ;;  %2210 = vmatpush1.bf16.msra.mxu1 %v3057_v38  ;;  %v3158_v37 = vld [vmem:[%s4322_s1 + $0x404] ss:$8 sps:$4 sm:$0xff]   ;;  %v3153_v38 = vld [vmem:[%s4322_s1 + $0x510] ss:$8 sps:$4 sm:$0xff]  }
  0x6b   : > { %2211 = vmatprep.subr.bf16.mxu1 %v3065_v39  ;;  %v3161_v39 = vld [vmem:[%s4322_s1 + $0x504] ss:$8 sps:$4 sm:$0xff]  }
  0x6d   : > { %2169 = vmatpush2.bf16.msra.mxu0 %v3060_v40  ;;  %v3156_v40 = vld [vmem:[%s4322_s1 + $0x400] ss:$8 sps:$4 sm:$0xff]  }
  0x6e   : > { %2170 = vmatprep.subr.bf16.mxu0 %v3068_v41  ;;  %2212 = vmatpush2.bf16.msra.mxu1 %v3063_v42  ;;  %v3164_v41 = vld [vmem:[%s4322_s1 + $0x4f4] ss:$8 sps:$4 sm:$0xff]   ;;  %v3159_v42 = vld [vmem:[%s4322_s1 + $0x500] ss:$8 sps:$4 sm:$0xff]  }
  0x6f   : > { %2213 = vmatprep.subr.bf16.mxu1 %v3071_v43  ;;  %v3167_v43 = vld [vmem:[%s4322_s1 + $0x5f4] ss:$8 sps:$4 sm:$0xff]  }
  0x71   : > { %2171 = vmatpush2.bf16.msra.mxu0 %v3066_v44  ;;  %v3162_v44 = vld [vmem:[%s4322_s1 + $0x4f0] ss:$8 sps:$4 sm:$0xff]  }
  0x72   : > { %2172 = vmatprep.subr.bf16.mxu0 %v3074_v45  ;;  %2214 = vmatpush2.bf16.msra.mxu1 %v3069_v46  ;;  %v3170_v45 = vld [vmem:[%s4322_s1 + $0x4e4] ss:$8 sps:$4 sm:$0xff]   ;;  %v3165_v46 = vld [vmem:[%s4322_s1 + $0x5f0] ss:$8 sps:$4 sm:$0xff]  }
  0x73   : > { %2215 = vmatprep.subr.bf16.mxu1 %v3077_v47  ;;  %v3173_v47 = vld [vmem:[%s4322_s1 + $0x5e4] ss:$8 sps:$4 sm:$0xff]  }
  0x75   : > { %2173 = vmatpush2.bf16.msra.mxu0 %v3072_v48  ;;  %v3168_v48 = vld [vmem:[%s4322_s1 + $0x4e0] ss:$8 sps:$4 sm:$0xff]  }
  0x76   : > { %2174 = vmatprep.subr.bf16.mxu0 %v3080_v49  ;;  %2216 = vmatpush2.bf16.msra.mxu1 %v3075_v50  ;;  %v3176_v49 = vld [vmem:[%s4322_s1 + $0x4d4] ss:$8 sps:$4 sm:$0xff]   ;;  %v3171_v50 = vld [vmem:[%s4322_s1 + $0x5e0] ss:$8 sps:$4 sm:$0xff]  }
  0x77   : > { %2217 = vmatprep.subr.bf16.mxu1 %v3083_v51  ;;  %v3179_v51 = vld [vmem:[%s4322_s1 + $0x5d4] ss:$8 sps:$4 sm:$0xff]  }
  0x79   : > { %2175 = vmatpush2.bf16.msra.mxu0 %v3078_v52  ;;  %v3174_v52 = vld [vmem:[%s4322_s1 + $0x4d0] ss:$8 sps:$4 sm:$0xff]  }
  0x7a   : > { %2176 = vmatprep.subr.bf16.mxu0 %v3086_v53  ;;  %2218 = vmatpush2.bf16.msra.mxu1 %v3081_v54  ;;  %v3182_v53 = vld [vmem:[%s4322_s1 + $0x4c4] ss:$8 sps:$4 sm:$0xff]   ;;  %v3177_v54 = vld [vmem:[%s4322_s1 + $0x5d0] ss:$8 sps:$4 sm:$0xff]  }
  0x7b   : > { %2219 = vmatprep.subr.bf16.mxu1 %v3089_v55  ;;  %v3185_v55 = vld [vmem:[%s4322_s1 + $0x5c4] ss:$8 sps:$4 sm:$0xff]  }
  0x7d   : > { %2177 = vmatpush2.bf16.msra.mxu0 %v3084_v56  ;;  %v3180_v56 = vld [vmem:[%s4322_s1 + $0x4c0] ss:$8 sps:$4 sm:$0xff]  }
  0x7e   : > { %2178 = vmatprep.subr.bf16.mxu0 %v3092_v57  ;;  %2220 = vmatpush2.bf16.msra.mxu1 %v3087_v58  ;;  %v3188_v57 = vld [vmem:[%s4322_s1 + $0x4b4] ss:$8 sps:$4 sm:$0xff]   ;;  %v3183_v58 = vld [vmem:[%s4322_s1 + $0x5c0] ss:$8 sps:$4 sm:$0xff]  }
  0x7f   : > { %2221 = vmatprep.subr.bf16.mxu1 %v3095_v59  ;;  %v3191_v59 = vld [vmem:[%s4322_s1 + $0x5b4] ss:$8 sps:$4 sm:$0xff]  }
  0x81   : > { %2179 = vmatpush2.bf16.msra.mxu0 %v3090_v60  ;;  %v3186_v60 = vld [vmem:[%s4322_s1 + $0x4b0] ss:$8 sps:$4 sm:$0xff]  }
  0x82   : > { %2180 = vmatprep.subr.bf16.mxu0 %v3098_v61  ;;  %2222 = vmatpush2.bf16.msra.mxu1 %v3093_v62  ;;  %v3194_v61 = vld [vmem:[%s4322_s1 + $0x4a4] ss:$8 sps:$4 sm:$0xff]   ;;  %v3189_v62 = vld [vmem:[%s4322_s1 + $0x5b0] ss:$8 sps:$4 sm:$0xff]  }
  0x83   : > { %2223 = vmatprep.subr.bf16.mxu1 %v3101_v63  ;;  %v3197_v63 = vld [vmem:[%s4322_s1 + $0x5a4] ss:$8 sps:$4 sm:$0xff]  }
  0x85   : > { %2181 = vmatpush2.bf16.msra.mxu0 %v3096_v0  ;;  %v3192_v0 = vld [vmem:[%s4322_s1 + $0x4a0] ss:$8 sps:$4 sm:$0xff]  }
  0x86   : > { %2182 = vmatprep.subr.bf16.mxu0 %v3104_v1  ;;  %2224 = vmatpush2.bf16.msra.mxu1 %v3099_v2  ;;  %v3200_v1 = vld [vmem:[%s4322_s1 + $0x494] ss:$8 sps:$4 sm:$0xff]   ;;  %v3195_v2 = vld [vmem:[%s4322_s1 + $0x5a0] ss:$8 sps:$4 sm:$0xff]  }
  0x87   : > { %2225 = vmatprep.subr.bf16.mxu1 %v3107_v3  ;;  %v3203_v3 = vld [vmem:[%s4322_s1 + $0x594] ss:$8 sps:$4 sm:$0xff]  }
  0x89   : > { %2183 = vmatpush2.bf16.msra.mxu0 %v3102_v4  ;;  %v3198_v4 = vld [vmem:[%s4322_s1 + $0x490] ss:$8 sps:$4 sm:$0xff]  }
  0x8a   : > { %2238 = vmatprep.subr.bf16.mxu0 %v3113_v5  ;;  %2226 = vmatpush2.bf16.msra.mxu1 %v3105_v6  ;;  %v3206_v5 = vld [vmem:[%s4322_s1 + $0x484] ss:$8 sps:$4 sm:$0xff]   ;;  %v3201_v6 = vld [vmem:[%s4322_s1 + $0x590] ss:$8 sps:$4 sm:$0xff]  }
  0x8b   : > { %2281 = vmatprep.subr.bf16.mxu1 %v3119_v8  ;;  %v3209_v8 = vld [vmem:[%s4322_s1 + $0x584] ss:$8 sps:$4 sm:$0xff]  }
  0x8c   : > { %2185 = vmatmul.mubr.bf16.vlgmr.msra.gmra.mxu0 %v3108_v7  ;;  %v3204_v7 = vld [vmem:[%s4322_s1 + $0x480] ss:$8 sps:$4 sm:$0xff]  }
  0x8d   : > { %2239 = vmatpush1.bf16.msra.mxu0 %v3111_v9  ;;  %2228 = vmatmul.mubr.bf16.vlgmr.msra.gmra.mxu1 %v3114_v10  ;;  %v3207_v9 = vld [vmem:[%s4322_s1 + $0x580] ss:$8 sps:$4 sm:$0xff]   ;;  %v3215_v10 = vld [vmem:[%s4322_s1 + $0x674] ss:$8 sps:$4 sm:$0xff]  }
  0x8e   : > { %2240 = vmatprep.subr.bf16.mxu0 %v3122_v11  ;;  %2282 = vmatpush1.bf16.msra.mxu1 %v3117_v12  ;;  %v3210_v11 = vld [vmem:[%s3556_s10 + $0x20] ss:$72 sps:$4 sm:$0xff]   ;;  %v3213_v12 = vld [vmem:[%s4322_s1 + $0x670] ss:$8 sps:$4 sm:$0xff]  }
  0x8f   : > { %2283 = vmatprep.subr.bf16.mxu1 %v3125_v13  ;;  %2270 = vmatprep.mubr.bf16.mxu0 %v3212_v18  ;;  %v3216_v13 = vld [vmem:[%s3556_s10 + $0x28] ss:$72 sps:$4 sm:$0xff]   ;;  %v3320_v18 = vld [vmem:[%s3556_s10 + $0x3c] ss:$72 sps:$4 sm:$0xff]  }
  0x90   : > { %2313 = vmatprep.mubr.bf16.mxu1 %v3218_v22  ;;  %v3225_v22 = vld [vmem:[%s4322_s1 + $0x760] ss:$8 sps:$4 sm:$0xff]  }
  0x91   : > { %2241 = vmatpush1.bf16.msra.mxu0 %v3120_v14  ;;  %v3221_v14 = vld [vmem:[%s4322_s1 + $0x774] ss:$8 sps:$4 sm:$0xff]  }
  0x92   : > { %2242 = vmatprep.subr.bf16.mxu0 %v3128_v15  ;;  %2284 = vmatpush1.bf16.msra.mxu1 %v3123_v16  ;;  %v3314_v15 = vld [vmem:[%s3556_s10 + $0x34] ss:$72 sps:$4 sm:$0xff]   ;;  %v3224_v16 = vld [vmem:[%s4322_s1 + $0x664] ss:$8 sps:$4 sm:$0xff]  }
  0x93   : > { %2285 = vmatprep.subr.bf16.mxu1 %v3131_v17  ;;  %v3219_v17 = vld [vmem:[%s4322_s1 + $0x770] ss:$8 sps:$4 sm:$0xff]  }
  0x95   : > { %2243 = vmatpush1.bf16.msra.mxu0 %v3126_v19  ;;  %v3227_v19 = vld [vmem:[%s4322_s1 + $0x764] ss:$8 sps:$4 sm:$0xff]  }
  0x96   : > { %2244 = vmatprep.subr.bf16.mxu0 %v3134_v21  ;;  %2286 = vmatpush1.bf16.msra.mxu1 %v3129_v20  ;;  %v3222_v20 = vld [vmem:[%s4322_s1 + $0x660] ss:$8 sps:$4 sm:$0xff]   ;;  %v3230_v21 = vld [vmem:[%s4322_s1 + $0x654] ss:$8 sps:$4 sm:$0xff]  }
  0x97   : > { %2287 = vmatprep.subr.bf16.mxu1 %v3137_v23  ;;  %v3233_v23 = vld [vmem:[%s4322_s1 + $0x754] ss:$8 sps:$4 sm:$0xff]  }
  0x99   : > { %2245 = vmatpush1.bf16.msra.mxu0 %v3132_v24  ;;  %v3228_v24 = vld [vmem:[%s4322_s1 + $0x650] ss:$8 sps:$4 sm:$0xff]  }
  0x9a   : > { %2246 = vmatprep.subr.bf16.mxu0 %v3140_v25  ;;  %2288 = vmatpush1.bf16.msra.mxu1 %v3135_v26  ;;  %v3236_v25 = vld [vmem:[%s4322_s1 + $0x644] ss:$8 sps:$4 sm:$0xff]   ;;  %v3231_v26 = vld [vmem:[%s4322_s1 + $0x750] ss:$8 sps:$4 sm:$0xff]  }
  0x9b   : > { %2289 = vmatprep.subr.bf16.mxu1 %v3143_v27  ;;  %v3239_v27 = vld [vmem:[%s4322_s1 + $0x744] ss:$8 sps:$4 sm:$0xff]  }
  0x9d   : > { %2247 = vmatpush1.bf16.msra.mxu0 %v3138_v28  ;;  %v3234_v28 = vld [vmem:[%s4322_s1 + $0x640] ss:$8 sps:$4 sm:$0xff]  }
  0x9e   : > { %2248 = vmatprep.subr.bf16.mxu0 %v3146_v29  ;;  %2290 = vmatpush1.bf16.msra.mxu1 %v3141_v30  ;;  %v3242_v29 = vld [vmem:[%s4322_s1 + $0x634] ss:$8 sps:$4 sm:$0xff]   ;;  %v3237_v30 = vld [vmem:[%s4322_s1 + $0x740] ss:$8 sps:$4 sm:$0xff]  }
  0x9f   : > { %2291 = vmatprep.subr.bf16.mxu1 %v3149_v31  ;;  %v3245_v31 = vld [vmem:[%s4322_s1 + $0x734] ss:$8 sps:$4 sm:$0xff]  }
  0xa1   : > { %2249 = vmatpush1.bf16.msra.mxu0 %v3144_v32  ;;  %v3240_v32 = vld [vmem:[%s4322_s1 + $0x630] ss:$8 sps:$4 sm:$0xff]  }
  0xa2   : > { %2250 = vmatprep.subr.bf16.mxu0 %v3152_v33  ;;  %2292 = vmatpush1.bf16.msra.mxu1 %v3147_v34  ;;  %v3248_v33 = vld [vmem:[%s4322_s1 + $0x624] ss:$8 sps:$4 sm:$0xff]   ;;  %v3243_v34 = vld [vmem:[%s4322_s1 + $0x730] ss:$8 sps:$4 sm:$0xff]  }
  0xa3   : > { %2293 = vmatprep.subr.bf16.mxu1 %v3155_v35  ;;  %v3251_v35 = vld [vmem:[%s4322_s1 + $0x724] ss:$8 sps:$4 sm:$0xff]  }
  0xa5   : > { %2251 = vmatpush1.bf16.msra.mxu0 %v3150_v36  ;;  %v3246_v36 = vld [vmem:[%s4322_s1 + $0x620] ss:$8 sps:$4 sm:$0xff]  }
  0xa6   : > { %2252 = vmatprep.subr.bf16.mxu0 %v3158_v37  ;;  %2294 = vmatpush1.bf16.msra.mxu1 %v3153_v38  ;;  %v3254_v37 = vld [vmem:[%s4322_s1 + $0x614] ss:$8 sps:$4 sm:$0xff]   ;;  %v3249_v38 = vld [vmem:[%s4322_s1 + $0x720] ss:$8 sps:$4 sm:$0xff]  }
  0xa7   : > { %2295 = vmatprep.subr.bf16.mxu1 %v3161_v39  ;;  %v3257_v39 = vld [vmem:[%s4322_s1 + $0x714] ss:$8 sps:$4 sm:$0xff]  }
  0xa9   : > { %2253 = vmatpush1.bf16.msra.mxu0 %v3156_v40  ;;  %v3252_v40 = vld [vmem:[%s4322_s1 + $0x610] ss:$8 sps:$4 sm:$0xff]  }
  0xaa   : > { %2254 = vmatprep.subr.bf16.mxu0 %v3164_v41  ;;  %2296 = vmatpush1.bf16.msra.mxu1 %v3159_v42  ;;  %v3260_v41 = vld [vmem:[%s4322_s1 + $0x604] ss:$8 sps:$4 sm:$0xff]   ;;  %v3255_v42 = vld [vmem:[%s4322_s1 + $0x710] ss:$8 sps:$4 sm:$0xff]  }
  0xab   : > { %2297 = vmatprep.subr.bf16.mxu1 %v3167_v43  ;;  %v3263_v43 = vld [vmem:[%s4322_s1 + $0x704] ss:$8 sps:$4 sm:$0xff]  }
  0xad   : > { %2255 = vmatpush2.bf16.msra.mxu0 %v3162_v44  ;;  %v3258_v44 = vld [vmem:[%s4322_s1 + $0x600] ss:$8 sps:$4 sm:$0xff]  }
  0xae   : > { %2256 = vmatprep.subr.bf16.mxu0 %v3170_v45  ;;  %2298 = vmatpush2.bf16.msra.mxu1 %v3165_v46  ;;  %v3266_v45 = vld [vmem:[%s4322_s1 + $0x6f4] ss:$8 sps:$4 sm:$0xff]   ;;  %v3261_v46 = vld [vmem:[%s4322_s1 + $0x700] ss:$8 sps:$4 sm:$0xff]  }
  0xaf   : > { %2299 = vmatprep.subr.bf16.mxu1 %v3173_v47  ;;  %v3269_v47 = vld [vmem:[%s4322_s1 + $0x7f4] ss:$8 sps:$4 sm:$0xff]  }
  0xb1   : > { %2257 = vmatpush2.bf16.msra.mxu0 %v3168_v48  ;;  %v3264_v48 = vld [vmem:[%s4322_s1 + $0x6f0] ss:$8 sps:$4 sm:$0xff]  }
  0xb2   : > { %2258 = vmatprep.subr.bf16.mxu0 %v3176_v49  ;;  %2300 = vmatpush2.bf16.msra.mxu1 %v3171_v50  ;;  %v3272_v49 = vld [vmem:[%s4322_s1 + $0x6e4] ss:$8 sps:$4 sm:$0xff]   ;;  %v3267_v50 = vld [vmem:[%s4322_s1 + $0x7f0] ss:$8 sps:$4 sm:$0xff]  }
  0xb3   : > { %2301 = vmatprep.subr.bf16.mxu1 %v3179_v51  ;;  %v3275_v51 = vld [vmem:[%s4322_s1 + $0x7e4] ss:$8 sps:$4 sm:$0xff]  }
  0xb5   : > { %2259 = vmatpush2.bf16.msra.mxu0 %v3174_v52  ;;  %v3270_v52 = vld [vmem:[%s4322_s1 + $0x6e0] ss:$8 sps:$4 sm:$0xff]  }
  0xb6   : > { %2260 = vmatprep.subr.bf16.mxu0 %v3182_v53  ;;  %2302 = vmatpush2.bf16.msra.mxu1 %v3177_v54  ;;  %v3278_v53 = vld [vmem:[%s4322_s1 + $0x6d4] ss:$8 sps:$4 sm:$0xff]   ;;  %v3273_v54 = vld [vmem:[%s4322_s1 + $0x7e0] ss:$8 sps:$4 sm:$0xff]  }
  0xb7   : > { %2303 = vmatprep.subr.bf16.mxu1 %v3185_v55  ;;  %v3281_v55 = vld [vmem:[%s4322_s1 + $0x7d4] ss:$8 sps:$4 sm:$0xff]  }
  0xb9   : > { %2261 = vmatpush2.bf16.msra.mxu0 %v3180_v56  ;;  %v3276_v56 = vld [vmem:[%s4322_s1 + $0x6d0] ss:$8 sps:$4 sm:$0xff]  }
  0xba   : > { %2262 = vmatprep.subr.bf16.mxu0 %v3188_v57  ;;  %2304 = vmatpush2.bf16.msra.mxu1 %v3183_v58  ;;  %v3284_v57 = vld [vmem:[%s4322_s1 + $0x6c4] ss:$8 sps:$4 sm:$0xff]   ;;  %v3279_v58 = vld [vmem:[%s4322_s1 + $0x7d0] ss:$8 sps:$4 sm:$0xff]  }
  0xbb   : > { %2305 = vmatprep.subr.bf16.mxu1 %v3191_v59  ;;  %v3287_v59 = vld [vmem:[%s4322_s1 + $0x7c4] ss:$8 sps:$4 sm:$0xff]  }
  0xbd   : > { %2263 = vmatpush2.bf16.msra.mxu0 %v3186_v60  ;;  %v3282_v60 = vld [vmem:[%s4322_s1 + $0x6c0] ss:$8 sps:$4 sm:$0xff]  }
  0xbe   : > { %2264 = vmatprep.subr.bf16.mxu0 %v3194_v61  ;;  %2306 = vmatpush2.bf16.msra.mxu1 %v3189_v62  ;;  %v3290_v61 = vld [vmem:[%s4322_s1 + $0x6b4] ss:$8 sps:$4 sm:$0xff]   ;;  %v3285_v62 = vld [vmem:[%s4322_s1 + $0x7c0] ss:$8 sps:$4 sm:$0xff]  }
  0xbf   : > { %2307 = vmatprep.subr.bf16.mxu1 %v3197_v63  ;;  %v3293_v63 = vld [vmem:[%s4322_s1 + $0x7b4] ss:$8 sps:$4 sm:$0xff]  }
  0xc1   : > { %2265 = vmatpush2.bf16.msra.mxu0 %v3192_v0  ;;  %v3288_v0 = vld [vmem:[%s4322_s1 + $0x6b0] ss:$8 sps:$4 sm:$0xff]  }
  0xc2   : > { %2266 = vmatprep.subr.bf16.mxu0 %v3200_v1  ;;  %2308 = vmatpush2.bf16.msra.mxu1 %v3195_v2  ;;  %v3296_v1 = vld [vmem:[%s4322_s1 + $0x6a4] ss:$8 sps:$4 sm:$0xff]   ;;  %v3291_v2 = vld [vmem:[%s4322_s1 + $0x7b0] ss:$8 sps:$4 sm:$0xff]  }
  0xc3   : > { %2309 = vmatprep.subr.bf16.mxu1 %v3203_v3  ;;  %v3299_v3 = vld [vmem:[%s4322_s1 + $0x7a4] ss:$8 sps:$4 sm:$0xff]  }
  0xc5   : > { %2267 = vmatpush2.bf16.msra.mxu0 %v3198_v4  ;;  %v3294_v4 = vld [vmem:[%s4322_s1 + $0x6a0] ss:$8 sps:$4 sm:$0xff]  }
  0xc6   : > { %2268 = vmatprep.subr.bf16.mxu0 %v3206_v5  ;;  %2310 = vmatpush2.bf16.msra.mxu1 %v3201_v6  ;;  %v3302_v5 = vld [vmem:[%s4322_s1 + $0x694] ss:$8 sps:$4 sm:$0xff]   ;;  %v3297_v6 = vld [vmem:[%s4322_s1 + $0x7a0] ss:$8 sps:$4 sm:$0xff]  }
  0xc7   : > { %2311 = vmatprep.subr.bf16.mxu1 %v3209_v8  ;;  %v3300_v8 = vld [vmem:[%s4322_s1 + $0x690] ss:$8 sps:$4 sm:$0xff]  }
  0xc9   : > { %2269 = vmatpush2.bf16.msra.mxu0 %v3204_v7  ;;  %v3305_v7 = vld [vmem:[%s4322_s1 + $0x794] ss:$8 sps:$4 sm:$0xff]  }
  0xca   : > { %2324 = vmatprep.subr.bf16.mxu0 %v3215_v10  ;;  %2312 = vmatpush2.bf16.msra.mxu1 %v3207_v9  ;;  %v3308_v9 = vld [vmem:[%s4322_s1 + $0x684] ss:$8 sps:$4 sm:$0xff]   ;;  %v3303_v10 = vld [vmem:[%s4322_s1 + $0x790] ss:$8 sps:$4 sm:$0xff]  }
  0xcb   : > { %2367 = vmatprep.subr.bf16.mxu1 %v3221_v14  ;;  %v3309_v14 = vld [vmem:[%s4322_s1 + $0x780] ss:$8 sps:$4 sm:$0xff]  }
  0xcc   : > { %2271 = vmatmul.mubr.bf16.vlgmr.msra.gmra.mxu0 %v3210_v11  ;;  %v3311_v11 = vld [vmem:[%s4322_s1 + $0x784] ss:$8 sps:$4 sm:$0xff]  }
  0xcd   : > { %2325 = vmatpush1.bf16.msra.mxu0 %v3213_v12  ;;  %2356 = vmatprep.mubr.bf16.mxu0 %v3314_v15  ;;  %v3306_v12 = vld [vmem:[%s4322_s1 + $0x680] ss:$8 sps:$4 sm:$0xff]   ;;  %v3312_v15 = vld [vmem:[%s3556_s10 + $0x30] ss:$72 sps:$4 sm:$0xff]  }
  0xce   : > { %2314 = vmatmul.mubr.bf16.vlgmr.msra.gmra.mxu1 %v3216_v13  ;;  %2326 = vmatprep.subr.bf16.mxu0 %v3224_v16  ;;  %v3317_v13 = vld [vmem:[%s4322_s1 + $0x874] ss:$8 sps:$4 sm:$0xff]   ;;  %v3315_v16 = vld [vmem:[%s4322_s1 + $0x870] ss:$8 sps:$4 sm:$0xff]  }
  0xcf   : > { %2368 = vmatpush1.bf16.msra.mxu1 %v3219_v17  ;;  %2399 = vmatprep.mubr.bf16.mxu1 %v3320_v18  ;;  %v3368_v17 = vld [vmem:[%s3556_s10 + $0x44] ss:$72 sps:$4 sm:$0xff]   ;;  %v3318_v18 = vld [vmem:[%s3556_s10 + $0x38] ss:$72 sps:$4 sm:$0xff]  }
  0xd0   : > { %2369 = vmatprep.subr.bf16.mxu1 %v3227_v19  ;;  %v3323_v19 = vld [vmem:[%s4322_s1 + $0x864] ss:$8 sps:$4 sm:$0xff]  }
  0xd1   : > { %2327 = vmatpush1.bf16.msra.mxu0 %v3222_v20  ;;  %v3321_v20 = vld [vmem:[%s4322_s1 + $0x860] ss:$8 sps:$4 sm:$0xff]  }
  0xd2   : > { %2328 = vmatprep.subr.bf16.mxu0 %v3230_v21  ;;  %v3326_v21 = vld [vmem:[%s4322_s1 + $0x854] ss:$8 sps:$4 sm:$0xff]  }
  0xd3   : > { %2370 = vmatpush1.bf16.msra.mxu1 %v3225_v22  ;;  %v3324_v22 = vld [vmem:[%s4322_s1 + $0x850] ss:$8 sps:$4 sm:$0xff]  }
  0xd4   : > { %2371 = vmatprep.subr.bf16.mxu1 %v3233_v23  ;;  %v3329_v23 = vld [vmem:[%s4322_s1 + $0x844] ss:$8 sps:$4 sm:$0xff]  }
  0xd5   : > { %2329 = vmatpush1.bf16.msra.mxu0 %v3228_v24  ;;  %v3327_v24 = vld [vmem:[%s4322_s1 + $0x840] ss:$8 sps:$4 sm:$0xff]  }
  0xd6   : > { %2330 = vmatprep.subr.bf16.mxu0 %v3236_v25  ;;  %v3332_v25 = vld [vmem:[%s4322_s1 + $0x834] ss:$8 sps:$4 sm:$0xff]  }
  0xd7   : > { %2372 = vmatpush1.bf16.msra.mxu1 %v3231_v26  ;;  %v3330_v26 = vld [vmem:[%s4322_s1 + $0x830] ss:$8 sps:$4 sm:$0xff]  }
  0xd8   : > { %2373 = vmatprep.subr.bf16.mxu1 %v3239_v27  ;;  %v3335_v27 = vld [vmem:[%s4322_s1 + $0x824] ss:$8 sps:$4 sm:$0xff]  }
  0xd9   : > { %2331 = vmatpush1.bf16.msra.mxu0 %v3234_v28  ;;  %v3333_v28 = vld [vmem:[%s4322_s1 + $0x820] ss:$8 sps:$4 sm:$0xff]  }
  0xda   : > { %2332 = vmatprep.subr.bf16.mxu0 %v3242_v29  ;;  %v3338_v29 = vld [vmem:[%s4322_s1 + $0x814] ss:$8 sps:$4 sm:$0xff]  }
  0xdb   : > { %2374 = vmatpush1.bf16.msra.mxu1 %v3237_v30  ;;  %v3336_v30 = vld [vmem:[%s4322_s1 + $0x810] ss:$8 sps:$4 sm:$0xff]  }
  0xdc   : > { %2375 = vmatprep.subr.bf16.mxu1 %v3245_v31  ;;  %v3341_v31 = vld [vmem:[%s4322_s1 + $0x804] ss:$8 sps:$4 sm:$0xff]  }
  0xdd   : > { %2333 = vmatpush1.bf16.msra.mxu0 %v3240_v32  ;;  %v3339_v32 = vld [vmem:[%s4322_s1 + $0x800] ss:$8 sps:$4 sm:$0xff]  }
  0xde   : > { %2334 = vmatprep.subr.bf16.mxu0 %v3248_v33  ;;  %v3344_v33 = vld [vmem:[%s4322_s1 + $0x8f4] ss:$8 sps:$4 sm:$0xff]  }
  0xdf   : > { %2376 = vmatpush1.bf16.msra.mxu1 %v3243_v34  ;;  %v3342_v34 = vld [vmem:[%s4322_s1 + $0x8f0] ss:$8 sps:$4 sm:$0xff]  }
  0xe0   : > { %2377 = vmatprep.subr.bf16.mxu1 %v3251_v35  ;;  %v3347_v35 = vld [vmem:[%s4322_s1 + $0x8e4] ss:$8 sps:$4 sm:$0xff]  }
  0xe1   : > { %2335 = vmatpush1.bf16.msra.mxu0 %v3246_v36  ;;  %v3345_v36 = vld [vmem:[%s4322_s1 + $0x8e0] ss:$8 sps:$4 sm:$0xff]  }
  0xe2   : > { %2336 = vmatprep.subr.bf16.mxu0 %v3254_v37  ;;  %v3350_v37 = vld [vmem:[%s4322_s1 + $0x8d4] ss:$8 sps:$4 sm:$0xff]  }
  0xe3   : > { %2378 = vmatpush1.bf16.msra.mxu1 %v3249_v38  ;;  %v3348_v38 = vld [vmem:[%s4322_s1 + $0x8d0] ss:$8 sps:$4 sm:$0xff]  }
  0xe4   : > { %2379 = vmatprep.subr.bf16.mxu1 %v3257_v39  ;;  %v3353_v39 = vld [vmem:[%s4322_s1 + $0x8c4] ss:$8 sps:$4 sm:$0xff]  }
  0xe5   : > { %2337 = vmatpush1.bf16.msra.mxu0 %v3252_v40  ;;  %v3351_v40 = vld [vmem:[%s4322_s1 + $0x8c0] ss:$8 sps:$4 sm:$0xff]  }
  0xe6   : > { %2338 = vmatprep.subr.bf16.mxu0 %v3260_v41  ;;  %v3356_v41 = vld [vmem:[%s4322_s1 + $0x8b4] ss:$8 sps:$4 sm:$0xff]  }
  0xe7   : > { %2380 = vmatpush1.bf16.msra.mxu1 %v3255_v42  ;;  %v3354_v42 = vld [vmem:[%s4322_s1 + $0x8b0] ss:$8 sps:$4 sm:$0xff]  }
  0xe8   : > { %2381 = vmatprep.subr.bf16.mxu1 %v3263_v43  ;;  %v3359_v43 = vld [vmem:[%s4322_s1 + $0x8a4] ss:$8 sps:$4 sm:$0xff]  }
  0xe9   : > { %2339 = vmatpush1.bf16.msra.mxu0 %v3258_v44  ;;  %v3357_v44 = vld [vmem:[%s4322_s1 + $0x8a0] ss:$8 sps:$4 sm:$0xff]  }
  0xea   : > { %2340 = vmatprep.subr.bf16.mxu0 %v3266_v45  ;;  %v3362_v45 = vld [vmem:[%s4322_s1 + $0x894] ss:$8 sps:$4 sm:$0xff]  }
  0xeb   : > { %2382 = vmatpush1.bf16.msra.mxu1 %v3261_v46  ;;  %v3360_v46 = vld [vmem:[%s4322_s1 + $0x890] ss:$8 sps:$4 sm:$0xff]  }
  0xec   : > { %2383 = vmatprep.subr.bf16.mxu1 %v3269_v47  ;;  %v3365_v47 = vld [vmem:[%s4322_s1 + $0x884] ss:$8 sps:$4 sm:$0xff]  }
  0xed   : > { %2341 = vmatpush2.bf16.msra.mxu0 %v3264_v48  ;;  %v3363_v48 = vld [vmem:[%s4322_s1 + $0x880] ss:$8 sps:$4 sm:$0xff]  }
  0xee   : > { %2342 = vmatprep.subr.bf16.mxu0 %v3272_v49  ;;  %v3366_v49 = vld [vmem:[%s3556_s10 + $0x40] ss:$72 sps:$4 sm:$0xff]  }
  0xef   : > { %2384 = vmatpush2.bf16.msra.mxu1 %v3267_v50 }
  0xf0   : > { %2385 = vmatprep.subr.bf16.mxu1 %v3275_v51 }
  0xf1   : > { %2343 = vmatpush2.bf16.msra.mxu0 %v3270_v52 }
  0xf2   : > { %2344 = vmatprep.subr.bf16.mxu0 %v3278_v53 }
  0xf3   : > { %2386 = vmatpush2.bf16.msra.mxu1 %v3273_v54 }
  0xf4   : > { %2387 = vmatprep.subr.bf16.mxu1 %v3281_v55 }
  0xf5   : > { %2345 = vmatpush2.bf16.msra.mxu0 %v3276_v56 }
  0xf6   : > { %2346 = vmatprep.subr.bf16.mxu0 %v3284_v57 }
  0xf7   : > { %2388 = vmatpush2.bf16.msra.mxu1 %v3279_v58 }
  0xf8   : > { %2389 = vmatprep.subr.bf16.mxu1 %v3287_v59 }
  0xf9   : > { %2347 = vmatpush2.bf16.msra.mxu0 %v3282_v60 }
  0xfa   : > { %2348 = vmatprep.subr.bf16.mxu0 %v3290_v61  ;;  %v526_v61 = vlaneseq }
  0xfb   : > { %2390 = vmatpush2.bf16.msra.mxu1 %v3285_v62 }
  0xfc   : > { %2391 = vmatprep.subr.bf16.mxu1 %v3293_v63 }
  0xfd   : > { %2349 = vmatpush2.bf16.msra.mxu0 %v3288_v0  ;;  %v527_v0 = vshrl.u32 %v526_v61, 7 }
  0xfe   : > { %2350 = vmatprep.subr.bf16.mxu0 %v3296_v1 }
  0xff   : > { %2392 = vmatpush2.bf16.msra.mxu1 %v3291_v2 }
 0x100   : > { %2393 = vmatprep.subr.bf16.mxu1 %v3299_v3 }
 0x101   : > { %2351 = vmatpush2.bf16.msra.mxu0 %v3294_v4  ;;  %v528_v4 = vsub.s32 0, %v527_v0 }
 0x102   : > { %2352 = vmatprep.subr.bf16.mxu0 %v3302_v5  ;;  %v524_v5 = vld [vmem:[%s4323_s2] sm:$0x3] }
 0x103   : > { %2394 = vmatpush2.bf16.msra.mxu1 %v3297_v6 }
 0x104   : > { %2395 = vmatprep.subr.bf16.mxu1 %v3305_v7  ;;  %v532_v7 = vsub.s32 1, %v527_v0 }
 0x105   : > { %2353 = vmatpush2.bf16.msra.mxu0 %v3300_v8 }
 0x106   : > { %2354 = vmatprep.subr.bf16.mxu0 %v3308_v9 }
 0x107   : > { %2396 = vmatpush2.bf16.msra.mxu1 %v3303_v10  ;;  %v529_v10 = vrot.slane %v524_v5, %v528_v4 }
 0x108   : > { %2397 = vmatprep.subr.bf16.mxu1 %v3311_v11  ;;  %v533_v11 = vrot.slane %v524_v5, %v532_v7 }
 0x109   : > { %2355 = vmatpush2.bf16.msra.mxu0 %v3306_v12 }
 0x10a   : > { %2410 = vmatprep.subr.bf16.mxu0 %v3317_v13 }
 0x10b   : > { %2398 = vmatpush2.bf16.msra.mxu1 %v3309_v14 }
 0x10c   : > { %2357 = vmatmul.mubr.bf16.vlgmr.msra.gmra.mxu0 %v3312_v15  ;;  %v2100_v50 = vpop.f32.mrf.mxu0 }
 0x10d   : > { %2411 = vmatpush1.bf16.msra.mxu0 %v3315_v16  ;;  %2442 = vmatprep.mubr.bf16.mxu0 %v3368_v17  ;;  %v2143_v52 = vpop.f32.mrf.mxu1  ;;  %v2101_v14 = vadd.f32 %v2100_v50, %v529_v10 }
 0x10e   : > { %2400 = vmatmul.mubr.bf16.vlgmr.msra.gmra.mxu1 %v3318_v18  ;;  %2412 = vmatprep.subr.bf16.mxu0 %v3323_v19  ;;  %v2102_v51 = vpop.f32.mrf.mxu0 }
 0x10f   : > { %v2145_v54 = vpop.f32.mrf.mxu1  ;;  %v2103_v16 = vadd.f32 %v2102_v51, %v533_v11 }
 0x110   : > { %v2104_v53 = vpop.f32.mrf.mxu0 }
 0x111   : > { %2413 = vmatpush1.bf16.msra.mxu0 %v3321_v20  ;;  %v2147_v56 = vpop.f32.mrf.mxu1  ;;  %v2105_v15 = vadd.f32 %v2104_v53, %v529_v10  ;;  %v2144_v20 = vadd.f32 %v2143_v52, %v2101_v14 }
 0x112   : > { %2414 = vmatprep.subr.bf16.mxu0 %v3326_v21  ;;  %v2106_v55 = vpop.f32.mrf.mxu0 }
 0x113   : > { %v2149_v58 = vpop.f32.mrf.mxu1  ;;  %v2107_v17 = vadd.f32 %v2106_v55, %v533_v11  ;;  %v2148_v21 = vadd.f32 %v2147_v56, %v2105_v15 }
 0x115   : > { %2415 = vmatpush1.bf16.msra.mxu0 %v3324_v22 }
 0x116   : > { %2416 = vmatprep.subr.bf16.mxu0 %v3329_v23  ;;  %v2146_v23 = vadd.f32 %v2145_v54, %v2103_v16 }
 0x119   : > { %2417 = vmatpush1.bf16.msra.mxu0 %v3327_v24  ;;  %v2150_v24 = vadd.f32 %v2149_v58, %v2107_v17 }
 0x11a   : > { %2418 = vmatprep.subr.bf16.mxu0 %v3332_v25 }
 0x11d   : > { %2419 = vmatpush1.bf16.msra.mxu0 %v3330_v26 }
 0x11e   : > { %2420 = vmatprep.subr.bf16.mxu0 %v3335_v27 }
 0x121   : > { %2421 = vmatpush1.bf16.msra.mxu0 %v3333_v28 }
 0x122   : > { %2422 = vmatprep.subr.bf16.mxu0 %v3338_v29 }
 0x125   : > { %2423 = vmatpush1.bf16.msra.mxu0 %v3336_v30 }
 0x126   : > { %2424 = vmatprep.subr.bf16.mxu0 %v3341_v31 }
 0x129   : > { %2425 = vmatpush1.bf16.msra.mxu0 %v3339_v32 }
 0x12a   : > { %2426 = vmatprep.subr.bf16.mxu0 %v3344_v33 }
 0x12d   : > { %2427 = vmatpush2.bf16.msra.mxu0 %v3342_v34 }
 0x12e   : > { %2428 = vmatprep.subr.bf16.mxu0 %v3347_v35 }
 0x131   : > { %2429 = vmatpush2.bf16.msra.mxu0 %v3345_v36 }
 0x132   : > { %2430 = vmatprep.subr.bf16.mxu0 %v3350_v37 }
 0x135   : > { %2431 = vmatpush2.bf16.msra.mxu0 %v3348_v38 }
 0x136   : > { %2432 = vmatprep.subr.bf16.mxu0 %v3353_v39 }
 0x139   : > { %2433 = vmatpush2.bf16.msra.mxu0 %v3351_v40 }
 0x13a   : > { %2434 = vmatprep.subr.bf16.mxu0 %v3356_v41 }
 0x13d   : > { %2435 = vmatpush2.bf16.msra.mxu0 %v3354_v42 }
 0x13e   : > { %2436 = vmatprep.subr.bf16.mxu0 %v3359_v43 }
 0x141   : > { %2437 = vmatpush2.bf16.msra.mxu0 %v3357_v44 }
 0x142   : > { %2438 = vmatprep.subr.bf16.mxu0 %v3362_v45 }
 0x145   : > { %2439 = vmatpush2.bf16.msra.mxu0 %v3360_v46 }
 0x146   : > { %2440 = vmatprep.subr.bf16.mxu0 %v3365_v47 }
 0x149   : > { %2441 = vmatpush2.bf16.msra.mxu0 %v3363_v48 }
 0x14c   : > { %2443 = vmatmul.mubr.bf16.vlgmr.msra.gmra.mxu0 %v3366_v49  ;;  %v2186_v57 = vpop.f32.mrf.mxu0 }
 0x14d   : > { %v2229_v60 = vpop.f32.mrf.mxu1  ;;  %v2187_v25 = vadd.f32 %v2186_v57, %v2144_v20 }
 0x14e   : > { %v2188_v59 = vpop.f32.mrf.mxu0 }
 0x14f   : > { %v2231_v63 = vpop.f32.mrf.mxu1  ;;  %v2189_v28 = vadd.f32 %v2188_v59, %v2146_v23  ;;  %v2230_v32 = vadd.f32 %v2229_v60, %v2187_v25 }
 0x150   : > { %v2190_v62 = vpop.f32.mrf.mxu0 }
 0x151   : > { %v2233_v2 = vpop.f32.mrf.mxu1  ;;  %v2191_v26 = vadd.f32 %v2190_v62, %v2148_v21  ;;  %v2232_v34 = vadd.f32 %v2231_v63, %v2189_v28 }
 0x152   : > { %v2192_v1 = vpop.f32.mrf.mxu0 }
 0x153   : > { %v2235_v6 = vpop.f32.mrf.mxu1  ;;  %v2193_v29 = vadd.f32 %v2192_v1, %v2150_v24  ;;  %v2234_v33 = vadd.f32 %v2233_v2, %v2191_v26 }
 0x155   : > { %v2236_v35 = vadd.f32 %v2235_v6, %v2193_v29 }
 0x18c   : > { %v2272_v3 = vpop.f32.mrf.mxu0 }
 0x18d   : > { %v2273_v36 = vadd.f32 %v2272_v3, %v2230_v32 }
 0x18e   : > { %v2274_v8 = vpop.f32.mrf.mxu0  ;;  %v2315_v9 = vpop.f32.mrf.mxu1 }
 0x18f   : > { %v2275_v40 = vadd.f32 %v2274_v8, %v2232_v34  ;;  %v2316_v42 = vadd.f32 %v2315_v9, %v2273_v36 }
 0x190   : > { %v2276_v12 = vpop.f32.mrf.mxu0  ;;  %v2317_v13 = vpop.f32.mrf.mxu1 }
 0x191   : > { %v2277_v37 = vadd.f32 %v2276_v12, %v2234_v33  ;;  %v2318_v46 = vadd.f32 %v2317_v13, %v2275_v40 }
 0x192   : > { %v2278_v18 = vpop.f32.mrf.mxu0  ;;  %v2319_v19 = vpop.f32.mrf.mxu1 }
 0x193   : > { %v2279_v41 = vadd.f32 %v2278_v18, %v2236_v35  ;;  %v2320_v43 = vadd.f32 %v2319_v19, %v2277_v37 }
 0x194   : > { %v2321_v27 = vpop.f32.mrf.mxu1 }
 0x195   : > { %v2322_v47 = vadd.f32 %v2321_v27, %v2279_v41 }
 0x1cc   : > { %v2358_v22 = vpop.f32.mrf.mxu0 }
 0x1cd   : > { %v2359_v48 = vadd.f32 %v2358_v22, %v2316_v42 }
 0x1ce   : > { %v2360_v30 = vpop.f32.mrf.mxu0  ;;  %v2401_v31 = vpop.f32.mrf.mxu1 }
 0x1cf   : > { %v2361_v51 = vadd.f32 %v2360_v30, %v2318_v46  ;;  %v2402_v55 = vadd.f32 %v2401_v31, %v2359_v48 }
 0x1d0   : > { %v2362_v38 = vpop.f32.mrf.mxu0  ;;  %v2403_v39 = vpop.f32.mrf.mxu1 }
 0x1d1   : > { %v2363_v49 = vadd.f32 %v2362_v38, %v2320_v43  ;;  %v2404_v58 = vadd.f32 %v2403_v39, %v2361_v51 }
 0x1d2   : > { %v2364_v44 = vpop.f32.mrf.mxu0  ;;  %v2405_v45 = vpop.f32.mrf.mxu1 }
 0x1d3   : > { %v2365_v52 = vadd.f32 %v2364_v44, %v2322_v47  ;;  %v2406_v56 = vadd.f32 %v2405_v45, %v2363_v49  ;;  %v2502_v44 = vld [vmem:[%s212_s22] sm:$0xff]  ;;  %v2504_v45 = vld [vmem:[%s212_s22 + $0x10] sm:$0xff]  ;;  %v2503_v49 = vld [vmem:[%s212_s22 + $0x8] sm:$0xff] }
 0x1d4   : > { %v2407_v53 = vpop.f32.mrf.mxu1 }
 0x1d5   : > { %v2408_v59 = vadd.f32 %v2407_v53, %v2365_v52 }
 0x20c   : > { %v2444_v50 = vpop.f32.mrf.mxu0 }
 0x20d   : > { %v2445_v60 = vadd.f32 %v2444_v50, %v2402_v55  ;;  %v2505_v50 = vld [vmem:[%s212_s22 + $0x18] sm:$0xff] }
 0x20e   : > { %v2446_v54 = vpop.f32.mrf.mxu0 }
 0x20f   : > { %v2447_v63 = vadd.f32 %v2446_v54, %v2404_v58 }
 0x210   : > { %v2448_v57 = vpop.f32.mrf.mxu0 }
 0x211   : > { %v2449_v61 = vadd.f32 %v2448_v57, %v2406_v56 }
 0x212   : > { %v2450_v62 = vpop.f32.mrf.mxu0 }
 0x213   : > { %v2453_v0 = vadd.f32 %v2449_v61, %v2445_v60  ;;  %v2451_v1 = vadd.f32 %v2450_v62, %v2408_v59 }
 0x215   : > { %v2454_v2 = vrot.slane %v2453_v0, 4  ;;  %v2460_v3 = vadd.f32 %v2451_v1, %v2447_v63 }
 0x217   : > { %v2455_v4 = vadd.f32 %v2454_v2, %v2453_v0  ;;  %v2461_v5 = vrot.slane %v2460_v3, 4 }
 0x219   : > { %v2456_v6 = vrot.slane %v2455_v4, 2  ;;  %v2462_v7 = vadd.f32 %v2461_v5, %v2460_v3 }
 0x21b   : > { %v2457_v8 = vadd.f32 %v2456_v6, %v2455_v4  ;;  %v2463_v9 = vrot.slane %v2462_v7, 2 }
 0x21d   : > { %v2458_v10 = vrot.slane %v2457_v8, 1  ;;  %v2464_v11 = vadd.f32 %v2463_v9, %v2462_v7 }
 0x21f   : > { %v2459_v12 = vadd.f32 %v2458_v10, %v2457_v8  ;;  %v2465_v13 = vrot.slane %v2464_v11, 1 }
 0x221   : > { %v2468_v14 = vmul.f32 0.0625, %v2459_v12  ;;  %v2466_v15 = vadd.f32 %v2465_v13, %v2464_v11 }
 0x223   : > { %v2470_v16 = vsub.f32 %v2445_v60, %v2468_v14  ;;  %v2472_v17 = vsub.f32 %v2449_v61, %v2468_v14  ;;  %v2469_v18 = vmul.f32 0.0625, %v2466_v15 }
 0x225   : > { %v2474_v19 = vmul.f32 %v2470_v16, %v2470_v16  ;;  %v2476_v20 = vmul.f32 %v2472_v17, %v2472_v17  ;;  %v2471_v21 = vsub.f32 %v2447_v63, %v2469_v18  ;;  %v2473_v22 = vsub.f32 %v2451_v1, %v2469_v18 }
 0x227   : > { %v2478_v23 = vadd.f32 %v2476_v20, %v2474_v19  ;;  %v2475_v24 = vmul.f32 %v2471_v21, %v2471_v21  ;;  %v2477_v25 = vmul.f32 %v2473_v22, %v2473_v22 }
 0x229   : > { %v2479_v26 = vrot.slane %v2478_v23, 4  ;;  %v2485_v27 = vadd.f32 %v2477_v25, %v2475_v24 }
 0x22b   : > { %v2480_v28 = vadd.f32 %v2479_v26, %v2478_v23  ;;  %v2486_v29 = vrot.slane %v2485_v27, 4 }
 0x22d   : > { %v2481_v30 = vrot.slane %v2480_v28, 2  ;;  %v2487_v31 = vadd.f32 %v2486_v29, %v2485_v27 }
 0x22f   : > { %v2482_v32 = vadd.f32 %v2481_v30, %v2480_v28  ;;  %v2488_v33 = vrot.slane %v2487_v31, 2 }
 0x231   : > { %v2483_v34 = vrot.slane %v2482_v32, 1  ;;  %v2489_v35 = vadd.f32 %v2488_v33, %v2487_v31 }
 0x233   : > { %v2484_v36 = vadd.f32 %v2483_v34, %v2482_v32  ;;  %v2490_v37 = vrot.slane %v2489_v35, 1 }
 0x235   : > { %v2492_v38 = vmul.f32 0.0625, %v2484_v36  ;;  %v2491_v39 = vadd.f32 %v2490_v37, %v2489_v35 }
 0x237   : > { %v2494_v40 = vadd.f32 1e-05, %v2492_v38  ;;  %v2493_v41 = vmul.f32 0.0625, %v2491_v39 }
 0x239   : > { %3369 = vrsqrt.f32 %v2494_v40  ;;  %v2495_v42 = vadd.f32 1e-05, %v2493_v41 }
 0x23b   : > { %3371 = vrsqrt.f32 %v2495_v42 }
 0x246   : > { %v3370_v43 = vpop.eup %3369 }
 0x247   : > { %v2498_v46 = vmul.f32 %v3370_v43, %v2470_v16  ;;  %v2500_v47 = vmul.f32 %v3370_v43, %v2472_v17 }
 0x248   : > { %v3372_v48 = vpop.eup %3371 }
 0x249   : > { %v2506_v51 = vadd.f32 %v2502_v44, %v2498_v46  ;;  %v2508_v52 = vadd.f32 %v2504_v45, %v2500_v47  ;;  %v2499_v53 = vmul.f32 %v3372_v48, %v2471_v21  ;;  %v2501_v54 = vmul.f32 %v3372_v48, %v2473_v22 }
 0x24b   : > { %2510 = vst [vmem:[%s217_s25] sm:$0xff] %v2506_v51  ;;  %2512 = vst [vmem:[%s217_s25 + $0x10] sm:$0xff] %v2508_v52  ;;  %v2507_v55 = vadd.f32 %v2503_v49, %v2499_v53  ;;  %v2509_v56 = vadd.f32 %v2505_v50, %v2501_v54 }
 0x24d   : > { %2511 = vst [vmem:[%s217_s25 + $0x8] sm:$0xff] %v2507_v55  ;;  %2513 = vst [vmem:[%s217_s25 + $0x18] sm:$0xff] %v2509_v56 }
 0x24e PF: > { %s14_s15 = sadd.s32 1, %s3379_s15  }
 0x24f   : > { %p11_p4 = scmp.ge.s32.totalorder %s14_s15, 4  }
 0x251   :  { %13 = sbr.rel (!%p11_p4) target bundleno = 1 (0x1), region = 69 }

// kernel: resnet_forward.45
= control target key start
LH: loop header
LB: loop body
LE: loop exit
PB: predicated region body
PF: predicated region fallthrough
CT: control target
= control target key end

     0   :  { %s3369_s12 = smov 0   ;;  %s4029_s0 = inlined_call_operand.vmem [shape: bf16[2,64,2304], index: 0, kind: input, shape index: {}]   ;;  %s4030_s1 = inlined_call_operand.vmem [shape: bf16[2304,128], index: 1, kind: input, shape index: {}]   ;;  %s4031_s2 = inlined_call_operand.vmem [shape: f32[1,128], index: 2, kind: input, shape index: {}]   ;;  %s4032_s3 = inlined_call_operand.vmem [shape: f32[2,64,128], index: 3, kind: output, shape index: {}]  }
   0x1 LB: > { %s2474_s13 = sadd.s32 4294967295, %s3347_s12   ;;  %p2478_p0 = scmp.ge.s32.totalorder %s3347_s12, 1  ;;  %s3347_s12 = sphi %s3369_s12, %s13_s12  }
   0x2   : > { %p137_p1 = scmp.lt.s32.totalorder %s3347_s12, 3 }
   0x4   : > { %p138_p2 = pnand %p2478_p0, %p137_p1 }
   0x6   : > { %141 = sbr.rel (%p138_p2) target bundleno = 465 (0x1d1), region = 32 }
   0xb   : > { %v3087_v0 = vld [vmem:[%s4030_s1 + $0x78] sm:$0xff]   ;;  %v3091_v4 = vld [vmem:[%s4030_s1 + $0x70] sm:$0xff]   ;;  %v3095_v8 = vld [vmem:[%s4030_s1 + $0x68] sm:$0xff]   ;;  %p161_p3 = scmp.lt.s32.totalorder %s2474_s13, 1 }
   0xc   : > { %v3088_v1 = vld [vmem:[%s4030_s1 + $0xf8] sm:$0xff]   ;;  %2702 = vmatprep.subr.bf16.mxu0 %v3087_v0  ;;  %v3092_v5 = vld [vmem:[%s4030_s1 + $0xf0] sm:$0xff]   ;;  %v3096_v9 = vld [vmem:[%s4030_s1 + $0xe8] sm:$0xff]  }
   0xd   : > { %v3089_v2 = vld [vmem:[%s4030_s1 + $0x38] sm:$0xff]   ;;  %2742 = vmatprep.subr.bf16.mxu1 %v3088_v1  ;;  %v3093_v6 = vld [vmem:[%s4030_s1 + $0x30] sm:$0xff]   ;;  %v3097_v10 = vld [vmem:[%s4030_s1 + $0x28] sm:$0xff]   ;;  %s4068_s13 = smov (!%p161_p3, %s2474_s13), 1 }
   0xe   : > { %v3090_v3 = vld [vmem:[%s4030_s1 + $0xb8] sm:$0xff]   ;;  %2703 = vmatpush3.bf16.msra.mxu0 %v3089_v2  ;;  %v3094_v7 = vld [vmem:[%s4030_s1 + $0xb0] sm:$0xff]   ;;  %v3098_v11 = vld [vmem:[%s4030_s1 + $0xa8] sm:$0xff]   ;;  %s3078_s16 = smul.u32 576, %s4068_s13 }
   0xf   : > { %2743 = vmatpush3.bf16.msra.mxu1 %v3090_v3  ;;  %2704 = vmatprep.subr.bf16.mxu0 %v3091_v4  ;;  %v3099_v12 = vld [vmem:[%s4030_s1 + $0x60] sm:$0xff]   ;;  %v3103_v16 = vld [vmem:[%s4030_s1 + $0x58] sm:$0xff]   ;;  %v3107_v20 = vld [vmem:[%s4030_s1 + $0x50] sm:$0xff]  }
  0x10   : > { %2744 = vmatprep.subr.bf16.mxu1 %v3092_v5  ;;  %v3100_v13 = vld [vmem:[%s4030_s1 + $0xe0] sm:$0xff]   ;;  %v3104_v17 = vld [vmem:[%s4030_s1 + $0xd8] sm:$0xff]   ;;  %v3108_v21 = vld [vmem:[%s4030_s1 + $0xd0] sm:$0xff]   ;;  %s3477_s27 = scalar_lea.vmem %s4029_s0, %s3078_s16 }
  0x11   : > { %v3101_v14 = vld [vmem:[%s4030_s1 + $0x20] sm:$0xff]   ;;  %v3105_v18 = vld [vmem:[%s4030_s1 + $0x18] sm:$0xff]   ;;  %v3109_v22 = vld [vmem:[%s4030_s1 + $0x10] sm:$0xff]  }
  0x12   : > { %2705 = vmatpush3.bf16.msra.mxu0 %v3093_v6  ;;  %v3102_v15 = vld [vmem:[%s4030_s1 + $0xa0] sm:$0xff]   ;;  %v3106_v19 = vld [vmem:[%s4030_s1 + $0x98] sm:$0xff]   ;;  %v3110_v23 = vld [vmem:[%s4030_s1 + $0x90] sm:$0xff]  }
  0x13   : > { %2745 = vmatpush3.bf16.msra.mxu1 %v3094_v7  ;;  %2706 = vmatprep.subr.bf16.mxu0 %v3095_v8  ;;  %v3111_v24 = vld [vmem:[%s4030_s1 + $0x48] sm:$0xff]   ;;  %v3115_v28 = vld [vmem:[%s4030_s1 + $0x40] sm:$0xff]   ;;  %v3125_v36 = vld [vmem:[%s4030_s1 + $0x178] sm:$0xff]  }
  0x14   : > { %2746 = vmatprep.subr.bf16.mxu1 %v3096_v9  ;;  %v3112_v25 = vld [vmem:[%s4030_s1 + $0xc8] sm:$0xff]   ;;  %v3116_v29 = vld [vmem:[%s4030_s1 + $0xc0] sm:$0xff]   ;;  %v3126_v37 = vld [vmem:[%s4030_s1 + $0x1f8] sm:$0xff]  }
  0x15   : > { %v3113_v26 = vld [vmem:[%s4030_s1 + $0x8] sm:$0xff]   ;;  %v3117_v30 = vld [vmem:[%s4030_s1] sm:$0xff]   ;;  %v3127_v38 = vld [vmem:[%s4030_s1 + $0x138] sm:$0xff]  }
  0x16   : > { %2707 = vmatpush3.bf16.msra.mxu0 %v3097_v10  ;;  %v3114_v27 = vld [vmem:[%s4030_s1 + $0x88] sm:$0xff]   ;;  %v3118_v31 = vld [vmem:[%s4030_s1 + $0x80] sm:$0xff]   ;;  %v3128_v39 = vld [vmem:[%s4030_s1 + $0x1b8] sm:$0xff]  }
  0x17   : > { %2747 = vmatpush3.bf16.msra.mxu1 %v3098_v11  ;;  %2708 = vmatprep.subr.bf16.mxu0 %v3099_v12  ;;  %v3119_v32 = vld [vmem:[%s3477_s27] ss:$72 sps:$4 sm:$0xff]   ;;  %v3121_v33 = vld [vmem:[%s3477_s27 + $0x4] ss:$72 sps:$4 sm:$0xff]   ;;  %v3129_v40 = vld [vmem:[%s4030_s1 + $0x170] sm:$0xff]  }
  0x18   : > { %2748 = vmatprep.subr.bf16.mxu1 %v3100_v13  ;;  %v3122_v34 = vld [vmem:[%s3477_s27 + $0x8] ss:$72 sps:$4 sm:$0xff]   ;;  %v3124_v35 = vld [vmem:[%s3477_s27 + $0xc] ss:$72 sps:$4 sm:$0xff]   ;;  %1795 = vmatprep.mubr.bf16.mxu0 %v3121_v33  ;;  %v3135_v45 = vld [vmem:[%s3477_s27 + $0x9c] ss:$72 sps:$4 sm:$0xff]  }
  0x19   : > { %1860 = vmatprep.mubr.bf16.mxu1 %v3124_v35  ;;  %v3130_v41 = vld [vmem:[%s4030_s1 + $0x1f0] sm:$0xff]   ;;  %v3138_v47 = vld [vmem:[%s3477_s27 + $0x98] ss:$72 sps:$4 sm:$0xff]   ;;  %v3139_v48 = vld [vmem:[%s4030_s1 + $0x168] sm:$0xff]  }
  0x1a   : > { %2709 = vmatpush3.bf16.msra.mxu0 %v3101_v14  ;;  %v3131_v42 = vld [vmem:[%s4030_s1 + $0x130] sm:$0xff]   ;;  %v3140_v49 = vld [vmem:[%s4030_s1 + $0x1e8] sm:$0xff]   ;;  %v3143_v52 = vld [vmem:[%s4030_s1 + $0x160] sm:$0xff]  }
  0x1b   : > { %2749 = vmatpush3.bf16.msra.mxu1 %v3102_v15  ;;  %2710 = vmatprep.subr.bf16.mxu0 %v3103_v16  ;;  %v3132_v43 = vld [vmem:[%s4030_s1 + $0x1b0] sm:$0xff]   ;;  %v3141_v50 = vld [vmem:[%s4030_s1 + $0x128] sm:$0xff]   ;;  %v3144_v53 = vld [vmem:[%s4030_s1 + $0x1e0] sm:$0xff]  }
  0x1c   : > { %2750 = vmatprep.subr.bf16.mxu1 %v3104_v17  ;;  %v3133_v44 = vld [vmem:[%s3477_s27 + $0x94] ss:$72 sps:$4 sm:$0xff]   ;;  %v3137_v46 = vld [vmem:[%s3477_s27 + $0x90] ss:$72 sps:$4 sm:$0xff]   ;;  %v3142_v51 = vld [vmem:[%s4030_s1 + $0x1a8] sm:$0xff]  }
  0x1d   : > { %v3145_v54 = vld [vmem:[%s4030_s1 + $0x120] sm:$0xff]   ;;  %v3149_v57 = vld [vmem:[%s3477_s27 + $0x12c] ss:$72 sps:$4 sm:$0xff]   ;;  %v3152_v59 = vld [vmem:[%s3477_s27 + $0x128] ss:$72 sps:$4 sm:$0xff]  }
  0x1e   : > { %2711 = vmatpush3.bf16.msra.mxu0 %v3105_v18  ;;  %v3146_v55 = vld [vmem:[%s4030_s1 + $0x1a0] sm:$0xff]   ;;  %v3153_v60 = vld [vmem:[%s4030_s1 + $0x158] sm:$0xff]   ;;  %v3157_v0 = vld [vmem:[%s4030_s1 + $0x150] sm:$0xff]  }
  0x1f   : > { %2751 = vmatpush3.bf16.msra.mxu1 %v3106_v19  ;;  %2712 = vmatprep.subr.bf16.mxu0 %v3107_v20  ;;  %v3147_v56 = vld [vmem:[%s3477_s27 + $0x124] ss:$72 sps:$4 sm:$0xff]   ;;  %v3151_v58 = vld [vmem:[%s3477_s27 + $0x120] ss:$72 sps:$4 sm:$0xff]   ;;  %v3154_v61 = vld [vmem:[%s4030_s1 + $0x1d8] sm:$0xff]  }
  0x20   : > { %2752 = vmatprep.subr.bf16.mxu1 %v3108_v21  ;;  %v3155_v62 = vld [vmem:[%s4030_s1 + $0x118] sm:$0xff]   ;;  %v3158_v1 = vld [vmem:[%s4030_s1 + $0x1d0] sm:$0xff]   ;;  %v3167_v8 = vld [vmem:[%s4030_s1 + $0x148] sm:$0xff]  }
  0x21   : > { %v3156_v63 = vld [vmem:[%s4030_s1 + $0x198] sm:$0xff]   ;;  %v3159_v2 = vld [vmem:[%s4030_s1 + $0x110] sm:$0xff]   ;;  %v3168_v9 = vld [vmem:[%s4030_s1 + $0x1c8] sm:$0xff]  }
  0x22   : > { %2713 = vmatpush3.bf16.msra.mxu0 %v3109_v22  ;;  %v3160_v3 = vld [vmem:[%s4030_s1 + $0x190] sm:$0xff]   ;;  %v3163_v5 = vld [vmem:[%s3477_s27 + $0x1bc] ss:$72 sps:$4 sm:$0xff]   ;;  %v3166_v7 = vld [vmem:[%s3477_s27 + $0x1b8] ss:$72 sps:$4 sm:$0xff]  }
  0x23   : > { %2753 = vmatpush3.bf16.msra.mxu1 %v3110_v23  ;;  %2714 = vmatprep.subr.bf16.mxu0 %v3111_v24  ;;  %v3161_v4 = vld [vmem:[%s3477_s27 + $0x1b4] ss:$72 sps:$4 sm:$0xff]   ;;  %v3165_v6 = vld [vmem:[%s3477_s27 + $0x1b0] ss:$72 sps:$4 sm:$0xff]   ;;  %v3169_v10 = vld [vmem:[%s4030_s1 + $0x108] sm:$0xff]  }
  0x24   : > { %2754 = vmatprep.subr.bf16.mxu1 %v3112_v25  ;;  %v3170_v11 = vld [vmem:[%s4030_s1 + $0x188] sm:$0xff]   ;;  %v3171_v12 = vld [vmem:[%s4030_s1 + $0x140] sm:$0xff]   ;;  %v3175_v16 = vld [vmem:[%s3477_s27 + $0x10] ss:$72 sps:$4 sm:$0xff]  }
  0x25   : > { %v3172_v13 = vld [vmem:[%s4030_s1 + $0x1c0] sm:$0xff]   ;;  %v3177_v17 = vld [vmem:[%s3477_s27 + $0x14] ss:$72 sps:$4 sm:$0xff]   ;;  %v3196_v33 = vld [vmem:[%s4030_s1 + $0x2e8] sm:$0xff]  }
  0x26   : > { %2715 = vmatpush3.bf16.msra.mxu0 %v3113_v26  ;;  %v3173_v14 = vld [vmem:[%s4030_s1 + $0x100] sm:$0xff]   ;;  %v3181_v20 = vld [vmem:[%s4030_s1 + $0x278] sm:$0xff]   ;;  %v3185_v24 = vld [vmem:[%s4030_s1 + $0x270] sm:$0xff]  }
  0x27   : > { %2755 = vmatpush3.bf16.msra.mxu1 %v3114_v27  ;;  %2716 = vmatprep.subr.bf16.mxu0 %v3115_v28  ;;  %v3174_v15 = vld [vmem:[%s4030_s1 + $0x180] sm:$0xff]   ;;  %v3182_v21 = vld [vmem:[%s4030_s1 + $0x2f8] sm:$0xff]   ;;  %v3186_v25 = vld [vmem:[%s4030_s1 + $0x2f0] sm:$0xff]  }
  0x28   : > { %2756 = vmatprep.subr.bf16.mxu1 %v3116_v29  ;;  %v3178_v18 = vld [vmem:[%s3477_s27 + $0x18] ss:$72 sps:$4 sm:$0xff]   ;;  %v3180_v19 = vld [vmem:[%s3477_s27 + $0x1c] ss:$72 sps:$4 sm:$0xff]   ;;  %v3187_v26 = vld [vmem:[%s4030_s1 + $0x230] sm:$0xff]  }
  0x29   : > { %v3183_v22 = vld [vmem:[%s4030_s1 + $0x238] sm:$0xff]   ;;  %v3188_v27 = vld [vmem:[%s4030_s1 + $0x2b0] sm:$0xff]   ;;  %v3189_v28 = vld [vmem:[%s3477_s27 + $0xa4] ss:$72 sps:$4 sm:$0xff]  }
  0x2a   : > { %2717 = vmatpush3.bf16.msra.mxu0 %v3117_v30  ;;  %v3184_v23 = vld [vmem:[%s4030_s1 + $0x2b8] sm:$0xff]   ;;  %v3191_v29 = vld [vmem:[%s3477_s27 + $0xac] ss:$72 sps:$4 sm:$0xff]   ;;  %v3193_v30 = vld [vmem:[%s3477_s27 + $0xa0] ss:$72 sps:$4 sm:$0xff]  }
  0x2b   : > { %2757 = vmatpush3.bf16.msra.mxu1 %v3118_v31  ;;  %2782 = vmatprep.subr.bf16.mxu0 %v3125_v36  ;;  %v3194_v31 = vld [vmem:[%s3477_s27 + $0xa8] ss:$72 sps:$4 sm:$0xff]   ;;  %v3199_v36 = vld [vmem:[%s4030_s1 + $0x260] sm:$0xff]  }
  0x2c   : > { %2822 = vmatprep.subr.bf16.mxu1 %v3126_v37  ;;  %v3198_v35 = vld [vmem:[%s4030_s1 + $0x2a8] sm:$0xff]   ;;  %v3200_v37 = vld [vmem:[%s4030_s1 + $0x2e0] sm:$0xff]  }
  0x2d   : > { %1796 = vmatmul.mubr.bf16.vlgmr.msra.gmra.mxu0 %v3119_v32  ;;  %v3195_v32 = vld [vmem:[%s4030_s1 + $0x268] sm:$0xff]  }
  0x2e   : > { %1861 = vmatmul.mubr.bf16.vlgmr.msra.gmra.mxu1 %v3122_v34  ;;  %2783 = vmatpush3.bf16.msra.mxu0 %v3127_v38  ;;  %v3197_v34 = vld [vmem:[%s4030_s1 + $0x228] sm:$0xff]   ;;  %v3201_v38 = vld [vmem:[%s4030_s1 + $0x220] sm:$0xff]  }
  0x2f   : > { %2823 = vmatpush3.bf16.msra.mxu1 %v3128_v39  ;;  %2784 = vmatprep.subr.bf16.mxu0 %v3129_v40  ;;  %v3202_v39 = vld [vmem:[%s4030_s1 + $0x2a0] sm:$0xff]   ;;  %v3203_v40 = vld [vmem:[%s3477_s27 + $0x134] ss:$72 sps:$4 sm:$0xff]  }
  0x30   : > { %2824 = vmatprep.subr.bf16.mxu1 %v3130_v41  ;;  %1803 = vmatprep.mubr.bf16.mxu0 %v3133_v44  ;;  %v3205_v41 = vld [vmem:[%s3477_s27 + $0x13c] ss:$72 sps:$4 sm:$0xff]  }
  0x31   : > { %1868 = vmatprep.mubr.bf16.mxu1 %v3135_v45  ;;  %v3209_v44 = vld [vmem:[%s4030_s1 + $0x258] sm:$0xff]  }
  0x32   : > { %2785 = vmatpush3.bf16.msra.mxu0 %v3131_v42  ;;  %v3207_v42 = vld [vmem:[%s3477_s27 + $0x130] ss:$72 sps:$4 sm:$0xff]  }
  0x33   : > { %2825 = vmatpush3.bf16.msra.mxu1 %v3132_v43  ;;  %2786 = vmatprep.subr.bf16.mxu0 %v3139_v48  ;;  %v3208_v43 = vld [vmem:[%s3477_s27 + $0x138] ss:$72 sps:$4 sm:$0xff]   ;;  %v3213_v48 = vld [vmem:[%s4030_s1 + $0x250] sm:$0xff]  }
  0x34   : > { %2826 = vmatprep.subr.bf16.mxu1 %v3140_v49  ;;  %v3210_v45 = vld [vmem:[%s4030_s1 + $0x2d8] sm:$0xff]   ;;  %v3214_v49 = vld [vmem:[%s4030_s1 + $0x2d0] sm:$0xff]  }
  0x35   : > { %1804 = vmatmul.mubr.bf16.gmra.mxu0 %v3137_v46  ;;  %v3211_v46 = vld [vmem:[%s4030_s1 + $0x218] sm:$0xff]  }
  0x36   : > { %1869 = vmatmul.mubr.bf16.gmra.mxu1 %v3138_v47  ;;  %2787 = vmatpush3.bf16.msra.mxu0 %v3141_v50  ;;  %v3212_v47 = vld [vmem:[%s4030_s1 + $0x298] sm:$0xff]   ;;  %v3215_v50 = vld [vmem:[%s4030_s1 + $0x210] sm:$0xff]  }
  0x37   : > { %2827 = vmatpush3.bf16.msra.mxu1 %v3142_v51  ;;  %2788 = vmatprep.subr.bf16.mxu0 %v3143_v52  ;;  %v3216_v51 = vld [vmem:[%s4030_s1 + $0x290] sm:$0xff]   ;;  %v3217_v52 = vld [vmem:[%s3477_s27 + $0x1c4] ss:$72 sps:$4 sm:$0xff]  }
  0x38   : > { %2828 = vmatprep.subr.bf16.mxu1 %v3144_v53  ;;  %1811 = vmatprep.mubr.bf16.mxu0 %v3147_v56  ;;  %v3219_v53 = vld [vmem:[%s3477_s27 + $0x1cc] ss:$72 sps:$4 sm:$0xff]  }
  0x39   : > { %1876 = vmatprep.mubr.bf16.mxu1 %v3149_v57  ;;  %v3223_v56 = vld [vmem:[%s4030_s1 + $0x248] sm:$0xff]  }
  0x3a   : > { %2789 = vmatpush3.bf16.msra.mxu0 %v3145_v54  ;;  %v3221_v54 = vld [vmem:[%s3477_s27 + $0x1c0] ss:$72 sps:$4 sm:$0xff]  }
  0x3b   : > { %2829 = vmatpush3.bf16.msra.mxu1 %v3146_v55  ;;  %2790 = vmatprep.subr.bf16.mxu0 %v3153_v60  ;;  %v3222_v55 = vld [vmem:[%s3477_s27 + $0x1c8] ss:$72 sps:$4 sm:$0xff]   ;;  %v3227_v60 = vld [vmem:[%s4030_s1 + $0x240] sm:$0xff]  }
  0x3c   : > { %2830 = vmatprep.subr.bf16.mxu1 %v3154_v61  ;;  %v3224_v57 = vld [vmem:[%s4030_s1 + $0x2c8] sm:$0xff]   ;;  %v3228_v61 = vld [vmem:[%s4030_s1 + $0x2c0] sm:$0xff]  }
  0x3d   : > { %1812 = vmatmul.mubr.bf16.gmra.mxu0 %v3151_v58  ;;  %v3225_v58 = vld [vmem:[%s4030_s1 + $0x208] sm:$0xff]  }
  0x3e   : > { %1877 = vmatmul.mubr.bf16.gmra.mxu1 %v3152_v59  ;;  %2791 = vmatpush3.bf16.msra.mxu0 %v3155_v62  ;;  %v3226_v59 = vld [vmem:[%s4030_s1 + $0x288] sm:$0xff]   ;;  %v3229_v62 = vld [vmem:[%s4030_s1 + $0x200] sm:$0xff]  }
  0x3f   : > { %2831 = vmatpush3.bf16.msra.mxu1 %v3156_v63  ;;  %2792 = vmatprep.subr.bf16.mxu0 %v3157_v0  ;;  %v3230_v63 = vld [vmem:[%s4030_s1 + $0x280] sm:$0xff]  }
  0x40   : > { %2832 = vmatprep.subr.bf16.mxu1 %v3158_v1  ;;  %1819 = vmatprep.mubr.bf16.mxu0 %v3161_v4  ;;  %v3231_v0 = vld [vmem:[%s3477_s27 + $0x20] ss:$72 sps:$4 sm:$0xff]   ;;  %v3233_v1 = vld [vmem:[%s3477_s27 + $0x24] ss:$72 sps:$4 sm:$0xff]   ;;  %v3237_v4 = vld [vmem:[%s4030_s1 + $0x378] sm:$0xff]  }
  0x41   : > { %1884 = vmatprep.mubr.bf16.mxu1 %v3163_v5  ;;  %v3238_v5 = vld [vmem:[%s4030_s1 + $0x3f8] sm:$0xff]  }
  0x42   : > { %2793 = vmatpush3.bf16.msra.mxu0 %v3159_v2  ;;  %v3234_v2 = vld [vmem:[%s3477_s27 + $0x28] ss:$72 sps:$4 sm:$0xff]  }
  0x43   : > { %2833 = vmatpush3.bf16.msra.mxu1 %v3160_v3  ;;  %2794 = vmatprep.subr.bf16.mxu0 %v3167_v8  ;;  %v3236_v3 = vld [vmem:[%s3477_s27 + $0x2c] ss:$72 sps:$4 sm:$0xff]  }
  0x44   : > { %2834 = vmatprep.subr.bf16.mxu1 %v3168_v9  ;;  %v3241_v8 = vld [vmem:[%s4030_s1 + $0x370] sm:$0xff]  }
  0x45   : > { %1820 = vmatmul.mubr.bf16.gmra.mxu0 %v3165_v6  ;;  %v3239_v6 = vld [vmem:[%s4030_s1 + $0x338] sm:$0xff]   ;;  %v3242_v9 = vld [vmem:[%s4030_s1 + $0x3f0] sm:$0xff]  }
  0x46   : > { %1885 = vmatmul.mubr.bf16.gmra.mxu1 %v3166_v7  ;;  %2795 = vmatpush3.bf16.msra.mxu0 %v3169_v10  ;;  %v3240_v7 = vld [vmem:[%s4030_s1 + $0x3b8] sm:$0xff]   ;;  %v3243_v10 = vld [vmem:[%s4030_s1 + $0x330] sm:$0xff]  }
  0x47   : > { %2835 = vmatpush3.bf16.msra.mxu1 %v3170_v11  ;;  %2796 = vmatprep.subr.bf16.mxu0 %v3171_v12  ;;  %v3244_v11 = vld [vmem:[%s4030_s1 + $0x3b0] sm:$0xff]  }
  0x48   : > { %2836 = vmatprep.subr.bf16.mxu1 %v3172_v13  ;;  %1925 = vmatprep.mubr.bf16.mxu0 %v3177_v17  ;;  %v3245_v12 = vld [vmem:[%s3477_s27 + $0xb4] ss:$72 sps:$4 sm:$0xff]   ;;  %v3252_v17 = vld [vmem:[%s4030_s1 + $0x3e8] sm:$0xff]  }
  0x49   : > { %1990 = vmatprep.mubr.bf16.mxu1 %v3180_v19  ;;  %v3247_v13 = vld [vmem:[%s3477_s27 + $0xbc] ss:$72 sps:$4 sm:$0xff]   ;;  %v3254_v19 = vld [vmem:[%s4030_s1 + $0x3a8] sm:$0xff]  }
  0x4a   : > { %2797 = vmatpush3.bf16.msra.mxu0 %v3173_v14  ;;  %v3249_v14 = vld [vmem:[%s3477_s27 + $0xb0] ss:$72 sps:$4 sm:$0xff]  }
  0x4b   : > { %2837 = vmatpush3.bf16.msra.mxu1 %v3174_v15  ;;  %2862 = vmatprep.subr.bf16.mxu0 %v3181_v20  ;;  %v3250_v15 = vld [vmem:[%s3477_s27 + $0xb8] ss:$72 sps:$4 sm:$0xff]  }
  0x4c   : > { %2902 = vmatprep.subr.bf16.mxu1 %v3182_v21  ;;  %v3255_v20 = vld [vmem:[%s4030_s1 + $0x360] sm:$0xff]  }
  0x4d   : > { %1926 = vmatmul.mubr.bf16.vlgmr.msra.gmra.mxu0 %v3175_v16  ;;  %v3251_v16 = vld [vmem:[%s4030_s1 + $0x368] sm:$0xff]   ;;  %v3256_v21 = vld [vmem:[%s4030_s1 + $0x3e0] sm:$0xff]  }
  0x4e   : > { %1991 = vmatmul.mubr.bf16.vlgmr.msra.gmra.mxu1 %v3178_v18  ;;  %2863 = vmatpush3.bf16.msra.mxu0 %v3183_v22  ;;  %v3253_v18 = vld [vmem:[%s4030_s1 + $0x328] sm:$0xff]   ;;  %v3257_v22 = vld [vmem:[%s4030_s1 + $0x320] sm:$0xff]  }
  0x4f   : > { %2903 = vmatpush3.bf16.msra.mxu1 %v3184_v23  ;;  %2864 = vmatprep.subr.bf16.mxu0 %v3185_v24  ;;  %v3258_v23 = vld [vmem:[%s4030_s1 + $0x3a0] sm:$0xff]  }
  0x50   : > { %2904 = vmatprep.subr.bf16.mxu1 %v3186_v25  ;;  %1933 = vmatprep.mubr.bf16.mxu0 %v3189_v28  ;;  %v3259_v24 = vld [vmem:[%s3477_s27 + $0x144] ss:$72 sps:$4 sm:$0xff]   ;;  %v3265_v28 = vld [vmem:[%s4030_s1 + $0x358] sm:$0xff]  }
  0x51   : > { %1998 = vmatprep.mubr.bf16.mxu1 %v3191_v29  ;;  %v3261_v25 = vld [vmem:[%s3477_s27 + $0x14c] ss:$72 sps:$4 sm:$0xff]   ;;  %v3266_v29 = vld [vmem:[%s4030_s1 + $0x3d8] sm:$0xff]  }
  0x52   : > { %2865 = vmatpush3.bf16.msra.mxu0 %v3187_v26  ;;  %v3263_v26 = vld [vmem:[%s3477_s27 + $0x140] ss:$72 sps:$4 sm:$0xff]  }
  0x53   : > { %2905 = vmatpush3.bf16.msra.mxu1 %v3188_v27  ;;  %2866 = vmatprep.subr.bf16.mxu0 %v3195_v32  ;;  %v3264_v27 = vld [vmem:[%s3477_s27 + $0x148] ss:$72 sps:$4 sm:$0xff]  }
  0x54   : > { %2906 = vmatprep.subr.bf16.mxu1 %v3196_v33  ;;  %v3269_v32 = vld [vmem:[%s4030_s1 + $0x350] sm:$0xff]  }
  0x55   : > { %1934 = vmatmul.mubr.bf16.gmra.mxu0 %v3193_v30  ;;  %v3267_v30 = vld [vmem:[%s4030_s1 + $0x318] sm:$0xff]   ;;  %v3270_v33 = vld [vmem:[%s4030_s1 + $0x3d0] sm:$0xff]  }
  0x56   : > { %1999 = vmatmul.mubr.bf16.gmra.mxu1 %v3194_v31  ;;  %2867 = vmatpush3.bf16.msra.mxu0 %v3197_v34  ;;  %v3268_v31 = vld [vmem:[%s4030_s1 + $0x398] sm:$0xff]   ;;  %v3271_v34 = vld [vmem:[%s4030_s1 + $0x310] sm:$0xff]  }
  0x57   : > { %2907 = vmatpush3.bf16.msra.mxu1 %v3198_v35  ;;  %2868 = vmatprep.subr.bf16.mxu0 %v3199_v36  ;;  %v3272_v35 = vld [vmem:[%s4030_s1 + $0x390] sm:$0xff]  }
  0x58   : > { %2908 = vmatprep.subr.bf16.mxu1 %v3200_v37  ;;  %1941 = vmatprep.mubr.bf16.mxu0 %v3203_v40  ;;  %v3273_v36 = vld [vmem:[%s3477_s27 + $0x1d4] ss:$72 sps:$4 sm:$0xff]   ;;  %v3279_v40 = vld [vmem:[%s4030_s1 + $0x348] sm:$0xff]  }
  0x59   : > { %2006 = vmatprep.mubr.bf16.mxu1 %v3205_v41  ;;  %v3275_v37 = vld [vmem:[%s3477_s27 + $0x1dc] ss:$72 sps:$4 sm:$0xff]   ;;  %v3280_v41 = vld [vmem:[%s4030_s1 + $0x3c8] sm:$0xff]  }
  0x5a   : > { %2869 = vmatpush3.bf16.msra.mxu0 %v3201_v38  ;;  %v3277_v38 = vld [vmem:[%s3477_s27 + $0x1d0] ss:$72 sps:$4 sm:$0xff]  }
  0x5b   : > { %2909 = vmatpush3.bf16.msra.mxu1 %v3202_v39  ;;  %2870 = vmatprep.subr.bf16.mxu0 %v3209_v44  ;;  %v3278_v39 = vld [vmem:[%s3477_s27 + $0x1d8] ss:$72 sps:$4 sm:$0xff]  }
  0x5c   : > { %2910 = vmatprep.subr.bf16.mxu1 %v3210_v45  ;;  %v3283_v44 = vld [vmem:[%s4030_s1 + $0x340] sm:$0xff]  }
  0x5d   : > { %1942 = vmatmul.mubr.bf16.gmra.mxu0 %v3207_v42  ;;  %v3281_v42 = vld [vmem:[%s4030_s1 + $0x308] sm:$0xff]   ;;  %v3284_v45 = vld [vmem:[%s4030_s1 + $0x3c0] sm:$0xff]  }
  0x5e   : > { %2007 = vmatmul.mubr.bf16.gmra.mxu1 %v3208_v43  ;;  %2871 = vmatpush3.bf16.msra.mxu0 %v3211_v46  ;;  %v3282_v43 = vld [vmem:[%s4030_s1 + $0x388] sm:$0xff]   ;;  %v3285_v46 = vld [vmem:[%s4030_s1 + $0x300] sm:$0xff]  }
  0x5f   : > { %2911 = vmatpush3.bf16.msra.mxu1 %v3212_v47  ;;  %2872 = vmatprep.subr.bf16.mxu0 %v3213_v48  ;;  %v3286_v47 = vld [vmem:[%s4030_s1 + $0x380] sm:$0xff]   ;;  %v3287_v48 = vld [vmem:[%s3477_s27 + $0x30] ss:$72 sps:$4 sm:$0xff]  }
  0x60   : > { %2912 = vmatprep.subr.bf16.mxu1 %v3214_v49  ;;  %1949 = vmatprep.mubr.bf16.mxu0 %v3217_v52  ;;  %v3289_v49 = vld [vmem:[%s3477_s27 + $0x34] ss:$72 sps:$4 sm:$0xff]  }
  0x61   : > { %2014 = vmatprep.mubr.bf16.mxu1 %v3219_v53  ;;  %v3293_v52 = vld [vmem:[%s4030_s1 + $0x478] sm:$0xff]  }
  0x62   : > { %2873 = vmatpush3.bf16.msra.mxu0 %v3215_v50  ;;  %v3290_v50 = vld [vmem:[%s3477_s27 + $0x38] ss:$72 sps:$4 sm:$0xff]  }
  0x63   : > { %2913 = vmatpush3.bf16.msra.mxu1 %v3216_v51  ;;  %2874 = vmatprep.subr.bf16.mxu0 %v3223_v56  ;;  %v3292_v51 = vld [vmem:[%s3477_s27 + $0x3c] ss:$72 sps:$4 sm:$0xff]  }
  0x64   : > { %2914 = vmatprep.subr.bf16.mxu1 %v3224_v57  ;;  %v3294_v53 = vld [vmem:[%s4030_s1 + $0x438] sm:$0xff]   ;;  %v3297_v56 = vld [vmem:[%s3477_s27 + $0xc4] ss:$72 sps:$4 sm:$0xff]  }
  0x65   : > { %1950 = vmatmul.mubr.bf16.gmra.mxu0 %v3221_v54  ;;  %v3295_v54 = vld [vmem:[%s4030_s1 + $0x470] sm:$0xff]  }
  0x66   : > { %2015 = vmatmul.mubr.bf16.gmra.mxu1 %v3222_v55  ;;  %2875 = vmatpush3.bf16.msra.mxu0 %v3225_v58  ;;  %v3296_v55 = vld [vmem:[%s4030_s1 + $0x430] sm:$0xff]   ;;  %v3301_v58 = vld [vmem:[%s3477_s27 + $0xc0] ss:$72 sps:$4 sm:$0xff]  }
  0x67   : > { %2915 = vmatpush3.bf16.msra.mxu1 %v3226_v59  ;;  %2876 = vmatprep.subr.bf16.mxu0 %v3227_v60  ;;  %v3299_v57 = vld [vmem:[%s3477_s27 + $0xcc] ss:$72 sps:$4 sm:$0xff]   ;;  %v3302_v59 = vld [vmem:[%s3477_s27 + $0xc8] ss:$72 sps:$4 sm:$0xff]  }
  0x68   : > { %2916 = vmatprep.subr.bf16.mxu1 %v3228_v61  ;;  %2055 = vmatprep.mubr.bf16.mxu0 %v3233_v1  ;;  %v3303_v60 = vld [vmem:[%s4030_s1 + $0x468] sm:$0xff]   ;;  %v3309_v1 = vld [vmem:[%s3477_s27 + $0x15c] ss:$72 sps:$4 sm:$0xff]  }
  0x69   : > { %2120 = vmatprep.mubr.bf16.mxu1 %v3236_v3  ;;  %v3304_v61 = vld [vmem:[%s4030_s1 + $0x428] sm:$0xff]   ;;  %v3313_v3 = vld [vmem:[%s4030_s1 + $0x458] sm:$0xff]  }
  0x6a   : > { %2877 = vmatpush3.bf16.msra.mxu0 %v3229_v62  ;;  %v3305_v62 = vld [vmem:[%s4030_s1 + $0x460] sm:$0xff]  }
  0x6b   : > { %2917 = vmatpush3.bf16.msra.mxu1 %v3230_v63  ;;  %2942 = vmatprep.subr.bf16.mxu0 %v3237_v4  ;;  %v3306_v63 = vld [vmem:[%s4030_s1 + $0x420] sm:$0xff]  }
  0x6c   : > { %2982 = vmatprep.subr.bf16.mxu1 %v3238_v5  ;;  %v3312_v4 = vld [vmem:[%s3477_s27 + $0x158] ss:$72 sps:$4 sm:$0xff]  }
  0x6d   : > { %2056 = vmatmul.mubr.bf16.vlgmr.msra.gmra.mxu0 %v3231_v0  ;;  %v3307_v0 = vld [vmem:[%s3477_s27 + $0x154] ss:$72 sps:$4 sm:$0xff]  }
  0x6e   : > { %2121 = vmatmul.mubr.bf16.vlgmr.msra.gmra.mxu1 %v3234_v2  ;;  %2943 = vmatpush3.bf16.msra.mxu0 %v3239_v6  ;;  %v3311_v2 = vld [vmem:[%s3477_s27 + $0x150] ss:$72 sps:$4 sm:$0xff]  }
  0x6f   : > { %2983 = vmatpush3.bf16.msra.mxu1 %v3240_v7  ;;  %2944 = vmatprep.subr.bf16.mxu0 %v3241_v8  ;;  %v3314_v5 = vld [vmem:[%s4030_s1 + $0x418] sm:$0xff]   ;;  %v3315_v6 = vld [vmem:[%s4030_s1 + $0x450] sm:$0xff]   ;;  %v3317_v7 = vld [vmem:[%s3477_s27 + $0x1e4] ss:$72 sps:$4 sm:$0xff]  }
  0x70   : > { %2984 = vmatprep.subr.bf16.mxu1 %v3242_v9  ;;  %2063 = vmatprep.mubr.bf16.mxu0 %v3245_v12  ;;  %v3319_v8 = vld [vmem:[%s3477_s27 + $0x1ec] ss:$72 sps:$4 sm:$0xff]   ;;  %v3322_v12 = vld [vmem:[%s3477_s27 + $0x1e8] ss:$72 sps:$4 sm:$0xff]  }
  0x71   : > { %2128 = vmatprep.mubr.bf16.mxu1 %v3247_v13  ;;  %v3316_v9 = vld [vmem:[%s4030_s1 + $0x410] sm:$0xff]   ;;  %v3324_v13 = vld [vmem:[%s4030_s1 + $0x408] sm:$0xff]  }
  0x72   : > { %2945 = vmatpush3.bf16.msra.mxu0 %v3243_v10  ;;  %v3323_v10 = vld [vmem:[%s4030_s1 + $0x448] sm:$0xff]  }
  0x73   : > { %2985 = vmatpush3.bf16.msra.mxu1 %v3244_v11  ;;  %2946 = vmatprep.subr.bf16.mxu0 %v3251_v16  ;;  %v3321_v11 = vld [vmem:[%s3477_s27 + $0x1e0] ss:$72 sps:$4 sm:$0xff]   ;;  %v3332_v16 = vld [vmem:[%s3477_s27 + $0x164] ss:$72 sps:$4 sm:$0xff]  }
  0x74   : > { %2986 = vmatprep.subr.bf16.mxu1 %v3252_v17  ;;  %v3326_v17 = vld [vmem:[%s4030_s1 + $0x400] sm:$0xff]  }
  0x75   : > { %2064 = vmatmul.mubr.bf16.gmra.mxu0 %v3249_v14  ;;  %v3325_v14 = vld [vmem:[%s4030_s1 + $0x440] sm:$0xff]  }
  0x76   : > { %2129 = vmatmul.mubr.bf16.gmra.mxu1 %v3250_v15  ;;  %2947 = vmatpush3.bf16.msra.mxu0 %v3253_v18  ;;  %v3329_v15 = vld [vmem:[%s3477_s27 + $0x44] ss:$72 sps:$4 sm:$0xff]   ;;  %v3327_v18 = vld [vmem:[%s3477_s27 + $0x40] ss:$72 sps:$4 sm:$0xff]  }
  0x77   : > { %2987 = vmatpush3.bf16.msra.mxu1 %v3254_v19  ;;  %2948 = vmatprep.subr.bf16.mxu0 %v3255_v20  ;;  %v3330_v19 = vld [vmem:[%s3477_s27 + $0x160] ss:$72 sps:$4 sm:$0xff]   ;;  %v3333_v20 = vld [vmem:[%s3477_s27 + $0xd4] ss:$72 sps:$4 sm:$0xff]  }
  0x78   : > { %2988 = vmatprep.subr.bf16.mxu1 %v3256_v21  ;;  %2071 = vmatprep.mubr.bf16.mxu0 %v3259_v24  ;;  %v3335_v21 = vld [vmem:[%s3477_s27 + $0x1f4] ss:$72 sps:$4 sm:$0xff]  }
  0x79   : > { %2136 = vmatprep.mubr.bf16.mxu1 %v3261_v25 }
  0x7a   : > { %2949 = vmatpush3.bf16.msra.mxu0 %v3257_v22  ;;  %v3337_v22 = vld [vmem:[%s3477_s27 + $0xd0] ss:$72 sps:$4 sm:$0xff]  }
  0x7b   : > { %2989 = vmatpush3.bf16.msra.mxu1 %v3258_v23  ;;  %2950 = vmatprep.subr.bf16.mxu0 %v3265_v28  ;;  %v3338_v23 = vld [vmem:[%s3477_s27 + $0x1f0] ss:$72 sps:$4 sm:$0xff]   ;;  %s2701_s27 = sshll.u32 %s4068_s13, 6 }
  0x7c   : > { %2990 = vmatprep.subr.bf16.mxu1 %v3266_v29  ;;  %s170_s19 = scalar_lea.vmem %s4032_s3, %s2701_s27 }
  0x7d   : > { %2072 = vmatmul.mubr.bf16.gmra.mxu0 %v3263_v26  ;;  %v2482_v26 = vld [vmem:[%s4031_s2] ss:$0 sm:$0xff] }
  0x7e   : > { %2137 = vmatmul.mubr.bf16.gmra.mxu1 %v3264_v27  ;;  %2951 = vmatpush3.bf16.msra.mxu0 %v3267_v30 }
  0x7f   : > { %2991 = vmatpush3.bf16.msra.mxu1 %v3268_v31  ;;  %2952 = vmatprep.subr.bf16.mxu0 %v3269_v32 }
  0x80   : > { %2992 = vmatprep.subr.bf16.mxu1 %v3270_v33  ;;  %2079 = vmatprep.mubr.bf16.mxu0 %v3273_v36 }
  0x81   : > { %2144 = vmatprep.mubr.bf16.mxu1 %v3275_v37 }
  0x82   : > { %2953 = vmatpush3.bf16.msra.mxu0 %v3271_v34 }
  0x83   : > { %2993 = vmatpush3.bf16.msra.mxu1 %v3272_v35  ;;  %2954 = vmatprep.subr.bf16.mxu0 %v3279_v40 }
  0x84   : > { %2994 = vmatprep.subr.bf16.mxu1 %v3280_v41 }
  0x85   : > { %2080 = vmatmul.mubr.bf16.gmra.mxu0 %v3277_v38 }
  0x86   : > { %2145 = vmatmul.mubr.bf16.gmra.mxu1 %v3278_v39  ;;  %2955 = vmatpush3.bf16.msra.mxu0 %v3281_v42 }
  0x87   : > { %2995 = vmatpush3.bf16.msra.mxu1 %v3282_v43  ;;  %2956 = vmatprep.subr.bf16.mxu0 %v3283_v44 }
  0x88   : > { %2996 = vmatprep.subr.bf16.mxu1 %v3284_v45  ;;  %2185 = vmatprep.mubr.bf16.mxu0 %v3289_v49 }
  0x89   : > { %2250 = vmatprep.mubr.bf16.mxu1 %v3292_v51 }
  0x8a   : > { %2957 = vmatpush3.bf16.msra.mxu0 %v3285_v46 }
  0x8b   : > { %2997 = vmatpush3.bf16.msra.mxu1 %v3286_v47  ;;  %3022 = vmatprep.subr.bf16.mxu0 %v3293_v52 }
  0x8c   : > { %3062 = vmatprep.subr.bf16.mxu1 %v3293_v52 }
  0x8d   : > { %2186 = vmatmul.mubr.bf16.vlgmr.msra.gmra.mxu0 %v3287_v48 }
  0x8e   : > { %2251 = vmatmul.mubr.bf16.vlgmr.msra.gmra.mxu1 %v3290_v50  ;;  %3023 = vmatpush3.bf16.msra.mxu0 %v3294_v53 }
  0x8f   : > { %3070 = vmatpush3.bf16.msra.mxu1 %v3294_v53  ;;  %3024 = vmatprep.subr.bf16.mxu0 %v3295_v54 }
  0x90   : > { %3063 = vmatprep.subr.bf16.mxu1 %v3295_v54  ;;  %2193 = vmatprep.mubr.bf16.mxu0 %v3297_v56 }
  0x91   : > { %2258 = vmatprep.mubr.bf16.mxu1 %v3299_v57 }
  0x92   : > { %3025 = vmatpush3.bf16.msra.mxu0 %v3296_v55 }
  0x93   : > { %3071 = vmatpush3.bf16.msra.mxu1 %v3296_v55  ;;  %3026 = vmatprep.subr.bf16.mxu0 %v3303_v60 }
  0x94   : > { %3064 = vmatprep.subr.bf16.mxu1 %v3303_v60 }
  0x95   : > { %2194 = vmatmul.mubr.bf16.gmra.mxu0 %v3301_v58 }
  0x96   : > { %2259 = vmatmul.mubr.bf16.gmra.mxu1 %v3302_v59  ;;  %3027 = vmatpush3.bf16.msra.mxu0 %v3304_v61 }
  0x97   : > { %3072 = vmatpush3.bf16.msra.mxu1 %v3304_v61  ;;  %3028 = vmatprep.subr.bf16.mxu0 %v3305_v62 }
  0x98   : > { %3065 = vmatprep.subr.bf16.mxu1 %v3305_v62  ;;  %2201 = vmatprep.mubr.bf16.mxu0 %v3307_v0 }
  0x99   : > { %2266 = vmatprep.mubr.bf16.mxu1 %v3309_v1 }
  0x9a   : > { %3029 = vmatpush3.bf16.msra.mxu0 %v3306_v63 }
  0x9b   : > { %3073 = vmatpush3.bf16.msra.mxu1 %v3306_v63  ;;  %3030 = vmatprep.subr.bf16.mxu0 %v3313_v3 }
  0x9c   : > { %3066 = vmatprep.subr.bf16.mxu1 %v3313_v3 }
  0x9d   : > { %2202 = vmatmul.mubr.bf16.gmra.mxu0 %v3311_v2 }
  0x9e   : > { %2267 = vmatmul.mubr.bf16.gmra.mxu1 %v3312_v4  ;;  %3031 = vmatpush3.bf16.msra.mxu0 %v3314_v5 }
  0x9f   : > { %2209 = vmatprep.mubr.bf16.mxu0 %v3317_v7  ;;  %3074 = vmatpush3.bf16.msra.mxu1 %v3314_v5 }
  0xa0   : > { %3032 = vmatprep.subr.bf16.mxu0 %v3315_v6  ;;  %3067 = vmatprep.subr.bf16.mxu1 %v3315_v6 }
  0xa1   : > { %2274 = vmatprep.mubr.bf16.mxu1 %v3319_v8 }
  0xa2   : > { %3033 = vmatpush3.bf16.msra.mxu0 %v3316_v9 }
  0xa3   : > { %3075 = vmatpush3.bf16.msra.mxu1 %v3316_v9  ;;  %3034 = vmatprep.subr.bf16.mxu0 %v3323_v10 }
  0xa4   : > { %3068 = vmatprep.subr.bf16.mxu1 %v3323_v10 }
  0xa5   : > { %2210 = vmatmul.mubr.bf16.gmra.mxu0 %v3321_v11 }
  0xa6   : > { %2275 = vmatmul.mubr.bf16.gmra.mxu1 %v3322_v12  ;;  %2315 = vmatprep.mubr.bf16.mxu0 %v3329_v15 }
  0xa7   : > { %3035 = vmatpush3.bf16.msra.mxu0 %v3324_v13  ;;  %3076 = vmatpush3.bf16.msra.mxu1 %v3324_v13 }
  0xa8   : > { %3036 = vmatprep.subr.bf16.mxu0 %v3325_v14  ;;  %3069 = vmatprep.subr.bf16.mxu1 %v3325_v14 }
  0xa9   : > { %2331 = vmatprep.mubr.bf16.mxu1 %v3332_v16 }
  0xab   : > { %3037 = vmatpush3.bf16.msra.mxu0 %v3326_v17  ;;  %3077 = vmatpush3.bf16.msra.mxu1 %v3326_v17 }
  0xae   : > { %2316 = vmatmul.mubr.bf16.vlgmr.msra.gmra.mxu0 %v3327_v18  ;;  %2332 = vmatmul.mubr.bf16.vlgmr.msra.gmra.mxu1 %v3330_v19 }
  0xaf   : > { %2323 = vmatprep.mubr.bf16.mxu0 %v3333_v20  ;;  %2339 = vmatprep.mubr.bf16.mxu1 %v3335_v21 }
  0xb6   : > { %2324 = vmatmul.mubr.bf16.gmra.mxu0 %v3337_v22  ;;  %2340 = vmatmul.mubr.bf16.gmra.mxu1 %v3338_v23 }
  0xed   : > { %v2718_v24 = vpop.f32.mrf.mxu0 }
  0xee   : > { %v2758_v25 = vpop.f32.mrf.mxu1 }
  0xef   : > { %v2719_v27 = vpop.f32.mrf.mxu0 }
  0xf0   : > { %v2720_v28 = vadd.f32 %v2719_v27, %v2718_v24  ;;  %v2759_v29 = vpop.f32.mrf.mxu1 }
  0xf1   : > { %v2760_v30 = vadd.f32 %v2759_v29, %v2758_v25  ;;  %v2721_v31 = vpop.f32.mrf.mxu0 }
  0xf2   : > { %v1798_v32 = vadd.f32 %v2720_v28, %v2482_v26  ;;  %v2761_v33 = vpop.f32.mrf.mxu1 }
  0xf3   : > { %v2722_v34 = vpop.f32.mrf.mxu0 }
  0xf4   : > { %v1863_v35 = vadd.f32 %v2760_v30, %v1798_v32  ;;  %v2723_v36 = vadd.f32 %v2722_v34, %v2721_v31  ;;  %v2762_v37 = vpop.f32.mrf.mxu1 }
  0xf5   : > { %v2763_v38 = vadd.f32 %v2762_v37, %v2761_v33  ;;  %v2724_v40 = vpop.f32.mrf.mxu0 }
  0xf6   : > { %v1801_v39 = vadd.f32 %v2723_v36, %v2482_v26  ;;  %v2764_v42 = vpop.f32.mrf.mxu1 }
  0xf7   : > { %v2725_v43 = vpop.f32.mrf.mxu0 }
  0xf8   : > { %v1866_v41 = vadd.f32 %v2763_v38, %v1801_v39  ;;  %v2726_v44 = vadd.f32 %v2725_v43, %v2724_v40  ;;  %v2765_v45 = vpop.f32.mrf.mxu1 }
  0xf9   : > { %v2766_v46 = vadd.f32 %v2765_v45, %v2764_v42  ;;  %v2727_v47 = vpop.f32.mrf.mxu0 }
  0xfa   : > { %v1806_v48 = vadd.f32 %v2726_v44, %v2482_v26  ;;  %v2767_v49 = vpop.f32.mrf.mxu1 }
  0xfb   : > { %v2728_v50 = vpop.f32.mrf.mxu0 }
  0xfc   : > { %v1871_v51 = vadd.f32 %v2766_v46, %v1806_v48  ;;  %v2729_v52 = vadd.f32 %v2728_v50, %v2727_v47  ;;  %v2768_v53 = vpop.f32.mrf.mxu1 }
  0xfd   : > { %v2769_v54 = vadd.f32 %v2768_v53, %v2767_v49  ;;  %v2730_v57 = vpop.f32.mrf.mxu0 }
  0xfe   : > { %v1809_v55 = vadd.f32 %v2729_v52, %v2482_v26  ;;  %v2770_v58 = vpop.f32.mrf.mxu1 }
  0xff   : > { %v2731_v59 = vpop.f32.mrf.mxu0 }
 0x100   : > { %v3896_v56 = vadd.f32 %v2769_v54, %v1809_v55  ;;  %v2732_v60 = vadd.f32 %v2731_v59, %v2730_v57  ;;  %v2771_v61 = vpop.f32.mrf.mxu1 }
 0x101   : > { %v2772_v62 = vadd.f32 %v2771_v61, %v2770_v58  ;;  %v2733_v63 = vpop.f32.mrf.mxu0 }
 0x102   : > { %v1814_v0 = vadd.f32 %v2732_v60, %v2482_v26  ;;  %v2773_v1 = vpop.f32.mrf.mxu1 }
 0x103   : > { %v2734_v2 = vpop.f32.mrf.mxu0 }
 0x104   : > { %v1879_v3 = vadd.f32 %v2772_v62, %v1814_v0  ;;  %v2735_v4 = vadd.f32 %v2734_v2, %v2733_v63  ;;  %v2774_v5 = vpop.f32.mrf.mxu1 }
 0x105   : > { %v2775_v6 = vadd.f32 %v2774_v5, %v2773_v1  ;;  %v2736_v9 = vpop.f32.mrf.mxu0 }
 0x106   : > { %v1817_v7 = vadd.f32 %v2735_v4, %v2482_v26  ;;  %v2776_v10 = vpop.f32.mrf.mxu1 }
 0x107   : > { %v2737_v11 = vpop.f32.mrf.mxu0 }
 0x108   : > { %v3898_v8 = vadd.f32 %v2775_v6, %v1817_v7  ;;  %v2777_v12 = vpop.f32.mrf.mxu1  ;;  %v2738_v13 = vadd.f32 %v2737_v11, %v2736_v9 }
 0x109   : > { %v2778_v14 = vadd.f32 %v2777_v12, %v2776_v10  ;;  %v2739_v15 = vpop.f32.mrf.mxu0 }
 0x10a   : > { %v2779_v16 = vpop.f32.mrf.mxu1  ;;  %v1822_v17 = vadd.f32 %v2738_v13, %v2482_v26 }
 0x10b   : > { %v2740_v18 = vpop.f32.mrf.mxu0 }
 0x10c   : > { %v2780_v19 = vpop.f32.mrf.mxu1  ;;  %v1887_v20 = vadd.f32 %v2778_v14, %v1822_v17  ;;  %v2741_v21 = vadd.f32 %v2740_v18, %v2739_v15 }
 0x10d   : > { %v2781_v22 = vadd.f32 %v2780_v19, %v2779_v16  ;;  %v2798_v24 = vpop.f32.mrf.mxu0 }
 0x10e   : > { %v1825_v23 = vadd.f32 %v2741_v21, %v2482_v26  ;;  %v2838_v27 = vpop.f32.mrf.mxu1 }
 0x10f   : > { %v2799_v28 = vpop.f32.mrf.mxu0 }
 0x110   : > { %v1890_v25 = vadd.f32 %v2781_v22, %v1825_v23  ;;  %v2800_v29 = vadd.f32 %v2799_v28, %v2798_v24  ;;  %v2839_v30 = vpop.f32.mrf.mxu1 }
 0x111   : > { %v2801_v31 = vpop.f32.mrf.mxu0  ;;  %v2840_v33 = vadd.f32 %v2839_v30, %v2838_v27 }
 0x112   : > { %v1928_v32 = vadd.f32 %v2800_v29, %v1863_v35  ;;  %v2841_v34 = vpop.f32.mrf.mxu1 }
 0x113   : > { %v2802_v36 = vpop.f32.mrf.mxu0 }
 0x114   : > { %v1993_v37 = vadd.f32 %v2840_v33, %v1928_v32  ;;  %v2803_v38 = vadd.f32 %v2802_v36, %v2801_v31  ;;  %v2842_v39 = vpop.f32.mrf.mxu1 }
 0x115   : > { %v2843_v42 = vadd.f32 %v2842_v39, %v2841_v34  ;;  %v2804_v44 = vpop.f32.mrf.mxu0 }
 0x116   : > { %v1931_v40 = vadd.f32 %v2803_v38, %v1866_v41  ;;  %v2844_v26 = vpop.f32.mrf.mxu1 }
 0x117   : > { %v2805_v45 = vpop.f32.mrf.mxu0 }
 0x118   : > { %v3900_v43 = vadd.f32 %v2843_v42, %v1931_v40  ;;  %v2806_v46 = vadd.f32 %v2805_v45, %v2804_v44  ;;  %v2845_v47 = vpop.f32.mrf.mxu1 }
 0x119   : > { %v2846_v48 = vadd.f32 %v2845_v47, %v2844_v26  ;;  %v2807_v49 = vpop.f32.mrf.mxu0 }
 0x11a   : > { %v1936_v50 = vadd.f32 %v2806_v46, %v1871_v51  ;;  %v2847_v52 = vpop.f32.mrf.mxu1 }
 0x11b   : > { %v2808_v35 = vpop.f32.mrf.mxu0 }
 0x11c   : > { %v3902_v53 = vadd.f32 %v2846_v48, %v1936_v50  ;;  %v2809_v54 = vadd.f32 %v2808_v35, %v2807_v49  ;;  %v2848_v55 = vpop.f32.mrf.mxu1 }
 0x11d   : > { %v2849_v57 = vadd.f32 %v2848_v55, %v2847_v52  ;;  %v2810_v59 = vpop.f32.mrf.mxu0 }
 0x11e   : > { %v1939_v41 = vadd.f32 %v2809_v54, %v3896_v56  ;;  %v2850_v60 = vpop.f32.mrf.mxu1 }
 0x11f   : > { %v2811_v61 = vpop.f32.mrf.mxu0 }
 0x120   : > { %v3905_v58 = vadd.f32 %v2849_v57, %v1939_v41  ;;  %v2851_v62 = vpop.f32.mrf.mxu1  ;;  %v2812_v63 = vadd.f32 %v2811_v61, %v2810_v59 }
 0x121   : > { %v2852_v0 = vadd.f32 %v2851_v62, %v2850_v60  ;;  %v2813_v1 = vpop.f32.mrf.mxu0 }
 0x122   : > { %v2853_v2 = vpop.f32.mrf.mxu1  ;;  %v1944_v51 = vadd.f32 %v2812_v63, %v1879_v3 }
 0x123   : > { %v2814_v4 = vpop.f32.mrf.mxu0 }
 0x124   : > { %v2854_v5 = vpop.f32.mrf.mxu1  ;;  %v3907_v6 = vadd.f32 %v2852_v0, %v1944_v51  ;;  %v2815_v7 = vadd.f32 %v2814_v4, %v2813_v1 }
 0x125   : > { %v2855_v9 = vadd.f32 %v2854_v5, %v2853_v2  ;;  %v2816_v56 = vpop.f32.mrf.mxu0 }
 0x126   : > { %v1947_v10 = vadd.f32 %v2815_v7, %v3898_v8  ;;  %v2856_v12 = vpop.f32.mrf.mxu1 }
 0x127   : > { %v2817_v13 = vpop.f32.mrf.mxu0 }
 0x128   : > { %v3910_v11 = vadd.f32 %v2855_v9, %v1947_v10  ;;  %v2818_v14 = vadd.f32 %v2817_v13, %v2816_v56  ;;  %v2857_v15 = vpop.f32.mrf.mxu1 }
 0x129   : > { %v2858_v16 = vadd.f32 %v2857_v15, %v2856_v12  ;;  %v2819_v17 = vpop.f32.mrf.mxu0 }
 0x12a   : > { %v1952_v18 = vadd.f32 %v2818_v14, %v1887_v20  ;;  %v2859_v19 = vpop.f32.mrf.mxu1 }
 0x12b   : > { %v2820_v3 = vpop.f32.mrf.mxu0 }
 0x12c   : > { %v3912_v21 = vadd.f32 %v2858_v16, %v1952_v18  ;;  %v2821_v22 = vadd.f32 %v2820_v3, %v2819_v17  ;;  %v2860_v23 = vpop.f32.mrf.mxu1 }
 0x12d   : > { %v2861_v24 = vadd.f32 %v2860_v23, %v2859_v19  ;;  %v2878_v8 = vpop.f32.mrf.mxu0 }
 0x12e   : > { %v1955_v27 = vadd.f32 %v2821_v22, %v1890_v25  ;;  %v3916_v29 = vpop.f32.mrf.mxu1 }
 0x12f   : > { %v2879_v30 = vpop.f32.mrf.mxu0 }
 0x130   : > { %v3914_v28 = vadd.f32 %v2861_v24, %v1955_v27  ;;  %v2880_v31 = vadd.f32 %v2879_v30, %v2878_v8  ;;  %v2919_v32 = vpop.f32.mrf.mxu1 }
 0x131   : > { %v2881_v33 = vpop.f32.mrf.mxu0 }
 0x132   : > { %4033 = vst [vmem:[#allocation2_spill] sm:$0xff] %v3914_v28  ;;  %v3918_v34 = vadd.f32 %v2880_v31, %v1993_v37  ;;  %v2921_v20 = vpop.f32.mrf.mxu1 }
 0x133   : > { %v2882_v36 = vpop.f32.mrf.mxu0 }
 0x134   : > { %v2922_v38 = vpop.f32.mrf.mxu1 }
 0x135   : > { %v2884_v39 = vpop.f32.mrf.mxu0 }
 0x136   : > { %v3920_v40 = vpop.f32.mrf.mxu1 }
 0x137   : > { %v2885_v42 = vpop.f32.mrf.mxu0 }
 0x138   : > { %v2925_v44 = vpop.f32.mrf.mxu1 }
 0x139   : > { %v2887_v25 = vpop.f32.mrf.mxu0 }
 0x13a   : > { %v3922_v26 = vpop.f32.mrf.mxu1 }
 0x13b   : > { %v2888_v45 = vpop.f32.mrf.mxu0 }
 0x13c   : > { %v3924_v46 = vpop.f32.mrf.mxu1 }
 0x13d   : > { %v2890_v47 = vpop.f32.mrf.mxu0 }
 0x13e   : > { %v3926_v48 = vpop.f32.mrf.mxu1 }
 0x13f   : > { %v2891_v49 = vpop.f32.mrf.mxu0 }
 0x140   : > { %v3928_v37 = vpop.f32.mrf.mxu1 }
 0x141   : > { %v2893_v50 = vpop.f32.mrf.mxu0 }
 0x142   : > { %v3930_v52 = vpop.f32.mrf.mxu1 }
 0x143   : > { %v2894_v35 = vpop.f32.mrf.mxu0 }
 0x144   : > { %v3932_v54 = vpop.f32.mrf.mxu1 }
 0x145   : > { %v3934_v55 = vpop.f32.mrf.mxu0 }
 0x146   : > { %v3936_v57 = vpop.f32.mrf.mxu1 }
 0x147   : > { %v3938_v41 = vpop.f32.mrf.mxu0 }
 0x148   : > { %v3940_v59 = vpop.f32.mrf.mxu1 }
 0x149   : > { %v3942_v60 = vpop.f32.mrf.mxu0 }
 0x14a   : > { %v3944_v61 = vpop.f32.mrf.mxu1 }
 0x14b   : > { %4034 = vst [vmem:[#allocation3_spill] sm:$0xff] %v3944_v61  ;;  %v3946_v62 = vpop.f32.mrf.mxu0 }
 0x14c   : > { %v3948_v63 = vpop.f32.mrf.mxu1 }
 0x14d   : > { %4035 = vst [vmem:[#allocation4_spill] sm:$0xff] %v3948_v63  ;;  %v2958_v0 = vpop.f32.mrf.mxu0  ;;  %v2883_v63 = vadd.f32 %v2882_v36, %v2881_v33 }
 0x14e   : > { %v2998_v1 = vpop.f32.mrf.mxu1 }
 0x14f   : > { %v2959_v2 = vpop.f32.mrf.mxu0 }
 0x150   : > { %v2999_v51 = vpop.f32.mrf.mxu1 }
 0x151   : > { %v2961_v4 = vpop.f32.mrf.mxu0 }
 0x152   : > { %v3001_v5 = vpop.f32.mrf.mxu1 }
 0x153   : > { %v2962_v7 = vpop.f32.mrf.mxu0 }
 0x154   : > { %v3002_v9 = vpop.f32.mrf.mxu1  ;;  %v2963_v33 = vadd.f32 %v2962_v7, %v2961_v4 }
 0x155   : > { %v2964_v10 = vpop.f32.mrf.mxu0 }
 0x156   : > { %v3004_v56 = vpop.f32.mrf.mxu1 }
 0x157   : > { %v2965_v12 = vpop.f32.mrf.mxu0 }
 0x158   : > { %v3005_v13 = vpop.f32.mrf.mxu1 }
 0x159   : > { %v2967_v14 = vpop.f32.mrf.mxu0 }
 0x15a   : > { %v3950_v15 = vpop.f32.mrf.mxu1 }
 0x15b   : > { %4036 = vst [vmem:[#allocation5_spill] sm:$0xff] %v3950_v15  ;;  %v2968_v16 = vpop.f32.mrf.mxu0 }
 0x15c   : > { %v3952_v17 = vpop.f32.mrf.mxu1 }
 0x15d   : > { %4037 = vst [vmem:[#allocation6_spill] sm:$0xff] %v3952_v17  ;;  %v2970_v18 = vpop.f32.mrf.mxu0 }
 0x15e   : > { %v3954_v19 = vpop.f32.mrf.mxu1 }
 0x15f   : > { %4038 = vst [vmem:[#allocation7_spill] sm:$0xff] %v3954_v19  ;;  %v2971_v3 = vpop.f32.mrf.mxu0 }
 0x160   : > { %v3956_v22 = vpop.f32.mrf.mxu1 }
 0x161   : > { %4039 = vst [vmem:[#allocation8_spill] sm:$0xff] %v3956_v22  ;;  %v3958_v23 = vpop.f32.mrf.mxu0  ;;  %v2920_v22 = vadd.f32 %v2919_v32, %v3916_v29 }
 0x162   : > { %4040 = vst [vmem:[#allocation9_spill] sm:$0xff] %v3958_v23  ;;  %v3960_v24 = vpop.f32.mrf.mxu1  ;;  %v2886_v23 = vadd.f32 %v2885_v42, %v2884_v39  ;;  %v2892_v39 = vadd.f32 %v2891_v49, %v2890_v47 }
 0x163   : > { %4041 = vst [vmem:[#allocation10_spill] sm:$0xff] %v3960_v24  ;;  %v3962_v27 = vpop.f32.mrf.mxu0  ;;  %v2061_v24 = vadd.f32 %v2883_v63, %v3900_v43  ;;  %v2123_v36 = vadd.f32 %v2920_v22, %v3918_v34 }
 0x164   : > { %4042 = vst [vmem:[#allocation11_spill] sm:$0xff] %v3962_v27  ;;  %v3964_v8 = vpop.f32.mrf.mxu1  ;;  %v2923_v27 = vadd.f32 %v2922_v38, %v2921_v20  ;;  %v3000_v20 = vadd.f32 %v2999_v51, %v2998_v1  ;;  %v3006_v51 = vadd.f32 %v3005_v13, %v3004_v56  ;;  %v4051_v56 = vld [vmem:[#allocation6_spill] sm:$0xff] }
 0x165   : > { %4043 = vst [vmem:[#allocation12_spill] sm:$0xff] %v3964_v8  ;;  %v3966_v30 = vpop.f32.mrf.mxu0 }
 0x166   : > { %4044 = vst [vmem:[#allocation13_spill] sm:$0xff] %v3966_v30  ;;  %v3968_v31 = vpop.f32.mrf.mxu1  ;;  %v2960_v30 = vadd.f32 %v2959_v2, %v2958_v0  ;;  %v2126_v32 = vadd.f32 %v2923_v27, %v2061_v24  ;;  %v3003_v0 = vadd.f32 %v3002_v9, %v3001_v5  ;;  %v2966_v2 = vadd.f32 %v2965_v12, %v2964_v10  ;;  %v4054_v24 = vld [vmem:[#allocation2_spill] sm:$0xff]  ;;  %v4056_v27 = vld [vmem:[#allocation4_spill] sm:$0xff] }
 0x167   : > { %4045 = vst [vmem:[#allocation14_spill] sm:$0xff] %v3968_v31  ;;  %v3970_v61 = vpop.f32.mrf.mxu0  ;;  %v2926_v31 = vadd.f32 %v2925_v44, %v3920_v40  ;;  %v2074_v44 = vadd.f32 %v2892_v39, %v3907_v6 }
 0x168   : > { %v3972_v28 = vpop.f32.mrf.mxu1  ;;  %v2188_v43 = vadd.f32 %v2960_v30, %v2123_v36  ;;  %v2191_v63 = vadd.f32 %v2963_v33, %v2126_v32  ;;  %v4058_v33 = vld [vmem:[#allocation8_spill] sm:$0xff] }
 0x169   : > { %4046 = vst [vmem:[#allocation15_spill] sm:$0xff] %v3972_v28  ;;  %v3974_v19 = vpop.f32.mrf.mxu0  ;;  %v2066_v28 = vadd.f32 %v2886_v23, %v3902_v53  ;;  %v2929_v53 = vadd.f32 %v3924_v46, %v3922_v26 }
 0x16a   : > { %4047 = vst [vmem:[#allocation16_spill] sm:$0xff] %v3974_v19  ;;  %v3977_v17 = vpop.f32.mrf.mxu1  ;;  %v2889_v19 = vadd.f32 %v2888_v45, %v2887_v25  ;;  %v2932_v25 = vadd.f32 %v3928_v37, %v3926_v48  ;;  %v2935_v45 = vadd.f32 %v3932_v54, %v3930_v52  ;;  %v2256_v26 = vadd.f32 %v3003_v0, %v2191_v63  ;;  %v4060_v0 = vld [vmem:[#allocation10_spill] sm:$0xff] }
 0x16b   : > { %4048 = vst [vmem:[#allocation17_spill] sm:$0xff] %v3977_v17  ;;  %v3980_v8 = vpop.f32.mrf.mxu0  ;;  %v2895_v17 = vadd.f32 %v2894_v35, %v2893_v50  ;;  %v2131_v4 = vadd.f32 %v2926_v31, %v2066_v28  ;;  %v2898_v28 = vadd.f32 %v3938_v41, %v3934_v55  ;;  %v2969_v35 = vadd.f32 %v2968_v16, %v2967_v14  ;;  %v4050_v14 = vld [vmem:[#allocation5_spill] sm:$0xff] }
 0x16c   : > { %v3982_v15 = vpop.f32.mrf.mxu1  ;;  %v2069_v34 = vadd.f32 %v2889_v19, %v3905_v58  ;;  %v2253_v58 = vadd.f32 %v3000_v20, %v2188_v43  ;;  %v2901_v48 = vadd.f32 %v3946_v62, %v3942_v60  ;;  %v2972_v37 = vadd.f32 %v2971_v3, %v2970_v18  ;;  %v4052_v16 = vld [vmem:[#allocation9_spill] sm:$0xff] }
 0x16d   : > { %4049 = vst [vmem:[#allocation18_spill] sm:$0xff] %v3982_v15  ;;  %v2077_v50 = vadd.f32 %v2895_v17, %v3910_v11  ;;  %v2196_v46 = vadd.f32 %v2966_v2, %v2131_v4  ;;  %v2139_v54 = vadd.f32 %v2932_v25, %v2074_v44  ;;  %v2938_v11 = vadd.f32 %v3940_v59, %v3936_v57  ;;  %v4053_v17 = vld [vmem:[#allocation11_spill] sm:$0xff]  ;;  %v4059_v32 = vld [vmem:[#allocation13_spill] sm:$0xff]  ;;  %v4061_v2 = vld [vmem:[#allocation12_spill] sm:$0xff] }
 0x16e   : > { %v3038_v29 = vpop.f32.mrf.mxu0  ;;  %v3050_v42 = vpop.f32.mrf.mxu1  ;;  %v2134_v7 = vadd.f32 %v2929_v53, %v2069_v34  ;;  %v2082_v10 = vadd.f32 %v2898_v28, %v3912_v21  ;;  %v3009_v13 = vadd.f32 %v4051_v56, %v4050_v14  ;;  %v2975_v19 = vadd.f32 %v4053_v17, %v4052_v16  ;;  %v4055_v59 = vld [vmem:[#allocation3_spill] sm:$0xff] }
 0x16f   : > { %v2142_v60 = vadd.f32 %v2935_v45, %v2077_v50  ;;  %v2261_v62 = vadd.f32 %v3006_v51, %v2196_v46  ;;  %v2085_v57 = vadd.f32 %v2901_v48, %v4054_v24  ;;  %v2941_v30 = vadd.f32 %v4056_v27, %v4055_v59  ;;  %v4057_v21 = vld [vmem:[#allocation7_spill] sm:$0xff] }
 0x170   : > { %v3039_v38 = vpop.f32.mrf.mxu0  ;;  %v3051_v15 = vpop.f32.mrf.mxu1  ;;  %v2199_v12 = vadd.f32 %v2969_v35, %v2134_v7  ;;  %v2204_v31 = vadd.f32 %v2972_v37, %v2139_v54  ;;  %v3012_v36 = vadd.f32 %v4058_v33, %v4057_v21  ;;  %v2978_v39 = vadd.f32 %v3970_v61, %v4059_v32  ;;  %v4063_v35 = vld [vmem:[#allocation14_spill] sm:$0xff]  ;;  %v4064_v61 = vld [vmem:[#allocation15_spill] sm:$0xff] }
 0x171   : > { %v3040_v47 = vadd.f32 %v3039_v38, %v3038_v29  ;;  %v2147_v20 = vadd.f32 %v2938_v11, %v2082_v10  ;;  %v2207_v63 = vadd.f32 %v2975_v19, %v2142_v60  ;;  %v3015_v4 = vadd.f32 %v4061_v2, %v4060_v0 }
 0x172   : > { %v3041_v40 = vpop.f32.mrf.mxu0  ;;  %v3053_v49 = vpop.f32.mrf.mxu1  ;;  %v2264_v38 = vadd.f32 %v3009_v13, %v2199_v12  ;;  %v3052_v25 = vadd.f32 %v3051_v15, %v3050_v42  ;;  %v2150_v50 = vadd.f32 %v2941_v30, %v2085_v57  ;;  %v2269_v28 = vadd.f32 %v3012_v36, %v2204_v31 }
 0x173   : > { %v2318_v9 = vadd.f32 %v3040_v47, %v2253_v58  ;;  %v2212_v58 = vadd.f32 %v2978_v39, %v2147_v20  ;;  %v2272_v51 = vadd.f32 %v3015_v4, %v2207_v63 }
 0x174   : > { %v3042_v1 = vpop.f32.mrf.mxu0  ;;  %v3054_v5 = vpop.f32.mrf.mxu1  ;;  %v4066_v7 = vld [vmem:[#allocation18_spill] sm:$0xff]  ;;  %v2334_v54 = vadd.f32 %v3052_v25, %v2269_v28 }
 0x175   : > { %v3043_v6 = vadd.f32 %v3042_v1, %v3041_v40  ;;  %v4062_v40 = vld [vmem:[#allocation16_spill] sm:$0xff]  ;;  %v3018_v1 = vadd.f32 %v4064_v61, %v4063_v35 }
 0x176   : > { %v3044_v52 = vpop.f32.mrf.mxu0  ;;  %v3056_v41 = vpop.f32.mrf.mxu1  ;;  %v2981_v44 = vadd.f32 %v3980_v8, %v4062_v40 }
 0x177   : > { %v2321_v55 = vadd.f32 %v3043_v6, %v2256_v26  ;;  %v3055_v26 = vadd.f32 %v3054_v5, %v3053_v49  ;;  %v4065_v6 = vld [vmem:[#allocation17_spill] sm:$0xff]  ;;  %v2277_v15 = vadd.f32 %v3018_v1, %v2212_v58 }
 0x178   : > { %v3045_v22 = vpop.f32.mrf.mxu0  ;;  %v3057_v23 = vpop.f32.mrf.mxu1  ;;  %v3021_v48 = vadd.f32 %v4066_v7, %v4065_v6 }
 0x179   : > { %v2348_v18 = vadd.f32 %v2321_v55, %v2318_v9  ;;  %v3046_v3 = vadd.f32 %v3045_v22, %v3044_v52  ;;  %v2215_v52 = vadd.f32 %v2981_v44, %v2150_v50  ;;  %v3058_v11 = vadd.f32 %v3057_v23, %v3056_v41 }
 0x17a   : > { %v3047_v29 = vpop.f32.mrf.mxu0  ;;  %v3059_v34 = vpop.f32.mrf.mxu1  ;;  %v2337_v42 = vadd.f32 %v3055_v26, %v2272_v51 }
 0x17b   : > { %v2326_v43 = vadd.f32 %v3046_v3, %v2261_v62  ;;  %v2280_v14 = vadd.f32 %v3021_v48, %v2215_v52  ;;  %v2342_v56 = vadd.f32 %v3058_v11, %v2277_v15 }
 0x17c   : > { %v3048_v53 = vpop.f32.mrf.mxu0  ;;  %v3060_v37 = vpop.f32.mrf.mxu1 }
 0x17d   : > { %v2349_v45 = vadd.f32 %v2348_v18, %v2326_v43  ;;  %v3049_v47 = vadd.f32 %v3048_v53, %v3047_v29  ;;  %v3061_v12 = vadd.f32 %v3060_v37, %v3059_v34 }
 0x17f   : > { %v2329_v46 = vadd.f32 %v3049_v47, %v2264_v38  ;;  %v2345_v16 = vadd.f32 %v3061_v12, %v2280_v14 }
 0x181   : > { %v2350_v8 = vadd.f32 %v2349_v45, %v2329_v46 }
 0x183   : > { %v2351_v10 = vadd.f32 %v2350_v8, %v2334_v54 }
 0x185   : > { %v2352_v13 = vadd.f32 %v2351_v10, %v2337_v42 }
 0x187   : > { %v2353_v17 = vadd.f32 %v2352_v13, %v2342_v56 }
 0x189   : > { %v2354_v49 = vadd.f32 %v2353_v17, %v2345_v16 }
 0x18b   : > { %v2355_v5 = vrot.slane %v2354_v49, 4 }
 0x18d   : > { %v2356_v19 = vadd.f32 %v2355_v5, %v2354_v49 }
 0x18f   : > { %v2357_v22 = vrot.slane %v2356_v19, 2 }
 0x191   : > { %v2358_v60 = vadd.f32 %v2357_v22, %v2356_v19 }
 0x193   : > { %v2359_v62 = vrot.slane %v2358_v60, 1 }
 0x195   : > { %v2360_v18 = vadd.f32 %v2359_v62, %v2358_v60 }
 0x197   : > { %v2362_v3 = vmul.f32 0.015625, %v2360_v18 }
 0x199   : > { %v2363_v24 = vsub.f32 %v2318_v9, %v2362_v3  ;;  %v2364_v41 = vsub.f32 %v2321_v55, %v2362_v3  ;;  %v2365_v23 = vsub.f32 %v2326_v43, %v2362_v3  ;;  %v2366_v57 = vsub.f32 %v2329_v46, %v2362_v3 }
 0x19a   : > { %v2367_v59 = vsub.f32 %v2334_v54, %v2362_v3  ;;  %v2368_v27 = vsub.f32 %v2337_v42, %v2362_v3  ;;  %v2369_v30 = vsub.f32 %v2342_v56, %v2362_v3  ;;  %v2370_v31 = vsub.f32 %v2345_v16, %v2362_v3 }
 0x19b   : > { %v2371_v21 = vmul.f32 %v2363_v24, %v2363_v24  ;;  %v2372_v33 = vmul.f32 %v2364_v41, %v2364_v41  ;;  %v2373_v36 = vmul.f32 %v2365_v23, %v2365_v23  ;;  %v2374_v32 = vmul.f32 %v2366_v57, %v2366_v57 }
 0x19c   : > { %v2375_v20 = vmul.f32 %v2367_v59, %v2367_v59  ;;  %v2376_v63 = vmul.f32 %v2368_v27, %v2368_v27  ;;  %v2377_v2 = vmul.f32 %v2369_v30, %v2369_v30  ;;  %v2378_v55 = vmul.f32 %v2370_v31, %v2370_v31 }
 0x19d   : > { %v2379_v29 = vadd.f32 %v2372_v33, %v2371_v21 }
 0x19f   : > { %v2380_v39 = vadd.f32 %v2379_v29, %v2373_v36 }
 0x1a1   : > { %v2381_v38 = vadd.f32 %v2380_v39, %v2374_v32 }
 0x1a3   : > { %v2382_v0 = vadd.f32 %v2381_v38, %v2375_v20 }
 0x1a5   : > { %v2383_v9 = vadd.f32 %v2382_v0, %v2376_v63 }
 0x1a7   : > { %v2384_v43 = vadd.f32 %v2383_v9, %v2377_v2 }
 0x1a9   : > { %v2385_v4 = vadd.f32 %v2384_v43, %v2378_v55 }
 0x1ab   : > { %v2386_v34 = vrot.slane %v2385_v4, 4 }
 0x1ad   : > { %v2387_v53 = vadd.f32 %v2386_v34, %v2385_v4 }
 0x1af   : > { %v2388_v40 = vrot.slane %v2387_v53, 2 }
 0x1b1   : > { %v2389_v44 = vadd.f32 %v2388_v40, %v2387_v53 }
 0x1b3   : > { %v2390_v25 = vrot.slane %v2389_v44, 1 }
 0x1b5   : > { %v2391_v45 = vadd.f32 %v2390_v25, %v2389_v44 }
 0x1b7   : > { %v2392_v47 = vmul.f32 0.015625, %v2391_v45 }
 0x1b9   : > { %v2393_v50 = vadd.f32 1e-05, %v2392_v47 }
 0x1bb   : > { %3339 = vrsqrt.f32 %v2393_v50 }
 0x1c8   : > { %v3340_v28 = vpop.eup %3339 }
 0x1c9   : > { %v2395_v58 = vmul.f32 %v3340_v28, %v2363_v24  ;;  %v2396_v35 = vmul.f32 %v3340_v28, %v2364_v41  ;;  %v2397_v61 = vmul.f32 %v3340_v28, %v2365_v23  ;;  %v2398_v1 = vmul.f32 %v3340_v28, %v2366_v57 }
 0x1ca   : > { %v2399_v26 = vmul.f32 %v3340_v28, %v2367_v59  ;;  %v2400_v46 = vmul.f32 %v3340_v28, %v2368_v27  ;;  %v2401_v51 = vmul.f32 %v3340_v28, %v2369_v30  ;;  %v2402_v6 = vmul.f32 %v3340_v28, %v2370_v31 }
 0x1cb   : > { %v2403_v7 = vmax.f32 %v2395_v58, 0.0  ;;  %v2404_v48 = vmax.f32 %v2396_v35, 0.0  ;;  %v2405_v37 = vmax.f32 %v2397_v61, 0.0  ;;  %v2406_v52 = vmax.f32 %v2398_v1, 0.0 }
 0x1cc   : > { %v2407_v54 = vmax.f32 %v2399_v26, 0.0  ;;  %v2408_v11 = vmax.f32 %v2400_v46, 0.0  ;;  %v2409_v8 = vmax.f32 %v2401_v51, 0.0  ;;  %v2410_v15 = vmax.f32 %v2402_v6, 0.0 }
 0x1cd   : > { %2411 = vst [vmem:[%s170_s19] sm:$0xff] %v2403_v7  ;;  %2412 = vst [vmem:[%s170_s19 + $0x8] sm:$0xff] %v2404_v48 }
 0x1ce   : > { %2413 = vst [vmem:[%s170_s19 + $0x10] sm:$0xff] %v2405_v37  ;;  %2414 = vst [vmem:[%s170_s19 + $0x18] sm:$0xff] %v2406_v52 }
 0x1cf   : > { %2415 = vst [vmem:[%s170_s19 + $0x20] sm:$0xff] %v2407_v54  ;;  %2416 = vst [vmem:[%s170_s19 + $0x28] sm:$0xff] %v2408_v11 }
 0x1d0   : > { %2417 = vst [vmem:[%s170_s19 + $0x30] sm:$0xff] %v2409_v8  ;;  %2418 = vst [vmem:[%s170_s19 + $0x38] sm:$0xff] %v2410_v15 }
 0x1d1 PF: > { %s13_s12 = sadd.s32 1, %s3347_s12  }
 0x1d2   : > { %p10_p4 = scmp.ge.s32.totalorder %s13_s12, 4  }
 0x1d4   :  { %12 = sbr.rel (!%p10_p4) target bundleno = 1 (0x1), region = 62 }

// kernel: resnet_forward.46
= control target key start
LH: loop header
LB: loop body
LE: loop exit
PB: predicated region body
PF: predicated region fallthrough
CT: control target
= control target key end

     0   :  { %s3833_s12 = smov 0   ;;  %s4987_s0 = inlined_call_operand.vmem [shape: bf16[2,256,1152], index: 0, kind: input, shape index: {}]   ;;  %s4988_s1 = inlined_call_operand.vmem [shape: bf16[1152,128], index: 1, kind: input, shape index: {}]   ;;  %s4989_s2 = inlined_call_operand.vmem [shape: f32[1,128], index: 2, kind: input, shape index: {}]   ;;  %s4990_s3 = inlined_call_operand.vmem [shape: f32[2,256,128], index: 3, kind: output, shape index: {}]  }
   0x1 LB: > { %s2750_s13 = sadd.s32 4294967295, %s3811_s12   ;;  %p2754_p0 = scmp.ge.s32.totalorder %s3811_s12, 1  ;;  %s3811_s12 = sphi %s3833_s12, %s13_s12  }
   0x2   : > { %p137_p1 = scmp.lt.s32.totalorder %s3811_s12, 3 }
   0x4   : > { %p138_p2 = pnand %p2754_p0, %p137_p1 }
   0x6   : > { %141 = sbr.rel (%p138_p2) target bundleno = 673 (0x2a1), region = 32 }
   0xb   : > { %v3523_v0 = vld [vmem:[%s4988_s1 + $0x78] sm:$0xff]   ;;  %v3525_v2 = vld [vmem:[%s4988_s1 + $0x70] sm:$0xff]   ;;  %p161_p3 = scmp.lt.s32.totalorder %s2750_s13, 1  ;;  %v3527_v4 = vld [vmem:[%s4988_s1 + $0x68] sm:$0xff]  }
   0xc   : > { %v3524_v1 = vld [vmem:[%s4988_s1 + $0x38] sm:$0xff]   ;;  %2978 = vmatprep.subr.bf16.mxu0 %v3523_v0  ;;  %3498 = vmatprep.subr.bf16.mxu1 %v3523_v0  ;;  %v3526_v3 = vld [vmem:[%s4988_s1 + $0x30] sm:$0xff]   ;;  %v3528_v5 = vld [vmem:[%s4988_s1 + $0x28] sm:$0xff]  }
   0xd   : > { %2979 = vmatpush3.bf16.msra.mxu0 %v3524_v1  ;;  %3506 = vmatpush3.bf16.msra.mxu1 %v3524_v1  ;;  %s5016_s13 = smov (!%p161_p3, %s2750_s13), 1  ;;  %v3529_v6 = vld [vmem:[%s4988_s1 + $0x60] sm:$0xff]   ;;  %v3531_v8 = vld [vmem:[%s4988_s1 + $0x58] sm:$0xff]   ;;  %v3533_v10 = vld [vmem:[%s4988_s1 + $0x50] sm:$0xff]  }
   0xe   : > { %2980 = vmatprep.subr.bf16.mxu0 %v3525_v2  ;;  %3499 = vmatprep.subr.bf16.mxu1 %v3525_v2  ;;  %s3514_s28 = smul.u32 1152, %s5016_s13  ;;  %v3530_v7 = vld [vmem:[%s4988_s1 + $0x20] sm:$0xff]   ;;  %v3532_v9 = vld [vmem:[%s4988_s1 + $0x18] sm:$0xff]   ;;  %v3534_v13 = vld [vmem:[%s4988_s1 + $0x10] sm:$0xff]  }
   0xf   : > { %v3535_v14 = vld [vmem:[%s4988_s1 + $0x48] sm:$0xff]   ;;  %v3537_v16 = vld [vmem:[%s4988_s1 + $0x40] sm:$0xff]   ;;  %v3545_v18 = vld [vmem:[%s4988_s1 + $0xf8] sm:$0xff]  }
  0x10   : > { %s3874_s8 = scalar_lea.vmem %s4987_s0, %s3514_s28  ;;  %v3536_v15 = vld [vmem:[%s4988_s1 + $0x8] sm:$0xff]   ;;  %v3538_v17 = vld [vmem:[%s4988_s1] sm:$0xff]   ;;  %v3546_v21 = vld [vmem:[%s4988_s1 + $0x178] sm:$0xff]  }
  0x11   : > { %2981 = vmatpush3.bf16.msra.mxu0 %v3526_v3  ;;  %3507 = vmatpush3.bf16.msra.mxu1 %v3526_v3  ;;  %v3541_v11 = vld [vmem:[%s3874_s8 + $0x4] ss:$36 sps:$4 sm:$0xff]   ;;  %v3547_v22 = vld [vmem:[%s4988_s1 + $0xb8] sm:$0xff]   ;;  %v3549_v24 = vld [vmem:[%s4988_s1 + $0xf0] sm:$0xff]  }
  0x12   : > { %2982 = vmatprep.subr.bf16.mxu0 %v3527_v4  ;;  %3500 = vmatprep.subr.bf16.mxu1 %v3527_v4  ;;  %v3544_v12 = vld [vmem:[%s3874_s8 + $0x364] ss:$36 sps:$4 sm:$0xff]   ;;  %v3548_v23 = vld [vmem:[%s4988_s1 + $0x138] sm:$0xff]   ;;  %v3551_v25 = vld [vmem:[%s3874_s8 + $0x4c] ss:$36 sps:$4 sm:$0xff]  }
  0x13   : > { %1683 = vmatprep.mubr.bf16.mxu0 %v3541_v11  ;;  %1779 = vmatprep.mubr.bf16.mxu1 %v3544_v12  ;;  %v3539_v19 = vld [vmem:[%s3874_s8] ss:$36 sps:$4 sm:$0xff]   ;;  %v3553_v26 = vld [vmem:[%s3874_s8 + $0x3ac] ss:$36 sps:$4 sm:$0xff]   ;;  %v3563_v35 = vld [vmem:[%s3874_s8 + $0x94] ss:$36 sps:$4 sm:$0xff]  }
  0x14   : > { %v3542_v20 = vld [vmem:[%s3874_s8 + $0x360] ss:$36 sps:$4 sm:$0xff]   ;;  %v3560_v27 = vld [vmem:[%s4988_s1 + $0x170] sm:$0xff]   ;;  %v3555_v30 = vld [vmem:[%s3874_s8 + $0x48] ss:$36 sps:$4 sm:$0xff]  }
  0x15   : > { %2983 = vmatpush3.bf16.msra.mxu0 %v3528_v5  ;;  %3508 = vmatpush3.bf16.msra.mxu1 %v3528_v5  ;;  %v3550_v28 = vld [vmem:[%s4988_s1 + $0xb0] sm:$0xff]   ;;  %v3556_v31 = vld [vmem:[%s3874_s8 + $0x3a8] ss:$36 sps:$4 sm:$0xff]   ;;  %v3559_v34 = vld [vmem:[%s4988_s1 + $0xe0] sm:$0xff]  }
  0x16   : > { %2984 = vmatprep.subr.bf16.mxu0 %v3529_v6  ;;  %3501 = vmatprep.subr.bf16.mxu1 %v3529_v6  ;;  %v3562_v29 = vld [vmem:[%s4988_s1 + $0x130] sm:$0xff]   ;;  %v3557_v32 = vld [vmem:[%s4988_s1 + $0xe8] sm:$0xff]   ;;  %v3561_v37 = vld [vmem:[%s4988_s1 + $0xa0] sm:$0xff]  }
  0x17   : > { %v3558_v33 = vld [vmem:[%s4988_s1 + $0xa8] sm:$0xff]   ;;  %v3565_v36 = vld [vmem:[%s3874_s8 + $0x3f4] ss:$36 sps:$4 sm:$0xff]   ;;  %v3573_v45 = vld [vmem:[%s3874_s8 + $0xdc] ss:$36 sps:$4 sm:$0xff]  }
  0x18   : > { %v3569_v38 = vld [vmem:[%s4988_s1 + $0xd8] sm:$0xff]   ;;  %v3567_v39 = vld [vmem:[%s3874_s8 + $0x90] ss:$36 sps:$4 sm:$0xff]   ;;  %v3580_v41 = vld [vmem:[%s4988_s1 + $0x168] sm:$0xff]  }
  0x19   : > { %2985 = vmatpush3.bf16.msra.mxu0 %v3530_v7  ;;  %3509 = vmatpush3.bf16.msra.mxu1 %v3530_v7  ;;  %v3568_v40 = vld [vmem:[%s3874_s8 + $0x3f0] ss:$36 sps:$4 sm:$0xff]   ;;  %v3570_v42 = vld [vmem:[%s4988_s1 + $0x98] sm:$0xff]   ;;  %v3582_v44 = vld [vmem:[%s4988_s1 + $0x128] sm:$0xff]  }
  0x1a   : > { %2986 = vmatprep.subr.bf16.mxu0 %v3531_v8  ;;  %3502 = vmatprep.subr.bf16.mxu1 %v3531_v8  ;;  %v3571_v43 = vld [vmem:[%s4988_s1 + $0xd0] sm:$0xff]   ;;  %v3575_v46 = vld [vmem:[%s3874_s8 + $0x43c] ss:$36 sps:$4 sm:$0xff]   ;;  %v3579_v50 = vld [vmem:[%s4988_s1 + $0xc8] sm:$0xff]  }
  0x1b   : > { %v3572_v47 = vld [vmem:[%s4988_s1 + $0x90] sm:$0xff]   ;;  %v3577_v48 = vld [vmem:[%s3874_s8 + $0xd8] ss:$36 sps:$4 sm:$0xff]   ;;  %v3581_v51 = vld [vmem:[%s4988_s1 + $0x88] sm:$0xff]  }
  0x1c   : > { %v3578_v49 = vld [vmem:[%s3874_s8 + $0x438] ss:$36 sps:$4 sm:$0xff]   ;;  %v3585_v52 = vld [vmem:[%s3874_s8 + $0x124] ss:$36 sps:$4 sm:$0xff]   ;;  %v3589_v56 = vld [vmem:[%s3874_s8 + $0xc] ss:$36 sps:$4 sm:$0xff]  }
  0x1d   : > { %2987 = vmatpush3.bf16.msra.mxu0 %v3532_v9  ;;  %3510 = vmatpush3.bf16.msra.mxu1 %v3532_v9  ;;  %v3583_v53 = vld [vmem:[%s4988_s1 + $0xc0] sm:$0xff]   ;;  %v3587_v58 = vld [vmem:[%s3874_s8 + $0x8] ss:$36 sps:$4 sm:$0xff]   ;;  %v3591_v60 = vld [vmem:[%s4988_s1 + $0x1f8] sm:$0xff]  }
  0x1e   : > { %2988 = vmatprep.subr.bf16.mxu0 %v3533_v10  ;;  %3503 = vmatprep.subr.bf16.mxu1 %v3533_v10  ;;  %v3593_v54 = vld [vmem:[%s4988_s1 + $0x160] sm:$0xff]   ;;  %v3592_v61 = vld [vmem:[%s4988_s1 + $0x1b8] sm:$0xff]   ;;  %v3595_v62 = vld [vmem:[%s3874_s8 + $0x16c] ss:$36 sps:$4 sm:$0xff]  }
  0x1f   : > { %v3594_v55 = vld [vmem:[%s4988_s1 + $0x120] sm:$0xff]   ;;  %v3607_v63 = vld [vmem:[%s4988_s1 + $0x158] sm:$0xff]   ;;  %v3608_v2 = vld [vmem:[%s4988_s1 + $0x1f0] sm:$0xff]  }
  0x20   : > { %v3584_v57 = vld [vmem:[%s4988_s1 + $0x80] sm:$0xff]   ;;  %v3597_v0 = vld [vmem:[%s3874_s8 + $0x54] ss:$36 sps:$4 sm:$0xff]   ;;  %v3599_v4 = vld [vmem:[%s3874_s8 + $0x168] ss:$36 sps:$4 sm:$0xff]  }
  0x21   : > { %2989 = vmatpush3.bf16.msra.mxu0 %v3534_v13  ;;  %3511 = vmatpush3.bf16.msra.mxu1 %v3534_v13  ;;  %v3590_v59 = vld [vmem:[%s3874_s8 + $0x120] ss:$36 sps:$4 sm:$0xff]   ;;  %v3609_v1 = vld [vmem:[%s4988_s1 + $0x118] sm:$0xff]   ;;  %v3610_v3 = vld [vmem:[%s4988_s1 + $0x1b0] sm:$0xff]  }
  0x22   : > { %2990 = vmatprep.subr.bf16.mxu0 %v3535_v14  ;;  %3504 = vmatprep.subr.bf16.mxu1 %v3535_v14  ;;  %v3617_v5 = vld [vmem:[%s4988_s1 + $0x150] sm:$0xff]   ;;  %v3603_v9 = vld [vmem:[%s3874_s8 + $0x9c] ss:$36 sps:$4 sm:$0xff]   ;;  %v3625_v10 = vld [vmem:[%s4988_s1 + $0x1e8] sm:$0xff]  }
  0x23   : > { %v3618_v6 = vld [vmem:[%s4988_s1 + $0x110] sm:$0xff]   ;;  %v3626_v11 = vld [vmem:[%s4988_s1 + $0x1a8] sm:$0xff]   ;;  %v3606_v13 = vld [vmem:[%s3874_s8 + $0x98] ss:$36 sps:$4 sm:$0xff]  }
  0x24   : > { %v3600_v7 = vld [vmem:[%s3874_s8 + $0x50] ss:$36 sps:$4 sm:$0xff]   ;;  %v3611_v14 = vld [vmem:[%s3874_s8 + $0x1fc] ss:$36 sps:$4 sm:$0xff]  }
  0x25   : > { %2991 = vmatpush3.bf16.msra.mxu0 %v3536_v15  ;;  %3512 = vmatpush3.bf16.msra.mxu1 %v3536_v15  ;;  %v3601_v8 = vld [vmem:[%s3874_s8 + $0x1b4] ss:$36 sps:$4 sm:$0xff]   ;;  %v3633_v15 = vld [vmem:[%s4988_s1 + $0x148] sm:$0xff]  }
  0x26   : > { %2992 = vmatprep.subr.bf16.mxu0 %v3537_v16  ;;  %3505 = vmatprep.subr.bf16.mxu1 %v3537_v16  ;;  %v3605_v12 = vld [vmem:[%s3874_s8 + $0x1b0] ss:$36 sps:$4 sm:$0xff]   ;;  %v3634_v16 = vld [vmem:[%s4988_s1 + $0x108] sm:$0xff]  }
  0x29   : > { %2993 = vmatpush3.bf16.msra.mxu0 %v3538_v17  ;;  %3513 = vmatpush3.bf16.msra.mxu1 %v3538_v17  ;;  %v3613_v17 = vld [vmem:[%s3874_s8 + $0xe4] ss:$36 sps:$4 sm:$0xff]  }
  0x2a   : > { %3090 = vmatprep.subr.bf16.mxu1 %v3545_v18  ;;  %3202 = vmatprep.subr.bf16.mxu0 %v3546_v21  ;;  %v3641_v18 = vld [vmem:[%s4988_s1 + $0x1e0] sm:$0xff]  }
  0x2b   : > { %v3643_v21 = vld [vmem:[%s4988_s1 + $0x140] sm:$0xff]  }
  0x2c   : > { %1684 = vmatmul.mubr.bf16.vlgmr.msra.gmra.mxu0 %v3539_v19  ;;  %1780 = vmatmul.mubr.bf16.vlgmr.msra.gmra.mxu1 %v3542_v20  ;;  %v3642_v19 = vld [vmem:[%s4988_s1 + $0x1a0] sm:$0xff]   ;;  %v3615_v20 = vld [vmem:[%s3874_s8 + $0x1f8] ss:$36 sps:$4 sm:$0xff]  }
  0x2d   : > { %3091 = vmatpush3.bf16.msra.mxu1 %v3547_v22  ;;  %3203 = vmatpush3.bf16.msra.mxu0 %v3548_v23  ;;  %v3644_v22 = vld [vmem:[%s4988_s1 + $0x100] sm:$0xff]  }
  0x2e   : > { %3092 = vmatprep.subr.bf16.mxu1 %v3549_v24  ;;  %1691 = vmatprep.mubr.bf16.mxu0 %v3551_v25  ;;  %v3616_v23 = vld [vmem:[%s3874_s8 + $0xe0] ss:$36 sps:$4 sm:$0xff]   ;;  %v3621_v25 = vld [vmem:[%s3874_s8 + $0x12c] ss:$36 sps:$4 sm:$0xff]  }
  0x2f   : > { %1787 = vmatprep.mubr.bf16.mxu1 %v3553_v26  ;;  %3204 = vmatprep.subr.bf16.mxu0 %v3560_v27  ;;  %v3619_v24 = vld [vmem:[%s3874_s8 + $0x244] ss:$36 sps:$4 sm:$0xff]   ;;  %v3657_v26 = vld [vmem:[%s4988_s1 + $0x1d8] sm:$0xff]  }
  0x30   : > { %v3623_v27 = vld [vmem:[%s3874_s8 + $0x240] ss:$36 sps:$4 sm:$0xff]  }
  0x31   : > { %3093 = vmatpush3.bf16.msra.mxu1 %v3550_v28  ;;  %3205 = vmatpush3.bf16.msra.mxu0 %v3562_v29  ;;  %v3658_v28 = vld [vmem:[%s4988_s1 + $0x238] sm:$0xff]  }
  0x32   : > { %3094 = vmatprep.subr.bf16.mxu1 %v3557_v32  ;;  %3206 = vmatprep.subr.bf16.mxu0 %v3580_v41  ;;  %v3659_v29 = vld [vmem:[%s4988_s1 + $0x198] sm:$0xff]   ;;  %v3687_v41 = vld [vmem:[%s4988_s1 + $0x1c8] sm:$0xff]  }
  0x33   : > { %v3629_v32 = vld [vmem:[%s3874_s8 + $0x174] ss:$36 sps:$4 sm:$0xff]  }
  0x34   : > { %1692 = vmatmul.mubr.bf16.gmra.mxu0 %v3555_v30  ;;  %1788 = vmatmul.mubr.bf16.gmra.mxu1 %v3556_v31  ;;  %v3624_v30 = vld [vmem:[%s3874_s8 + $0x128] ss:$36 sps:$4 sm:$0xff]  }
  0x35   : > { %3095 = vmatpush3.bf16.msra.mxu1 %v3558_v33  ;;  %1699 = vmatprep.mubr.bf16.mxu0 %v3563_v35  ;;  %v3627_v31 = vld [vmem:[%s3874_s8 + $0x28c] ss:$36 sps:$4 sm:$0xff]  }
  0x36   : > { %3096 = vmatprep.subr.bf16.mxu1 %v3559_v34  ;;  %1795 = vmatprep.mubr.bf16.mxu1 %v3565_v36  ;;  %v3672_v33 = vld [vmem:[%s4988_s1 + $0x1d0] sm:$0xff]   ;;  %v3631_v34 = vld [vmem:[%s3874_s8 + $0x288] ss:$36 sps:$4 sm:$0xff]  }
  0x37   : > { %3207 = vmatpush3.bf16.msra.mxu0 %v3582_v44  ;;  %v3632_v35 = vld [vmem:[%s3874_s8 + $0x170] ss:$36 sps:$4 sm:$0xff]   ;;  %v3647_v44 = vld [vmem:[%s3874_s8 + $0x204] ss:$36 sps:$4 sm:$0xff]  }
  0x38   : > { %3208 = vmatprep.subr.bf16.mxu0 %v3593_v54  ;;  %v3674_v36 = vld [vmem:[%s4988_s1 + $0x190] sm:$0xff]   ;;  %v3662_v54 = vld [vmem:[%s3874_s8 + $0x5c] ss:$36 sps:$4 sm:$0xff]  }
  0x39   : > { %3097 = vmatpush3.bf16.msra.mxu1 %v3561_v37  ;;  %v3635_v37 = vld [vmem:[%s3874_s8 + $0x2d4] ss:$36 sps:$4 sm:$0xff]  }
  0x3a   : > { %3098 = vmatprep.subr.bf16.mxu1 %v3569_v38  ;;  %v3637_v38 = vld [vmem:[%s3874_s8 + $0x1bc] ss:$36 sps:$4 sm:$0xff]  }
  0x3b   : > { %3209 = vmatpush3.bf16.msra.mxu0 %v3594_v55  ;;  %v3673_v55 = vld [vmem:[%s4988_s1 + $0x230] sm:$0xff]  }
  0x3c   : > { %1700 = vmatmul.mubr.bf16.gmra.mxu0 %v3567_v39  ;;  %1796 = vmatmul.mubr.bf16.gmra.mxu1 %v3568_v40  ;;  %v3639_v39 = vld [vmem:[%s3874_s8 + $0x2d0] ss:$36 sps:$4 sm:$0xff]   ;;  %v3640_v40 = vld [vmem:[%s3874_s8 + $0x1b8] ss:$36 sps:$4 sm:$0xff]  }
  0x3d   : > { %3099 = vmatpush3.bf16.msra.mxu1 %v3570_v42  ;;  %1707 = vmatprep.mubr.bf16.mxu0 %v3573_v45  ;;  %v3645_v42 = vld [vmem:[%s3874_s8 + $0x31c] ss:$36 sps:$4 sm:$0xff]  }
  0x3e   : > { %3100 = vmatprep.subr.bf16.mxu1 %v3571_v43  ;;  %1803 = vmatprep.mubr.bf16.mxu1 %v3575_v46  ;;  %v3689_v43 = vld [vmem:[%s4988_s1 + $0x188] sm:$0xff]   ;;  %v3649_v45 = vld [vmem:[%s3874_s8 + $0x318] ss:$36 sps:$4 sm:$0xff]   ;;  %v3650_v46 = vld [vmem:[%s3874_s8 + $0x200] ss:$36 sps:$4 sm:$0xff]  }
  0x3f   : > { %3210 = vmatprep.subr.bf16.mxu0 %v3607_v63  ;;  %v3717_v63 = vld [vmem:[%s4988_s1 + $0x218] sm:$0xff]  }
  0x40   : > { %3211 = vmatpush3.bf16.msra.mxu0 %v3609_v1  ;;  %v3675_v1 = vld [vmem:[%s3874_s8 + $0x324] ss:$36 sps:$4 sm:$0xff]  }
  0x41   : > { %3101 = vmatpush3.bf16.msra.mxu1 %v3572_v47  ;;  %3212 = vmatprep.subr.bf16.mxu0 %v3617_v5  ;;  %v3702_v47 = vld [vmem:[%s4988_s1 + $0x1c0] sm:$0xff]   ;;  %v3743_v5 = vld [vmem:[%s4988_s1 + $0x208] sm:$0xff]  }
  0x42   : > { %3102 = vmatprep.subr.bf16.mxu1 %v3579_v50  ;;  %v3655_v50 = vld [vmem:[%s3874_s8 + $0x14] ss:$36 sps:$4 sm:$0xff]  }
  0x44   : > { %1708 = vmatmul.mubr.bf16.gmra.mxu0 %v3577_v48  ;;  %1804 = vmatmul.mubr.bf16.gmra.mxu1 %v3578_v49  ;;  %v3651_v48 = vld [vmem:[%s3874_s8 + $0x24c] ss:$36 sps:$4 sm:$0xff]   ;;  %v3704_v49 = vld [vmem:[%s4988_s1 + $0x180] sm:$0xff]  }
  0x45   : > { %3103 = vmatpush3.bf16.msra.mxu1 %v3581_v51  ;;  %1715 = vmatprep.mubr.bf16.mxu0 %v3585_v52  ;;  %v3653_v51 = vld [vmem:[%s3874_s8 + $0x10] ss:$36 sps:$4 sm:$0xff]   ;;  %v3656_v52 = vld [vmem:[%s3874_s8 + $0x248] ss:$36 sps:$4 sm:$0xff]  }
  0x46   : > { %3104 = vmatprep.subr.bf16.mxu1 %v3583_v53  ;;  %1844 = vmatprep.mubr.bf16.mxu1 %v3589_v56  ;;  %v3660_v53 = vld [vmem:[%s3874_s8 + $0x294] ss:$36 sps:$4 sm:$0xff]   ;;  %v3688_v56 = vld [vmem:[%s4988_s1 + $0x228] sm:$0xff]  }
  0x47   : > { %3213 = vmatpush3.bf16.msra.mxu0 %v3618_v6  ;;  %v3680_v6 = vld [vmem:[%s3874_s8 + $0xe8] ss:$36 sps:$4 sm:$0xff]  }
  0x48   : > { %3214 = vmatprep.subr.bf16.mxu0 %v3633_v15  ;;  %v3695_v15 = vld [vmem:[%s3874_s8 + $0x178] ss:$36 sps:$4 sm:$0xff]  }
  0x49   : > { %3105 = vmatpush3.bf16.msra.mxu1 %v3584_v57  ;;  %v3664_v57 = vld [vmem:[%s3874_s8 + $0x290] ss:$36 sps:$4 sm:$0xff]  }
  0x4a   : > { %3314 = vmatprep.subr.bf16.mxu1 %v3591_v60  ;;  %v3668_v60 = vld [vmem:[%s3874_s8 + $0xa4] ss:$36 sps:$4 sm:$0xff]  }
  0x4b   : > { %3215 = vmatpush3.bf16.msra.mxu0 %v3634_v16  ;;  %v3696_v16 = vld [vmem:[%s3874_s8 + $0x3fc] ss:$36 sps:$4 sm:$0xff]  }
  0x4c   : > { %1716 = vmatmul.mubr.bf16.gmra.mxu0 %v3590_v59  ;;  %1845 = vmatmul.mubr.bf16.vlgmr.msra.gmra.mxu1 %v3587_v58  ;;  %v3665_v58 = vld [vmem:[%s3874_s8 + $0x58] ss:$36 sps:$4 sm:$0xff]  }
  0x4d   : > { %3315 = vmatpush3.bf16.msra.mxu1 %v3592_v61  ;;  %1723 = vmatprep.mubr.bf16.mxu0 %v3595_v62  ;;  %v3666_v59 = vld [vmem:[%s3874_s8 + $0x2dc] ss:$36 sps:$4 sm:$0xff]  }
  0x4e   : > { %1852 = vmatprep.mubr.bf16.mxu1 %v3597_v0  ;;  %3316 = vmatprep.subr.bf16.mxu1 %v3608_v2  ;;  %v3703_v61 = vld [vmem:[%s4988_s1 + $0x220] sm:$0xff]   ;;  %v3670_v62 = vld [vmem:[%s3874_s8 + $0x2d8] ss:$36 sps:$4 sm:$0xff]   ;;  %v3677_v2 = vld [vmem:[%s3874_s8 + $0xec] ss:$36 sps:$4 sm:$0xff]  }
  0x4f   : > { %3216 = vmatprep.subr.bf16.mxu0 %v3643_v21  ;;  %v3671_v0 = vld [vmem:[%s3874_s8 + $0xa0] ss:$36 sps:$4 sm:$0xff]   ;;  %v3707_v21 = vld [vmem:[%s3874_s8 + $0x20c] ss:$36 sps:$4 sm:$0xff]  }
  0x50   : > { %3217 = vmatpush3.bf16.msra.mxu0 %v3644_v22  ;;  %v3709_v22 = vld [vmem:[%s3874_s8 + $0x440] ss:$36 sps:$4 sm:$0xff]  }
  0x51   : > { %3317 = vmatpush3.bf16.msra.mxu1 %v3610_v3  ;;  %3450 = vmatprep.subr.bf16.mxu0 %v3658_v28  ;;  %v3730_v3 = vld [vmem:[%s4988_s1 + $0x210] sm:$0xff]  }
  0x52   : > { %3318 = vmatprep.subr.bf16.mxu1 %v3625_v10  ;;  %v3685_v10 = vld [vmem:[%s3874_s8 + $0x368] ss:$36 sps:$4 sm:$0xff]  }
  0x54   : > { %1724 = vmatmul.mubr.bf16.gmra.mxu0 %v3599_v4  ;;  %1853 = vmatmul.mubr.bf16.gmra.mxu1 %v3600_v7  ;;  %v3679_v4 = vld [vmem:[%s3874_s8 + $0x320] ss:$36 sps:$4 sm:$0xff]   ;;  %v3681_v7 = vld [vmem:[%s3874_s8 + $0x36c] ss:$36 sps:$4 sm:$0xff]  }
  0x55   : > { %1731 = vmatprep.mubr.bf16.mxu0 %v3601_v8  ;;  %1860 = vmatprep.mubr.bf16.mxu1 %v3603_v9  ;;  %v3683_v8 = vld [vmem:[%s3874_s8 + $0x134] ss:$36 sps:$4 sm:$0xff]   ;;  %v3756_v9 = vld [vmem:[%s4988_s1 + $0x200] sm:$0xff]  }
  0x56   : > { %3319 = vmatpush3.bf16.msra.mxu1 %v3626_v11  ;;  %v3686_v11 = vld [vmem:[%s3874_s8 + $0x130] ss:$36 sps:$4 sm:$0xff]  }
  0x57   : > { %3320 = vmatprep.subr.bf16.mxu1 %v3641_v18  ;;  %v3700_v18 = vld [vmem:[%s3874_s8 + $0x3f8] ss:$36 sps:$4 sm:$0xff]  }
  0x5a   : > { %3321 = vmatpush3.bf16.msra.mxu1 %v3642_v19  ;;  %v3701_v19 = vld [vmem:[%s3874_s8 + $0x1c0] ss:$36 sps:$4 sm:$0xff]  }
  0x5b   : > { %3322 = vmatprep.subr.bf16.mxu1 %v3657_v26  ;;  %v3713_v26 = vld [vmem:[%s3874_s8 + $0x18] ss:$36 sps:$4 sm:$0xff]  }
  0x5c   : > { %1732 = vmatmul.mubr.bf16.gmra.mxu0 %v3605_v12  ;;  %1861 = vmatmul.mubr.bf16.gmra.mxu1 %v3606_v13  ;;  %v3690_v12 = vld [vmem:[%s3874_s8 + $0x3b4] ss:$36 sps:$4 sm:$0xff]   ;;  %v3692_v13 = vld [vmem:[%s3874_s8 + $0x17c] ss:$36 sps:$4 sm:$0xff]  }
  0x5d   : > { %1739 = vmatprep.mubr.bf16.mxu0 %v3611_v14  ;;  %1868 = vmatprep.mubr.bf16.mxu1 %v3613_v17  ;;  %v3694_v14 = vld [vmem:[%s3874_s8 + $0x3b0] ss:$36 sps:$4 sm:$0xff]   ;;  %v3698_v17 = vld [vmem:[%s3874_s8 + $0x1c4] ss:$36 sps:$4 sm:$0xff]  }
  0x5e   : > { %3323 = vmatpush3.bf16.msra.mxu1 %v3659_v29  ;;  %v3720_v29 = vld [vmem:[%s3874_s8 + $0x64] ss:$36 sps:$4 sm:$0xff]  }
  0x5f   : > { %3324 = vmatprep.subr.bf16.mxu1 %v3672_v33  ;;  %v3726_v33 = vld [vmem:[%s3874_s8 + $0xac] ss:$36 sps:$4 sm:$0xff]  }
  0x62   : > { %3325 = vmatpush3.bf16.msra.mxu1 %v3674_v36  ;;  %v3731_v36 = vld [vmem:[%s3874_s8 + $0x32c] ss:$36 sps:$4 sm:$0xff]  }
  0x63   : > { %3326 = vmatprep.subr.bf16.mxu1 %v3687_v41  ;;  %v3739_v41 = vld [vmem:[%s3874_s8 + $0x13c] ss:$36 sps:$4 sm:$0xff]  }
  0x64   : > { %1740 = vmatmul.mubr.bf16.gmra.mxu0 %v3615_v20  ;;  %1869 = vmatmul.mubr.bf16.gmra.mxu1 %v3616_v23  ;;  %v3705_v20 = vld [vmem:[%s3874_s8 + $0x444] ss:$36 sps:$4 sm:$0xff]  }
  0x65   : > { %1747 = vmatprep.mubr.bf16.mxu0 %v3619_v24  ;;  %1876 = vmatprep.mubr.bf16.mxu1 %v3621_v25  ;;  %v3710_v23 = vld [vmem:[%s3874_s8 + $0x208] ss:$36 sps:$4 sm:$0xff]   ;;  %v3711_v24 = vld [vmem:[%s3874_s8 + $0x254] ss:$36 sps:$4 sm:$0xff]   ;;  %v3715_v25 = vld [vmem:[%s3874_s8 + $0x1c] ss:$36 sps:$4 sm:$0xff]  }
  0x66   : > { %3327 = vmatpush3.bf16.msra.mxu1 %v3689_v43  ;;  %v3742_v43 = vld [vmem:[%s3874_s8 + $0x138] ss:$36 sps:$4 sm:$0xff]  }
  0x67   : > { %3328 = vmatprep.subr.bf16.mxu1 %v3702_v47 }
  0x6a   : > { %3329 = vmatpush3.bf16.msra.mxu1 %v3704_v49 }
  0x6c   : > { %1748 = vmatmul.mubr.bf16.gmra.mxu0 %v3623_v27  ;;  %1877 = vmatmul.mubr.bf16.gmra.mxu1 %v3624_v30  ;;  %v3716_v27 = vld [vmem:[%s3874_s8 + $0x250] ss:$36 sps:$4 sm:$0xff]   ;;  %v3722_v30 = vld [vmem:[%s3874_s8 + $0x298] ss:$36 sps:$4 sm:$0xff]  }
  0x6d   : > { %1755 = vmatprep.mubr.bf16.mxu0 %v3627_v31  ;;  %1884 = vmatprep.mubr.bf16.mxu1 %v3629_v32  ;;  %v3723_v31 = vld [vmem:[%s3874_s8 + $0x60] ss:$36 sps:$4 sm:$0xff]  }
  0x6e   : > { %v3724_v32 = vld [vmem:[%s3874_s8 + $0x2e4] ss:$36 sps:$4 sm:$0xff]  }
  0x74   : > { %1756 = vmatmul.mubr.bf16.gmra.mxu0 %v3631_v34  ;;  %1885 = vmatmul.mubr.bf16.gmra.mxu1 %v3632_v35  ;;  %v3728_v34 = vld [vmem:[%s3874_s8 + $0x2e0] ss:$36 sps:$4 sm:$0xff]   ;;  %v3729_v35 = vld [vmem:[%s3874_s8 + $0xa8] ss:$36 sps:$4 sm:$0xff]  }
  0x75   : > { %1763 = vmatprep.mubr.bf16.mxu0 %v3635_v37  ;;  %1892 = vmatprep.mubr.bf16.mxu1 %v3637_v38  ;;  %v3733_v37 = vld [vmem:[%s3874_s8 + $0xf4] ss:$36 sps:$4 sm:$0xff]   ;;  %v3735_v38 = vld [vmem:[%s3874_s8 + $0x328] ss:$36 sps:$4 sm:$0xff]  }
  0x7c   : > { %1764 = vmatmul.mubr.bf16.gmra.mxu0 %v3639_v39  ;;  %1893 = vmatmul.mubr.bf16.gmra.mxu1 %v3640_v40  ;;  %v3736_v39 = vld [vmem:[%s3874_s8 + $0xf0] ss:$36 sps:$4 sm:$0xff]  }
  0x7d   : > { %1771 = vmatprep.mubr.bf16.mxu0 %v3645_v42  ;;  %1900 = vmatprep.mubr.bf16.mxu1 %v3647_v44  ;;  %v3737_v40 = vld [vmem:[%s3874_s8 + $0x374] ss:$36 sps:$4 sm:$0xff]   ;;  %v3744_v44 = vld [vmem:[%s3874_s8 + $0x3bc] ss:$36 sps:$4 sm:$0xff]  }
  0x7e   : > { %v3741_v42 = vld [vmem:[%s3874_s8 + $0x370] ss:$36 sps:$4 sm:$0xff]  }
  0x84   : > { %1772 = vmatmul.mubr.bf16.gmra.mxu0 %v3649_v45  ;;  %1901 = vmatmul.mubr.bf16.gmra.mxu1 %v3650_v46  ;;  %v3746_v45 = vld [vmem:[%s3874_s8 + $0x184] ss:$36 sps:$4 sm:$0xff]  }
  0x85   : > { %1908 = vmatprep.mubr.bf16.mxu1 %v3651_v48  ;;  %2005 = vmatprep.mubr.bf16.mxu0 %v3655_v50 }
  0x8c   : > { %1909 = vmatmul.mubr.bf16.gmra.mxu1 %v3656_v52  ;;  %2006 = vmatmul.mubr.bf16.vlgmr.msra.gmra.mxu0 %v3653_v51 }
  0x8d   : > { %3451 = vmatpush3.bf16.msra.mxu0 %v3658_v28  ;;  %1916 = vmatprep.mubr.bf16.mxu1 %v3660_v53  ;;  %v3718_v28 = vld [vmem:[%s3874_s8 + $0x29c] ss:$36 sps:$4 sm:$0xff]  }
  0x8e   : > { %2013 = vmatprep.mubr.bf16.mxu0 %v3662_v54  ;;  %3452 = vmatprep.subr.bf16.mxu0 %v3673_v55  ;;  %v3748_v54 = vld [vmem:[%s3874_s8 + $0x3b8] ss:$36 sps:$4 sm:$0xff]  }
  0x91   : > { %3453 = vmatpush3.bf16.msra.mxu0 %v3673_v55  ;;  %v3749_v55 = vld [vmem:[%s3874_s8 + $0x180] ss:$36 sps:$4 sm:$0xff]  }
  0x92   : > { %3454 = vmatprep.subr.bf16.mxu0 %v3688_v56 }
  0x94   : > { %1917 = vmatmul.mubr.bf16.gmra.mxu1 %v3664_v57  ;;  %2014 = vmatmul.mubr.bf16.gmra.mxu0 %v3665_v58  ;;  %v3752_v57 = vld [vmem:[%s3874_s8 + $0x1cc] ss:$36 sps:$4 sm:$0xff]  }
  0x95   : > { %1924 = vmatprep.mubr.bf16.mxu1 %v3666_v59  ;;  %2021 = vmatprep.mubr.bf16.mxu0 %v3668_v60 }
  0x96   : > { %3455 = vmatpush3.bf16.msra.mxu0 %v3688_v56  ;;  %v3750_v56 = vld [vmem:[%s3874_s8 + $0x404] ss:$36 sps:$4 sm:$0xff]  }
  0x97   : > { %3456 = vmatprep.subr.bf16.mxu0 %v3703_v61 }
  0x9a   : > { %3457 = vmatpush3.bf16.msra.mxu0 %v3703_v61 }
  0x9b   : > { %3458 = vmatprep.subr.bf16.mxu0 %v3717_v63 }
  0x9c   : > { %1925 = vmatmul.mubr.bf16.gmra.mxu1 %v3670_v62  ;;  %2022 = vmatmul.mubr.bf16.gmra.mxu0 %v3671_v0 }
  0x9d   : > { %1932 = vmatprep.mubr.bf16.mxu1 %v3675_v1  ;;  %2029 = vmatprep.mubr.bf16.mxu0 %v3677_v2 }
  0x9e   : > { %3459 = vmatpush3.bf16.msra.mxu0 %v3717_v63 }
  0x9f   : > { %3460 = vmatprep.subr.bf16.mxu0 %v3730_v3 }
  0xa2   : > { %3461 = vmatpush3.bf16.msra.mxu0 %v3730_v3 }
  0xa3   : > { %3462 = vmatprep.subr.bf16.mxu0 %v3743_v5 }
  0xa4   : > { %1933 = vmatmul.mubr.bf16.gmra.mxu1 %v3679_v4  ;;  %2030 = vmatmul.mubr.bf16.gmra.mxu0 %v3680_v6  ;;  %v3754_v6 = vld [vmem:[%s3874_s8 + $0x400] ss:$36 sps:$4 sm:$0xff]  }
  0xa5   : > { %1940 = vmatprep.mubr.bf16.mxu1 %v3681_v7  ;;  %2037 = vmatprep.mubr.bf16.mxu0 %v3683_v8  ;;  %v3755_v7 = vld [vmem:[%s3874_s8 + $0x1c8] ss:$36 sps:$4 sm:$0xff]  }
  0xa6   : > { %3463 = vmatpush3.bf16.msra.mxu0 %v3743_v5  ;;  %v3757_v8 = vld [vmem:[%s3874_s8 + $0x44c] ss:$36 sps:$4 sm:$0xff]  }
  0xa7   : > { %3464 = vmatprep.subr.bf16.mxu0 %v3756_v9 }
  0xaa   : > { %3465 = vmatpush3.bf16.msra.mxu0 %v3756_v9  ;;  %v3759_v9 = vld [vmem:[%s3874_s8 + $0x214] ss:$36 sps:$4 sm:$0xff]  }
  0xac   : > { %1941 = vmatmul.mubr.bf16.gmra.mxu1 %v3685_v10  ;;  %2038 = vmatmul.mubr.bf16.gmra.mxu0 %v3686_v11 }
  0xad   : > { %1948 = vmatprep.mubr.bf16.mxu1 %v3690_v12  ;;  %2045 = vmatprep.mubr.bf16.mxu0 %v3692_v13 }
  0xb4   : > { %1949 = vmatmul.mubr.bf16.gmra.mxu1 %v3694_v14  ;;  %2046 = vmatmul.mubr.bf16.gmra.mxu0 %v3695_v15 }
  0xb5   : > { %1956 = vmatprep.mubr.bf16.mxu1 %v3696_v16  ;;  %2053 = vmatprep.mubr.bf16.mxu0 %v3698_v17 }
  0xbc   : > { %1957 = vmatmul.mubr.bf16.gmra.mxu1 %v3700_v18  ;;  %2054 = vmatmul.mubr.bf16.gmra.mxu0 %v3701_v19 }
  0xbd   : > { %1964 = vmatprep.mubr.bf16.mxu1 %v3705_v20  ;;  %2061 = vmatprep.mubr.bf16.mxu0 %v3707_v21 }
  0xc4   : > { %1965 = vmatmul.mubr.bf16.gmra.mxu1 %v3709_v22  ;;  %2062 = vmatmul.mubr.bf16.gmra.mxu0 %v3710_v23  ;;  %v3761_v22 = vld [vmem:[%s3874_s8 + $0x448] ss:$36 sps:$4 sm:$0xff]   ;;  %v3762_v23 = vld [vmem:[%s3874_s8 + $0x210] ss:$36 sps:$4 sm:$0xff]  }
  0xc5   : > { %2069 = vmatprep.mubr.bf16.mxu0 %v3711_v24  ;;  %2166 = vmatprep.mubr.bf16.mxu1 %v3715_v25  ;;  %v3765_v24 = vld [vmem:[%s3874_s8 + $0x25c] ss:$36 sps:$4 sm:$0xff]  }
  0xc6   : > { %v3766_v25 = vld [vmem:[%s3874_s8 + $0x20] ss:$36 sps:$4 sm:$0xff]  }
  0xcc   : > { %2070 = vmatmul.mubr.bf16.gmra.mxu0 %v3716_v27  ;;  %2167 = vmatmul.mubr.bf16.vlgmr.msra.gmra.mxu1 %v3713_v26 }
  0xcd   : > { %2077 = vmatprep.mubr.bf16.mxu0 %v3718_v28  ;;  %2174 = vmatprep.mubr.bf16.mxu1 %v3720_v29 }
  0xd4   : > { %2078 = vmatmul.mubr.bf16.gmra.mxu0 %v3722_v30  ;;  %2175 = vmatmul.mubr.bf16.gmra.mxu1 %v3723_v31 }
  0xd5   : > { %2085 = vmatprep.mubr.bf16.mxu0 %v3724_v32  ;;  %2182 = vmatprep.mubr.bf16.mxu1 %v3726_v33 }
  0xdc   : > { %2086 = vmatmul.mubr.bf16.gmra.mxu0 %v3728_v34  ;;  %2183 = vmatmul.mubr.bf16.gmra.mxu1 %v3729_v35 }
  0xdd   : > { %2093 = vmatprep.mubr.bf16.mxu0 %v3731_v36  ;;  %2190 = vmatprep.mubr.bf16.mxu1 %v3733_v37 }
  0xe4   : > { %2094 = vmatmul.mubr.bf16.gmra.mxu0 %v3735_v38  ;;  %2191 = vmatmul.mubr.bf16.gmra.mxu1 %v3736_v39  ;;  %v3763_v38 = vld [vmem:[%s3874_s8 + $0x258] ss:$36 sps:$4 sm:$0xff]   ;;  %v3767_v39 = vld [vmem:[%s3874_s8 + $0x68] ss:$36 sps:$4 sm:$0xff]  }
  0xe5   : > { %2101 = vmatprep.mubr.bf16.mxu0 %v3737_v40  ;;  %2198 = vmatprep.mubr.bf16.mxu1 %v3739_v41  ;;  %v3770_v40 = vld [vmem:[%s3874_s8 + $0x2a4] ss:$36 sps:$4 sm:$0xff]   ;;  %v3771_v41 = vld [vmem:[%s3874_s8 + $0xb0] ss:$36 sps:$4 sm:$0xff]  }
  0xec   : > { %v2994_v46 = vpop.f32.mrf.mxu0  ;;  %v3066_v47 = vpop.f32.mrf.mxu1  ;;  %2102 = vmatmul.mubr.bf16.gmra.mxu0 %v3741_v42  ;;  %2199 = vmatmul.mubr.bf16.gmra.mxu1 %v3742_v43 }
  0xed   : > { %2109 = vmatprep.mubr.bf16.mxu0 %v3744_v44  ;;  %2206 = vmatprep.mubr.bf16.mxu1 %v3746_v45 }
  0xee   : > { %v2995_v48 = vpop.f32.mrf.mxu0  ;;  %v3067_v49 = vpop.f32.mrf.mxu1 }
  0xef   : > { %v4167_v50 = vadd.f32 %v2995_v48, %v2994_v46  ;;  %v4169_v51 = vadd.f32 %v3067_v49, %v3066_v47  ;;  %v4218_v46 = vld [vmem:[%s4989_s2] ss:$0 sm:$0xff] }
  0xf0   : > { %v2997_v52 = vpop.f32.mrf.mxu0  ;;  %v3069_v53 = vpop.f32.mrf.mxu1 }
  0xf2   : > { %v2998_v58 = vpop.f32.mrf.mxu0  ;;  %v3070_v59 = vpop.f32.mrf.mxu1 }
  0xf3   : > { %v4175_v60 = vadd.f32 %v2998_v58, %v2997_v52  ;;  %v4177_v61 = vadd.f32 %v3070_v59, %v3069_v53  ;;  %v1686_v53 = vadd.f32 %v4167_v50, %v4218_v46  ;;  %v3768_v58 = vld [vmem:[%s3874_s8 + $0x2a0] ss:$36 sps:$4 sm:$0xff]   ;;  %v3772_v59 = vld [vmem:[%s3874_s8 + $0xf8] ss:$36 sps:$4 sm:$0xff]  }
  0xf4   : > { %v3000_v62 = vpop.f32.mrf.mxu0  ;;  %v3072_v63 = vpop.f32.mrf.mxu1  ;;  %2110 = vmatmul.mubr.bf16.gmra.mxu0 %v3748_v54  ;;  %2207 = vmatmul.mubr.bf16.gmra.mxu1 %v3749_v55 }
  0xf5   : > { %2117 = vmatprep.mubr.bf16.mxu0 %v3750_v56  ;;  %2214 = vmatprep.mubr.bf16.mxu1 %v3752_v57 }
  0xf6   : > { %v3001_v0 = vpop.f32.mrf.mxu0  ;;  %v3073_v1 = vpop.f32.mrf.mxu1 }
  0xf7   : > { %v4179_v2 = vadd.f32 %v3001_v0, %v3000_v62  ;;  %v4181_v3 = vadd.f32 %v3073_v1, %v3072_v63  ;;  %v3775_v63 = vld [vmem:[%s3874_s8 + $0x2ec] ss:$36 sps:$4 sm:$0xff]   ;;  %v3776_v0 = vld [vmem:[%s3874_s8 + $0x140] ss:$36 sps:$4 sm:$0xff]  }
  0xf8   : > { %v3003_v4 = vpop.f32.mrf.mxu0  ;;  %v3075_v5 = vpop.f32.mrf.mxu1 }
  0xfa   : > { %v3004_v10 = vpop.f32.mrf.mxu0  ;;  %v3076_v11 = vpop.f32.mrf.mxu1 }
  0xfb   : > { %v4187_v12 = vadd.f32 %v3004_v10, %v3003_v4  ;;  %v4189_v13 = vadd.f32 %v3076_v11, %v3075_v5  ;;  %v1689_v5 = vadd.f32 %v4175_v60, %v4218_v46  ;;  %v1694_v60 = vadd.f32 %v4179_v2, %v4218_v46 }
  0xfc   : > { %v3006_v14 = vpop.f32.mrf.mxu0  ;;  %v3078_v15 = vpop.f32.mrf.mxu1  ;;  %2118 = vmatmul.mubr.bf16.gmra.mxu0 %v3754_v6  ;;  %2215 = vmatmul.mubr.bf16.gmra.mxu1 %v3755_v7 }
  0xfd   : > { %2125 = vmatprep.mubr.bf16.mxu0 %v3757_v8  ;;  %2222 = vmatprep.mubr.bf16.mxu1 %v3759_v9 }
  0xfe   : > { %v3007_v16 = vpop.f32.mrf.mxu0  ;;  %v3079_v17 = vpop.f32.mrf.mxu1 }
  0xff   : > { %v4191_v18 = vadd.f32 %v3007_v16, %v3006_v14  ;;  %v4193_v19 = vadd.f32 %v3079_v17, %v3078_v15 }
 0x100   : > { %v3009_v20 = vpop.f32.mrf.mxu0  ;;  %v3081_v21 = vpop.f32.mrf.mxu1 }
 0x102   : > { %v3010_v26 = vpop.f32.mrf.mxu0  ;;  %v3082_v27 = vpop.f32.mrf.mxu1 }
 0x103   : > { %v4199_v28 = vadd.f32 %v3010_v26, %v3009_v20  ;;  %v4201_v29 = vadd.f32 %v3082_v27, %v3081_v21  ;;  %v3773_v20 = vld [vmem:[%s3874_s8 + $0x2e8] ss:$36 sps:$4 sm:$0xff]   ;;  %v1697_v27 = vadd.f32 %v4187_v12, %v4218_v46  ;;  %v1702_v12 = vadd.f32 %v4191_v18, %v4218_v46 }
 0x104   : > { %v3012_v30 = vpop.f32.mrf.mxu0  ;;  %v3084_v31 = vpop.f32.mrf.mxu1  ;;  %2126 = vmatmul.mubr.bf16.gmra.mxu0 %v3761_v22  ;;  %2223 = vmatmul.mubr.bf16.gmra.mxu1 %v3762_v23  ;;  %v3777_v21 = vld [vmem:[%s3874_s8 + $0x188] ss:$36 sps:$4 sm:$0xff]   ;;  %v3780_v23 = vld [vmem:[%s3874_s8 + $0x334] ss:$36 sps:$4 sm:$0xff]  }
 0x105   : > { %2230 = vmatprep.mubr.bf16.mxu1 %v3765_v24  ;;  %3466 = vmatprep.mubr.bf16.mxu0 %v3766_v25  ;;  %v3781_v24 = vld [vmem:[%s3874_s8 + $0x1d0] ss:$36 sps:$4 sm:$0xff]  }
 0x106   : > { %v3013_v32 = vpop.f32.mrf.mxu0  ;;  %v3085_v33 = vpop.f32.mrf.mxu1 }
 0x107   : > { %v4203_v34 = vadd.f32 %v3013_v32, %v3012_v30  ;;  %v4205_v35 = vadd.f32 %v3085_v33, %v3084_v31 }
 0x108   : > { %v3015_v36 = vpop.f32.mrf.mxu0  ;;  %v3087_v37 = vpop.f32.mrf.mxu1 }
 0x10a   : > { %v3016_v42 = vpop.f32.mrf.mxu0  ;;  %v3088_v43 = vpop.f32.mrf.mxu1 }
 0x10b   : > { %v4211_v44 = vadd.f32 %v3016_v42, %v3015_v36  ;;  %v4213_v45 = vadd.f32 %v3088_v43, %v3087_v37  ;;  %v3778_v42 = vld [vmem:[%s3874_s8 + $0x330] ss:$36 sps:$4 sm:$0xff]   ;;  %v3782_v43 = vld [vmem:[%s3874_s8 + $0x218] ss:$36 sps:$4 sm:$0xff]  }
 0x10c   : > { %v3018_v47 = vpop.f32.mrf.mxu0  ;;  %v3106_v48 = vpop.f32.mrf.mxu1  ;;  %2231 = vmatmul.mubr.bf16.gmra.mxu1 %v3763_v38  ;;  %3467 = vmatmul.mubr.bf16.vlgmr.msra.gmra.mxu0 %v3767_v39 }
 0x10d   : > { %2238 = vmatprep.mubr.bf16.mxu1 %v3770_v40  ;;  %3470 = vmatprep.mubr.bf16.mxu0 %v3771_v41 }
 0x10e   : > { %v3019_v49 = vpop.f32.mrf.mxu0  ;;  %v3107_v52 = vpop.f32.mrf.mxu1 }
 0x10f   : > { %v4222_v54 = vadd.f32 %v3019_v49, %v3018_v47  ;;  %v3108_v55 = vadd.f32 %v3107_v52, %v3106_v48  ;;  %v3785_v48 = vld [vmem:[%s3874_s8 + $0x37c] ss:$36 sps:$4 sm:$0xff]  }
 0x110   : > { %v3021_v56 = vpop.f32.mrf.mxu0  ;;  %v3109_v57 = vpop.f32.mrf.mxu1  ;;  %v3786_v49 = vld [vmem:[%s3874_s8 + $0x260] ss:$36 sps:$4 sm:$0xff]  }
 0x111   : > { %v4226_v62 = vadd.f32 %v3108_v55, %v1686_v53  ;;  %v1705_v55 = vadd.f32 %v4199_v28, %v4218_v46  ;;  %v1710_v28 = vadd.f32 %v4203_v34, %v4218_v46 }
 0x112   : > { %v3022_v1 = vpop.f32.mrf.mxu0  ;;  %v3110_v4 = vpop.f32.mrf.mxu1 }
 0x113   : > { %v4232_v6 = vadd.f32 %v3022_v1, %v3021_v56  ;;  %v3111_v50 = vadd.f32 %v3110_v4, %v3109_v57 }
 0x114   : > { %v3024_v7 = vpop.f32.mrf.mxu0  ;;  %v3112_v8 = vpop.f32.mrf.mxu1  ;;  %2239 = vmatmul.mubr.bf16.gmra.mxu1 %v3768_v58  ;;  %3471 = vmatmul.mubr.bf16.gmra.mxu0 %v3772_v59 }
 0x115   : > { %v4234_v9 = vadd.f32 %v3111_v50, %v1689_v5  ;;  %2246 = vmatprep.mubr.bf16.mxu1 %v3775_v63  ;;  %3474 = vmatprep.mubr.bf16.mxu0 %v3776_v0 }
 0x116   : > { %v3025_v10 = vpop.f32.mrf.mxu0  ;;  %v3113_v11 = vpop.f32.mrf.mxu1 }
 0x117   : > { %v4238_v14 = vadd.f32 %v3025_v10, %v3024_v7  ;;  %v3114_v15 = vadd.f32 %v3113_v11, %v3112_v8  ;;  %v3783_v7 = vld [vmem:[%s3874_s8 + $0x378] ss:$36 sps:$4 sm:$0xff]   ;;  %v3787_v8 = vld [vmem:[%s3874_s8 + $0x2a8] ss:$36 sps:$4 sm:$0xff]  }
 0x118   : > { %v3027_v16 = vpop.f32.mrf.mxu0  ;;  %v3115_v17 = vpop.f32.mrf.mxu1  ;;  %v3790_v11 = vld [vmem:[%s3874_s8 + $0x3c4] ss:$36 sps:$4 sm:$0xff]  }
 0x119   : > { %v4242_v22 = vadd.f32 %v3114_v15, %v1694_v60  ;;  %v3791_v60 = vld [vmem:[%s3874_s8 + $0x2f0] ss:$36 sps:$4 sm:$0xff]  }
 0x11a   : > { %v3028_v25 = vpop.f32.mrf.mxu0  ;;  %v3116_v26 = vpop.f32.mrf.mxu1 }
 0x11b   : > { %v4248_v30 = vadd.f32 %v3028_v25, %v3027_v16  ;;  %v3117_v2 = vadd.f32 %v3116_v26, %v3115_v17  ;;  %v1713_v17 = vadd.f32 %v4211_v44, %v4218_v46  ;;  %v1718_v44 = vadd.f32 %v4222_v54, %v4218_v46 }
 0x11c   : > { %v3030_v31 = vpop.f32.mrf.mxu0  ;;  %v3118_v32 = vpop.f32.mrf.mxu1  ;;  %2247 = vmatmul.mubr.bf16.gmra.mxu1 %v3773_v20  ;;  %3475 = vmatmul.mubr.bf16.gmra.mxu0 %v3777_v21 }
 0x11d   : > { %v4250_v33 = vadd.f32 %v3117_v2, %v1697_v27  ;;  %2254 = vmatprep.mubr.bf16.mxu1 %v3780_v23  ;;  %3478 = vmatprep.mubr.bf16.mxu0 %v3781_v24 }
 0x11e   : > { %v3031_v36 = vpop.f32.mrf.mxu0  ;;  %v3119_v37 = vpop.f32.mrf.mxu1 }
 0x11f   : > { %v4254_v38 = vadd.f32 %v3031_v36, %v3030_v31  ;;  %v3120_v39 = vadd.f32 %v3119_v37, %v3118_v32  ;;  %v3788_v36 = vld [vmem:[%s3874_s8 + $0x3c0] ss:$36 sps:$4 sm:$0xff]   ;;  %v3792_v37 = vld [vmem:[%s3874_s8 + $0x338] ss:$36 sps:$4 sm:$0xff]  }
 0x120   : > { %v3033_v40 = vpop.f32.mrf.mxu0  ;;  %v3121_v41 = vpop.f32.mrf.mxu1 }
 0x121   : > { %v4258_v47 = vadd.f32 %v3120_v39, %v1702_v12  ;;  %v3795_v39 = vld [vmem:[%s3874_s8 + $0x40c] ss:$36 sps:$4 sm:$0xff]  }
 0x122   : > { %v3034_v52 = vpop.f32.mrf.mxu0  ;;  %v3122_v53 = vpop.f32.mrf.mxu1 }
 0x123   : > { %v4264_v56 = vadd.f32 %v3034_v52, %v3033_v40  ;;  %v3123_v18 = vadd.f32 %v3122_v53, %v3121_v41  ;;  %v3796_v40 = vld [vmem:[%s3874_s8 + $0x380] ss:$36 sps:$4 sm:$0xff]  }
 0x124   : > { %v3036_v57 = vpop.f32.mrf.mxu0  ;;  %v3124_v58 = vpop.f32.mrf.mxu1  ;;  %2255 = vmatmul.mubr.bf16.gmra.mxu1 %v3778_v42  ;;  %3479 = vmatmul.mubr.bf16.gmra.mxu0 %v3782_v43  ;;  %v1721_v43 = vadd.f32 %v4232_v6, %v4218_v46  ;;  %v1726_v6 = vadd.f32 %v4238_v14, %v4218_v46 }
 0x125   : > { %v4266_v59 = vadd.f32 %v3123_v18, %v1705_v55  ;;  %2262 = vmatprep.mubr.bf16.mxu1 %v3785_v48  ;;  %3482 = vmatprep.mubr.bf16.mxu0 %v3786_v49 }
 0x126   : > { %v3037_v63 = vpop.f32.mrf.mxu0  ;;  %v3125_v0 = vpop.f32.mrf.mxu1 }
 0x127   : > { %v4270_v1 = vadd.f32 %v3037_v63, %v3036_v57  ;;  %v3126_v4 = vadd.f32 %v3125_v0, %v3124_v58 }
 0x128   : > { %v3039_v5 = vpop.f32.mrf.mxu0  ;;  %v3127_v50 = vpop.f32.mrf.mxu1 }
 0x129   : > { %v4274_v10 = vadd.f32 %v3126_v4, %v1710_v28  ;;  %v3793_v28 = vld [vmem:[%s3874_s8 + $0x408] ss:$36 sps:$4 sm:$0xff]  }
 0x12a   : > { %v3040_v15 = vpop.f32.mrf.mxu0  ;;  %v3128_v16 = vpop.f32.mrf.mxu1  ;;  %v3797_v4 = vld [vmem:[%s3874_s8 + $0x3c8] ss:$36 sps:$4 sm:$0xff]  }
 0x12b   : > { %v4280_v20 = vadd.f32 %v3040_v15, %v3039_v5  ;;  %v3129_v34 = vadd.f32 %v3128_v16, %v3127_v50  ;;  %v3800_v50 = vld [vmem:[%s3874_s8 + $0x454] ss:$36 sps:$4 sm:$0xff]  }
 0x12c   : > { %v3042_v21 = vpop.f32.mrf.mxu0  ;;  %v3130_v23 = vpop.f32.mrf.mxu1  ;;  %2263 = vmatmul.mubr.bf16.gmra.mxu1 %v3783_v7  ;;  %3483 = vmatmul.mubr.bf16.gmra.mxu0 %v3787_v8  ;;  %v3801_v7 = vld [vmem:[%s3874_s8 + $0x410] ss:$36 sps:$4 sm:$0xff]  }
 0x12d   : > { %v4282_v24 = vadd.f32 %v3129_v34, %v1713_v17  ;;  %2270 = vmatprep.mubr.bf16.mxu1 %v3790_v11  ;;  %3486 = vmatprep.mubr.bf16.mxu0 %v3791_v60  ;;  %v1729_v60 = vadd.f32 %v4248_v30, %v4218_v46 }
 0x12e   : > { %v3043_v25 = vpop.f32.mrf.mxu0  ;;  %v3131_v26 = vpop.f32.mrf.mxu1 }
 0x12f   : > { %v4286_v27 = vadd.f32 %v3043_v25, %v3042_v21  ;;  %v3132_v2 = vadd.f32 %v3131_v26, %v3130_v23  ;;  %v1734_v25 = vadd.f32 %v4254_v38, %v4218_v46 }
 0x130   : > { %v3045_v31 = vpop.f32.mrf.mxu0  ;;  %v3133_v32 = vpop.f32.mrf.mxu1 }
 0x131   : > { %v4290_v12 = vadd.f32 %v3132_v2, %v1718_v44 }
 0x132   : > { %v3046_v41 = vpop.f32.mrf.mxu0  ;;  %v3134_v42 = vpop.f32.mrf.mxu1 }
 0x133   : > { %v4296_v48 = vadd.f32 %v3046_v41, %v3045_v31  ;;  %v3135_v54 = vadd.f32 %v3134_v42, %v3133_v32  ;;  %v3798_v31 = vld [vmem:[%s3874_s8 + $0x450] ss:$36 sps:$4 sm:$0xff]   ;;  %v3802_v32 = vld [vmem:[%s3874_s8 + $0x458] ss:$36 sps:$4 sm:$0xff]   ;;  %s2977_s8 = sshll.u32 %s5016_s13, 8 }
 0x134   : > { %v3048_v49 = vpop.f32.mrf.mxu0  ;;  %v3136_v52 = vpop.f32.mrf.mxu1  ;;  %2271 = vmatmul.mubr.bf16.gmra.mxu1 %v3788_v36  ;;  %3487 = vmatmul.mubr.bf16.gmra.mxu0 %v3792_v37  ;;  %s4926_s20 = scalar_lea.vmem %s4990_s3, %s2977_s8 }
 0x135   : > { %v4298_v53 = vadd.f32 %v3135_v54, %v1721_v43  ;;  %2278 = vmatprep.mubr.bf16.mxu1 %v3795_v39  ;;  %3490 = vmatprep.mubr.bf16.mxu0 %v3796_v40  ;;  %v1737_v40 = vadd.f32 %v4264_v56, %v4218_v46 }
 0x136   : > { %v3049_v55 = vpop.f32.mrf.mxu0  ;;  %v3137_v18 = vpop.f32.mrf.mxu1 }
 0x137   : > { %v4302_v57 = vadd.f32 %v3049_v55, %v3048_v49  ;;  %v3138_v58 = vadd.f32 %v3137_v18, %v3136_v52  ;;  %v1742_v55 = vadd.f32 %v4270_v1, %v4218_v46 }
 0x138   : > { %v3051_v63 = vpop.f32.mrf.mxu0  ;;  %v3139_v0 = vpop.f32.mrf.mxu1 }
 0x139   : > { %v4306_v5 = vadd.f32 %v3138_v58, %v1726_v6 }
 0x13a   : > { %v3052_v8 = vpop.f32.mrf.mxu0  ;;  %v3140_v11 = vpop.f32.mrf.mxu1 }
 0x13b   : > { %v4312_v15 = vadd.f32 %v3052_v8, %v3051_v63  ;;  %v3141_v14 = vadd.f32 %v3140_v11, %v3139_v0 }
 0x13c   : > { %v3054_v16 = vpop.f32.mrf.mxu0  ;;  %v3142_v17 = vpop.f32.mrf.mxu1  ;;  %2279 = vmatmul.mubr.bf16.gmra.mxu1 %v3793_v28  ;;  %3491 = vmatmul.mubr.bf16.gmra.mxu0 %v3797_v4  ;;  %v1745_v4 = vadd.f32 %v4280_v20, %v4218_v46 }
 0x13d   : > { %v4314_v34 = vadd.f32 %v3141_v14, %v1729_v60  ;;  %2286 = vmatprep.mubr.bf16.mxu1 %v3800_v50  ;;  %3494 = vmatprep.mubr.bf16.mxu0 %v3801_v7 }
 0x13e   : > { %v3055_v21 = vpop.f32.mrf.mxu0  ;;  %v3143_v23 = vpop.f32.mrf.mxu1 }
 0x13f   : > { %v4318_v26 = vadd.f32 %v3055_v21, %v3054_v16  ;;  %v3144_v30 = vadd.f32 %v3143_v23, %v3142_v17  ;;  %v1750_v16 = vadd.f32 %v4286_v27, %v4218_v46 }
 0x140   : > { %v3057_v44 = vpop.f32.mrf.mxu0  ;;  %v3145_v2 = vpop.f32.mrf.mxu1 }
 0x141   : > { %v4322_v36 = vadd.f32 %v3144_v30, %v1734_v25 }
 0x142   : > { %v3058_v37 = vpop.f32.mrf.mxu0  ;;  %v3146_v39 = vpop.f32.mrf.mxu1 }
 0x143   : > { %v4326_v41 = vadd.f32 %v3058_v37, %v3057_v44  ;;  %v3147_v42 = vadd.f32 %v3146_v39, %v3145_v2 }
 0x144   : > { %v3060_v43 = vpop.f32.mrf.mxu0  ;;  %v3148_v54 = vpop.f32.mrf.mxu1  ;;  %2287 = vmatmul.mubr.bf16.gmra.mxu1 %v3798_v31  ;;  %3495 = vmatmul.mubr.bf16.gmra.mxu0 %v3802_v32  ;;  %v1753_v31 = vadd.f32 %v4296_v48, %v4218_v46 }
 0x145   : > { %v4328_v38 = vadd.f32 %v3147_v42, %v1737_v40 }
 0x146   : > { %v3061_v49 = vpop.f32.mrf.mxu0  ;;  %v3149_v52 = vpop.f32.mrf.mxu1 }
 0x147   : > { %v4332_v18 = vadd.f32 %v3061_v49, %v3060_v43  ;;  %v3150_v6 = vadd.f32 %v3149_v52, %v3148_v54 }
 0x148   : > { %v3063_v58 = vpop.f32.mrf.mxu0  ;;  %v3151_v63 = vpop.f32.mrf.mxu1 }
 0x149   : > { %v4334_v56 = vadd.f32 %v3150_v6, %v1742_v55 }
 0x14a   : > { %v3064_v0 = vpop.f32.mrf.mxu0  ;;  %v3152_v28 = vpop.f32.mrf.mxu1 }
 0x14b   : > { %v4338_v50 = vadd.f32 %v3064_v0, %v3063_v58  ;;  %v3153_v7 = vadd.f32 %v3152_v28, %v3151_v63 }
 0x14c   : > { %v3154_v8 = vpop.f32.mrf.mxu1  ;;  %v3218_v11 = vpop.f32.mrf.mxu0 }
 0x14d   : > { %v4340_v60 = vadd.f32 %v3153_v7, %v1745_v4 }
 0x14e   : > { %v3155_v1 = vpop.f32.mrf.mxu1  ;;  %v3219_v14 = vpop.f32.mrf.mxu0 }
 0x14f   : > { %v3156_v17 = vadd.f32 %v3155_v1, %v3154_v8  ;;  %v3220_v21 = vadd.f32 %v3219_v14, %v3218_v11 }
 0x150   : > { %v3157_v23 = vpop.f32.mrf.mxu1  ;;  %v3221_v25 = vpop.f32.mrf.mxu0 }
 0x151   : > { %v4344_v30 = vadd.f32 %v3156_v17, %v1750_v16  ;;  %v4347_v20 = vadd.f32 %v3220_v21, %v4226_v62  ;;  %v1758_v62 = vadd.f32 %v4302_v57, %v4218_v46 }
 0x152   : > { %v3158_v44 = vpop.f32.mrf.mxu1  ;;  %v3222_v2 = vpop.f32.mrf.mxu0 }
 0x153   : > { %v3159_v32 = vadd.f32 %v3158_v44, %v3157_v23  ;;  %v3223_v37 = vadd.f32 %v3222_v2, %v3221_v25 }
 0x154   : > { %v3160_v39 = vpop.f32.mrf.mxu1  ;;  %v3224_v40 = vpop.f32.mrf.mxu0 }
 0x155   : > { %v4351_v42 = vadd.f32 %v3159_v32, %v1753_v31  ;;  %v4354_v27 = vadd.f32 %v3223_v37, %v4234_v9  ;;  %v1761_v9 = vadd.f32 %v4312_v15, %v4218_v46 }
 0x156   : > { %v3161_v43 = vpop.f32.mrf.mxu1  ;;  %v3225_v54 = vpop.f32.mrf.mxu0 }
 0x157   : > { %v3162_v49 = vadd.f32 %v3161_v43, %v3160_v39  ;;  %v3226_v52 = vadd.f32 %v3225_v54, %v3224_v40 }
 0x158   : > { %v3163_v55 = vpop.f32.mrf.mxu1  ;;  %v3227_v6 = vpop.f32.mrf.mxu0 }
 0x159   : > { %v4358_v58 = vadd.f32 %v3162_v49, %v1758_v62  ;;  %v4361_v48 = vadd.f32 %v3226_v52, %v4242_v22  ;;  %v1766_v22 = vadd.f32 %v4318_v26, %v4218_v46 }
 0x15a   : > { %v3164_v63 = vpop.f32.mrf.mxu1  ;;  %v3228_v0 = vpop.f32.mrf.mxu0 }
 0x15b   : > { %v3165_v28 = vadd.f32 %v3164_v63, %v3163_v55  ;;  %v3229_v4 = vadd.f32 %v3228_v0, %v3227_v6 }
 0x15c   : > { %v3166_v7 = vpop.f32.mrf.mxu1  ;;  %v3230_v8 = vpop.f32.mrf.mxu0 }
 0x15d   : > { %v4365_v11 = vadd.f32 %v3165_v28, %v1761_v9  ;;  %v4368_v57 = vadd.f32 %v3229_v4, %v4250_v33  ;;  %v1769_v33 = vadd.f32 %v4326_v41, %v4218_v46 }
 0x15e   : > { %v3167_v1 = vpop.f32.mrf.mxu1  ;;  %v3231_v14 = vpop.f32.mrf.mxu0 }
 0x15f   : > { %v3168_v16 = vadd.f32 %v3167_v1, %v3166_v7  ;;  %v3232_v17 = vadd.f32 %v3231_v14, %v3230_v8 }
 0x160   : > { %v3169_v21 = vpop.f32.mrf.mxu1  ;;  %v3233_v23 = vpop.f32.mrf.mxu0 }
 0x161   : > { %v4372_v25 = vadd.f32 %v3168_v16, %v1766_v22  ;;  %v4375_v15 = vadd.f32 %v3232_v17, %v4258_v47  ;;  %v1774_v47 = vadd.f32 %v4332_v18, %v4218_v46 }
 0x162   : > { %v3170_v44 = vpop.f32.mrf.mxu1  ;;  %v3234_v2 = vpop.f32.mrf.mxu0 }
 0x163   : > { %v3171_v31 = vadd.f32 %v3170_v44, %v3169_v21  ;;  %v3235_v32 = vadd.f32 %v3234_v2, %v3233_v23 }
 0x164   : > { %v3172_v37 = vpop.f32.mrf.mxu1  ;;  %v3236_v39 = vpop.f32.mrf.mxu0 }
 0x165   : > { %v4379_v40 = vadd.f32 %v3171_v31, %v1769_v33  ;;  %v4382_v26 = vadd.f32 %v3235_v32, %v4266_v59  ;;  %v1777_v59 = vadd.f32 %v4338_v50, %v4218_v46 }
 0x166   : > { %v3173_v43 = vpop.f32.mrf.mxu1  ;;  %v3237_v54 = vpop.f32.mrf.mxu0 }
 0x167   : > { %v3174_v62 = vadd.f32 %v3173_v43, %v3172_v37  ;;  %v3238_v49 = vadd.f32 %v3237_v54, %v3236_v39 }
 0x168   : > { %v3175_v52 = vpop.f32.mrf.mxu1  ;;  %v3239_v55 = vpop.f32.mrf.mxu0 }
 0x169   : > { %v4386_v6 = vadd.f32 %v3174_v62, %v1774_v47  ;;  %v4389_v41 = vadd.f32 %v3238_v49, %v4274_v10  ;;  %v1782_v10 = vadd.f32 %v4169_v51, %v4218_v46 }
 0x16a   : > { %v3176_v63 = vpop.f32.mrf.mxu1  ;;  %v3240_v0 = vpop.f32.mrf.mxu0 }
 0x16b   : > { %v3177_v9 = vadd.f32 %v3176_v63, %v3175_v52  ;;  %v3241_v28 = vadd.f32 %v3240_v0, %v3239_v55 }
 0x16c   : > { %v3178_v4 = vpop.f32.mrf.mxu1  ;;  %v3242_v7 = vpop.f32.mrf.mxu0 }
 0x16d   : > { %v4393_v8 = vadd.f32 %v3177_v9, %v1777_v59  ;;  %v4396_v18 = vadd.f32 %v3241_v28, %v4282_v24  ;;  %v1785_v24 = vadd.f32 %v4177_v61, %v4218_v46 }
 0x16e   : > { %v3179_v1 = vpop.f32.mrf.mxu1  ;;  %v3243_v14 = vpop.f32.mrf.mxu0 }
 0x16f   : > { %v3180_v22 = vadd.f32 %v3179_v1, %v3178_v4  ;;  %v3244_v16 = vadd.f32 %v3243_v14, %v3242_v7 }
 0x170   : > { %v3181_v17 = vpop.f32.mrf.mxu1  ;;  %v3245_v21 = vpop.f32.mrf.mxu0 }
 0x171   : > { %v4400_v23 = vadd.f32 %v3180_v22, %v1782_v10  ;;  %v4403_v50 = vadd.f32 %v3244_v16, %v4290_v12  ;;  %v1790_v12 = vadd.f32 %v4181_v3, %v4218_v46 }
 0x172   : > { %v3182_v44 = vpop.f32.mrf.mxu1  ;;  %v3246_v2 = vpop.f32.mrf.mxu0 }
 0x173   : > { %v3183_v33 = vadd.f32 %v3182_v44, %v3181_v17  ;;  %v3247_v31 = vadd.f32 %v3246_v2, %v3245_v21 }
 0x174   : > { %v3184_v32 = vpop.f32.mrf.mxu1  ;;  %v3248_v37 = vpop.f32.mrf.mxu0 }
 0x175   : > { %v4407_v39 = vadd.f32 %v3183_v33, %v1785_v24  ;;  %v4410_v51 = vadd.f32 %v3247_v31, %v4298_v53  ;;  %v1793_v53 = vadd.f32 %v4189_v13, %v4218_v46 }
 0x176   : > { %v3185_v43 = vpop.f32.mrf.mxu1  ;;  %v3249_v54 = vpop.f32.mrf.mxu0 }
 0x177   : > { %v3186_v47 = vadd.f32 %v3185_v43, %v3184_v32  ;;  %v3250_v62 = vadd.f32 %v3249_v54, %v3248_v37 }
 0x178   : > { %v3187_v49 = vpop.f32.mrf.mxu1  ;;  %v3251_v52 = vpop.f32.mrf.mxu0 }
 0x179   : > { %v4414_v55 = vadd.f32 %v3186_v47, %v1790_v12  ;;  %v4417_v61 = vadd.f32 %v3250_v62, %v4306_v5  ;;  %v1798_v5 = vadd.f32 %v4193_v19, %v4218_v46 }
 0x17a   : > { %v3188_v63 = vpop.f32.mrf.mxu1  ;;  %v3252_v0 = vpop.f32.mrf.mxu0 }
 0x17b   : > { %v3189_v59 = vadd.f32 %v3188_v63, %v3187_v49  ;;  %v3253_v9 = vadd.f32 %v3252_v0, %v3251_v52 }
 0x17c   : > { %v3190_v28 = vpop.f32.mrf.mxu1  ;;  %v3254_v4 = vpop.f32.mrf.mxu0 }
 0x17d   : > { %v4421_v7 = vadd.f32 %v3189_v59, %v1793_v53  ;;  %v4424_v3 = vadd.f32 %v3253_v9, %v4314_v34  ;;  %v1801_v34 = vadd.f32 %v4201_v29, %v4218_v46 }
 0x17e   : > { %v3191_v1 = vpop.f32.mrf.mxu1  ;;  %v3255_v14 = vpop.f32.mrf.mxu0 }
 0x17f   : > { %v3192_v10 = vadd.f32 %v3191_v1, %v3190_v28  ;;  %v3256_v22 = vadd.f32 %v3255_v14, %v3254_v4 }
 0x180   : > { %v3193_v16 = vpop.f32.mrf.mxu1  ;;  %v3257_v17 = vpop.f32.mrf.mxu0 }
 0x181   : > { %v4428_v21 = vadd.f32 %v3192_v10, %v1798_v5  ;;  %v4431_v13 = vadd.f32 %v3256_v22, %v4322_v36  ;;  %v1806_v36 = vadd.f32 %v4205_v35, %v4218_v46 }
 0x182   : > { %v3194_v44 = vpop.f32.mrf.mxu1  ;;  %v3258_v2 = vpop.f32.mrf.mxu0 }
 0x183   : > { %v3195_v24 = vadd.f32 %v3194_v44, %v3193_v16  ;;  %v3259_v33 = vadd.f32 %v3258_v2, %v3257_v17 }
 0x184   : > { %v3196_v31 = vpop.f32.mrf.mxu1  ;;  %v3260_v32 = vpop.f32.mrf.mxu0 }
 0x185   : > { %v4435_v37 = vadd.f32 %v3195_v24, %v1801_v34  ;;  %v4438_v19 = vadd.f32 %v3259_v33, %v4328_v38  ;;  %v1809_v38 = vadd.f32 %v4213_v45, %v4218_v46 }
 0x186   : > { %v3197_v43 = vpop.f32.mrf.mxu1  ;;  %v3261_v54 = vpop.f32.mrf.mxu0 }
 0x187   : > { %v3198_v12 = vadd.f32 %v3197_v43, %v3196_v31  ;;  %v3262_v47 = vadd.f32 %v3261_v54, %v3260_v32 }
 0x188   : > { %v3199_v62 = vpop.f32.mrf.mxu1  ;;  %v3263_v49 = vpop.f32.mrf.mxu0 }
 0x189   : > { %v4442_v52 = vadd.f32 %v3198_v12, %v1806_v36  ;;  %v4445_v29 = vadd.f32 %v3262_v47, %v4334_v56 }
 0x18a   : > { %v3200_v63 = vpop.f32.mrf.mxu1  ;;  %v3264_v0 = vpop.f32.mrf.mxu0 }
 0x18b   : > { %v3201_v53 = vadd.f32 %v3200_v63, %v3199_v62  ;;  %v3265_v59 = vadd.f32 %v3264_v0, %v3263_v49 }
 0x18c   : > { %v3266_v9 = vpop.f32.mrf.mxu0  ;;  %v3330_v28 = vpop.f32.mrf.mxu1 }
 0x18d   : > { %v4449_v4 = vadd.f32 %v3201_v53, %v1809_v38  ;;  %v4452_v35 = vadd.f32 %v3265_v59, %v4340_v60 }
 0x18e   : > { %v3267_v1 = vpop.f32.mrf.mxu0  ;;  %v3331_v14 = vpop.f32.mrf.mxu1 }
 0x18f   : > { %v3268_v5 = vadd.f32 %v3267_v1, %v3266_v9  ;;  %v3332_v10 = vadd.f32 %v3331_v14, %v3330_v28 }
 0x190   : > { %v3269_v56 = vpop.f32.mrf.mxu0  ;;  %v4454_v22 = vpop.f32.mrf.mxu1 }
 0x191   : > { %v4457_v16 = vadd.f32 %v3268_v5, %v4344_v30  ;;  %v4460_v45 = vadd.f32 %v3332_v10, %v4347_v20 }
 0x192   : > { %v3270_v46 = vpop.f32.mrf.mxu0  ;;  %v4462_v17 = vpop.f32.mrf.mxu1 }
 0x193   : > { %v3271_v44 = vadd.f32 %v3270_v46, %v3269_v56 }
 0x194   : > { %v3272_v2 = vpop.f32.mrf.mxu0  ;;  %v4464_v60 = vpop.f32.mrf.mxu1 }
 0x195   : > { %v4467_v34 = vadd.f32 %v3271_v44, %v4351_v42 }
 0x196   : > { %v3273_v24 = vpop.f32.mrf.mxu0  ;;  %v4469_v33 = vpop.f32.mrf.mxu1 }
 0x197   : > { %v3274_v31 = vadd.f32 %v3273_v24, %v3272_v2 }
 0x198   : > { %v3275_v32 = vpop.f32.mrf.mxu0  ;;  %v4471_v30 = vpop.f32.mrf.mxu1 }
 0x199   : > { %v4474_v20 = vadd.f32 %v3274_v31, %v4358_v58 }
 0x19a   : > { %v3276_v43 = vpop.f32.mrf.mxu0  ;;  %v4476_v54 = vpop.f32.mrf.mxu1 }
 0x19b   : > { %v3277_v36 = vadd.f32 %v3276_v43, %v3275_v32 }
 0x19c   : > { %v3278_v12 = vpop.f32.mrf.mxu0  ;;  %v4478_v47 = vpop.f32.mrf.mxu1 }
 0x19d   : > { %v4481_v42 = vadd.f32 %v3277_v36, %v4365_v11 }
 0x19e   : > { %v3279_v62 = vpop.f32.mrf.mxu0  ;;  %v4483_v49 = vpop.f32.mrf.mxu1 }
 0x19f   : > { %v3280_v63 = vadd.f32 %v3279_v62, %v3278_v12 }
 0x1a0   : > { %v3281_v0 = vpop.f32.mrf.mxu0  ;;  %v4485_v38 = vpop.f32.mrf.mxu1 }
 0x1a1   : > { %v4488_v58 = vadd.f32 %v3280_v63, %v4372_v25 }
 0x1a2   : > { %v3282_v53 = vpop.f32.mrf.mxu0  ;;  %v4490_v59 = vpop.f32.mrf.mxu1 }
 0x1a3   : > { %4991 = vst [vmem:[#allocation2_spill] sm:$0xff] %v4488_v58  ;;  %v3283_v9 = vadd.f32 %v3282_v53, %v3281_v0 }
 0x1a4   : > { %v3284_v28 = vpop.f32.mrf.mxu0  ;;  %v4492_v1 = vpop.f32.mrf.mxu1 }
 0x1a5   : > { %v4495_v11 = vadd.f32 %v3283_v9, %v4379_v40 }
 0x1a6   : > { %v3285_v14 = vpop.f32.mrf.mxu0  ;;  %v4497_v5 = vpop.f32.mrf.mxu1 }
 0x1a7   : > { %4992 = vst [vmem:[#allocation3_spill] sm:$0xff] %v4495_v11  ;;  %v3286_v10 = vadd.f32 %v3285_v14, %v3284_v28 }
 0x1a8   : > { %v3287_v56 = vpop.f32.mrf.mxu0  ;;  %v4499_v46 = vpop.f32.mrf.mxu1 }
 0x1a9   : > { %v4502_v25 = vadd.f32 %v3286_v10, %v4386_v6 }
 0x1aa   : > { %v3288_v44 = vpop.f32.mrf.mxu0  ;;  %v4504_v2 = vpop.f32.mrf.mxu1 }
 0x1ab   : > { %4993 = vst [vmem:[#allocation4_spill] sm:$0xff] %v4502_v25  ;;  %v3289_v24 = vadd.f32 %v3288_v44, %v3287_v56 }
 0x1ac   : > { %v3290_v31 = vpop.f32.mrf.mxu0  ;;  %v4506_v32 = vpop.f32.mrf.mxu1 }
 0x1ad   : > { %v4509_v40 = vadd.f32 %v3289_v24, %v4393_v8 }
 0x1ae   : > { %v3291_v43 = vpop.f32.mrf.mxu0  ;;  %v4511_v36 = vpop.f32.mrf.mxu1 }
 0x1af   : > { %4994 = vst [vmem:[#allocation5_spill] sm:$0xff] %v4509_v40  ;;  %v3292_v12 = vadd.f32 %v3291_v43, %v3290_v31 }
 0x1b0   : > { %v3293_v62 = vpop.f32.mrf.mxu0  ;;  %v4513_v63 = vpop.f32.mrf.mxu1 }
 0x1b1   : > { %v4516_v6 = vadd.f32 %v3292_v12, %v4400_v23 }
 0x1b2   : > { %v3294_v0 = vpop.f32.mrf.mxu0  ;;  %v4518_v53 = vpop.f32.mrf.mxu1 }
 0x1b3   : > { %4995 = vst [vmem:[#allocation6_spill] sm:$0xff] %v4516_v6  ;;  %v3295_v9 = vadd.f32 %v3294_v0, %v3293_v62 }
 0x1b4   : > { %v3296_v28 = vpop.f32.mrf.mxu0  ;;  %v4520_v14 = vpop.f32.mrf.mxu1 }
 0x1b5   : > { %v4523_v8 = vadd.f32 %v3295_v9, %v4407_v39 }
 0x1b6   : > { %v3297_v10 = vpop.f32.mrf.mxu0  ;;  %v4525_v56 = vpop.f32.mrf.mxu1 }
 0x1b7   : > { %4996 = vst [vmem:[#allocation7_spill] sm:$0xff] %v4523_v8  ;;  %v3298_v44 = vadd.f32 %v3297_v10, %v3296_v28 }
 0x1b8   : > { %v3299_v24 = vpop.f32.mrf.mxu0  ;;  %v4527_v31 = vpop.f32.mrf.mxu1 }
 0x1b9   : > { %v4530_v23 = vadd.f32 %v3298_v44, %v4414_v55 }
 0x1ba   : > { %v3300_v43 = vpop.f32.mrf.mxu0  ;;  %v4532_v12 = vpop.f32.mrf.mxu1 }
 0x1bb   : > { %4997 = vst [vmem:[#allocation8_spill] sm:$0xff] %v4530_v23  ;;  %v3301_v62 = vadd.f32 %v3300_v43, %v3299_v24 }
 0x1bc   : > { %v3302_v0 = vpop.f32.mrf.mxu0  ;;  %v4534_v6 = vpop.f32.mrf.mxu1 }
 0x1bd   : > { %v4537_v39 = vadd.f32 %v3301_v62, %v4421_v7 }
 0x1be   : > { %v3303_v9 = vpop.f32.mrf.mxu0  ;;  %v4539_v8 = vpop.f32.mrf.mxu1 }
 0x1bf   : > { %4998 = vst [vmem:[#allocation9_spill] sm:$0xff] %v4537_v39  ;;  %v3304_v28 = vadd.f32 %v3303_v9, %v3302_v0 }
 0x1c0   : > { %v3305_v10 = vpop.f32.mrf.mxu0  ;;  %v4541_v40 = vpop.f32.mrf.mxu1 }
 0x1c1   : > { %v4544_v55 = vadd.f32 %v3304_v28, %v4428_v21 }
 0x1c2   : > { %v3306_v44 = vpop.f32.mrf.mxu0  ;;  %v4546_v23 = vpop.f32.mrf.mxu1 }
 0x1c3   : > { %4999 = vst [vmem:[#allocation10_spill] sm:$0xff] %v4544_v55  ;;  %v3307_v24 = vadd.f32 %v3306_v44, %v3305_v10 }
 0x1c4   : > { %v3308_v43 = vpop.f32.mrf.mxu0  ;;  %v4548_v25 = vpop.f32.mrf.mxu1 }
 0x1c5   : > { %v4551_v7 = vadd.f32 %v3307_v24, %v4435_v37  ;;  %v3335_v37 = vadd.f32 %v4462_v17, %v4454_v22 }
 0x1c6   : > { %v3309_v62 = vpop.f32.mrf.mxu0  ;;  %v4553_v39 = vpop.f32.mrf.mxu1 }
 0x1c7   : > { %5000 = vst [vmem:[#allocation11_spill] sm:$0xff] %v4551_v7  ;;  %v3310_v0 = vadd.f32 %v3309_v62, %v3308_v43 }
 0x1c8   : > { %v3311_v9 = vpop.f32.mrf.mxu0  ;;  %v4555_v11 = vpop.f32.mrf.mxu1 }
 0x1c9   : > { %v4558_v21 = vadd.f32 %v3310_v0, %v4442_v52  ;;  %v3338_v52 = vadd.f32 %v4469_v33, %v4464_v60 }
 0x1ca   : > { %v3312_v28 = vpop.f32.mrf.mxu0  ;;  %v4560_v55 = vpop.f32.mrf.mxu1 }
 0x1cb   : > { %5001 = vst [vmem:[#allocation12_spill] sm:$0xff] %v4558_v21  ;;  %v3313_v10 = vadd.f32 %v3312_v28, %v3311_v9  ;;  %v3341_v9 = vadd.f32 %v4476_v54, %v4471_v30  ;;  %v2172_v28 = vadd.f32 %v3335_v37, %v4354_v27  ;;  %v2177_v17 = vadd.f32 %v3338_v52, %v4361_v48 }
 0x1cc   : > { %v4562_v44 = vpop.f32.mrf.mxu1  ;;  %v3468_v58 = vpop.f32.mrf.mxu0  ;;  %v3347_v30 = vadd.f32 %v4490_v59, %v4485_v38 }
 0x1cd   : > { %v4567_v24 = vadd.f32 %v3313_v10, %v4449_v4  ;;  %v3344_v4 = vadd.f32 %v4483_v49, %v4478_v47  ;;  %v4592_v27 = vadd.f32 %v3468_v58, %v2177_v17  ;;  %v2180_v54 = vadd.f32 %v3341_v9, %v4368_v57 }
 0x1ce   : > { %v4569_v43 = vpop.f32.mrf.mxu1  ;;  %v2329_v62 = vpop.f32.mrf.mxu0  ;;  %v3353_v57 = vadd.f32 %v4504_v2, %v4499_v46  ;;  %v3359_v2 = vadd.f32 %v4518_v53, %v4513_v63  ;;  %v3365_v63 = vadd.f32 %v4532_v12, %v4527_v31  ;;  %v3371_v31 = vadd.f32 %v4546_v23, %v4541_v40 }
 0x1cf   : > { %5002 = vst [vmem:[#allocation13_spill] sm:$0xff] %v4567_v24  ;;  %v4584_v10 = vadd.f32 %v2329_v62, %v4460_v45  ;;  %v3350_v45 = vadd.f32 %v4497_v5, %v4492_v1  ;;  %v2185_v52 = vadd.f32 %v3344_v4, %v4375_v15  ;;  %v3356_v5 = vadd.f32 %v4511_v36, %v4506_v32 }
 0x1d0   : > { %v4573_v0 = vpop.f32.mrf.mxu1  ;;  %v3469_v7 = vpop.f32.mrf.mxu0  ;;  %v3377_v40 = vadd.f32 %v4560_v55, %v4555_v11 }
 0x1d1   : > { %v4601_v37 = vadd.f32 %v3469_v7, %v2180_v54  ;;  %v2193_v15 = vadd.f32 %v3350_v45, %v4389_v41  ;;  %v3362_v41 = vadd.f32 %v4525_v56, %v4520_v14  ;;  %v2201_v45 = vadd.f32 %v3356_v5, %v4403_v50 }
 0x1d2   : > { %v4578_v21 = vpop.f32.mrf.mxu1  ;;  %v2332_v22 = vpop.f32.mrf.mxu0  ;;  %v3368_v14 = vadd.f32 %v4539_v8, %v4534_v6 }
 0x1d3   : > { %v4586_v60 = vadd.f32 %v2332_v22, %v2172_v28  ;;  %v2188_v28 = vadd.f32 %v3347_v30, %v4382_v26  ;;  %v2196_v26 = vadd.f32 %v3353_v57, %v4396_v18  ;;  %v2209_v56 = vadd.f32 %v3362_v41, %v4417_v61 }
 0x1d4   : > { %v4588_v33 = vpop.f32.mrf.mxu1  ;;  %v3472_v24 = vpop.f32.mrf.mxu0  ;;  %v3374_v61 = vadd.f32 %v4553_v39, %v4548_v25  ;;  %v3380_v25 = vadd.f32 %v4569_v43, %v4562_v44  ;;  %v3383_v11 = vadd.f32 %v4578_v21, %v4573_v0 }
 0x1d5   : > { %v2456_v47 = vadd.f32 %v4586_v60, %v4584_v10  ;;  %v4625_v54 = vadd.f32 %v3472_v24, %v2193_v15  ;;  %v2204_v24 = vadd.f32 %v3359_v2, %v4410_v51  ;;  %v2212_v51 = vadd.f32 %v3365_v63, %v4424_v3 }
 0x1d6   : > { %v4597_v49 = vpop.f32.mrf.mxu1  ;;  %v2345_v48 = vpop.f32.mrf.mxu0  ;;  %v2217_v2 = vadd.f32 %v3368_v14, %v4431_v13  ;;  %v2225_v39 = vadd.f32 %v3374_v61, %v4445_v29 }
 0x1d7   : > { %v2457_v62 = vadd.f32 %v2456_v47, %v4592_v27  ;;  %v4609_v59 = vadd.f32 %v2345_v48, %v2185_v52  ;;  %v3386_v29 = vadd.f32 %v4597_v49, %v4588_v33 }
 0x1d8   : > { %v4605_v38 = vpop.f32.mrf.mxu1  ;;  %v3473_v58 = vpop.f32.mrf.mxu0 }
 0x1d9   : > { %v2458_v9 = vadd.f32 %v2457_v62, %v4601_v37  ;;  %v4631_v36 = vadd.f32 %v3473_v58, %v2196_v26  ;;  %v2241_v49 = vadd.f32 %v3386_v29, %v4474_v20 }
 0x1da   : > { %v4613_v22 = vpop.f32.mrf.mxu1  ;;  %v2348_v1 = vpop.f32.mrf.mxu0 }
 0x1db   : > { %v2459_v7 = vadd.f32 %v2458_v9, %v4609_v59  ;;  %v4619_v4 = vadd.f32 %v2348_v1, %v2188_v28  ;;  %v3389_v21 = vadd.f32 %v4613_v22, %v4605_v38 }
 0x1dc   : > { %v4621_v17 = vpop.f32.mrf.mxu1  ;;  %v3476_v46 = vpop.f32.mrf.mxu0 }
 0x1dd   : > { %v2460_v30 = vadd.f32 %v2459_v7, %v4619_v4  ;;  %v4649_v12 = vadd.f32 %v3476_v46, %v2209_v56  ;;  %v2220_v46 = vadd.f32 %v3371_v31, %v4438_v19  ;;  %v2228_v19 = vadd.f32 %v3377_v40, %v4452_v35 }
 0x1de   : > { %v3391_v47 = vpop.f32.mrf.mxu1  ;;  %v2361_v32 = vpop.f32.mrf.mxu0  ;;  %v2244_v22 = vadd.f32 %v3389_v21, %v4481_v42 }
 0x1df   : > { %v2461_v48 = vadd.f32 %v2460_v30, %v4625_v54  ;;  %v4637_v53 = vadd.f32 %v2361_v32, %v2201_v45  ;;  %v3392_v33 = vadd.f32 %v3391_v47, %v4621_v17  ;;  %v5003_v17 = vld [vmem:[#allocation2_spill] sm:$0xff] }
 0x1e0   : > { %v3393_v62 = vpop.f32.mrf.mxu1  ;;  %v3477_v52 = vpop.f32.mrf.mxu0 }
 0x1e1   : > { %v2462_v18 = vadd.f32 %v2461_v48, %v4631_v36  ;;  %v4655_v6 = vadd.f32 %v3477_v52, %v2212_v51  ;;  %v2249_v47 = vadd.f32 %v3392_v33, %v5003_v17 }
 0x1e2   : > { %v3394_v57 = vpop.f32.mrf.mxu1  ;;  %v2364_v9 = vpop.f32.mrf.mxu0 }
 0x1e3   : > { %v2463_v50 = vadd.f32 %v2462_v18, %v4637_v53  ;;  %v4645_v58 = vadd.f32 %v2364_v9, %v2204_v24  ;;  %v2233_v9 = vadd.f32 %v3380_v25, %v4457_v16  ;;  %v3395_v61 = vadd.f32 %v3394_v57, %v3393_v62  ;;  %v5004_v57 = vld [vmem:[#allocation3_spill] sm:$0xff] }
 0x1e4   : > { %v3396_v28 = vpop.f32.mrf.mxu1  ;;  %v3480_v1 = vpop.f32.mrf.mxu0 }
 0x1e5   : > { %v2464_v5 = vadd.f32 %v2463_v50, %v4645_v58  ;;  %v4673_v55 = vadd.f32 %v3480_v1, %v2225_v39  ;;  %v2236_v50 = vadd.f32 %v3383_v11, %v4467_v34  ;;  %v2252_v42 = vadd.f32 %v3395_v61, %v5004_v57  ;;  %v5005_v11 = vld [vmem:[#allocation4_spill] sm:$0xff] }
 0x1e6   : > { %v3397_v15 = vpop.f32.mrf.mxu1  ;;  %v2377_v7 = vpop.f32.mrf.mxu0 }
 0x1e7   : > { %v2465_v8 = vadd.f32 %v2464_v5, %v4649_v12  ;;  %v4661_v23 = vadd.f32 %v2377_v7, %v2217_v2 }
 0x1e8   : > { %v3399_v26 = vpop.f32.mrf.mxu1  ;;  %v3481_v30 = vpop.f32.mrf.mxu0 }
 0x1e9   : > { %v2466_v3 = vadd.f32 %v2465_v8, %v4655_v6  ;;  %v4679_v44 = vadd.f32 %v3481_v30, %v2228_v19  ;;  %v3398_v30 = vadd.f32 %v3397_v15, %v3396_v28 }
 0x1ea   : > { %v3400_v32 = vpop.f32.mrf.mxu1  ;;  %v2380_v41 = vpop.f32.mrf.mxu0 }
 0x1eb   : > { %v2467_v13 = vadd.f32 %v2466_v3, %v4661_v23  ;;  %v4669_v48 = vadd.f32 %v2380_v41, %v2220_v46  ;;  %v3401_v41 = vadd.f32 %v3400_v32, %v3399_v26  ;;  %v2257_v28 = vadd.f32 %v3398_v30, %v5005_v11  ;;  %v5006_v26 = vld [vmem:[#allocation5_spill] sm:$0xff] }
 0x1ec   : > { %v3402_v45 = vpop.f32.mrf.mxu1  ;;  %v3484_v52 = vpop.f32.mrf.mxu0 }
 0x1ed   : > { %v2468_v63 = vadd.f32 %v2467_v13, %v4669_v48  ;;  %v4694_v38 = vadd.f32 %v3484_v52, %v2241_v49  ;;  %v2260_v32 = vadd.f32 %v3401_v41, %v5006_v26  ;;  %v5010_v41 = vld [vmem:[#allocation9_spill] sm:$0xff] }
 0x1ee   : > { %v3403_v18 = vpop.f32.mrf.mxu1  ;;  %v2393_v24 = vpop.f32.mrf.mxu0 }
 0x1ef   : > { %v2469_v43 = vadd.f32 %v2468_v63, %v4673_v55  ;;  %v4685_v0 = vadd.f32 %v2393_v24, %v2233_v9  ;;  %v3404_v52 = vadd.f32 %v3403_v18, %v3402_v45  ;;  %v5007_v18 = vld [vmem:[#allocation6_spill] sm:$0xff] }
 0x1f0   : > { %v3405_v14 = vpop.f32.mrf.mxu1  ;;  %v3485_v56 = vpop.f32.mrf.mxu0 }
 0x1f1   : > { %v2470_v35 = vadd.f32 %v2469_v43, %v4679_v44  ;;  %v4698_v40 = vadd.f32 %v3485_v56, %v2244_v22 }
 0x1f2   : > { %v3406_v1 = vpop.f32.mrf.mxu1  ;;  %v2396_v31 = vpop.f32.mrf.mxu0 }
 0x1f3   : > { %v2471_v51 = vadd.f32 %v2470_v35, %v4685_v0  ;;  %v4692_v16 = vadd.f32 %v2396_v31, %v2236_v50  ;;  %v3407_v29 = vadd.f32 %v3406_v1, %v3405_v14  ;;  %v2265_v31 = vadd.f32 %v3404_v52, %v5007_v18  ;;  %v5008_v1 = vld [vmem:[#allocation7_spill] sm:$0xff] }
 0x1f4   : > { %v3408_v5 = vpop.f32.mrf.mxu1  ;;  %v3488_v7 = vpop.f32.mrf.mxu0 }
 0x1f5   : > { %v2472_v8 = vadd.f32 %v2471_v51, %v4692_v16  ;;  %v4710_v43 = vadd.f32 %v3488_v7, %v2257_v28  ;;  %v2268_v7 = vadd.f32 %v3407_v29, %v5008_v1  ;;  %v5011_v28 = vld [vmem:[#allocation10_spill] sm:$0xff] }
 0x1f6   : > { %v3409_v34 = vpop.f32.mrf.mxu1  ;;  %v2409_v2 = vpop.f32.mrf.mxu0 }
 0x1f7   : > { %v2473_v20 = vadd.f32 %v2472_v8, %v4694_v38  ;;  %v4702_v25 = vadd.f32 %v2409_v2, %v2249_v47  ;;  %v3410_v35 = vadd.f32 %v3409_v34, %v3408_v5  ;;  %v5009_v2 = vld [vmem:[#allocation8_spill] sm:$0xff] }
 0x1f8   : > { %v3411_v3 = vpop.f32.mrf.mxu1  ;;  %v3489_v46 = vpop.f32.mrf.mxu0 }
 0x1f9   : > { %v2474_v62 = vadd.f32 %v2473_v20, %v4698_v40  ;;  %v4714_v50 = vadd.f32 %v3489_v46, %v2260_v32  ;;  %v2273_v30 = vadd.f32 %v3410_v35, %v5009_v2  ;;  %v5012_v32 = vld [vmem:[#allocation12_spill] sm:$0xff] }
 0x1fa   : > { %v3412_v39 = vpop.f32.mrf.mxu1  ;;  %v2412_v13 = vpop.f32.mrf.mxu0 }
 0x1fb   : > { %v2475_v15 = vadd.f32 %v2474_v62, %v4702_v25  ;;  %v4708_v19 = vadd.f32 %v2412_v13, %v2252_v42  ;;  %v3413_v51 = vadd.f32 %v3412_v39, %v3411_v3 }
 0x1fc   : > { %v3414_v63 = vpop.f32.mrf.mxu1  ;;  %v3492_v24 = vpop.f32.mrf.mxu0 }
 0x1fd   : > { %v2476_v9 = vadd.f32 %v2475_v15, %v4708_v19  ;;  %v2434_v46 = vadd.f32 %v3492_v24, %v2273_v30  ;;  %v2276_v62 = vadd.f32 %v3413_v51, %v5010_v41 }
 0x1fe   : > { %v3415_v56 = vpop.f32.mrf.mxu1  ;;  %v2425_v21 = vpop.f32.mrf.mxu0 }
 0x1ff   : > { %v2477_v45 = vadd.f32 %v2476_v9, %v4710_v43  ;;  %v2426_v61 = vadd.f32 %v2425_v21, %v2265_v31  ;;  %v3416_v20 = vadd.f32 %v3415_v56, %v3414_v63  ;;  %v5013_v21 = vld [vmem:[#allocation11_spill] sm:$0xff] }
 0x200   : > { %v3417_v33 = vpop.f32.mrf.mxu1  ;;  %v3493_v49 = vpop.f32.mrf.mxu0 }
 0x201   : > { %v2478_v14 = vadd.f32 %v2477_v45, %v4714_v50  ;;  %v2437_v13 = vadd.f32 %v3493_v49, %v2276_v62  ;;  %v2281_v15 = vadd.f32 %v3416_v20, %v5011_v28 }
 0x202   : > { %v3418_v22 = vpop.f32.mrf.mxu1  ;;  %v2428_v8 = vpop.f32.mrf.mxu0 }
 0x203   : > { %v2479_v5 = vadd.f32 %v2478_v14, %v2426_v61  ;;  %v2429_v34 = vadd.f32 %v2428_v8, %v2268_v7  ;;  %v3419_v57 = vadd.f32 %v3418_v22, %v3417_v33  ;;  %v5014_v14 = vld [vmem:[#allocation13_spill] sm:$0xff] }
 0x204   : > { %v3420_v17 = vpop.f32.mrf.mxu1  ;;  %v3496_v47 = vpop.f32.mrf.mxu0 }
 0x205   : > { %v2480_v42 = vadd.f32 %v2479_v5, %v2429_v34  ;;  %v2284_v35 = vadd.f32 %v3419_v57, %v5013_v21 }
 0x206   : > { %v3421_v3 = vpop.f32.mrf.mxu1  ;;  %v2441_v39 = vpop.f32.mrf.mxu0 }
 0x207   : > { %v2481_v52 = vadd.f32 %v2480_v42, %v2434_v46  ;;  %v3422_v11 = vadd.f32 %v3421_v3, %v3420_v17  ;;  %v2442_v9 = vadd.f32 %v2441_v39, %v2281_v15 }
 0x208   : > { %v3423_v29 = vpop.f32.mrf.mxu1  ;;  %v3497_v26 = vpop.f32.mrf.mxu0 }
 0x209   : > { %v2289_v63 = vadd.f32 %v3422_v11, %v5012_v32  ;;  %v2482_v56 = vadd.f32 %v2481_v52, %v2437_v13 }
 0x20a   : > { %v3424_v24 = vpop.f32.mrf.mxu1  ;;  %v2444_v45 = vpop.f32.mrf.mxu0 }
 0x20b   : > { %v2483_v18 = vadd.f32 %v2482_v56, %v2442_v9  ;;  %v3425_v31 = vadd.f32 %v3424_v24, %v3423_v29  ;;  %v2445_v33 = vadd.f32 %v2444_v45, %v2284_v35  ;;  %v2450_v51 = vadd.f32 %v3496_v47, %v2289_v63 }
 0x20d   : > { %v2292_v49 = vadd.f32 %v3425_v31, %v5014_v14  ;;  %v2484_v1 = vadd.f32 %v2483_v18, %v2445_v33 }
 0x20f   : > { %v2453_v7 = vadd.f32 %v3497_v26, %v2292_v49  ;;  %v2485_v22 = vadd.f32 %v2484_v1, %v2450_v51 }
 0x211   : > { %v2486_v8 = vadd.f32 %v2485_v22, %v2453_v7 }
 0x213   : > { %v2487_v2 = vrot.slane %v2486_v8, 4 }
 0x215   : > { %v2488_v30 = vadd.f32 %v2487_v2, %v2486_v8 }
 0x217   : > { %v2489_v20 = vrot.slane %v2488_v30, 2 }
 0x219   : > { %v2490_v5 = vadd.f32 %v2489_v20, %v2488_v30 }
 0x21b   : > { %v2491_v17 = vrot.slane %v2490_v5, 1 }
 0x21d   : > { %v2492_v41 = vadd.f32 %v2491_v17, %v2490_v5 }
 0x21f   : > { %v2494_v62 = vmul.f32 0.00390625, %v2492_v41 }
 0x221   : > { %v4727_v57 = vsub.f32 %v4637_v53, %v2494_v62  ;;  %v4730_v42 = vsub.f32 %v4645_v58, %v2494_v62  ;;  %v4733_v47 = vsub.f32 %v4649_v12, %v2494_v62  ;;  %v4736_v3 = vsub.f32 %v4655_v6, %v2494_v62 }
 0x222   : > { %v4739_v39 = vsub.f32 %v4661_v23, %v2494_v62  ;;  %v4742_v52 = vsub.f32 %v4669_v48, %v2494_v62  ;;  %v4745_v11 = vsub.f32 %v4673_v55, %v2494_v62  ;;  %v4748_v53 = vsub.f32 %v4679_v44, %v2494_v62 }
 0x223   : > { %v4751_v58 = vsub.f32 %v4685_v0, %v2494_v62  ;;  %v4754_v12 = vsub.f32 %v4692_v16, %v2494_v62  ;;  %v4757_v6 = vsub.f32 %v4694_v38, %v2494_v62  ;;  %v4760_v23 = vsub.f32 %v4698_v40, %v2494_v62 }
 0x224   : > { %v4763_v48 = vsub.f32 %v4702_v25, %v2494_v62  ;;  %v4766_v55 = vsub.f32 %v4708_v19, %v2494_v62  ;;  %v4769_v44 = vsub.f32 %v4710_v43, %v2494_v62  ;;  %v4772_v0 = vsub.f32 %v4714_v50, %v2494_v62 }
 0x225   : > { %v4774_v16 = vsub.f32 %v2426_v61, %v2494_v62  ;;  %v4776_v28 = vsub.f32 %v2429_v34, %v2494_v62  ;;  %v4778_v38 = vsub.f32 %v2434_v46, %v2494_v62  ;;  %v4780_v40 = vsub.f32 %v2437_v13, %v2494_v62 }
 0x226   : > { %v4782_v15 = vsub.f32 %v2442_v9, %v2494_v62  ;;  %v4784_v25 = vsub.f32 %v2445_v33, %v2494_v62  ;;  %v4786_v19 = vsub.f32 %v2450_v51, %v2494_v62  ;;  %v4788_v29 = vsub.f32 %v2453_v7, %v2494_v62 }
 0x227   : > { %v4791_v43 = vsub.f32 %v4584_v10, %v2494_v62  ;;  %v4794_v50 = vsub.f32 %v4586_v60, %v2494_v62  ;;  %v4797_v61 = vsub.f32 %v4592_v27, %v2494_v62  ;;  %v4804_v13 = vsub.f32 %v4601_v37, %v2494_v62 }
 0x228   : > { %v4807_v26 = vsub.f32 %v4609_v59, %v2494_v62  ;;  %v4812_v32 = vsub.f32 %v4619_v4, %v2494_v62  ;;  %v4817_v9 = vsub.f32 %v4625_v54, %v2494_v62  ;;  %v4822_v59 = vsub.f32 %v4631_v36, %v2494_v62 }
 0x229   : > { %v2527_v34 = vmul.f32 %v4791_v43, %v4791_v43  ;;  %v2528_v46 = vmul.f32 %v4794_v50, %v4794_v50  ;;  %v2529_v10 = vmul.f32 %v4797_v61, %v4797_v61  ;;  %v2530_v27 = vmul.f32 %v4804_v13, %v4804_v13 }
 0x22a   : > { %v2531_v37 = vmul.f32 %v4807_v26, %v4807_v26  ;;  %v2532_v21 = vmul.f32 %v4812_v32, %v4812_v32  ;;  %v2533_v4 = vmul.f32 %v4817_v9, %v4817_v9  ;;  %v2534_v45 = vmul.f32 %v4822_v59, %v4822_v59 }
 0x22b   : > { %v2559_v60 = vadd.f32 %v2528_v46, %v2527_v34  ;;  %v2535_v18 = vmul.f32 %v4727_v57, %v4727_v57  ;;  %v2536_v36 = vmul.f32 %v4730_v42, %v4730_v42  ;;  %v2537_v51 = vmul.f32 %v4733_v47, %v4733_v47 }
 0x22c   : > { %v2538_v49 = vmul.f32 %v4736_v3, %v4736_v3  ;;  %v2539_v7 = vmul.f32 %v4739_v39, %v4739_v39  ;;  %v2540_v8 = vmul.f32 %v4742_v52, %v4742_v52  ;;  %v2541_v30 = vmul.f32 %v4745_v11, %v4745_v11 }
 0x22d   : > { %v2560_v63 = vadd.f32 %v2559_v60, %v2529_v10  ;;  %v2542_v5 = vmul.f32 %v4748_v53, %v4748_v53  ;;  %v2543_v41 = vmul.f32 %v4751_v58, %v4751_v58  ;;  %v2544_v34 = vmul.f32 %v4754_v12, %v4754_v12 }
 0x22e   : > { %v2545_v10 = vmul.f32 %v4757_v6, %v4757_v6 }
 0x22f   : > { %v2561_v56 = vadd.f32 %v2560_v63, %v2530_v27  ;;  %v2546_v27 = vmul.f32 %v4760_v23, %v4760_v23 }
 0x231   : > { %v2562_v35 = vadd.f32 %v2561_v56, %v2531_v37  ;;  %v2547_v37 = vmul.f32 %v4763_v48, %v4763_v48 }
 0x233   : > { %v2563_v24 = vadd.f32 %v2562_v35, %v2532_v21  ;;  %v2548_v21 = vmul.f32 %v4766_v55, %v4766_v55 }
 0x235   : > { %v2564_v54 = vadd.f32 %v2563_v24, %v2533_v4  ;;  %v2549_v4 = vmul.f32 %v4769_v44, %v4769_v44 }
 0x237   : > { %v2565_v31 = vadd.f32 %v2564_v54, %v2534_v45  ;;  %v2550_v45 = vmul.f32 %v4772_v0, %v4772_v0 }
 0x239   : > { %v2566_v33 = vadd.f32 %v2565_v31, %v2535_v18  ;;  %v2551_v18 = vmul.f32 %v4774_v16, %v4774_v16 }
 0x23b   : > { %v2567_v14 = vadd.f32 %v2566_v33, %v2536_v36  ;;  %v2552_v36 = vmul.f32 %v4776_v28, %v4776_v28 }
 0x23d   : > { %v2568_v1 = vadd.f32 %v2567_v14, %v2537_v51  ;;  %v2553_v51 = vmul.f32 %v4778_v38, %v4778_v38 }
 0x23f   : > { %v2569_v22 = vadd.f32 %v2568_v1, %v2538_v49  ;;  %v2554_v49 = vmul.f32 %v4780_v40, %v4780_v40 }
 0x241   : > { %v2570_v2 = vadd.f32 %v2569_v22, %v2539_v7  ;;  %v2555_v7 = vmul.f32 %v4782_v15, %v4782_v15 }
 0x243   : > { %v2571_v20 = vadd.f32 %v2570_v2, %v2540_v8  ;;  %v2556_v8 = vmul.f32 %v4784_v25, %v4784_v25 }
 0x245   : > { %v2572_v17 = vadd.f32 %v2571_v20, %v2541_v30  ;;  %v2557_v30 = vmul.f32 %v4786_v19, %v4786_v19 }
 0x247   : > { %v2573_v62 = vadd.f32 %v2572_v17, %v2542_v5  ;;  %v2558_v5 = vmul.f32 %v4788_v29, %v4788_v29 }
 0x249   : > { %v2574_v46 = vadd.f32 %v2573_v62, %v2543_v41 }
 0x24b   : > { %v2575_v60 = vadd.f32 %v2574_v46, %v2544_v34 }
 0x24d   : > { %v2576_v63 = vadd.f32 %v2575_v60, %v2545_v10 }
 0x24f   : > { %v2577_v56 = vadd.f32 %v2576_v63, %v2546_v27 }
 0x251   : > { %v2578_v35 = vadd.f32 %v2577_v56, %v2547_v37 }
 0x253   : > { %v2579_v24 = vadd.f32 %v2578_v35, %v2548_v21 }
 0x255   : > { %v2580_v54 = vadd.f32 %v2579_v24, %v2549_v4 }
 0x257   : > { %v2581_v31 = vadd.f32 %v2580_v54, %v2550_v45 }
 0x259   : > { %v2582_v33 = vadd.f32 %v2581_v31, %v2551_v18 }
 0x25b   : > { %v2583_v14 = vadd.f32 %v2582_v33, %v2552_v36 }
 0x25d   : > { %v2584_v1 = vadd.f32 %v2583_v14, %v2553_v51 }
 0x25f   : > { %v2585_v22 = vadd.f32 %v2584_v1, %v2554_v49 }
 0x261   : > { %v2586_v2 = vadd.f32 %v2585_v22, %v2555_v7 }
 0x263   : > { %v2587_v20 = vadd.f32 %v2586_v2, %v2556_v8 }
 0x265   : > { %v2588_v17 = vadd.f32 %v2587_v20, %v2557_v30 }
 0x267   : > { %v2589_v41 = vadd.f32 %v2588_v17, %v2558_v5 }
 0x269   : > { %v2590_v62 = vrot.slane %v2589_v41, 4 }
 0x26b   : > { %v2591_v34 = vadd.f32 %v2590_v62, %v2589_v41 }
 0x26d   : > { %v2592_v46 = vrot.slane %v2591_v34, 2 }
 0x26f   : > { %v2593_v10 = vadd.f32 %v2592_v46, %v2591_v34 }
 0x271   : > { %v2594_v60 = vrot.slane %v2593_v10, 1 }
 0x273   : > { %v2595_v27 = vadd.f32 %v2594_v60, %v2593_v10 }
 0x275   : > { %v2596_v63 = vmul.f32 0.00390625, %v2595_v27 }
 0x277   : > { %v2597_v37 = vadd.f32 1e-05, %v2596_v63 }
 0x279   : > { %3803 = vrsqrt.f32 %v2597_v37 }
 0x286   : > { %v3804_v56 = vpop.eup %3803 }
 0x287   : > { %v2599_v21 = vmul.f32 %v3804_v56, %v4791_v43  ;;  %v2600_v35 = vmul.f32 %v3804_v56, %v4794_v50  ;;  %v2601_v4 = vmul.f32 %v3804_v56, %v4797_v61  ;;  %v2602_v24 = vmul.f32 %v3804_v56, %v4804_v13 }
 0x288   : > { %v2603_v45 = vmul.f32 %v3804_v56, %v4807_v26  ;;  %v2604_v54 = vmul.f32 %v3804_v56, %v4812_v32  ;;  %v2605_v18 = vmul.f32 %v3804_v56, %v4817_v9  ;;  %v2606_v31 = vmul.f32 %v3804_v56, %v4822_v59 }
 0x289   : > { %v2607_v36 = vmul.f32 %v3804_v56, %v4727_v57  ;;  %v2608_v33 = vmul.f32 %v3804_v56, %v4730_v42  ;;  %v2609_v43 = vmul.f32 %v3804_v56, %v4733_v47  ;;  %v2610_v50 = vmul.f32 %v3804_v56, %v4736_v3 }
 0x28a   : > { %v2611_v61 = vmul.f32 %v3804_v56, %v4739_v39  ;;  %v2612_v13 = vmul.f32 %v3804_v56, %v4742_v52  ;;  %v2613_v26 = vmul.f32 %v3804_v56, %v4745_v11  ;;  %v2614_v32 = vmul.f32 %v3804_v56, %v4748_v53 }
 0x28b   : > { %v2615_v9 = vmul.f32 %v3804_v56, %v4751_v58  ;;  %v2616_v59 = vmul.f32 %v3804_v56, %v4754_v12  ;;  %v2617_v57 = vmul.f32 %v3804_v56, %v4757_v6  ;;  %v2618_v42 = vmul.f32 %v3804_v56, %v4760_v23 }
 0x28c   : > { %v4900_v47 = vmul.f32 %v3804_v56, %v4763_v48  ;;  %v4903_v3 = vmul.f32 %v3804_v56, %v4766_v55  ;;  %v4906_v39 = vmul.f32 %v3804_v56, %v4769_v44  ;;  %v4909_v52 = vmul.f32 %v3804_v56, %v4772_v0 }
 0x28d   : > { %v4912_v11 = vmul.f32 %v3804_v56, %v4774_v16  ;;  %v4915_v53 = vmul.f32 %v3804_v56, %v4776_v28  ;;  %v4918_v58 = vmul.f32 %v3804_v56, %v4778_v38  ;;  %v4921_v12 = vmul.f32 %v3804_v56, %v4780_v40 }
 0x28e   : > { %v4929_v6 = vmul.f32 %v3804_v56, %v4782_v15  ;;  %v4932_v23 = vmul.f32 %v3804_v56, %v4784_v25  ;;  %v4935_v48 = vmul.f32 %v3804_v56, %v4786_v19  ;;  %v4938_v55 = vmul.f32 %v3804_v56, %v4788_v29 }
 0x28f   : > { %v2631_v44 = vmax.f32 %v2599_v21, 0.0  ;;  %v2632_v0 = vmax.f32 %v2600_v35, 0.0  ;;  %v2633_v16 = vmax.f32 %v2601_v4, 0.0  ;;  %v2634_v28 = vmax.f32 %v2602_v24, 0.0 }
 0x290   : > { %v2635_v38 = vmax.f32 %v2603_v45, 0.0  ;;  %v2636_v40 = vmax.f32 %v2604_v54, 0.0  ;;  %v2637_v15 = vmax.f32 %v2605_v18, 0.0  ;;  %v2638_v25 = vmax.f32 %v2606_v31, 0.0 }
 0x291   : > { %v2639_v51 = vmax.f32 %v2607_v36, 0.0  ;;  %v2640_v19 = vmax.f32 %v2608_v33, 0.0  ;;  %v2641_v14 = vmax.f32 %v2609_v43, 0.0  ;;  %v2642_v49 = vmax.f32 %v2610_v50, 0.0  ;;  %2663 = vst [vmem:[%s4926_s20] sm:$0xff] %v2631_v44  ;;  %2664 = vst [vmem:[%s4926_s20 + $0x8] sm:$0xff] %v2632_v0 }
 0x292   : > { %2665 = vst [vmem:[%s4926_s20 + $0x10] sm:$0xff] %v2633_v16  ;;  %2666 = vst [vmem:[%s4926_s20 + $0x18] sm:$0xff] %v2634_v28  ;;  %v2643_v29 = vmax.f32 %v2611_v61, 0.0  ;;  %v2644_v1 = vmax.f32 %v2612_v13, 0.0  ;;  %v2645_v7 = vmax.f32 %v2613_v26, 0.0  ;;  %v2646_v22 = vmax.f32 %v2614_v32, 0.0 }
 0x293   : > { %2667 = vst [vmem:[%s4926_s20 + $0x20] sm:$0xff] %v2635_v38  ;;  %2668 = vst [vmem:[%s4926_s20 + $0x28] sm:$0xff] %v2636_v40  ;;  %v2647_v8 = vmax.f32 %v2615_v9, 0.0  ;;  %v2648_v2 = vmax.f32 %v2616_v59, 0.0  ;;  %v2649_v30 = vmax.f32 %v2617_v57, 0.0  ;;  %v2650_v20 = vmax.f32 %v2618_v42, 0.0 }
 0x294   : > { %2669 = vst [vmem:[%s4926_s20 + $0x30] sm:$0xff] %v2637_v15  ;;  %2670 = vst [vmem:[%s4926_s20 + $0x38] sm:$0xff] %v2638_v25  ;;  %v2651_v5 = vmax.f32 %v4900_v47, 0.0  ;;  %v2652_v17 = vmax.f32 %v4903_v3, 0.0  ;;  %v2653_v41 = vmax.f32 %v4906_v39, 0.0  ;;  %v2654_v62 = vmax.f32 %v4909_v52, 0.0 }
 0x295   : > { %2671 = vst [vmem:[%s4926_s20 + $0x40] sm:$0xff] %v2639_v51  ;;  %2672 = vst [vmem:[%s4926_s20 + $0x48] sm:$0xff] %v2640_v19  ;;  %v2655_v34 = vmax.f32 %v4912_v11, 0.0  ;;  %v2656_v46 = vmax.f32 %v4915_v53, 0.0  ;;  %v2657_v10 = vmax.f32 %v4918_v58, 0.0  ;;  %v2658_v60 = vmax.f32 %v4921_v12, 0.0 }
 0x296   : > { %2673 = vst [vmem:[%s4926_s20 + $0x50] sm:$0xff] %v2641_v14  ;;  %2674 = vst [vmem:[%s4926_s20 + $0x58] sm:$0xff] %v2642_v49  ;;  %v2659_v27 = vmax.f32 %v4929_v6, 0.0  ;;  %v2660_v63 = vmax.f32 %v4932_v23, 0.0  ;;  %v2661_v37 = vmax.f32 %v4935_v48, 0.0  ;;  %v2662_v56 = vmax.f32 %v4938_v55, 0.0 }
 0x297   : > { %2675 = vst [vmem:[%s4926_s20 + $0x60] sm:$0xff] %v2643_v29  ;;  %2676 = vst [vmem:[%s4926_s20 + $0x68] sm:$0xff] %v2644_v1 }
 0x298   : > { %2677 = vst [vmem:[%s4926_s20 + $0x70] sm:$0xff] %v2645_v7  ;;  %2678 = vst [vmem:[%s4926_s20 + $0x78] sm:$0xff] %v2646_v22 }
 0x299   : > { %2679 = vst [vmem:[%s4926_s20 + $0x80] sm:$0xff] %v2647_v8  ;;  %2680 = vst [vmem:[%s4926_s20 + $0x88] sm:$0xff] %v2648_v2 }
 0x29a   : > { %2681 = vst [vmem:[%s4926_s20 + $0x90] sm:$0xff] %v2649_v30  ;;  %2682 = vst [vmem:[%s4926_s20 + $0x98] sm:$0xff] %v2650_v20 }
 0x29b   : > { %2683 = vst [vmem:[%s4926_s20 + $0xa0] sm:$0xff] %v2651_v5  ;;  %2684 = vst [vmem:[%s4926_s20 + $0xa8] sm:$0xff] %v2652_v17 }
 0x29c   : > { %2685 = vst [vmem:[%s4926_s20 + $0xb0] sm:$0xff] %v2653_v41  ;;  %2686 = vst [vmem:[%s4926_s20 + $0xb8] sm:$0xff] %v2654_v62 }
 0x29d   : > { %2687 = vst [vmem:[%s4926_s20 + $0xc0] sm:$0xff] %v2655_v34  ;;  %2688 = vst [vmem:[%s4926_s20 + $0xc8] sm:$0xff] %v2656_v46 }
 0x29e   : > { %2689 = vst [vmem:[%s4926_s20 + $0xd0] sm:$0xff] %v2657_v10  ;;  %2690 = vst [vmem:[%s4926_s20 + $0xd8] sm:$0xff] %v2658_v60 }
 0x29f   : > { %2691 = vst [vmem:[%s4926_s20 + $0xe0] sm:$0xff] %v2659_v27  ;;  %2692 = vst [vmem:[%s4926_s20 + $0xe8] sm:$0xff] %v2660_v63 }
 0x2a0   : > { %2693 = vst [vmem:[%s4926_s20 + $0xf0] sm:$0xff] %v2661_v37  ;;  %2694 = vst [vmem:[%s4926_s20 + $0xf8] sm:$0xff] %v2662_v56 }
 0x2a1 PF: > { %s13_s12 = sadd.s32 1, %s3811_s12  }
 0x2a2   : > { %p10_p4 = scmp.ge.s32.totalorder %s13_s12, 4  }
 0x2a4   :  { %12 = sbr.rel (!%p10_p4) target bundleno = 1 (0x1), region = 62 }

// kernel: resnet_forward.47
= control target key start
LH: loop header
LB: loop body
LE: loop exit
PB: predicated region body
PF: predicated region fallthrough
CT: control target
= control target key end

     0   :  { %s3624_s12 = smov 0   ;;  %s4474_s0 = inlined_call_operand.vmem [shape: bf16[2,256,1152], index: 0, kind: input, shape index: {}]   ;;  %s4475_s1 = inlined_call_operand.vmem [shape: bf16[1152,128], index: 1, kind: input, shape index: {}]   ;;  %s4476_s2 = inlined_call_operand.vmem [shape: f32[1,128], index: 2, kind: input, shape index: {}]   ;;  %s4477_s3 = inlined_call_operand.vmem [shape: f32[2,256,128], index: 3, kind: output, shape index: {}]  }
   0x1 LB: > { %s2543_s13 = sadd.s32 4294967295, %s3602_s12   ;;  %p2547_p0 = scmp.ge.s32.totalorder %s3602_s12, 1  ;;  %s3602_s12 = sphi %s3624_s12, %s13_s12  }
   0x2   : > { %p137_p1 = scmp.lt.s32.totalorder %s3602_s12, 3 }
   0x4   : > { %p138_p2 = pnand %p2547_p0, %p137_p1 }
   0x6   : > { %141 = sbr.rel (%p138_p2) target bundleno = 530 (0x212), region = 32 }
   0xb   : > { %v3316_v0 = vld [vmem:[%s4475_s1 + $0x78] sm:$0xff]   ;;  %v3318_v2 = vld [vmem:[%s4475_s1 + $0x70] sm:$0xff]   ;;  %p161_p3 = scmp.lt.s32.totalorder %s2543_s13, 1  ;;  %v3320_v4 = vld [vmem:[%s4475_s1 + $0x68] sm:$0xff]  }
   0xc   : > { %v3317_v1 = vld [vmem:[%s4475_s1 + $0x38] sm:$0xff]   ;;  %2771 = vmatprep.subr.bf16.mxu0 %v3316_v0  ;;  %3291 = vmatprep.subr.bf16.mxu1 %v3316_v0  ;;  %v3319_v3 = vld [vmem:[%s4475_s1 + $0x30] sm:$0xff]   ;;  %v3321_v5 = vld [vmem:[%s4475_s1 + $0x28] sm:$0xff]  }
   0xd   : > { %2772 = vmatpush3.bf16.msra.mxu0 %v3317_v1  ;;  %3299 = vmatpush3.bf16.msra.mxu1 %v3317_v1  ;;  %s4499_s13 = smov (!%p161_p3, %s2543_s13), 1  ;;  %v3322_v6 = vld [vmem:[%s4475_s1 + $0x60] sm:$0xff]   ;;  %v3324_v8 = vld [vmem:[%s4475_s1 + $0x58] sm:$0xff]   ;;  %v3326_v10 = vld [vmem:[%s4475_s1 + $0x50] sm:$0xff]  }
   0xe   : > { %2773 = vmatprep.subr.bf16.mxu0 %v3318_v2  ;;  %3292 = vmatprep.subr.bf16.mxu1 %v3318_v2  ;;  %s3307_s28 = smul.u32 1152, %s4499_s13  ;;  %v3323_v7 = vld [vmem:[%s4475_s1 + $0x20] sm:$0xff]   ;;  %v3325_v9 = vld [vmem:[%s4475_s1 + $0x18] sm:$0xff]   ;;  %v3327_v13 = vld [vmem:[%s4475_s1 + $0x10] sm:$0xff]  }
   0xf   : > { %v3328_v14 = vld [vmem:[%s4475_s1 + $0x48] sm:$0xff]   ;;  %v3330_v16 = vld [vmem:[%s4475_s1 + $0x40] sm:$0xff]   ;;  %v3338_v18 = vld [vmem:[%s4475_s1 + $0xf8] sm:$0xff]  }
  0x10   : > { %s3665_s8 = scalar_lea.vmem %s4474_s0, %s3307_s28  ;;  %v3329_v15 = vld [vmem:[%s4475_s1 + $0x8] sm:$0xff]   ;;  %v3331_v17 = vld [vmem:[%s4475_s1] sm:$0xff]   ;;  %v3341_v21 = vld [vmem:[%s4475_s1 + $0x178] sm:$0xff]  }
  0x11   : > { %2774 = vmatpush3.bf16.msra.mxu0 %v3319_v3  ;;  %3300 = vmatpush3.bf16.msra.mxu1 %v3319_v3  ;;  %v3334_v11 = vld [vmem:[%s3665_s8 + $0x4] ss:$36 sps:$4 sm:$0xff]   ;;  %v3339_v22 = vld [vmem:[%s4475_s1 + $0xb8] sm:$0xff]   ;;  %v3340_v23 = vld [vmem:[%s4475_s1 + $0xf0] sm:$0xff]  }
  0x12   : > { %2775 = vmatprep.subr.bf16.mxu0 %v3320_v4  ;;  %3293 = vmatprep.subr.bf16.mxu1 %v3320_v4  ;;  %v3337_v12 = vld [vmem:[%s3665_s8 + $0x364] ss:$36 sps:$4 sm:$0xff]   ;;  %v3343_v24 = vld [vmem:[%s4475_s1 + $0x138] sm:$0xff]   ;;  %v3344_v25 = vld [vmem:[%s3665_s8 + $0x4c] ss:$36 sps:$4 sm:$0xff]  }
  0x13   : > { %1683 = vmatprep.mubr.bf16.mxu0 %v3334_v11  ;;  %1779 = vmatprep.mubr.bf16.mxu1 %v3337_v12  ;;  %v3332_v19 = vld [vmem:[%s3665_s8] ss:$36 sps:$4 sm:$0xff]   ;;  %v3346_v26 = vld [vmem:[%s3665_s8 + $0x3ac] ss:$36 sps:$4 sm:$0xff]   ;;  %v3354_v35 = vld [vmem:[%s3665_s8 + $0x94] ss:$36 sps:$4 sm:$0xff]  }
  0x14   : > { %v3335_v20 = vld [vmem:[%s3665_s8 + $0x360] ss:$36 sps:$4 sm:$0xff]   ;;  %v3342_v27 = vld [vmem:[%s4475_s1 + $0xb0] sm:$0xff]   ;;  %v3348_v29 = vld [vmem:[%s3665_s8 + $0x48] ss:$36 sps:$4 sm:$0xff]  }
  0x15   : > { %2776 = vmatpush3.bf16.msra.mxu0 %v3321_v5  ;;  %3301 = vmatpush3.bf16.msra.mxu1 %v3321_v5  ;;  %v3361_v28 = vld [vmem:[%s4475_s1 + $0x170] sm:$0xff]   ;;  %v3349_v30 = vld [vmem:[%s3665_s8 + $0x3a8] ss:$36 sps:$4 sm:$0xff]   ;;  %v3352_v34 = vld [vmem:[%s4475_s1 + $0xe0] sm:$0xff]  }
  0x16   : > { %2777 = vmatprep.subr.bf16.mxu0 %v3322_v6  ;;  %3294 = vmatprep.subr.bf16.mxu1 %v3322_v6  ;;  %v3350_v31 = vld [vmem:[%s4475_s1 + $0xe8] sm:$0xff]   ;;  %v3363_v33 = vld [vmem:[%s4475_s1 + $0x130] sm:$0xff]   ;;  %v3353_v37 = vld [vmem:[%s4475_s1 + $0xa0] sm:$0xff]  }
  0x17   : > { %v3351_v32 = vld [vmem:[%s4475_s1 + $0xa8] sm:$0xff]   ;;  %v3356_v36 = vld [vmem:[%s3665_s8 + $0x3f4] ss:$36 sps:$4 sm:$0xff]   ;;  %v3366_v44 = vld [vmem:[%s3665_s8 + $0xdc] ss:$36 sps:$4 sm:$0xff]  }
  0x18   : > { %v3358_v38 = vld [vmem:[%s3665_s8 + $0x90] ss:$36 sps:$4 sm:$0xff]   ;;  %v3360_v40 = vld [vmem:[%s4475_s1 + $0xd8] sm:$0xff]   ;;  %v3375_v43 = vld [vmem:[%s4475_s1 + $0x168] sm:$0xff]  }
  0x19   : > { %2778 = vmatpush3.bf16.msra.mxu0 %v3323_v7  ;;  %3302 = vmatpush3.bf16.msra.mxu1 %v3323_v7  ;;  %v3359_v39 = vld [vmem:[%s3665_s8 + $0x3f0] ss:$36 sps:$4 sm:$0xff]   ;;  %v3362_v41 = vld [vmem:[%s4475_s1 + $0x98] sm:$0xff]   ;;  %v3377_v46 = vld [vmem:[%s4475_s1 + $0x128] sm:$0xff]  }
  0x1a   : > { %2779 = vmatprep.subr.bf16.mxu0 %v3324_v8  ;;  %3295 = vmatprep.subr.bf16.mxu1 %v3324_v8  ;;  %v3364_v42 = vld [vmem:[%s4475_s1 + $0xd0] sm:$0xff]   ;;  %v3368_v45 = vld [vmem:[%s3665_s8 + $0x43c] ss:$36 sps:$4 sm:$0xff]   ;;  %v3372_v48 = vld [vmem:[%s4475_s1 + $0xc8] sm:$0xff]  }
  0x1b   : > { %v3365_v47 = vld [vmem:[%s4475_s1 + $0x90] sm:$0xff]   ;;  %v3370_v49 = vld [vmem:[%s3665_s8 + $0xd8] ss:$36 sps:$4 sm:$0xff]   ;;  %v3373_v51 = vld [vmem:[%s4475_s1 + $0x88] sm:$0xff]  }
  0x1c   : > { %v3371_v50 = vld [vmem:[%s3665_s8 + $0x438] ss:$36 sps:$4 sm:$0xff]   ;;  %v3374_v52 = vld [vmem:[%s4475_s1 + $0xc0] sm:$0xff]   ;;  %v3382_v54 = vld [vmem:[%s3665_s8 + $0xc] ss:$36 sps:$4 sm:$0xff]  }
  0x1d   : > { %2780 = vmatpush3.bf16.msra.mxu0 %v3325_v9  ;;  %3303 = vmatpush3.bf16.msra.mxu1 %v3325_v9  ;;  %v3378_v53 = vld [vmem:[%s3665_s8 + $0x124] ss:$36 sps:$4 sm:$0xff]   ;;  %v3384_v60 = vld [vmem:[%s4475_s1 + $0x1f8] sm:$0xff]   ;;  %v3386_v62 = vld [vmem:[%s3665_s8 + $0x16c] ss:$36 sps:$4 sm:$0xff]  }
  0x1e   : > { %2781 = vmatprep.subr.bf16.mxu0 %v3326_v10  ;;  %3296 = vmatprep.subr.bf16.mxu1 %v3326_v10  ;;  %v3392_v55 = vld [vmem:[%s4475_s1 + $0x160] sm:$0xff]   ;;  %v3380_v58 = vld [vmem:[%s3665_s8 + $0x8] ss:$36 sps:$4 sm:$0xff]   ;;  %v3385_v61 = vld [vmem:[%s4475_s1 + $0x1b8] sm:$0xff]  }
  0x1f   : > { %v3393_v56 = vld [vmem:[%s4475_s1 + $0x120] sm:$0xff]   ;;  %v3388_v63 = vld [vmem:[%s3665_s8 + $0x54] ss:$36 sps:$4 sm:$0xff]   ;;  %v3390_v4 = vld [vmem:[%s3665_s8 + $0x168] ss:$36 sps:$4 sm:$0xff]  }
  0x20   : > { %v3376_v57 = vld [vmem:[%s4475_s1 + $0x80] sm:$0xff]   ;;  %v3402_v0 = vld [vmem:[%s4475_s1 + $0x158] sm:$0xff]   ;;  %v3400_v1 = vld [vmem:[%s4475_s1 + $0x1f0] sm:$0xff]  }
  0x21   : > { %2782 = vmatpush3.bf16.msra.mxu0 %v3327_v13  ;;  %3304 = vmatpush3.bf16.msra.mxu1 %v3327_v13  ;;  %v3383_v59 = vld [vmem:[%s3665_s8 + $0x120] ss:$36 sps:$4 sm:$0xff]   ;;  %v3403_v2 = vld [vmem:[%s4475_s1 + $0x118] sm:$0xff]   ;;  %v3401_v3 = vld [vmem:[%s4475_s1 + $0x1b0] sm:$0xff]  }
  0x22   : > { %2783 = vmatprep.subr.bf16.mxu0 %v3328_v14  ;;  %3297 = vmatprep.subr.bf16.mxu1 %v3328_v14  ;;  %v3391_v5 = vld [vmem:[%s3665_s8 + $0x50] ss:$36 sps:$4 sm:$0xff]   ;;  %v3396_v7 = vld [vmem:[%s3665_s8 + $0x9c] ss:$36 sps:$4 sm:$0xff]   ;;  %v3417_v9 = vld [vmem:[%s4475_s1 + $0x1e8] sm:$0xff]  }
  0x23   : > { %v3394_v6 = vld [vmem:[%s3665_s8 + $0x1b4] ss:$36 sps:$4 sm:$0xff]   ;;  %v3419_v11 = vld [vmem:[%s4475_s1 + $0x1a8] sm:$0xff]   ;;  %v3404_v14 = vld [vmem:[%s3665_s8 + $0x1fc] ss:$36 sps:$4 sm:$0xff]  }
  0x24   : > { %v3416_v8 = vld [vmem:[%s4475_s1 + $0x150] sm:$0xff]   ;;  %v3399_v13 = vld [vmem:[%s3665_s8 + $0x98] ss:$36 sps:$4 sm:$0xff]  }
  0x25   : > { %2784 = vmatpush3.bf16.msra.mxu0 %v3329_v15  ;;  %3305 = vmatpush3.bf16.msra.mxu1 %v3329_v15  ;;  %v3418_v10 = vld [vmem:[%s4475_s1 + $0x110] sm:$0xff]   ;;  %v3426_v15 = vld [vmem:[%s4475_s1 + $0x148] sm:$0xff]  }
  0x26   : > { %2785 = vmatprep.subr.bf16.mxu0 %v3330_v16  ;;  %3298 = vmatprep.subr.bf16.mxu1 %v3330_v16  ;;  %v3398_v12 = vld [vmem:[%s3665_s8 + $0x1b0] ss:$36 sps:$4 sm:$0xff]   ;;  %v3427_v16 = vld [vmem:[%s4475_s1 + $0x108] sm:$0xff]  }
  0x29   : > { %2786 = vmatpush3.bf16.msra.mxu0 %v3331_v17  ;;  %3306 = vmatpush3.bf16.msra.mxu1 %v3331_v17  ;;  %v3406_v17 = vld [vmem:[%s3665_s8 + $0xe4] ss:$36 sps:$4 sm:$0xff]  }
  0x2a   : > { %2883 = vmatprep.subr.bf16.mxu1 %v3338_v18  ;;  %2995 = vmatprep.subr.bf16.mxu0 %v3341_v21  ;;  %v3434_v18 = vld [vmem:[%s4475_s1 + $0x1e0] sm:$0xff]  }
  0x2b   : > { %v3409_v21 = vld [vmem:[%s3665_s8 + $0xe0] ss:$36 sps:$4 sm:$0xff]  }
  0x2c   : > { %1684 = vmatmul.mubr.bf16.vlgmr.msra.gmra.mxu0 %v3332_v19  ;;  %1780 = vmatmul.mubr.bf16.vlgmr.msra.gmra.mxu1 %v3335_v20  ;;  %v3435_v19 = vld [vmem:[%s4475_s1 + $0x1a0] sm:$0xff]   ;;  %v3408_v20 = vld [vmem:[%s3665_s8 + $0x1f8] ss:$36 sps:$4 sm:$0xff]  }
  0x2d   : > { %2884 = vmatpush3.bf16.msra.mxu1 %v3339_v22  ;;  %2996 = vmatpush3.bf16.msra.mxu0 %v3343_v24  ;;  %v3410_v22 = vld [vmem:[%s3665_s8 + $0x244] ss:$36 sps:$4 sm:$0xff]  }
  0x2e   : > { %2885 = vmatprep.subr.bf16.mxu1 %v3340_v23  ;;  %1691 = vmatprep.mubr.bf16.mxu0 %v3344_v25  ;;  %v3412_v23 = vld [vmem:[%s3665_s8 + $0x12c] ss:$36 sps:$4 sm:$0xff]   ;;  %v3442_v24 = vld [vmem:[%s4475_s1 + $0x140] sm:$0xff]  }
  0x2f   : > { %1787 = vmatprep.mubr.bf16.mxu1 %v3346_v26  ;;  %2997 = vmatprep.subr.bf16.mxu0 %v3361_v28  ;;  %v3443_v25 = vld [vmem:[%s4475_s1 + $0x100] sm:$0xff]   ;;  %v3450_v26 = vld [vmem:[%s4475_s1 + $0x1d8] sm:$0xff]  }
  0x30   : > { %v3451_v28 = vld [vmem:[%s4475_s1 + $0x198] sm:$0xff]  }
  0x31   : > { %2886 = vmatpush3.bf16.msra.mxu1 %v3342_v27  ;;  %2998 = vmatpush3.bf16.msra.mxu0 %v3363_v33  ;;  %v3414_v27 = vld [vmem:[%s3665_s8 + $0x240] ss:$36 sps:$4 sm:$0xff]   ;;  %v3465_v33 = vld [vmem:[%s4475_s1 + $0x1d0] sm:$0xff]  }
  0x32   : > { %2887 = vmatprep.subr.bf16.mxu1 %v3350_v31  ;;  %2999 = vmatprep.subr.bf16.mxu0 %v3375_v43  ;;  %v3420_v31 = vld [vmem:[%s3665_s8 + $0x28c] ss:$36 sps:$4 sm:$0xff]   ;;  %v3436_v43 = vld [vmem:[%s3665_s8 + $0x31c] ss:$36 sps:$4 sm:$0xff]  }
  0x34   : > { %1692 = vmatmul.mubr.bf16.gmra.mxu0 %v3348_v29  ;;  %1788 = vmatmul.mubr.bf16.gmra.mxu1 %v3349_v30  ;;  %v3452_v29 = vld [vmem:[%s4475_s1 + $0x238] sm:$0xff]   ;;  %v3415_v30 = vld [vmem:[%s3665_s8 + $0x128] ss:$36 sps:$4 sm:$0xff]  }
  0x35   : > { %2888 = vmatpush3.bf16.msra.mxu1 %v3351_v32  ;;  %1699 = vmatprep.mubr.bf16.mxu0 %v3354_v35  ;;  %v3422_v32 = vld [vmem:[%s3665_s8 + $0x174] ss:$36 sps:$4 sm:$0xff]  }
  0x36   : > { %2889 = vmatprep.subr.bf16.mxu1 %v3352_v34  ;;  %1795 = vmatprep.mubr.bf16.mxu1 %v3356_v36  ;;  %v3424_v34 = vld [vmem:[%s3665_s8 + $0x288] ss:$36 sps:$4 sm:$0xff]   ;;  %v3466_v35 = vld [vmem:[%s4475_s1 + $0x190] sm:$0xff]  }
  0x37   : > { %3000 = vmatpush3.bf16.msra.mxu0 %v3377_v46  ;;  %v3425_v36 = vld [vmem:[%s3665_s8 + $0x170] ss:$36 sps:$4 sm:$0xff]   ;;  %v3441_v46 = vld [vmem:[%s3665_s8 + $0x200] ss:$36 sps:$4 sm:$0xff]  }
  0x38   : > { %3001 = vmatprep.subr.bf16.mxu0 %v3392_v55  ;;  %v3467_v55 = vld [vmem:[%s4475_s1 + $0x230] sm:$0xff]  }
  0x39   : > { %2890 = vmatpush3.bf16.msra.mxu1 %v3353_v37  ;;  %v3428_v37 = vld [vmem:[%s3665_s8 + $0x2d4] ss:$36 sps:$4 sm:$0xff]  }
  0x3a   : > { %2891 = vmatprep.subr.bf16.mxu1 %v3360_v40  ;;  %v3433_v40 = vld [vmem:[%s3665_s8 + $0x1b8] ss:$36 sps:$4 sm:$0xff]  }
  0x3b   : > { %3002 = vmatpush3.bf16.msra.mxu0 %v3393_v56  ;;  %v3482_v56 = vld [vmem:[%s4475_s1 + $0x228] sm:$0xff]  }
  0x3c   : > { %1700 = vmatmul.mubr.bf16.gmra.mxu0 %v3358_v38  ;;  %1796 = vmatmul.mubr.bf16.gmra.mxu1 %v3359_v39  ;;  %v3430_v38 = vld [vmem:[%s3665_s8 + $0x1bc] ss:$36 sps:$4 sm:$0xff]   ;;  %v3432_v39 = vld [vmem:[%s3665_s8 + $0x2d0] ss:$36 sps:$4 sm:$0xff]  }
  0x3d   : > { %2892 = vmatpush3.bf16.msra.mxu1 %v3362_v41  ;;  %1707 = vmatprep.mubr.bf16.mxu0 %v3366_v44  ;;  %v3480_v41 = vld [vmem:[%s4475_s1 + $0x1c8] sm:$0xff]  }
  0x3e   : > { %2893 = vmatprep.subr.bf16.mxu1 %v3364_v42  ;;  %1803 = vmatprep.mubr.bf16.mxu1 %v3368_v45  ;;  %v3481_v42 = vld [vmem:[%s4475_s1 + $0x188] sm:$0xff]   ;;  %v3440_v45 = vld [vmem:[%s3665_s8 + $0x318] ss:$36 sps:$4 sm:$0xff]  }
  0x3f   : > { %3003 = vmatprep.subr.bf16.mxu0 %v3402_v0  ;;  %v3438_v44 = vld [vmem:[%s3665_s8 + $0x204] ss:$36 sps:$4 sm:$0xff]  }
  0x40   : > { %3004 = vmatpush3.bf16.msra.mxu0 %v3403_v2  ;;  %v3464_v0 = vld [vmem:[%s3665_s8 + $0xa0] ss:$36 sps:$4 sm:$0xff]   ;;  %v3470_v2 = vld [vmem:[%s3665_s8 + $0xec] ss:$36 sps:$4 sm:$0xff]  }
  0x41   : > { %2894 = vmatpush3.bf16.msra.mxu1 %v3365_v47  ;;  %3005 = vmatprep.subr.bf16.mxu0 %v3416_v8  ;;  %v3495_v47 = vld [vmem:[%s4475_s1 + $0x1c0] sm:$0xff]   ;;  %v3476_v8 = vld [vmem:[%s3665_s8 + $0x134] ss:$36 sps:$4 sm:$0xff]  }
  0x42   : > { %2895 = vmatprep.subr.bf16.mxu1 %v3372_v48  ;;  %v3496_v48 = vld [vmem:[%s4475_s1 + $0x180] sm:$0xff]  }
  0x44   : > { %1708 = vmatmul.mubr.bf16.gmra.mxu0 %v3370_v49  ;;  %1804 = vmatmul.mubr.bf16.gmra.mxu1 %v3371_v50  ;;  %v3444_v49 = vld [vmem:[%s3665_s8 + $0x24c] ss:$36 sps:$4 sm:$0xff]   ;;  %v3448_v50 = vld [vmem:[%s3665_s8 + $0x14] ss:$36 sps:$4 sm:$0xff]  }
  0x45   : > { %2896 = vmatpush3.bf16.msra.mxu1 %v3373_v51  ;;  %1715 = vmatprep.mubr.bf16.mxu0 %v3378_v53  ;;  %v3446_v51 = vld [vmem:[%s3665_s8 + $0x10] ss:$36 sps:$4 sm:$0xff]  }
  0x46   : > { %2897 = vmatprep.subr.bf16.mxu1 %v3374_v52  ;;  %1844 = vmatprep.mubr.bf16.mxu1 %v3382_v54  ;;  %v3449_v52 = vld [vmem:[%s3665_s8 + $0x248] ss:$36 sps:$4 sm:$0xff]   ;;  %v3453_v53 = vld [vmem:[%s3665_s8 + $0x294] ss:$36 sps:$4 sm:$0xff]   ;;  %v3455_v54 = vld [vmem:[%s3665_s8 + $0x5c] ss:$36 sps:$4 sm:$0xff]  }
  0x47   : > { %3006 = vmatpush3.bf16.msra.mxu0 %v3418_v10  ;;  %v3478_v10 = vld [vmem:[%s3665_s8 + $0x368] ss:$36 sps:$4 sm:$0xff]  }
  0x48   : > { %3007 = vmatprep.subr.bf16.mxu0 %v3426_v15  ;;  %v3488_v15 = vld [vmem:[%s3665_s8 + $0x178] ss:$36 sps:$4 sm:$0xff]  }
  0x49   : > { %2898 = vmatpush3.bf16.msra.mxu1 %v3376_v57  ;;  %v3457_v57 = vld [vmem:[%s3665_s8 + $0x290] ss:$36 sps:$4 sm:$0xff]  }
  0x4a   : > { %3107 = vmatprep.subr.bf16.mxu1 %v3384_v60  ;;  %v3461_v60 = vld [vmem:[%s3665_s8 + $0xa4] ss:$36 sps:$4 sm:$0xff]  }
  0x4b   : > { %3008 = vmatpush3.bf16.msra.mxu0 %v3427_v16  ;;  %v3489_v16 = vld [vmem:[%s3665_s8 + $0x3fc] ss:$36 sps:$4 sm:$0xff]  }
  0x4c   : > { %1716 = vmatmul.mubr.bf16.gmra.mxu0 %v3383_v59  ;;  %1845 = vmatmul.mubr.bf16.vlgmr.msra.gmra.mxu1 %v3380_v58  ;;  %v3458_v58 = vld [vmem:[%s3665_s8 + $0x58] ss:$36 sps:$4 sm:$0xff]  }
  0x4d   : > { %3108 = vmatpush3.bf16.msra.mxu1 %v3385_v61  ;;  %1723 = vmatprep.mubr.bf16.mxu0 %v3386_v62  ;;  %v3459_v59 = vld [vmem:[%s3665_s8 + $0x2dc] ss:$36 sps:$4 sm:$0xff]  }
  0x4e   : > { %1852 = vmatprep.mubr.bf16.mxu1 %v3388_v63  ;;  %3109 = vmatprep.subr.bf16.mxu1 %v3400_v1  ;;  %v3497_v61 = vld [vmem:[%s4475_s1 + $0x220] sm:$0xff]   ;;  %v3463_v62 = vld [vmem:[%s3665_s8 + $0x2d8] ss:$36 sps:$4 sm:$0xff]  }
  0x4f   : > { %3009 = vmatprep.subr.bf16.mxu0 %v3442_v24  ;;  %v3510_v63 = vld [vmem:[%s4475_s1 + $0x218] sm:$0xff]   ;;  %v3468_v1 = vld [vmem:[%s3665_s8 + $0x324] ss:$36 sps:$4 sm:$0xff]  }
  0x50   : > { %3010 = vmatpush3.bf16.msra.mxu0 %v3443_v25  ;;  %v3504_v24 = vld [vmem:[%s3665_s8 + $0x254] ss:$36 sps:$4 sm:$0xff]   ;;  %v3508_v25 = vld [vmem:[%s3665_s8 + $0x1c] ss:$36 sps:$4 sm:$0xff]  }
  0x51   : > { %3110 = vmatpush3.bf16.msra.mxu1 %v3401_v3  ;;  %3243 = vmatprep.subr.bf16.mxu0 %v3452_v29  ;;  %v3523_v3 = vld [vmem:[%s4475_s1 + $0x210] sm:$0xff]  }
  0x52   : > { %3111 = vmatprep.subr.bf16.mxu1 %v3417_v9  ;;  %v3549_v9 = vld [vmem:[%s4475_s1 + $0x200] sm:$0xff]  }
  0x54   : > { %1724 = vmatmul.mubr.bf16.gmra.mxu0 %v3390_v4  ;;  %1853 = vmatmul.mubr.bf16.gmra.mxu1 %v3391_v5  ;;  %v3472_v4 = vld [vmem:[%s3665_s8 + $0x320] ss:$36 sps:$4 sm:$0xff]   ;;  %v3536_v5 = vld [vmem:[%s4475_s1 + $0x208] sm:$0xff]  }
  0x55   : > { %1731 = vmatprep.mubr.bf16.mxu0 %v3394_v6  ;;  %1860 = vmatprep.mubr.bf16.mxu1 %v3396_v7  ;;  %v3473_v6 = vld [vmem:[%s3665_s8 + $0xe8] ss:$36 sps:$4 sm:$0xff]  }
  0x56   : > { %3112 = vmatpush3.bf16.msra.mxu1 %v3419_v11  ;;  %v3474_v7 = vld [vmem:[%s3665_s8 + $0x36c] ss:$36 sps:$4 sm:$0xff]  }
  0x57   : > { %3113 = vmatprep.subr.bf16.mxu1 %v3434_v18  ;;  %v3479_v11 = vld [vmem:[%s3665_s8 + $0x130] ss:$36 sps:$4 sm:$0xff]   ;;  %v3493_v18 = vld [vmem:[%s3665_s8 + $0x3f8] ss:$36 sps:$4 sm:$0xff]  }
  0x5a   : > { %3114 = vmatpush3.bf16.msra.mxu1 %v3435_v19  ;;  %v3494_v19 = vld [vmem:[%s3665_s8 + $0x1c0] ss:$36 sps:$4 sm:$0xff]  }
  0x5b   : > { %3115 = vmatprep.subr.bf16.mxu1 %v3450_v26  ;;  %v3506_v26 = vld [vmem:[%s3665_s8 + $0x18] ss:$36 sps:$4 sm:$0xff]  }
  0x5c   : > { %1732 = vmatmul.mubr.bf16.gmra.mxu0 %v3398_v12  ;;  %1861 = vmatmul.mubr.bf16.gmra.mxu1 %v3399_v13  ;;  %v3483_v12 = vld [vmem:[%s3665_s8 + $0x3b4] ss:$36 sps:$4 sm:$0xff]   ;;  %v3485_v13 = vld [vmem:[%s3665_s8 + $0x17c] ss:$36 sps:$4 sm:$0xff]  }
  0x5d   : > { %1739 = vmatprep.mubr.bf16.mxu0 %v3404_v14  ;;  %1868 = vmatprep.mubr.bf16.mxu1 %v3406_v17  ;;  %v3487_v14 = vld [vmem:[%s3665_s8 + $0x3b0] ss:$36 sps:$4 sm:$0xff]   ;;  %v3491_v17 = vld [vmem:[%s3665_s8 + $0x1c4] ss:$36 sps:$4 sm:$0xff]  }
  0x5e   : > { %3116 = vmatpush3.bf16.msra.mxu1 %v3451_v28  ;;  %v3511_v28 = vld [vmem:[%s3665_s8 + $0x29c] ss:$36 sps:$4 sm:$0xff]  }
  0x5f   : > { %3117 = vmatprep.subr.bf16.mxu1 %v3465_v33  ;;  %v3519_v33 = vld [vmem:[%s3665_s8 + $0xac] ss:$36 sps:$4 sm:$0xff]  }
  0x62   : > { %3118 = vmatpush3.bf16.msra.mxu1 %v3466_v35  ;;  %v3522_v35 = vld [vmem:[%s3665_s8 + $0xa8] ss:$36 sps:$4 sm:$0xff]  }
  0x63   : > { %3119 = vmatprep.subr.bf16.mxu1 %v3480_v41  ;;  %v3532_v41 = vld [vmem:[%s3665_s8 + $0x13c] ss:$36 sps:$4 sm:$0xff]  }
  0x64   : > { %1740 = vmatmul.mubr.bf16.gmra.mxu0 %v3408_v20  ;;  %1869 = vmatmul.mubr.bf16.gmra.mxu1 %v3409_v21  ;;  %v3498_v20 = vld [vmem:[%s3665_s8 + $0x444] ss:$36 sps:$4 sm:$0xff]   ;;  %v3500_v21 = vld [vmem:[%s3665_s8 + $0x20c] ss:$36 sps:$4 sm:$0xff]  }
  0x65   : > { %1747 = vmatprep.mubr.bf16.mxu0 %v3410_v22  ;;  %1876 = vmatprep.mubr.bf16.mxu1 %v3412_v23  ;;  %v3502_v22 = vld [vmem:[%s3665_s8 + $0x440] ss:$36 sps:$4 sm:$0xff]   ;;  %v3503_v23 = vld [vmem:[%s3665_s8 + $0x208] ss:$36 sps:$4 sm:$0xff]  }
  0x66   : > { %3120 = vmatpush3.bf16.msra.mxu1 %v3481_v42  ;;  %v3534_v42 = vld [vmem:[%s3665_s8 + $0x370] ss:$36 sps:$4 sm:$0xff]  }
  0x67   : > { %3121 = vmatprep.subr.bf16.mxu1 %v3495_v47 }
  0x6a   : > { %3122 = vmatpush3.bf16.msra.mxu1 %v3496_v48 }
  0x6c   : > { %1748 = vmatmul.mubr.bf16.gmra.mxu0 %v3414_v27  ;;  %1877 = vmatmul.mubr.bf16.gmra.mxu1 %v3415_v30  ;;  %v3509_v27 = vld [vmem:[%s3665_s8 + $0x250] ss:$36 sps:$4 sm:$0xff]   ;;  %v3515_v30 = vld [vmem:[%s3665_s8 + $0x298] ss:$36 sps:$4 sm:$0xff]  }
  0x6d   : > { %1755 = vmatprep.mubr.bf16.mxu0 %v3420_v31  ;;  %1884 = vmatprep.mubr.bf16.mxu1 %v3422_v32  ;;  %v3516_v31 = vld [vmem:[%s3665_s8 + $0x60] ss:$36 sps:$4 sm:$0xff]  }
  0x6e   : > { %v3517_v32 = vld [vmem:[%s3665_s8 + $0x2e4] ss:$36 sps:$4 sm:$0xff]  }
  0x74   : > { %1756 = vmatmul.mubr.bf16.gmra.mxu0 %v3424_v34  ;;  %1885 = vmatmul.mubr.bf16.gmra.mxu1 %v3425_v36  ;;  %v3521_v34 = vld [vmem:[%s3665_s8 + $0x2e0] ss:$36 sps:$4 sm:$0xff]   ;;  %v3524_v36 = vld [vmem:[%s3665_s8 + $0x32c] ss:$36 sps:$4 sm:$0xff]  }
  0x75   : > { %1763 = vmatprep.mubr.bf16.mxu0 %v3428_v37  ;;  %1892 = vmatprep.mubr.bf16.mxu1 %v3430_v38  ;;  %v3526_v37 = vld [vmem:[%s3665_s8 + $0xf4] ss:$36 sps:$4 sm:$0xff]   ;;  %v3528_v38 = vld [vmem:[%s3665_s8 + $0x328] ss:$36 sps:$4 sm:$0xff]  }
  0x7c   : > { %1764 = vmatmul.mubr.bf16.gmra.mxu0 %v3432_v39  ;;  %1893 = vmatmul.mubr.bf16.gmra.mxu1 %v3433_v40  ;;  %v3529_v39 = vld [vmem:[%s3665_s8 + $0xf0] ss:$36 sps:$4 sm:$0xff]  }
  0x7d   : > { %1771 = vmatprep.mubr.bf16.mxu0 %v3436_v43  ;;  %1900 = vmatprep.mubr.bf16.mxu1 %v3438_v44  ;;  %v3530_v40 = vld [vmem:[%s3665_s8 + $0x374] ss:$36 sps:$4 sm:$0xff]   ;;  %v3537_v44 = vld [vmem:[%s3665_s8 + $0x3bc] ss:$36 sps:$4 sm:$0xff]  }
  0x7e   : > { %v3535_v43 = vld [vmem:[%s3665_s8 + $0x138] ss:$36 sps:$4 sm:$0xff]  }
  0x84   : > { %1772 = vmatmul.mubr.bf16.gmra.mxu0 %v3440_v45  ;;  %1901 = vmatmul.mubr.bf16.gmra.mxu1 %v3441_v46  ;;  %v3539_v45 = vld [vmem:[%s3665_s8 + $0x184] ss:$36 sps:$4 sm:$0xff]  }
  0x85   : > { %1908 = vmatprep.mubr.bf16.mxu1 %v3444_v49  ;;  %2005 = vmatprep.mubr.bf16.mxu0 %v3448_v50 }
  0x8c   : > { %1909 = vmatmul.mubr.bf16.gmra.mxu1 %v3449_v52  ;;  %2006 = vmatmul.mubr.bf16.vlgmr.msra.gmra.mxu0 %v3446_v51 }
  0x8d   : > { %3244 = vmatpush3.bf16.msra.mxu0 %v3452_v29  ;;  %1916 = vmatprep.mubr.bf16.mxu1 %v3453_v53  ;;  %v3513_v29 = vld [vmem:[%s3665_s8 + $0x64] ss:$36 sps:$4 sm:$0xff]  }
  0x8e   : > { %2013 = vmatprep.mubr.bf16.mxu0 %v3455_v54  ;;  %3245 = vmatprep.subr.bf16.mxu0 %v3467_v55  ;;  %v3541_v54 = vld [vmem:[%s3665_s8 + $0x3b8] ss:$36 sps:$4 sm:$0xff]  }
  0x91   : > { %3246 = vmatpush3.bf16.msra.mxu0 %v3467_v55  ;;  %v3542_v55 = vld [vmem:[%s3665_s8 + $0x180] ss:$36 sps:$4 sm:$0xff]  }
  0x92   : > { %3247 = vmatprep.subr.bf16.mxu0 %v3482_v56 }
  0x94   : > { %1917 = vmatmul.mubr.bf16.gmra.mxu1 %v3457_v57  ;;  %2014 = vmatmul.mubr.bf16.gmra.mxu0 %v3458_v58  ;;  %v3545_v57 = vld [vmem:[%s3665_s8 + $0x1cc] ss:$36 sps:$4 sm:$0xff]  }
  0x95   : > { %1924 = vmatprep.mubr.bf16.mxu1 %v3459_v59  ;;  %2021 = vmatprep.mubr.bf16.mxu0 %v3461_v60 }
  0x96   : > { %3248 = vmatpush3.bf16.msra.mxu0 %v3482_v56  ;;  %v3543_v56 = vld [vmem:[%s3665_s8 + $0x404] ss:$36 sps:$4 sm:$0xff]  }
  0x97   : > { %3249 = vmatprep.subr.bf16.mxu0 %v3497_v61 }
  0x9a   : > { %3250 = vmatpush3.bf16.msra.mxu0 %v3497_v61 }
  0x9b   : > { %3251 = vmatprep.subr.bf16.mxu0 %v3510_v63 }
  0x9c   : > { %1925 = vmatmul.mubr.bf16.gmra.mxu1 %v3463_v62  ;;  %2022 = vmatmul.mubr.bf16.gmra.mxu0 %v3464_v0 }
  0x9d   : > { %1932 = vmatprep.mubr.bf16.mxu1 %v3468_v1  ;;  %2029 = vmatprep.mubr.bf16.mxu0 %v3470_v2 }
  0x9e   : > { %3252 = vmatpush3.bf16.msra.mxu0 %v3510_v63 }
  0x9f   : > { %3253 = vmatprep.subr.bf16.mxu0 %v3523_v3 }
  0xa2   : > { %3254 = vmatpush3.bf16.msra.mxu0 %v3523_v3 }
  0xa3   : > { %3255 = vmatprep.subr.bf16.mxu0 %v3536_v5 }
  0xa4   : > { %1933 = vmatmul.mubr.bf16.gmra.mxu1 %v3472_v4  ;;  %2030 = vmatmul.mubr.bf16.gmra.mxu0 %v3473_v6  ;;  %v3547_v6 = vld [vmem:[%s3665_s8 + $0x400] ss:$36 sps:$4 sm:$0xff]  }
  0xa5   : > { %1940 = vmatprep.mubr.bf16.mxu1 %v3474_v7  ;;  %2037 = vmatprep.mubr.bf16.mxu0 %v3476_v8  ;;  %v3548_v7 = vld [vmem:[%s3665_s8 + $0x1c8] ss:$36 sps:$4 sm:$0xff]  }
  0xa6   : > { %3256 = vmatpush3.bf16.msra.mxu0 %v3536_v5  ;;  %v3550_v8 = vld [vmem:[%s3665_s8 + $0x44c] ss:$36 sps:$4 sm:$0xff]  }
  0xa7   : > { %3257 = vmatprep.subr.bf16.mxu0 %v3549_v9 }
  0xaa   : > { %3258 = vmatpush3.bf16.msra.mxu0 %v3549_v9  ;;  %v3552_v9 = vld [vmem:[%s3665_s8 + $0x214] ss:$36 sps:$4 sm:$0xff]  }
  0xac   : > { %1941 = vmatmul.mubr.bf16.gmra.mxu1 %v3478_v10  ;;  %2038 = vmatmul.mubr.bf16.gmra.mxu0 %v3479_v11 }
  0xad   : > { %1948 = vmatprep.mubr.bf16.mxu1 %v3483_v12  ;;  %2045 = vmatprep.mubr.bf16.mxu0 %v3485_v13 }
  0xb4   : > { %1949 = vmatmul.mubr.bf16.gmra.mxu1 %v3487_v14  ;;  %2046 = vmatmul.mubr.bf16.gmra.mxu0 %v3488_v15 }
  0xb5   : > { %1956 = vmatprep.mubr.bf16.mxu1 %v3489_v16  ;;  %2053 = vmatprep.mubr.bf16.mxu0 %v3491_v17 }
  0xbc   : > { %1957 = vmatmul.mubr.bf16.gmra.mxu1 %v3493_v18  ;;  %2054 = vmatmul.mubr.bf16.gmra.mxu0 %v3494_v19 }
  0xbd   : > { %1964 = vmatprep.mubr.bf16.mxu1 %v3498_v20  ;;  %2061 = vmatprep.mubr.bf16.mxu0 %v3500_v21 }
  0xc4   : > { %1965 = vmatmul.mubr.bf16.gmra.mxu1 %v3502_v22  ;;  %2062 = vmatmul.mubr.bf16.gmra.mxu0 %v3503_v23  ;;  %v3554_v22 = vld [vmem:[%s3665_s8 + $0x448] ss:$36 sps:$4 sm:$0xff]   ;;  %v3555_v23 = vld [vmem:[%s3665_s8 + $0x210] ss:$36 sps:$4 sm:$0xff]  }
  0xc5   : > { %2069 = vmatprep.mubr.bf16.mxu0 %v3504_v24  ;;  %2166 = vmatprep.mubr.bf16.mxu1 %v3508_v25  ;;  %v3558_v24 = vld [vmem:[%s3665_s8 + $0x25c] ss:$36 sps:$4 sm:$0xff]  }
  0xc6   : > { %v3559_v25 = vld [vmem:[%s3665_s8 + $0x20] ss:$36 sps:$4 sm:$0xff]  }
  0xcc   : > { %2070 = vmatmul.mubr.bf16.gmra.mxu0 %v3509_v27  ;;  %2167 = vmatmul.mubr.bf16.vlgmr.msra.gmra.mxu1 %v3506_v26 }
  0xcd   : > { %2077 = vmatprep.mubr.bf16.mxu0 %v3511_v28  ;;  %2174 = vmatprep.mubr.bf16.mxu1 %v3513_v29 }
  0xd4   : > { %2078 = vmatmul.mubr.bf16.gmra.mxu0 %v3515_v30  ;;  %2175 = vmatmul.mubr.bf16.gmra.mxu1 %v3516_v31 }
  0xd5   : > { %2085 = vmatprep.mubr.bf16.mxu0 %v3517_v32  ;;  %2182 = vmatprep.mubr.bf16.mxu1 %v3519_v33 }
  0xdc   : > { %2086 = vmatmul.mubr.bf16.gmra.mxu0 %v3521_v34  ;;  %2183 = vmatmul.mubr.bf16.gmra.mxu1 %v3522_v35 }
  0xdd   : > { %2093 = vmatprep.mubr.bf16.mxu0 %v3524_v36  ;;  %2190 = vmatprep.mubr.bf16.mxu1 %v3526_v37 }
  0xe4   : > { %2094 = vmatmul.mubr.bf16.gmra.mxu0 %v3528_v38  ;;  %2191 = vmatmul.mubr.bf16.gmra.mxu1 %v3529_v39  ;;  %v3556_v38 = vld [vmem:[%s3665_s8 + $0x258] ss:$36 sps:$4 sm:$0xff]   ;;  %v3560_v39 = vld [vmem:[%s3665_s8 + $0x68] ss:$36 sps:$4 sm:$0xff]  }
  0xe5   : > { %2101 = vmatprep.mubr.bf16.mxu0 %v3530_v40  ;;  %2198 = vmatprep.mubr.bf16.mxu1 %v3532_v41  ;;  %v3563_v40 = vld [vmem:[%s3665_s8 + $0x2a4] ss:$36 sps:$4 sm:$0xff]   ;;  %v3564_v41 = vld [vmem:[%s3665_s8 + $0xb0] ss:$36 sps:$4 sm:$0xff]  }
  0xec   : > { %v2787_v46 = vpop.f32.mrf.mxu0  ;;  %v2859_v47 = vpop.f32.mrf.mxu1  ;;  %2102 = vmatmul.mubr.bf16.gmra.mxu0 %v3534_v42  ;;  %2199 = vmatmul.mubr.bf16.gmra.mxu1 %v3535_v43 }
  0xed   : > { %2109 = vmatprep.mubr.bf16.mxu0 %v3537_v44  ;;  %2206 = vmatprep.mubr.bf16.mxu1 %v3539_v45 }
  0xee   : > { %v2788_v48 = vpop.f32.mrf.mxu0  ;;  %v2860_v49 = vpop.f32.mrf.mxu1 }
  0xef   : > { %v3958_v50 = vadd.f32 %v2788_v48, %v2787_v46  ;;  %v3960_v51 = vadd.f32 %v2860_v49, %v2859_v47  ;;  %v4009_v48 = vld [vmem:[%s4476_s2] ss:$0 sm:$0xff] }
  0xf0   : > { %v2790_v52 = vpop.f32.mrf.mxu0  ;;  %v2862_v53 = vpop.f32.mrf.mxu1 }
  0xf2   : > { %v2791_v58 = vpop.f32.mrf.mxu0  ;;  %v2863_v59 = vpop.f32.mrf.mxu1 }
  0xf3   : > { %v3966_v60 = vadd.f32 %v2791_v58, %v2790_v52  ;;  %v3968_v61 = vadd.f32 %v2863_v59, %v2862_v53  ;;  %v1686_v53 = vadd.f32 %v3958_v50, %v4009_v48  ;;  %v3561_v58 = vld [vmem:[%s3665_s8 + $0x2a0] ss:$36 sps:$4 sm:$0xff]   ;;  %v3565_v59 = vld [vmem:[%s3665_s8 + $0xf8] ss:$36 sps:$4 sm:$0xff]  }
  0xf4   : > { %v2793_v62 = vpop.f32.mrf.mxu0  ;;  %v2865_v63 = vpop.f32.mrf.mxu1  ;;  %2110 = vmatmul.mubr.bf16.gmra.mxu0 %v3541_v54  ;;  %2207 = vmatmul.mubr.bf16.gmra.mxu1 %v3542_v55 }
  0xf5   : > { %2117 = vmatprep.mubr.bf16.mxu0 %v3543_v56  ;;  %2214 = vmatprep.mubr.bf16.mxu1 %v3545_v57 }
  0xf6   : > { %v2794_v0 = vpop.f32.mrf.mxu0  ;;  %v2866_v1 = vpop.f32.mrf.mxu1 }
  0xf7   : > { %v3970_v2 = vadd.f32 %v2794_v0, %v2793_v62  ;;  %v3972_v3 = vadd.f32 %v2866_v1, %v2865_v63  ;;  %v3568_v63 = vld [vmem:[%s3665_s8 + $0x2ec] ss:$36 sps:$4 sm:$0xff]   ;;  %v3569_v0 = vld [vmem:[%s3665_s8 + $0x140] ss:$36 sps:$4 sm:$0xff]  }
  0xf8   : > { %v2796_v4 = vpop.f32.mrf.mxu0  ;;  %v2868_v5 = vpop.f32.mrf.mxu1 }
  0xfa   : > { %v2797_v10 = vpop.f32.mrf.mxu0  ;;  %v2869_v11 = vpop.f32.mrf.mxu1 }
  0xfb   : > { %v3978_v12 = vadd.f32 %v2797_v10, %v2796_v4  ;;  %v3980_v13 = vadd.f32 %v2869_v11, %v2868_v5  ;;  %v1689_v5 = vadd.f32 %v3966_v60, %v4009_v48  ;;  %v1694_v60 = vadd.f32 %v3970_v2, %v4009_v48 }
  0xfc   : > { %v2799_v14 = vpop.f32.mrf.mxu0  ;;  %v2871_v15 = vpop.f32.mrf.mxu1  ;;  %2118 = vmatmul.mubr.bf16.gmra.mxu0 %v3547_v6  ;;  %2215 = vmatmul.mubr.bf16.gmra.mxu1 %v3548_v7 }
  0xfd   : > { %2125 = vmatprep.mubr.bf16.mxu0 %v3550_v8  ;;  %2222 = vmatprep.mubr.bf16.mxu1 %v3552_v9 }
  0xfe   : > { %v2800_v16 = vpop.f32.mrf.mxu0  ;;  %v2872_v17 = vpop.f32.mrf.mxu1 }
  0xff   : > { %v3982_v18 = vadd.f32 %v2800_v16, %v2799_v14  ;;  %v3984_v19 = vadd.f32 %v2872_v17, %v2871_v15 }
 0x100   : > { %v2802_v20 = vpop.f32.mrf.mxu0  ;;  %v2874_v21 = vpop.f32.mrf.mxu1 }
 0x102   : > { %v2803_v26 = vpop.f32.mrf.mxu0  ;;  %v2875_v27 = vpop.f32.mrf.mxu1 }
 0x103   : > { %v3990_v28 = vadd.f32 %v2803_v26, %v2802_v20  ;;  %v3992_v29 = vadd.f32 %v2875_v27, %v2874_v21  ;;  %v3566_v20 = vld [vmem:[%s3665_s8 + $0x2e8] ss:$36 sps:$4 sm:$0xff]   ;;  %v1697_v27 = vadd.f32 %v3978_v12, %v4009_v48  ;;  %v1702_v12 = vadd.f32 %v3982_v18, %v4009_v48 }
 0x104   : > { %v2805_v30 = vpop.f32.mrf.mxu0  ;;  %v2877_v31 = vpop.f32.mrf.mxu1  ;;  %2126 = vmatmul.mubr.bf16.gmra.mxu0 %v3554_v22  ;;  %2223 = vmatmul.mubr.bf16.gmra.mxu1 %v3555_v23  ;;  %v3570_v21 = vld [vmem:[%s3665_s8 + $0x188] ss:$36 sps:$4 sm:$0xff]   ;;  %v3573_v23 = vld [vmem:[%s3665_s8 + $0x334] ss:$36 sps:$4 sm:$0xff]  }
 0x105   : > { %2230 = vmatprep.mubr.bf16.mxu1 %v3558_v24  ;;  %3259 = vmatprep.mubr.bf16.mxu0 %v3559_v25  ;;  %v3574_v24 = vld [vmem:[%s3665_s8 + $0x1d0] ss:$36 sps:$4 sm:$0xff]  }
 0x106   : > { %v2806_v32 = vpop.f32.mrf.mxu0  ;;  %v2878_v33 = vpop.f32.mrf.mxu1 }
 0x107   : > { %v3994_v34 = vadd.f32 %v2806_v32, %v2805_v30  ;;  %v3996_v35 = vadd.f32 %v2878_v33, %v2877_v31 }
 0x108   : > { %v2808_v36 = vpop.f32.mrf.mxu0  ;;  %v2880_v37 = vpop.f32.mrf.mxu1 }
 0x10a   : > { %v2809_v42 = vpop.f32.mrf.mxu0  ;;  %v2881_v43 = vpop.f32.mrf.mxu1 }
 0x10b   : > { %v4002_v44 = vadd.f32 %v2809_v42, %v2808_v36  ;;  %v4004_v45 = vadd.f32 %v2881_v43, %v2880_v37  ;;  %v3571_v42 = vld [vmem:[%s3665_s8 + $0x330] ss:$36 sps:$4 sm:$0xff]   ;;  %v3575_v43 = vld [vmem:[%s3665_s8 + $0x218] ss:$36 sps:$4 sm:$0xff]  }
 0x10c   : > { %v2811_v46 = vpop.f32.mrf.mxu0  ;;  %v2899_v47 = vpop.f32.mrf.mxu1  ;;  %2231 = vmatmul.mubr.bf16.gmra.mxu1 %v3556_v38  ;;  %3260 = vmatmul.mubr.bf16.vlgmr.msra.gmra.mxu0 %v3560_v39 }
 0x10d   : > { %2238 = vmatprep.mubr.bf16.mxu1 %v3563_v40  ;;  %3263 = vmatprep.mubr.bf16.mxu0 %v3564_v41 }
 0x10e   : > { %v2812_v49 = vpop.f32.mrf.mxu0  ;;  %v2900_v52 = vpop.f32.mrf.mxu1 }
 0x10f   : > { %v4013_v54 = vadd.f32 %v2812_v49, %v2811_v46  ;;  %v2901_v55 = vadd.f32 %v2900_v52, %v2899_v47  ;;  %v3578_v47 = vld [vmem:[%s3665_s8 + $0x37c] ss:$36 sps:$4 sm:$0xff]  }
 0x110   : > { %v2814_v56 = vpop.f32.mrf.mxu0  ;;  %v2902_v57 = vpop.f32.mrf.mxu1  ;;  %v3579_v49 = vld [vmem:[%s3665_s8 + $0x260] ss:$36 sps:$4 sm:$0xff]  }
 0x111   : > { %v4017_v62 = vadd.f32 %v2901_v55, %v1686_v53  ;;  %v1705_v55 = vadd.f32 %v3990_v28, %v4009_v48  ;;  %v1710_v28 = vadd.f32 %v3994_v34, %v4009_v48 }
 0x112   : > { %v2815_v1 = vpop.f32.mrf.mxu0  ;;  %v2903_v4 = vpop.f32.mrf.mxu1 }
 0x113   : > { %v4023_v6 = vadd.f32 %v2815_v1, %v2814_v56  ;;  %v2904_v50 = vadd.f32 %v2903_v4, %v2902_v57 }
 0x114   : > { %v2817_v7 = vpop.f32.mrf.mxu0  ;;  %v2905_v8 = vpop.f32.mrf.mxu1  ;;  %2239 = vmatmul.mubr.bf16.gmra.mxu1 %v3561_v58  ;;  %3264 = vmatmul.mubr.bf16.gmra.mxu0 %v3565_v59 }
 0x115   : > { %v4025_v9 = vadd.f32 %v2904_v50, %v1689_v5  ;;  %2246 = vmatprep.mubr.bf16.mxu1 %v3568_v63  ;;  %3267 = vmatprep.mubr.bf16.mxu0 %v3569_v0 }
 0x116   : > { %v2818_v10 = vpop.f32.mrf.mxu0  ;;  %v2906_v11 = vpop.f32.mrf.mxu1 }
 0x117   : > { %v4029_v14 = vadd.f32 %v2818_v10, %v2817_v7  ;;  %v2907_v15 = vadd.f32 %v2906_v11, %v2905_v8  ;;  %v3576_v7 = vld [vmem:[%s3665_s8 + $0x378] ss:$36 sps:$4 sm:$0xff]   ;;  %v3580_v8 = vld [vmem:[%s3665_s8 + $0x2a8] ss:$36 sps:$4 sm:$0xff]  }
 0x118   : > { %v2820_v16 = vpop.f32.mrf.mxu0  ;;  %v2908_v17 = vpop.f32.mrf.mxu1  ;;  %v3583_v11 = vld [vmem:[%s3665_s8 + $0x3c4] ss:$36 sps:$4 sm:$0xff]  }
 0x119   : > { %v4033_v22 = vadd.f32 %v2907_v15, %v1694_v60  ;;  %v3584_v60 = vld [vmem:[%s3665_s8 + $0x2f0] ss:$36 sps:$4 sm:$0xff]  }
 0x11a   : > { %v2821_v25 = vpop.f32.mrf.mxu0  ;;  %v2909_v26 = vpop.f32.mrf.mxu1 }
 0x11b   : > { %v4039_v30 = vadd.f32 %v2821_v25, %v2820_v16  ;;  %v2910_v2 = vadd.f32 %v2909_v26, %v2908_v17  ;;  %v1713_v17 = vadd.f32 %v4002_v44, %v4009_v48  ;;  %v1718_v44 = vadd.f32 %v4013_v54, %v4009_v48 }
 0x11c   : > { %v2823_v31 = vpop.f32.mrf.mxu0  ;;  %v2911_v32 = vpop.f32.mrf.mxu1  ;;  %2247 = vmatmul.mubr.bf16.gmra.mxu1 %v3566_v20  ;;  %3268 = vmatmul.mubr.bf16.gmra.mxu0 %v3570_v21 }
 0x11d   : > { %v4041_v33 = vadd.f32 %v2910_v2, %v1697_v27  ;;  %2254 = vmatprep.mubr.bf16.mxu1 %v3573_v23  ;;  %3271 = vmatprep.mubr.bf16.mxu0 %v3574_v24 }
 0x11e   : > { %v2824_v36 = vpop.f32.mrf.mxu0  ;;  %v2912_v37 = vpop.f32.mrf.mxu1 }
 0x11f   : > { %v4045_v38 = vadd.f32 %v2824_v36, %v2823_v31  ;;  %v2913_v39 = vadd.f32 %v2912_v37, %v2911_v32  ;;  %v3581_v36 = vld [vmem:[%s3665_s8 + $0x3c0] ss:$36 sps:$4 sm:$0xff]   ;;  %v3585_v37 = vld [vmem:[%s3665_s8 + $0x338] ss:$36 sps:$4 sm:$0xff]  }
 0x120   : > { %v2826_v40 = vpop.f32.mrf.mxu0  ;;  %v2914_v41 = vpop.f32.mrf.mxu1 }
 0x121   : > { %v4049_v46 = vadd.f32 %v2913_v39, %v1702_v12  ;;  %v3588_v39 = vld [vmem:[%s3665_s8 + $0x40c] ss:$36 sps:$4 sm:$0xff]  }
 0x122   : > { %v2827_v52 = vpop.f32.mrf.mxu0  ;;  %v2915_v53 = vpop.f32.mrf.mxu1 }
 0x123   : > { %v4055_v56 = vadd.f32 %v2827_v52, %v2826_v40  ;;  %v2916_v18 = vadd.f32 %v2915_v53, %v2914_v41  ;;  %v3589_v40 = vld [vmem:[%s3665_s8 + $0x380] ss:$36 sps:$4 sm:$0xff]  }
 0x124   : > { %v2829_v57 = vpop.f32.mrf.mxu0  ;;  %v2917_v58 = vpop.f32.mrf.mxu1  ;;  %2255 = vmatmul.mubr.bf16.gmra.mxu1 %v3571_v42  ;;  %3272 = vmatmul.mubr.bf16.gmra.mxu0 %v3575_v43  ;;  %v1721_v43 = vadd.f32 %v4023_v6, %v4009_v48  ;;  %v1726_v6 = vadd.f32 %v4029_v14, %v4009_v48 }
 0x125   : > { %v4057_v59 = vadd.f32 %v2916_v18, %v1705_v55  ;;  %2262 = vmatprep.mubr.bf16.mxu1 %v3578_v47  ;;  %3275 = vmatprep.mubr.bf16.mxu0 %v3579_v49 }
 0x126   : > { %v2830_v63 = vpop.f32.mrf.mxu0  ;;  %v2918_v0 = vpop.f32.mrf.mxu1 }
 0x127   : > { %v4061_v1 = vadd.f32 %v2830_v63, %v2829_v57  ;;  %v2919_v4 = vadd.f32 %v2918_v0, %v2917_v58 }
 0x128   : > { %v2832_v5 = vpop.f32.mrf.mxu0  ;;  %v2920_v50 = vpop.f32.mrf.mxu1 }
 0x129   : > { %v4065_v10 = vadd.f32 %v2919_v4, %v1710_v28  ;;  %v3586_v28 = vld [vmem:[%s3665_s8 + $0x408] ss:$36 sps:$4 sm:$0xff]  }
 0x12a   : > { %v2833_v15 = vpop.f32.mrf.mxu0  ;;  %v2921_v16 = vpop.f32.mrf.mxu1  ;;  %v3590_v4 = vld [vmem:[%s3665_s8 + $0x3c8] ss:$36 sps:$4 sm:$0xff]  }
 0x12b   : > { %v4071_v20 = vadd.f32 %v2833_v15, %v2832_v5  ;;  %v2922_v34 = vadd.f32 %v2921_v16, %v2920_v50  ;;  %v3593_v50 = vld [vmem:[%s3665_s8 + $0x454] ss:$36 sps:$4 sm:$0xff]  }
 0x12c   : > { %v2835_v21 = vpop.f32.mrf.mxu0  ;;  %v2923_v23 = vpop.f32.mrf.mxu1  ;;  %2263 = vmatmul.mubr.bf16.gmra.mxu1 %v3576_v7  ;;  %3276 = vmatmul.mubr.bf16.gmra.mxu0 %v3580_v8  ;;  %v3594_v7 = vld [vmem:[%s3665_s8 + $0x410] ss:$36 sps:$4 sm:$0xff]  }
 0x12d   : > { %v4073_v24 = vadd.f32 %v2922_v34, %v1713_v17  ;;  %2270 = vmatprep.mubr.bf16.mxu1 %v3583_v11  ;;  %3279 = vmatprep.mubr.bf16.mxu0 %v3584_v60  ;;  %v1729_v60 = vadd.f32 %v4039_v30, %v4009_v48 }
 0x12e   : > { %v2836_v25 = vpop.f32.mrf.mxu0  ;;  %v2924_v26 = vpop.f32.mrf.mxu1 }
 0x12f   : > { %v4077_v27 = vadd.f32 %v2836_v25, %v2835_v21  ;;  %v2925_v2 = vadd.f32 %v2924_v26, %v2923_v23  ;;  %v1734_v25 = vadd.f32 %v4045_v38, %v4009_v48 }
 0x130   : > { %v2838_v31 = vpop.f32.mrf.mxu0  ;;  %v2926_v32 = vpop.f32.mrf.mxu1 }
 0x131   : > { %v4081_v12 = vadd.f32 %v2925_v2, %v1718_v44 }
 0x132   : > { %v2839_v41 = vpop.f32.mrf.mxu0  ;;  %v2927_v42 = vpop.f32.mrf.mxu1 }
 0x133   : > { %v4087_v47 = vadd.f32 %v2839_v41, %v2838_v31  ;;  %v2928_v54 = vadd.f32 %v2927_v42, %v2926_v32  ;;  %v3591_v31 = vld [vmem:[%s3665_s8 + $0x450] ss:$36 sps:$4 sm:$0xff]   ;;  %v3595_v32 = vld [vmem:[%s3665_s8 + $0x458] ss:$36 sps:$4 sm:$0xff]   ;;  %s2770_s8 = sshll.u32 %s4499_s13, 8 }
 0x134   : > { %v2841_v49 = vpop.f32.mrf.mxu0  ;;  %v2929_v52 = vpop.f32.mrf.mxu1  ;;  %2271 = vmatmul.mubr.bf16.gmra.mxu1 %v3581_v36  ;;  %3280 = vmatmul.mubr.bf16.gmra.mxu0 %v3585_v37  ;;  %s4367_s21 = scalar_lea.vmem %s4477_s3, %s2770_s8 }
 0x135   : > { %v4089_v53 = vadd.f32 %v2928_v54, %v1721_v43  ;;  %2278 = vmatprep.mubr.bf16.mxu1 %v3588_v39  ;;  %3283 = vmatprep.mubr.bf16.mxu0 %v3589_v40  ;;  %v1737_v40 = vadd.f32 %v4055_v56, %v4009_v48 }
 0x136   : > { %v2842_v55 = vpop.f32.mrf.mxu0  ;;  %v2930_v18 = vpop.f32.mrf.mxu1 }
 0x137   : > { %v4093_v57 = vadd.f32 %v2842_v55, %v2841_v49  ;;  %v2931_v58 = vadd.f32 %v2930_v18, %v2929_v52  ;;  %v1742_v55 = vadd.f32 %v4061_v1, %v4009_v48 }
 0x138   : > { %v2844_v63 = vpop.f32.mrf.mxu0  ;;  %v2932_v0 = vpop.f32.mrf.mxu1 }
 0x139   : > { %v4097_v5 = vadd.f32 %v2931_v58, %v1726_v6 }
 0x13a   : > { %v2845_v8 = vpop.f32.mrf.mxu0  ;;  %v2933_v11 = vpop.f32.mrf.mxu1 }
 0x13b   : > { %v4103_v15 = vadd.f32 %v2845_v8, %v2844_v63  ;;  %v2934_v14 = vadd.f32 %v2933_v11, %v2932_v0 }
 0x13c   : > { %v2847_v16 = vpop.f32.mrf.mxu0  ;;  %v2935_v17 = vpop.f32.mrf.mxu1  ;;  %2279 = vmatmul.mubr.bf16.gmra.mxu1 %v3586_v28  ;;  %3284 = vmatmul.mubr.bf16.gmra.mxu0 %v3590_v4  ;;  %v1745_v4 = vadd.f32 %v4071_v20, %v4009_v48 }
 0x13d   : > { %v4105_v34 = vadd.f32 %v2934_v14, %v1729_v60  ;;  %2286 = vmatprep.mubr.bf16.mxu1 %v3593_v50  ;;  %3287 = vmatprep.mubr.bf16.mxu0 %v3594_v7 }
 0x13e   : > { %v2848_v21 = vpop.f32.mrf.mxu0  ;;  %v2936_v23 = vpop.f32.mrf.mxu1 }
 0x13f   : > { %v4109_v26 = vadd.f32 %v2848_v21, %v2847_v16  ;;  %v2937_v30 = vadd.f32 %v2936_v23, %v2935_v17  ;;  %v1750_v16 = vadd.f32 %v4077_v27, %v4009_v48 }
 0x140   : > { %v2850_v44 = vpop.f32.mrf.mxu0  ;;  %v2938_v2 = vpop.f32.mrf.mxu1 }
 0x141   : > { %v4113_v36 = vadd.f32 %v2937_v30, %v1734_v25 }
 0x142   : > { %v2851_v37 = vpop.f32.mrf.mxu0  ;;  %v2939_v39 = vpop.f32.mrf.mxu1 }
 0x143   : > { %v4117_v41 = vadd.f32 %v2851_v37, %v2850_v44  ;;  %v2940_v42 = vadd.f32 %v2939_v39, %v2938_v2 }
 0x144   : > { %v2853_v43 = vpop.f32.mrf.mxu0  ;;  %v2941_v54 = vpop.f32.mrf.mxu1  ;;  %2287 = vmatmul.mubr.bf16.gmra.mxu1 %v3591_v31  ;;  %3288 = vmatmul.mubr.bf16.gmra.mxu0 %v3595_v32  ;;  %v1753_v31 = vadd.f32 %v4087_v47, %v4009_v48 }
 0x145   : > { %v4119_v38 = vadd.f32 %v2940_v42, %v1737_v40 }
 0x146   : > { %v2854_v49 = vpop.f32.mrf.mxu0  ;;  %v2942_v52 = vpop.f32.mrf.mxu1 }
 0x147   : > { %v4123_v18 = vadd.f32 %v2854_v49, %v2853_v43  ;;  %v2943_v6 = vadd.f32 %v2942_v52, %v2941_v54 }
 0x148   : > { %v2856_v58 = vpop.f32.mrf.mxu0  ;;  %v2944_v63 = vpop.f32.mrf.mxu1 }
 0x149   : > { %v4125_v56 = vadd.f32 %v2943_v6, %v1742_v55 }
 0x14a   : > { %v2857_v0 = vpop.f32.mrf.mxu0  ;;  %v2945_v28 = vpop.f32.mrf.mxu1 }
 0x14b   : > { %v4129_v50 = vadd.f32 %v2857_v0, %v2856_v58  ;;  %v2946_v7 = vadd.f32 %v2945_v28, %v2944_v63 }
 0x14c   : > { %v2947_v8 = vpop.f32.mrf.mxu1  ;;  %v3011_v11 = vpop.f32.mrf.mxu0 }
 0x14d   : > { %v4131_v60 = vadd.f32 %v2946_v7, %v1745_v4 }
 0x14e   : > { %v2948_v1 = vpop.f32.mrf.mxu1  ;;  %v3012_v14 = vpop.f32.mrf.mxu0 }
 0x14f   : > { %v2949_v17 = vadd.f32 %v2948_v1, %v2947_v8  ;;  %v3013_v21 = vadd.f32 %v3012_v14, %v3011_v11 }
 0x150   : > { %v2950_v23 = vpop.f32.mrf.mxu1  ;;  %v3014_v25 = vpop.f32.mrf.mxu0 }
 0x151   : > { %v4135_v30 = vadd.f32 %v2949_v17, %v1750_v16  ;;  %v4138_v20 = vadd.f32 %v3013_v21, %v4017_v62  ;;  %v1758_v62 = vadd.f32 %v4093_v57, %v4009_v48 }
 0x152   : > { %v2951_v44 = vpop.f32.mrf.mxu1  ;;  %v3015_v2 = vpop.f32.mrf.mxu0 }
 0x153   : > { %v2952_v32 = vadd.f32 %v2951_v44, %v2950_v23  ;;  %v3016_v37 = vadd.f32 %v3015_v2, %v3014_v25 }
 0x154   : > { %v2953_v39 = vpop.f32.mrf.mxu1  ;;  %v3017_v40 = vpop.f32.mrf.mxu0 }
 0x155   : > { %v4142_v42 = vadd.f32 %v2952_v32, %v1753_v31  ;;  %v4145_v27 = vadd.f32 %v3016_v37, %v4025_v9  ;;  %v1761_v9 = vadd.f32 %v4103_v15, %v4009_v48 }
 0x156   : > { %v2954_v43 = vpop.f32.mrf.mxu1  ;;  %v3018_v54 = vpop.f32.mrf.mxu0 }
 0x157   : > { %v2955_v49 = vadd.f32 %v2954_v43, %v2953_v39  ;;  %v3019_v52 = vadd.f32 %v3018_v54, %v3017_v40 }
 0x158   : > { %v2956_v55 = vpop.f32.mrf.mxu1  ;;  %v3020_v6 = vpop.f32.mrf.mxu0 }
 0x159   : > { %v4149_v58 = vadd.f32 %v2955_v49, %v1758_v62  ;;  %v4152_v47 = vadd.f32 %v3019_v52, %v4033_v22  ;;  %v1766_v22 = vadd.f32 %v4109_v26, %v4009_v48 }
 0x15a   : > { %v2957_v63 = vpop.f32.mrf.mxu1  ;;  %v3021_v0 = vpop.f32.mrf.mxu0 }
 0x15b   : > { %v2958_v28 = vadd.f32 %v2957_v63, %v2956_v55  ;;  %v3022_v4 = vadd.f32 %v3021_v0, %v3020_v6 }
 0x15c   : > { %v2959_v7 = vpop.f32.mrf.mxu1  ;;  %v3023_v8 = vpop.f32.mrf.mxu0 }
 0x15d   : > { %v4156_v11 = vadd.f32 %v2958_v28, %v1761_v9  ;;  %v4159_v57 = vadd.f32 %v3022_v4, %v4041_v33  ;;  %v1769_v33 = vadd.f32 %v4117_v41, %v4009_v48 }
 0x15e   : > { %v2960_v1 = vpop.f32.mrf.mxu1  ;;  %v3024_v14 = vpop.f32.mrf.mxu0 }
 0x15f   : > { %v2961_v16 = vadd.f32 %v2960_v1, %v2959_v7  ;;  %v3025_v17 = vadd.f32 %v3024_v14, %v3023_v8 }
 0x160   : > { %v2962_v21 = vpop.f32.mrf.mxu1  ;;  %v3026_v23 = vpop.f32.mrf.mxu0 }
 0x161   : > { %v4163_v25 = vadd.f32 %v2961_v16, %v1766_v22  ;;  %v4166_v15 = vadd.f32 %v3025_v17, %v4049_v46  ;;  %v1774_v46 = vadd.f32 %v4123_v18, %v4009_v48 }
 0x162   : > { %v2963_v44 = vpop.f32.mrf.mxu1  ;;  %v3027_v2 = vpop.f32.mrf.mxu0 }
 0x163   : > { %v2964_v31 = vadd.f32 %v2963_v44, %v2962_v21  ;;  %v3028_v32 = vadd.f32 %v3027_v2, %v3026_v23 }
 0x164   : > { %v2965_v37 = vpop.f32.mrf.mxu1  ;;  %v3029_v39 = vpop.f32.mrf.mxu0 }
 0x165   : > { %v4170_v40 = vadd.f32 %v2964_v31, %v1769_v33  ;;  %v4173_v26 = vadd.f32 %v3028_v32, %v4057_v59  ;;  %v1777_v59 = vadd.f32 %v4129_v50, %v4009_v48 }
 0x166   : > { %v2966_v43 = vpop.f32.mrf.mxu1  ;;  %v3030_v54 = vpop.f32.mrf.mxu0 }
 0x167   : > { %v2967_v62 = vadd.f32 %v2966_v43, %v2965_v37  ;;  %v3031_v49 = vadd.f32 %v3030_v54, %v3029_v39 }
 0x168   : > { %v2968_v52 = vpop.f32.mrf.mxu1  ;;  %v3032_v55 = vpop.f32.mrf.mxu0 }
 0x169   : > { %v4177_v6 = vadd.f32 %v2967_v62, %v1774_v46  ;;  %v4180_v41 = vadd.f32 %v3031_v49, %v4065_v10  ;;  %v1782_v10 = vadd.f32 %v3960_v51, %v4009_v48 }
 0x16a   : > { %v2969_v63 = vpop.f32.mrf.mxu1  ;;  %v3033_v0 = vpop.f32.mrf.mxu0 }
 0x16b   : > { %v2970_v9 = vadd.f32 %v2969_v63, %v2968_v52  ;;  %v3034_v28 = vadd.f32 %v3033_v0, %v3032_v55 }
 0x16c   : > { %v2971_v4 = vpop.f32.mrf.mxu1  ;;  %v3035_v7 = vpop.f32.mrf.mxu0 }
 0x16d   : > { %v4184_v8 = vadd.f32 %v2970_v9, %v1777_v59  ;;  %v4187_v18 = vadd.f32 %v3034_v28, %v4073_v24  ;;  %v1785_v24 = vadd.f32 %v3968_v61, %v4009_v48 }
 0x16e   : > { %v2972_v1 = vpop.f32.mrf.mxu1  ;;  %v3036_v14 = vpop.f32.mrf.mxu0 }
 0x16f   : > { %v2973_v22 = vadd.f32 %v2972_v1, %v2971_v4  ;;  %v3037_v16 = vadd.f32 %v3036_v14, %v3035_v7 }
 0x170   : > { %v2974_v17 = vpop.f32.mrf.mxu1  ;;  %v3038_v21 = vpop.f32.mrf.mxu0 }
 0x171   : > { %v4191_v23 = vadd.f32 %v2973_v22, %v1782_v10  ;;  %v4194_v50 = vadd.f32 %v3037_v16, %v4081_v12  ;;  %v1790_v12 = vadd.f32 %v3972_v3, %v4009_v48 }
 0x172   : > { %v2975_v44 = vpop.f32.mrf.mxu1  ;;  %v3039_v2 = vpop.f32.mrf.mxu0 }
 0x173   : > { %v2976_v33 = vadd.f32 %v2975_v44, %v2974_v17  ;;  %v3040_v31 = vadd.f32 %v3039_v2, %v3038_v21 }
 0x174   : > { %v2977_v32 = vpop.f32.mrf.mxu1  ;;  %v3041_v37 = vpop.f32.mrf.mxu0 }
 0x175   : > { %v4198_v39 = vadd.f32 %v2976_v33, %v1785_v24  ;;  %v4201_v51 = vadd.f32 %v3040_v31, %v4089_v53  ;;  %v1793_v53 = vadd.f32 %v3980_v13, %v4009_v48 }
 0x176   : > { %v2978_v43 = vpop.f32.mrf.mxu1  ;;  %v3042_v54 = vpop.f32.mrf.mxu0 }
 0x177   : > { %v2979_v46 = vadd.f32 %v2978_v43, %v2977_v32  ;;  %v3043_v62 = vadd.f32 %v3042_v54, %v3041_v37 }
 0x178   : > { %v2980_v49 = vpop.f32.mrf.mxu1  ;;  %v3044_v52 = vpop.f32.mrf.mxu0 }
 0x179   : > { %v4205_v55 = vadd.f32 %v2979_v46, %v1790_v12  ;;  %v4208_v61 = vadd.f32 %v3043_v62, %v4097_v5  ;;  %v1798_v5 = vadd.f32 %v3984_v19, %v4009_v48 }
 0x17a   : > { %v2981_v63 = vpop.f32.mrf.mxu1  ;;  %v3045_v0 = vpop.f32.mrf.mxu0 }
 0x17b   : > { %v2982_v59 = vadd.f32 %v2981_v63, %v2980_v49  ;;  %v3046_v9 = vadd.f32 %v3045_v0, %v3044_v52 }
 0x17c   : > { %v2983_v28 = vpop.f32.mrf.mxu1  ;;  %v3047_v4 = vpop.f32.mrf.mxu0 }
 0x17d   : > { %v4212_v7 = vadd.f32 %v2982_v59, %v1793_v53  ;;  %v4215_v3 = vadd.f32 %v3046_v9, %v4105_v34  ;;  %v1801_v34 = vadd.f32 %v3992_v29, %v4009_v48 }
 0x17e   : > { %v2984_v1 = vpop.f32.mrf.mxu1  ;;  %v3048_v14 = vpop.f32.mrf.mxu0 }
 0x17f   : > { %v2985_v10 = vadd.f32 %v2984_v1, %v2983_v28  ;;  %v3049_v22 = vadd.f32 %v3048_v14, %v3047_v4 }
 0x180   : > { %v2986_v16 = vpop.f32.mrf.mxu1  ;;  %v3050_v17 = vpop.f32.mrf.mxu0 }
 0x181   : > { %v4219_v21 = vadd.f32 %v2985_v10, %v1798_v5  ;;  %v4222_v13 = vadd.f32 %v3049_v22, %v4113_v36  ;;  %v1806_v36 = vadd.f32 %v3996_v35, %v4009_v48 }
 0x182   : > { %v2987_v44 = vpop.f32.mrf.mxu1  ;;  %v3051_v2 = vpop.f32.mrf.mxu0 }
 0x183   : > { %v2988_v24 = vadd.f32 %v2987_v44, %v2986_v16  ;;  %v3052_v33 = vadd.f32 %v3051_v2, %v3050_v17 }
 0x184   : > { %v2989_v31 = vpop.f32.mrf.mxu1  ;;  %v3053_v32 = vpop.f32.mrf.mxu0 }
 0x185   : > { %v4226_v37 = vadd.f32 %v2988_v24, %v1801_v34  ;;  %v4229_v19 = vadd.f32 %v3052_v33, %v4119_v38  ;;  %v1809_v38 = vadd.f32 %v4004_v45, %v4009_v48 }
 0x186   : > { %v2990_v43 = vpop.f32.mrf.mxu1  ;;  %v3054_v54 = vpop.f32.mrf.mxu0 }
 0x187   : > { %v2991_v12 = vadd.f32 %v2990_v43, %v2989_v31  ;;  %v3055_v46 = vadd.f32 %v3054_v54, %v3053_v32 }
 0x188   : > { %v2992_v62 = vpop.f32.mrf.mxu1  ;;  %v3056_v49 = vpop.f32.mrf.mxu0 }
 0x189   : > { %v4233_v52 = vadd.f32 %v2991_v12, %v1806_v36  ;;  %v4236_v29 = vadd.f32 %v3055_v46, %v4125_v56 }
 0x18a   : > { %v2993_v63 = vpop.f32.mrf.mxu1  ;;  %v3057_v0 = vpop.f32.mrf.mxu0 }
 0x18b   : > { %v2994_v53 = vadd.f32 %v2993_v63, %v2992_v62  ;;  %v3058_v59 = vadd.f32 %v3057_v0, %v3056_v49 }
 0x18c   : > { %v3059_v9 = vpop.f32.mrf.mxu0  ;;  %v4240_v28 = vpop.f32.mrf.mxu1 }
 0x18d   : > { %v4242_v35 = vadd.f32 %v2994_v53, %v1809_v38  ;;  %v4245_v4 = vadd.f32 %v3058_v59, %v4131_v60 }
 0x18e   : > { %v3060_v1 = vpop.f32.mrf.mxu0  ;;  %v4247_v14 = vpop.f32.mrf.mxu1 }
 0x18f   : > { %v3061_v56 = vadd.f32 %v3060_v1, %v3059_v9 }
 0x190   : > { %v3062_v5 = vpop.f32.mrf.mxu0  ;;  %v4249_v10 = vpop.f32.mrf.mxu1 }
 0x191   : > { %v4252_v22 = vadd.f32 %v3061_v56, %v4135_v30 }
 0x192   : > { %v3063_v45 = vpop.f32.mrf.mxu0  ;;  %v4254_v48 = vpop.f32.mrf.mxu1 }
 0x193   : > { %v3064_v16 = vadd.f32 %v3063_v45, %v3062_v5 }
 0x194   : > { %v3065_v17 = vpop.f32.mrf.mxu0  ;;  %v4256_v44 = vpop.f32.mrf.mxu1 }
 0x195   : > { %v4259_v60 = vadd.f32 %v3064_v16, %v4142_v42 }
 0x196   : > { %v3066_v2 = vpop.f32.mrf.mxu0  ;;  %v4261_v34 = vpop.f32.mrf.mxu1 }
 0x197   : > { %4478 = vst [vmem:[#allocation2_spill] sm:$0xff] %v4259_v60  ;;  %v3067_v24 = vadd.f32 %v3066_v2, %v3065_v17 }
 0x198   : > { %v3068_v33 = vpop.f32.mrf.mxu0  ;;  %v4263_v31 = vpop.f32.mrf.mxu1 }
 0x199   : > { %v4266_v30 = vadd.f32 %v3067_v24, %v4149_v58 }
 0x19a   : > { %v3069_v32 = vpop.f32.mrf.mxu0  ;;  %v4268_v43 = vpop.f32.mrf.mxu1 }
 0x19b   : > { %v3070_v54 = vadd.f32 %v3069_v32, %v3068_v33 }
 0x19c   : > { %v3071_v36 = vpop.f32.mrf.mxu0  ;;  %v4270_v12 = vpop.f32.mrf.mxu1 }
 0x19d   : > { %v4273_v42 = vadd.f32 %v3070_v54, %v4156_v11 }
 0x19e   : > { %v3072_v46 = vpop.f32.mrf.mxu0  ;;  %v4275_v62 = vpop.f32.mrf.mxu1 }
 0x19f   : > { %v3073_v49 = vadd.f32 %v3072_v46, %v3071_v36 }
 0x1a0   : > { %v3074_v63 = vpop.f32.mrf.mxu0  ;;  %v4277_v0 = vpop.f32.mrf.mxu1 }
 0x1a1   : > { %v4280_v58 = vadd.f32 %v3073_v49, %v4163_v25 }
 0x1a2   : > { %v3075_v38 = vpop.f32.mrf.mxu0  ;;  %v4282_v53 = vpop.f32.mrf.mxu1 }
 0x1a3   : > { %4479 = vst [vmem:[#allocation3_spill] sm:$0xff] %v4280_v58  ;;  %v3076_v59 = vadd.f32 %v3075_v38, %v3074_v63 }
 0x1a4   : > { %v3077_v9 = vpop.f32.mrf.mxu0  ;;  %v4284_v1 = vpop.f32.mrf.mxu1 }
 0x1a5   : > { %v4287_v11 = vadd.f32 %v3076_v59, %v4170_v40 }
 0x1a6   : > { %v3078_v56 = vpop.f32.mrf.mxu0  ;;  %v4289_v5 = vpop.f32.mrf.mxu1 }
 0x1a7   : > { %4480 = vst [vmem:[#allocation4_spill] sm:$0xff] %v4287_v11  ;;  %v3079_v45 = vadd.f32 %v3078_v56, %v3077_v9 }
 0x1a8   : > { %v3080_v16 = vpop.f32.mrf.mxu0  ;;  %v4291_v17 = vpop.f32.mrf.mxu1 }
 0x1a9   : > { %v4294_v25 = vadd.f32 %v3079_v45, %v4177_v6 }
 0x1aa   : > { %v3081_v2 = vpop.f32.mrf.mxu0  ;;  %v4296_v24 = vpop.f32.mrf.mxu1 }
 0x1ab   : > { %4481 = vst [vmem:[#allocation5_spill] sm:$0xff] %v4294_v25  ;;  %v3082_v33 = vadd.f32 %v3081_v2, %v3080_v16 }
 0x1ac   : > { %v3083_v32 = vpop.f32.mrf.mxu0  ;;  %v4298_v54 = vpop.f32.mrf.mxu1 }
 0x1ad   : > { %v4301_v40 = vadd.f32 %v3082_v33, %v4184_v8 }
 0x1ae   : > { %v3084_v36 = vpop.f32.mrf.mxu0  ;;  %v4303_v46 = vpop.f32.mrf.mxu1 }
 0x1af   : > { %4482 = vst [vmem:[#allocation6_spill] sm:$0xff] %v4301_v40  ;;  %v3085_v49 = vadd.f32 %v3084_v36, %v3083_v32 }
 0x1b0   : > { %v3086_v63 = vpop.f32.mrf.mxu0  ;;  %v4305_v38 = vpop.f32.mrf.mxu1 }
 0x1b1   : > { %v4308_v6 = vadd.f32 %v3085_v49, %v4191_v23 }
 0x1b2   : > { %v3087_v59 = vpop.f32.mrf.mxu0  ;;  %v4310_v9 = vpop.f32.mrf.mxu1 }
 0x1b3   : > { %4483 = vst [vmem:[#allocation7_spill] sm:$0xff] %v4308_v6  ;;  %v3088_v56 = vadd.f32 %v3087_v59, %v3086_v63 }
 0x1b4   : > { %v3089_v45 = vpop.f32.mrf.mxu0  ;;  %v4312_v16 = vpop.f32.mrf.mxu1 }
 0x1b5   : > { %v4315_v8 = vadd.f32 %v3088_v56, %v4198_v39 }
 0x1b6   : > { %v3090_v2 = vpop.f32.mrf.mxu0  ;;  %v4317_v33 = vpop.f32.mrf.mxu1 }
 0x1b7   : > { %4484 = vst [vmem:[#allocation8_spill] sm:$0xff] %v4315_v8  ;;  %v3091_v32 = vadd.f32 %v3090_v2, %v3089_v45 }
 0x1b8   : > { %v3092_v36 = vpop.f32.mrf.mxu0  ;;  %v4319_v11 = vpop.f32.mrf.mxu1 }
 0x1b9   : > { %v4322_v23 = vadd.f32 %v3091_v32, %v4205_v55 }
 0x1ba   : > { %v3093_v49 = vpop.f32.mrf.mxu0  ;;  %v4324_v6 = vpop.f32.mrf.mxu1 }
 0x1bb   : > { %4485 = vst [vmem:[#allocation9_spill] sm:$0xff] %v4322_v23  ;;  %v3094_v63 = vadd.f32 %v3093_v49, %v3092_v36 }
 0x1bc   : > { %v3095_v59 = vpop.f32.mrf.mxu0  ;;  %v4326_v40 = vpop.f32.mrf.mxu1 }
 0x1bd   : > { %v4329_v39 = vadd.f32 %v3094_v63, %v4212_v7 }
 0x1be   : > { %v3096_v56 = vpop.f32.mrf.mxu0  ;;  %v4331_v8 = vpop.f32.mrf.mxu1 }
 0x1bf   : > { %4486 = vst [vmem:[#allocation10_spill] sm:$0xff] %v4329_v39  ;;  %v3097_v45 = vadd.f32 %v3096_v56, %v3095_v59  ;;  %v3131_v59 = vadd.f32 %v4261_v34, %v4256_v44 }
 0x1c0   : > { %v3098_v2 = vpop.f32.mrf.mxu0  ;;  %v4333_v58 = vpop.f32.mrf.mxu1 }
 0x1c1   : > { %v4336_v55 = vadd.f32 %v3097_v45, %v4219_v21  ;;  %v3125_v45 = vadd.f32 %v4247_v14, %v4240_v28  ;;  %v2177_v44 = vadd.f32 %v3131_v59, %v4152_v47  ;;  %v3128_v28 = vadd.f32 %v4254_v48, %v4249_v10 }
 0x1c2   : > { %v3099_v32 = vpop.f32.mrf.mxu0  ;;  %v4338_v23 = vpop.f32.mrf.mxu1 }
 0x1c3   : > { %v3100_v36 = vadd.f32 %v3099_v32, %v3098_v2  ;;  %v2172_v48 = vadd.f32 %v3128_v28, %v4145_v27 }
 0x1c4   : > { %v3101_v49 = vpop.f32.mrf.mxu0  ;;  %v4340_v25 = vpop.f32.mrf.mxu1 }
 0x1c5   : > { %v4343_v7 = vadd.f32 %v3100_v36, %v4226_v37  ;;  %v3134_v36 = vadd.f32 %v4268_v43, %v4263_v31 }
 0x1c6   : > { %v3102_v63 = vpop.f32.mrf.mxu0  ;;  %v4345_v39 = vpop.f32.mrf.mxu1 }
 0x1c7   : > { %4487 = vst [vmem:[#allocation11_spill] sm:$0xff] %v4343_v7  ;;  %v3103_v56 = vadd.f32 %v3102_v63, %v3101_v49  ;;  %v3143_v49 = vadd.f32 %v4289_v5, %v4284_v1  ;;  %v2180_v59 = vadd.f32 %v3134_v36, %v4159_v57  ;;  %v3146_v1 = vadd.f32 %v4296_v24, %v4291_v17 }
 0x1c8   : > { %v3104_v60 = vpop.f32.mrf.mxu0  ;;  %v4349_v21 = vpop.f32.mrf.mxu1  ;;  %v3155_v17 = vadd.f32 %v4317_v33, %v4312_v16  ;;  %v3158_v16 = vadd.f32 %v4324_v6, %v4319_v11  ;;  %v3167_v11 = vadd.f32 %v4345_v39, %v4340_v25 }
 0x1c9   : > { %v4354_v2 = vadd.f32 %v3103_v56, %v4233_v52  ;;  %v2193_v5 = vadd.f32 %v3143_v49, %v4180_v41  ;;  %v2196_v41 = vadd.f32 %v3146_v1, %v4187_v18 }
 0x1ca   : > { %v3105_v32 = vpop.f32.mrf.mxu0  ;;  %v4357_v37 = vpop.f32.mrf.mxu1  ;;  %v2209_v18 = vadd.f32 %v3155_v17, %v4208_v61  ;;  %v2212_v61 = vadd.f32 %v3158_v16, %v4215_v3  ;;  %v2225_v3 = vadd.f32 %v3167_v11, %v4236_v29  ;;  %v4488_v16 = vld [vmem:[#allocation2_spill] sm:$0xff]  ;;  %v4490_v11 = vld [vmem:[#allocation3_spill] sm:$0xff] }
 0x1cb   : > { %v3106_v7 = vadd.f32 %v3105_v32, %v3104_v60  ;;  %v2169_v60 = vadd.f32 %v3125_v45, %v4138_v20  ;;  %v3170_v25 = vadd.f32 %v4357_v37, %v4349_v21 }
 0x1cc   : > { %v4362_v34 = vpop.f32.mrf.mxu1  ;;  %v3261_v52 = vpop.f32.mrf.mxu0 }
 0x1cd   : > { %v4372_v14 = vadd.f32 %v3106_v7, %v4242_v35  ;;  %v2338_v31 = vadd.f32 %v3261_v52, %v2177_v44  ;;  %v3137_v35 = vadd.f32 %v4275_v62, %v4270_v12  ;;  %v3140_v12 = vadd.f32 %v4282_v53, %v4277_v0 }
 0x1ce   : > { %v4375_v47 = vpop.f32.mrf.mxu1  ;;  %v2329_v43 = vpop.f32.mrf.mxu0  ;;  %v3149_v0 = vadd.f32 %v4303_v46, %v4298_v54  ;;  %v3152_v54 = vadd.f32 %v4310_v9, %v4305_v38  ;;  %v3161_v38 = vadd.f32 %v4331_v8, %v4326_v40  ;;  %v3164_v40 = vadd.f32 %v4338_v23, %v4333_v58 }
 0x1cf   : > { %2458 = vst [vmem:[%s4367_s21 + $0x10] sm:$0xff] %v2338_v31  ;;  %v2330_v63 = vadd.f32 %v2329_v43, %v2169_v60  ;;  %v2185_v27 = vadd.f32 %v3137_v35, %v4166_v15  ;;  %v2188_v15 = vadd.f32 %v3140_v12, %v4173_v26  ;;  %v2228_v37 = vadd.f32 %v3170_v25, %v4245_v4 }
 0x1d0   : > { %v4381_v56 = vpop.f32.mrf.mxu1  ;;  %v3262_v10 = vpop.f32.mrf.mxu0  ;;  %v2201_v26 = vadd.f32 %v3149_v0, %v4194_v50  ;;  %v2204_v50 = vadd.f32 %v3152_v54, %v4201_v51  ;;  %v2217_v51 = vadd.f32 %v3161_v38, %v4222_v13  ;;  %v2220_v23 = vadd.f32 %v3164_v40, %v4229_v19  ;;  %v4491_v38 = vld [vmem:[#allocation6_spill] sm:$0xff] }
 0x1d1   : > { %2456 = vst [vmem:[%s4367_s21] sm:$0xff] %v2330_v63  ;;  %v2341_v20 = vadd.f32 %v3262_v10, %v2180_v59 }
 0x1d2   : > { %v4387_v7 = vpop.f32.mrf.mxu1  ;;  %v2332_v45 = vpop.f32.mrf.mxu0 }
 0x1d3   : > { %2459 = vst [vmem:[%s4367_s21 + $0x18] sm:$0xff] %v2341_v20  ;;  %v2333_v57 = vadd.f32 %v2332_v45, %v2172_v48 }
 0x1d4   : > { %v3177_v32 = vpop.f32.mrf.mxu1  ;;  %v3265_v36 = vpop.f32.mrf.mxu0 }
 0x1d5   : > { %2457 = vst [vmem:[%s4367_s21 + $0x8] sm:$0xff] %v2333_v57  ;;  %v2354_v62 = vadd.f32 %v3265_v36, %v2193_v5 }
 0x1d6   : > { %v3178_v44 = vpop.f32.mrf.mxu1  ;;  %v2345_v52 = vpop.f32.mrf.mxu0 }
 0x1d7   : > { %2462 = vst [vmem:[%s4367_s21 + $0x30] sm:$0xff] %v2354_v62  ;;  %v2346_v24 = vadd.f32 %v2345_v52, %v2185_v27  ;;  %v3179_v12 = vadd.f32 %v3178_v44, %v3177_v32  ;;  %v3173_v27 = vadd.f32 %v4375_v47, %v4362_v34 }
 0x1d8   : > { %v3180_v28 = vpop.f32.mrf.mxu1  ;;  %v3266_v31 = vpop.f32.mrf.mxu0 }
 0x1d9   : > { %2460 = vst [vmem:[%s4367_s21 + $0x20] sm:$0xff] %v2346_v24  ;;  %v2357_v53 = vadd.f32 %v3266_v31, %v2196_v41  ;;  %v2241_v44 = vadd.f32 %v3179_v12, %v4266_v30  ;;  %v3176_v41 = vadd.f32 %v4387_v7, %v4381_v56  ;;  %v2233_v47 = vadd.f32 %v3173_v27, %v4252_v22 }
 0x1da   : > { %v3181_v60 = vpop.f32.mrf.mxu1  ;;  %v2348_v43 = vpop.f32.mrf.mxu0 }
 0x1db   : > { %2463 = vst [vmem:[%s4367_s21 + $0x38] sm:$0xff] %v2357_v53  ;;  %v2349_v33 = vadd.f32 %v2348_v43, %v2188_v15  ;;  %v3182_v17 = vadd.f32 %v3181_v60, %v3180_v28  ;;  %v2236_v56 = vadd.f32 %v3176_v41, %v4488_v16 }
 0x1dc   : > { %v3183_v49 = vpop.f32.mrf.mxu1  ;;  %v3269_v63 = vpop.f32.mrf.mxu0 }
 0x1dd   : > { %2461 = vst [vmem:[%s4367_s21 + $0x28] sm:$0xff] %v2349_v33  ;;  %v2370_v46 = vadd.f32 %v3269_v63, %v2209_v18  ;;  %v2244_v53 = vadd.f32 %v3182_v17, %v4273_v42  ;;  %v4489_v63 = vld [vmem:[#allocation5_spill] sm:$0xff] }
 0x1de   : > { %v3184_v59 = vpop.f32.mrf.mxu1  ;;  %v2361_v10 = vpop.f32.mrf.mxu0 }
 0x1df   : > { %2466 = vst [vmem:[%s4367_s21 + $0x50] sm:$0xff] %v2370_v46  ;;  %v2362_v6 = vadd.f32 %v2361_v10, %v2201_v26  ;;  %v3185_v60 = vadd.f32 %v3184_v59, %v3183_v49 }
 0x1e0   : > { %v3186_v35 = vpop.f32.mrf.mxu1  ;;  %v3270_v20 = vpop.f32.mrf.mxu0 }
 0x1e1   : > { %2464 = vst [vmem:[%s4367_s21 + $0x40] sm:$0xff] %v2362_v6  ;;  %v2373_v9 = vadd.f32 %v3270_v20, %v2212_v61  ;;  %v2249_v49 = vadd.f32 %v3185_v60, %v4490_v11 }
 0x1e2   : > { %v3187_v48 = vpop.f32.mrf.mxu1  ;;  %v2364_v45 = vpop.f32.mrf.mxu0 }
 0x1e3   : > { %2467 = vst [vmem:[%s4367_s21 + $0x58] sm:$0xff] %v2373_v9  ;;  %v2365_v39 = vadd.f32 %v2364_v45, %v2204_v50  ;;  %v3188_v42 = vadd.f32 %v3187_v48, %v3186_v35 }
 0x1e4   : > { %v3189_v1 = vpop.f32.mrf.mxu1  ;;  %v3273_v57 = vpop.f32.mrf.mxu0 }
 0x1e5   : > { %2465 = vst [vmem:[%s4367_s21 + $0x48] sm:$0xff] %v2365_v39  ;;  %v2386_v8 = vadd.f32 %v3273_v57, %v2225_v3  ;;  %v4492_v3 = vld [vmem:[#allocation4_spill] sm:$0xff] }
 0x1e6   : > { %v3190_v5 = vpop.f32.mrf.mxu1  ;;  %v2377_v36 = vpop.f32.mrf.mxu0  ;;  %v2252_v35 = vadd.f32 %v3188_v42, %v4492_v3 }
 0x1e7   : > { %2470 = vst [vmem:[%s4367_s21 + $0x70] sm:$0xff] %v2386_v8  ;;  %v2378_v21 = vadd.f32 %v2377_v36, %v2217_v51  ;;  %v3191_v0 = vadd.f32 %v3190_v5, %v3189_v1  ;;  %v4493_v8 = vld [vmem:[#allocation9_spill] sm:$0xff] }
 0x1e8   : > { %v3192_v29 = vpop.f32.mrf.mxu1  ;;  %v3274_v62 = vpop.f32.mrf.mxu0 }
 0x1e9   : > { %2468 = vst [vmem:[%s4367_s21 + $0x60] sm:$0xff] %v2378_v21  ;;  %v2389_v58 = vadd.f32 %v3274_v62, %v2228_v37  ;;  %v2257_v54 = vadd.f32 %v3191_v0, %v4489_v63  ;;  %v4494_v37 = vld [vmem:[#allocation7_spill] sm:$0xff] }
 0x1ea   : > { %v3193_v13 = vpop.f32.mrf.mxu1  ;;  %v2380_v52 = vpop.f32.mrf.mxu0 }
 0x1eb   : > { %2471 = vst [vmem:[%s4367_s21 + $0x78] sm:$0xff] %v2389_v58  ;;  %v2381_v32 = vadd.f32 %v2380_v52, %v2220_v23  ;;  %v3194_v22 = vadd.f32 %v3193_v13, %v3192_v29  ;;  %v4495_v23 = vld [vmem:[#allocation10_spill] sm:$0xff] }
 0x1ec   : > { %v3195_v4 = vpop.f32.mrf.mxu1  ;;  %v3277_v24 = vpop.f32.mrf.mxu0 }
 0x1ed   : > { %2469 = vst [vmem:[%s4367_s21 + $0x68] sm:$0xff] %v2381_v32  ;;  %v2402_v34 = vadd.f32 %v3277_v24, %v2241_v44  ;;  %v2260_v9 = vadd.f32 %v3194_v22, %v4491_v38 }
 0x1ee   : > { %v3196_v19 = vpop.f32.mrf.mxu1  ;;  %v2393_v31 = vpop.f32.mrf.mxu0 }
 0x1ef   : > { %2474 = vst [vmem:[%s4367_s21 + $0x90] sm:$0xff] %v2402_v34  ;;  %v2394_v28 = vadd.f32 %v2393_v31, %v2233_v47  ;;  %v3197_v25 = vadd.f32 %v3196_v19, %v3195_v4  ;;  %v4496_v4 = vld [vmem:[#allocation8_spill] sm:$0xff] }
 0x1f0   : > { %v3198_v30 = vpop.f32.mrf.mxu1  ;;  %v3278_v15 = vpop.f32.mrf.mxu0 }
 0x1f1   : > { %2472 = vst [vmem:[%s4367_s21 + $0x80] sm:$0xff] %v2394_v28  ;;  %v2405_v43 = vadd.f32 %v3278_v15, %v2244_v53  ;;  %v2265_v29 = vadd.f32 %v3197_v25, %v4494_v37 }
 0x1f2   : > { %v3199_v7 = vpop.f32.mrf.mxu1  ;;  %v2396_v33 = vpop.f32.mrf.mxu0 }
 0x1f3   : > { %2475 = vst [vmem:[%s4367_s21 + $0x98] sm:$0xff] %v2405_v43  ;;  %v2397_v18 = vadd.f32 %v2396_v33, %v2236_v56  ;;  %v3200_v12 = vadd.f32 %v3199_v7, %v3198_v30  ;;  %v4497_v7 = vld [vmem:[#allocation11_spill] sm:$0xff] }
 0x1f4   : > { %v3201_v46 = vpop.f32.mrf.mxu1  ;;  %v3281_v26 = vpop.f32.mrf.mxu0 }
 0x1f5   : > { %2473 = vst [vmem:[%s4367_s21 + $0x88] sm:$0xff] %v2397_v18  ;;  %v2418_v10 = vadd.f32 %v3281_v26, %v2257_v54  ;;  %v2268_v24 = vadd.f32 %v3200_v12, %v4496_v4 }
 0x1f6   : > { %v3202_v59 = vpop.f32.mrf.mxu1  ;;  %v2409_v6 = vpop.f32.mrf.mxu0 }
 0x1f7   : > { %2478 = vst [vmem:[%s4367_s21 + $0xb0] sm:$0xff] %v2418_v10  ;;  %v3203_v61 = vadd.f32 %v3202_v59, %v3201_v46  ;;  %v2410_v20 = vadd.f32 %v2409_v6, %v2249_v49 }
 0x1f8   : > { %v3204_v50 = vpop.f32.mrf.mxu1  ;;  %v3282_v45 = vpop.f32.mrf.mxu0 }
 0x1f9   : > { %2476 = vst [vmem:[%s4367_s21 + $0xa0] sm:$0xff] %v2410_v20  ;;  %v2421_v39 = vadd.f32 %v3282_v45, %v2260_v9  ;;  %v2273_v51 = vadd.f32 %v3203_v61, %v4493_v8 }
 0x1fa   : > { %v3205_v48 = vpop.f32.mrf.mxu1  ;;  %v2412_v1 = vpop.f32.mrf.mxu0 }
 0x1fb   : > { %2479 = vst [vmem:[%s4367_s21 + $0xb8] sm:$0xff] %v2421_v39  ;;  %v3206_v57 = vadd.f32 %v3205_v48, %v3204_v50  ;;  %v2413_v40 = vadd.f32 %v2412_v1, %v2252_v35 }
 0x1fc   : > { %v3207_v5 = vpop.f32.mrf.mxu1  ;;  %v3285_v36 = vpop.f32.mrf.mxu0 }
 0x1fd   : > { %2477 = vst [vmem:[%s4367_s21 + $0xa8] sm:$0xff] %v2413_v40  ;;  %v2434_v21 = vadd.f32 %v3285_v36, %v2273_v51  ;;  %v2276_v13 = vadd.f32 %v3206_v57, %v4495_v23 }
 0x1fe   : > { %v3208_v62 = vpop.f32.mrf.mxu1  ;;  %v2425_v27 = vpop.f32.mrf.mxu0 }
 0x1ff   : > { %2482 = vst [vmem:[%s4367_s21 + $0xd0] sm:$0xff] %v2434_v21  ;;  %v2426_v58 = vadd.f32 %v2425_v27, %v2265_v29  ;;  %v3209_v32 = vadd.f32 %v3208_v62, %v3207_v5 }
 0x200   : > { %v3210_v52 = vpop.f32.mrf.mxu1  ;;  %v3286_v17 = vpop.f32.mrf.mxu0 }
 0x201   : > { %2480 = vst [vmem:[%s4367_s21 + $0xc0] sm:$0xff] %v2426_v58  ;;  %v2437_v44 = vadd.f32 %v3286_v17, %v2276_v13  ;;  %v2281_v28 = vadd.f32 %v3209_v32, %v4336_v55 }
 0x202   : > { %v3211_v41 = vpop.f32.mrf.mxu1  ;;  %v2428_v34 = vpop.f32.mrf.mxu0 }
 0x203   : > { %2483 = vst [vmem:[%s4367_s21 + $0xd8] sm:$0xff] %v2437_v44  ;;  %v2429_v47 = vadd.f32 %v2428_v34, %v2268_v24  ;;  %v3212_v0 = vadd.f32 %v3211_v41, %v3210_v52 }
 0x204   : > { %v3213_v19 = vpop.f32.mrf.mxu1  ;;  %v3289_v31 = vpop.f32.mrf.mxu0 }
 0x205   : > { %2481 = vst [vmem:[%s4367_s21 + $0xc8] sm:$0xff] %v2429_v47  ;;  %v2284_v33 = vadd.f32 %v3212_v0, %v4497_v7 }
 0x206   : > { %v3214_v53 = vpop.f32.mrf.mxu1  ;;  %v2441_v30 = vpop.f32.mrf.mxu0 }
 0x207   : > { %v3215_v15 = vadd.f32 %v3214_v53, %v3213_v19  ;;  %v2442_v60 = vadd.f32 %v2441_v30, %v2281_v28 }
 0x208   : > { %v3216_v43 = vpop.f32.mrf.mxu1  ;;  %v3290_v16 = vpop.f32.mrf.mxu0 }
 0x209   : > { %v2289_v56 = vadd.f32 %v3215_v15, %v4354_v2  ;;  %2484 = vst [vmem:[%s4367_s21 + $0xe0] sm:$0xff] %v2442_v60 }
 0x20a   : > { %v3217_v22 = vpop.f32.mrf.mxu1  ;;  %v2444_v18 = vpop.f32.mrf.mxu0 }
 0x20b   : > { %v2450_v63 = vadd.f32 %v3289_v31, %v2289_v56  ;;  %v3218_v54 = vadd.f32 %v3217_v22, %v3216_v43  ;;  %v2445_v46 = vadd.f32 %v2444_v18, %v2284_v33 }
 0x20d   : > { %2486 = vst [vmem:[%s4367_s21 + $0xf0] sm:$0xff] %v2450_v63  ;;  %v2292_v55 = vadd.f32 %v3218_v54, %v4372_v14  ;;  %2485 = vst [vmem:[%s4367_s21 + $0xe8] sm:$0xff] %v2445_v46 }
 0x20f   : > { %v2453_v26 = vadd.f32 %v3290_v16, %v2292_v55 }
 0x211   : > { %2487 = vst [vmem:[%s4367_s21 + $0xf8] sm:$0xff] %v2453_v26 }
 0x212 PF: > { %s13_s12 = sadd.s32 1, %s3602_s12  }
 0x213   : > { %p10_p4 = scmp.ge.s32.totalorder %s13_s12, 4  }
 0x215   :  { %12 = sbr.rel (!%p10_p4) target bundleno = 1 (0x1), region = 62 }

</bundles_post_ra>
